<compile_context>
chip_gen: v7x
topology: tpu7x:2x2x1
jax: 0.10.0
libtpu: 0.0.40
codegen_flags: <defaults>
</compile_context>

<pallas_src>
import jax
import jax.numpy as jnp
from jax.experimental import pallas as pl
from jax.experimental.pallas import tpu as pltpu

_EPS = 1e-5  # torch.nn.BatchNorm2d default eps


# ----------------------------------------------------------------------------
# Fused kernel: one grid step processes B images end-to-end.
# ----------------------------------------------------------------------------
def _cnn_kernel(p1_ref, w1_ref, w2_ref, w3a_ref, w3b_ref, wfc1_ref, wfc2_ref,
                s1_ref, h1_ref, s2_ref, h2_ref, s3a_ref, h3a_ref,
                s3b_ref, h3b_ref, bfc1_ref, bfc2_ref,
                out_ref,
                a2_ref, a3_ref, a4_ref, t1_ref, t2_ref, t3_ref):
    f32 = jnp.float32
    bf16 = jnp.bfloat16
    B = out_ref.shape[1]

    def pool2x2(plane, t_ref):
        # plane: (B, H, W, C) f32 -> (B, H//2, W//2, C) f32 (2x2 max-pool).
        _, Hc, Wc, C = plane.shape
        r = plane.reshape(B, Hc // 2, 2, Wc, C)
        t_ref[...] = jnp.maximum(r[:, :, 0], r[:, :, 1])           # H-direction max
        even = t_ref[:, :, pl.ds(0, Wc // 2, stride=2), :]         # W-direction max
        odd = t_ref[:, :, pl.ds(1, Wc // 2, stride=2), :]
        return jnp.maximum(even, odd)

    def write_halo(halo_ref, plane):
        # plane: (B, H, W, C) f32 -> halo_ref (B, H+2, W+2, C) bf16, zero border,
        # written with a single full store (no masked per-column writes).
        _, Hc, Wc, C = plane.shape
        dt = halo_ref.dtype
        zcol = jnp.zeros((B, Hc, 1, C), dt)
        body = jnp.concatenate([zcol, plane.astype(dt), zcol], axis=2)
        zrow = jnp.zeros((B, 1, Wc + 2, C), dt)
        halo_ref[...] = jnp.concatenate([zrow, body, zrow], axis=1)

    def conv3x3(halo_ref, w_ref, Hc, Wc, Cin):
        # 9 shifted windows lane-concatenated into one [B*H*W, 9*Cin] patch tile,
        # then a single MXU matmul against the [9*Cin, Cout] weight.
        taps = [halo_ref[:, dy:dy + Hc, dx:dx + Wc, :]
                for dy in range(3) for dx in range(3)]
        patches = jnp.concatenate(taps, axis=-1).reshape(B * Hc * Wc, 9 * Cin)
        return jnp.dot(patches, w_ref[...], preferred_element_type=f32)

    # ---- conv1 (3->32, stride 2, pad 1; host-side im2col) + BN1 + ReLU ----
    acc1 = jnp.dot(p1_ref[...], w1_ref[...], preferred_element_type=f32)   # (B*1024, 32)
    acc1 = jnp.maximum(acc1 * s1_ref[...] + h1_ref[...], 0.0)
    # maxpool 32x32 -> 16x16, then fill conv2's zero-padded halo in one store.
    write_halo(a2_ref, pool2x2(acc1.reshape(B, 32, 32, 32), t1_ref))

    # ---- conv2 (32->64) + BN2 + ReLU ----
    acc2 = conv3x3(a2_ref, w2_ref, 16, 16, 32)                             # (B*256, 64)
    acc2 = jnp.maximum(acc2 * s2_ref[...] + h2_ref[...], 0.0)
    # maxpool 16x16 -> 8x8; this f32 plane is also the residual skip input.
    pool2 = pool2x2(acc2.reshape(B, 16, 16, 64), t2_ref)                   # (B, 8, 8, 64)
    write_halo(a3_ref, pool2)

    # ---- conv3a (64->64) + BN3a + ReLU ----
    acc3a = conv3x3(a3_ref, w3a_ref, 8, 8, 64)                             # (B*64, 64)
    acc3a = jnp.maximum(acc3a * s3a_ref[...] + h3a_ref[...], 0.0)
    write_halo(a4_ref, acc3a.reshape(B, 8, 8, 64))

    # ---- conv3b (64->64) + BN3b, + residual (pool2 output), ReLU ----
    acc3b = conv3x3(a4_ref, w3b_ref, 8, 8, 64)
    acc3b = acc3b * s3b_ref[...] + h3b_ref[...]
    act3 = jnp.maximum(acc3b.reshape(B, 8, 8, 64) + pool2, 0.0)            # (B, 8, 8, 64)

    # ---- maxpool 8x8 -> 4x4; AdaptiveAvgPool2d((4,4)) is identity at 64x64 input ----
    # TODO(synk): adaptive avg-pool only handled for the identity case (4x4 in -> 4x4 out).
    pooled = pool2x2(act3, t3_ref)                                         # (B, 4, 4, 64)

    # ---- flatten in (y, x, c) order (fc1 weight pre-permuted to match) ----
    feats = jnp.concatenate(
        [pooled[:, y, x, :] for y in range(4) for x in range(4)], axis=-1)  # (B, 1024)

    # ---- fc1 + ReLU (Dropout(0.5) is inference-mode identity) and fc2 ----
    hid = jnp.dot(feats.astype(bf16), wfc1_ref[...], preferred_element_type=f32)
    hid = jnp.maximum(hid + bfc1_ref[...], 0.0)                            # (B, 256)
    logits = jnp.dot(hid.astype(bf16), wfc2_ref[...],
                     preferred_element_type=f32) + bfc2_ref[...]           # (B, nc_pad)
    out_ref[0] = logits


# ----------------------------------------------------------------------------
# Host wrapper: weight/BN prep, conv1 im2col, single pallas_call.
# ----------------------------------------------------------------------------
def custom_cnn_forward(x_nchw, params, block_b=8):
    N, C, H, W = x_nchw.shape
    assert C == 3 and H == 64 and W == 64, "kernel specialized to 3x64x64 inputs"
    nc = params["fc2_w"].shape[1]
    nc_pad = 128 * pl.cdiv(nc, 128)        # lane-dense logits block

    # Images per grid step: amortize the per-step pipeline overhead, but keep
    # >=2 grid steps when possible so both v7x TensorCores stay busy.
    B = max(1, min(block_b, (N + 1) // 2))
    G = pl.cdiv(N, B)
    Np = G * B

    # conv1 im2col (stride 2, pad 1, k=3): rows (n, Y, X), cols (dy, dx, ci), K 27->32.
    # TODO(synk): conv1's im2col is still a host-side XLA gather; the kernel starts
    # from the [Np*1024, 32] patch matrix.
    x = jnp.transpose(x_nchw, (0, 2, 3, 1)).astype(jnp.float32)            # NCHW -> NHWC
    if Np > N:
        x = jnp.concatenate([x, jnp.zeros((Np - N, H, W, C), jnp.float32)], axis=0)
    xp = jnp.pad(x, ((0, 0), (1, 1), (1, 1), (0, 0)))
    cols = [xp[:, dy:dy + 63:2, dx:dx + 63:2, :]
            for dy in range(3) for dx in range(3)]
    patches = jnp.concatenate(cols, axis=-1).reshape(Np * 1024, 27)
    patches = jnp.pad(patches, ((0, 0), (0, 5))).astype(jnp.bfloat16)      # [Np*1024, 32]

    # Weights (bf16 for the MXU); conv kernels flattened to [9*Cin, Cout], tap-major.
    w1 = jnp.pad(params["conv1_w"].reshape(27, 32), ((0, 5), (0, 0))).astype(jnp.bfloat16)
    w2 = params["conv2_w"].reshape(9 * 32, 64).astype(jnp.bfloat16)
    w3a = params["conv3a_w"].reshape(9 * 64, 64).astype(jnp.bfloat16)
    w3b = params["conv3b_w"].reshape(9 * 64, 64).astype(jnp.bfloat16)
    # Fold PyTorch's NCHW flatten (c*16 + y*4 + x) into fc1 -> rows ordered (y, x, c).
    wfc1 = (params["fc1_w"].reshape(64, 4, 4, 256).transpose(1, 2, 0, 3)
            .reshape(1024, 256).astype(jnp.bfloat16))
    wfc2 = jnp.pad(params["fc2_w"], ((0, 0), (0, nc_pad - nc))).astype(jnp.bfloat16)
    bfc1 = params["fc1_b"].reshape(1, 256).astype(jnp.float32)
    bfc2 = jnp.pad(params["fc2_b"], (0, nc_pad - nc)).reshape(1, nc_pad).astype(jnp.float32)

    def fold(bn, bias):
        gamma, beta, mean, var = bn
        scale = gamma / jnp.sqrt(var + _EPS)
        shift = beta + (bias - mean) * scale
        return (scale.reshape(1, -1).astype(jnp.float32),
                shift.reshape(1, -1).astype(jnp.float32))

    s1, h1 = fold(params["bn1"], params["conv1_b"])
    s2, h2 = fold(params["bn2"], params["conv2_b"])
    s3a, h3a = fold(params["bn3a"], params["conv3a_b"])
    s3b, h3b = fold(params["bn3b"], params["conv3b_b"])

    def full(shape):
        zero = (0,) * len(shape)
        return pl.BlockSpec(shape, lambda n, _z=zero: _z)

    out = pl.pallas_call(
        _cnn_kernel,
        out_shape=jax.ShapeDtypeStruct((G, B, nc_pad), jnp.float32),
        grid=(G,),
        in_specs=[
            pl.BlockSpec((B * 1024, 32), lambda n: (n, 0)),   # conv1 patches (B images)
            full((32, 32)), full((288, 64)), full((576, 64)), full((576, 64)),
            full((1024, 256)), full((256, nc_pad)),
            full((1, 32)), full((1, 32)),                     # bn1 scale/shift
            full((1, 64)), full((1, 64)),                     # bn2
            full((1, 64)), full((1, 64)),                     # bn3a
            full((1, 64)), full((1, 64)),                     # bn3b
            full((1, 256)), full((1, nc_pad)),                # fc biases
        ],
        out_specs=pl.BlockSpec((1, B, nc_pad), lambda n: (n, 0, 0)),
        scratch_shapes=[
            pltpu.VMEM((B, 18, 18, 32), jnp.bfloat16),   # conv2 halo (pool1, zero border)
            pltpu.VMEM((B, 10, 10, 64), jnp.bfloat16),   # conv3a halo (pool2 = residual)
            pltpu.VMEM((B, 10, 10, 64), jnp.bfloat16),   # conv3b halo (conv3a output)
            pltpu.VMEM((B, 16, 32, 32), jnp.float32),    # H-maxed conv1 plane (pool scratch)
            pltpu.VMEM((B, 8, 16, 64), jnp.float32),     # H-maxed conv2 plane
            pltpu.VMEM((B, 4, 8, 64), jnp.float32),      # H-maxed relu3 plane
        ],
        compiler_params=pltpu.CompilerParams(
            dimension_semantics=("parallel",),
            vmem_limit_bytes=48 * 1024 * 1024),
    )(patches, w1, w2, w3a, w3b, wfc1, wfc2,
      s1, h1, s2, h2, s3a, h3a, s3b, h3b, bfc1, bfc2)
    return out.reshape(Np, nc_pad)[:N, :nc]


# ----------------------------------------------------------------------------
# Deterministic parameters (same conventions as the PyTorch module)
# ----------------------------------------------------------------------------
def init_params(key, num_classes=14):
    ks = jax.random.split(key, 6)

    def conv_w(k, cin, cout):
        return (jax.random.normal(k, (3, 3, cin, cout), jnp.float32)
                / jnp.sqrt(9.0 * cin))

    def bn_p(c, i):
        idx = jnp.arange(c, dtype=jnp.float32)
        return (1.0 + 0.1 * jnp.cos(idx + i),           # gamma
                0.05 * jnp.sin(idx - i),                # beta
                0.01 * idx,                             # running_mean
                1.0 + 0.1 * jnp.abs(jnp.sin(idx)))      # running_var

    def bias(c, s):
        return 0.02 * jnp.sin(jnp.arange(c, dtype=jnp.float32) + s)

    return {
        "conv1_w": conv_w(ks[0], 3, 32),   "conv1_b": bias(32, 0.0),  "bn1": bn_p(32, 0.0),
        "conv2_w": conv_w(ks[1], 32, 64),  "conv2_b": bias(64, 1.0),  "bn2": bn_p(64, 1.0),
        "conv3a_w": conv_w(ks[2], 64, 64), "conv3a_b": bias(64, 2.0), "bn3a": bn_p(64, 2.0),
        "conv3b_w": conv_w(ks[3], 64, 64), "conv3b_b": bias(64, 3.0), "bn3b": bn_p(64, 3.0),
        "fc1_w": jax.random.normal(ks[4], (64 * 4 * 4, 256), jnp.float32) / jnp.sqrt(1024.0),
        "fc1_b": bias(256, 4.0),
        "fc2_w": jax.random.normal(ks[5], (256, num_classes), jnp.float32) / jnp.sqrt(256.0),
        "fc2_b": bias(num_classes, 5.0),
    }


if __name__ == "__main__":
    key = jax.random.PRNGKey(0)
    # Input: batch=2, 3 channels, 64x64 spatial (NCHW, PyTorch convention).
    x = jax.random.normal(key, (2, 3, 64, 64), dtype=jnp.float32)
    params = init_params(jax.random.PRNGKey(42), num_classes=14)

    fwd = jax.jit(custom_cnn_forward)
    out = jax.block_until_ready(fwd(x, params))
    assert out.shape == (2, 14), out.shape
    assert bool(jnp.all(jnp.isfinite(out)))
    print("KERNEL_OK")
</pallas_src>

<mosaic_0001>
module attributes {stable_mosaic.version = 11 : i64} {
  func.func @_cnn_kernel(%arg0: i32, %arg1: memref<1024x32xbf16, #tpu.memory_space<vmem>>, %arg2: memref<32x32xbf16, #tpu.memory_space<vmem>>, %arg3: memref<288x64xbf16, #tpu.memory_space<vmem>>, %arg4: memref<576x64xbf16, #tpu.memory_space<vmem>>, %arg5: memref<576x64xbf16, #tpu.memory_space<vmem>>, %arg6: memref<1024x256xbf16, #tpu.memory_space<vmem>>, %arg7: memref<256x128xbf16, #tpu.memory_space<vmem>>, %arg8: memref<1x32xf32, #tpu.memory_space<vmem>>, %arg9: memref<1x32xf32, #tpu.memory_space<vmem>>, %arg10: memref<1x64xf32, #tpu.memory_space<vmem>>, %arg11: memref<1x64xf32, #tpu.memory_space<vmem>>, %arg12: memref<1x64xf32, #tpu.memory_space<vmem>>, %arg13: memref<1x64xf32, #tpu.memory_space<vmem>>, %arg14: memref<1x64xf32, #tpu.memory_space<vmem>>, %arg15: memref<1x64xf32, #tpu.memory_space<vmem>>, %arg16: memref<1x256xf32, #tpu.memory_space<vmem>>, %arg17: memref<1x128xf32, #tpu.memory_space<vmem>>, %arg18: memref<1x1x128xf32, #tpu.memory_space<vmem>>, %arg19: memref<1x18x18x32xbf16, #tpu.memory_space<vmem>>, %arg20: memref<1x10x10x64xbf16, #tpu.memory_space<vmem>>, %arg21: memref<1x10x10x64xbf16, #tpu.memory_space<vmem>>, %arg22: memref<1x16x32x32xf32, #tpu.memory_space<vmem>>, %arg23: memref<1x8x16x64xf32, #tpu.memory_space<vmem>>, %arg24: memref<1x4x8x64xf32, #tpu.memory_space<vmem>>) attributes {dimension_semantics = [#tpu.dimension_semantics<parallel>], iteration_bounds = array<i64: 2>, scalar_prefetch = 0 : i64, scratch_operands = 6 : i64, tpu.core_type = #tpu.core_type<tc>, window_params = [{transform_indices = @transform_0, window_bounds = array<i64: 1024, 32>}, {pipeline_mode = #tpu.pipeline_mode<synchronous>, transform_indices = @transform_1, window_bounds = array<i64: 32, 32>}, {pipeline_mode = #tpu.pipeline_mode<synchronous>, transform_indices = @transform_2, window_bounds = array<i64: 288, 64>}, {pipeline_mode = #tpu.pipeline_mode<synchronous>, transform_indices = @transform_3, window_bounds = array<i64: 576, 64>}, {pipeline_mode = #tpu.pipeline_mode<synchronous>, transform_indices = @transform_4, window_bounds = array<i64: 576, 64>}, {pipeline_mode = #tpu.pipeline_mode<synchronous>, transform_indices = @transform_5, window_bounds = array<i64: 1024, 256>}, {pipeline_mode = #tpu.pipeline_mode<synchronous>, transform_indices = @transform_6, window_bounds = array<i64: 256, 128>}, {pipeline_mode = #tpu.pipeline_mode<synchronous>, transform_indices = @transform_7, window_bounds = array<i64: 1, 32>}, {pipeline_mode = #tpu.pipeline_mode<synchronous>, transform_indices = @transform_8, window_bounds = array<i64: 1, 32>}, {pipeline_mode = #tpu.pipeline_mode<synchronous>, transform_indices = @transform_9, window_bounds = array<i64: 1, 64>}, {pipeline_mode = #tpu.pipeline_mode<synchronous>, transform_indices = @transform_10, window_bounds = array<i64: 1, 64>}, {pipeline_mode = #tpu.pipeline_mode<synchronous>, transform_indices = @transform_11, window_bounds = array<i64: 1, 64>}, {pipeline_mode = #tpu.pipeline_mode<synchronous>, transform_indices = @transform_12, window_bounds = array<i64: 1, 64>}, {pipeline_mode = #tpu.pipeline_mode<synchronous>, transform_indices = @transform_13, window_bounds = array<i64: 1, 64>}, {pipeline_mode = #tpu.pipeline_mode<synchronous>, transform_indices = @transform_14, window_bounds = array<i64: 1, 64>}, {pipeline_mode = #tpu.pipeline_mode<synchronous>, transform_indices = @transform_15, window_bounds = array<i64: 1, 256>}, {pipeline_mode = #tpu.pipeline_mode<synchronous>, transform_indices = @transform_16, window_bounds = array<i64: 1, 128>}, {transform_indices = @transform_17, window_bounds = array<i64: 1, 1, 128>}]} {
    %c0 = arith.constant 0 : index
    %c0_0 = arith.constant 0 : index
    %0 = vector.load %arg1[%c0, %c0_0] : memref<1024x32xbf16, #tpu.memory_space<vmem>>, vector<1024x32xbf16>
    %c0_1 = arith.constant 0 : index
    %c0_2 = arith.constant 0 : index
    %1 = vector.load %arg2[%c0_1, %c0_2] : memref<32x32xbf16, #tpu.memory_space<vmem>>, vector<32x32xbf16>
    %cst = arith.constant dense<0.000000e+00> : vector<1024x32xf32>
    %2 = tpu.matmul %0, %1, %cst {dimension_numbers = #tpu.dot_dimension_numbers<[1], [0], [0], [1], [0, 0, 1, 1], [], []>} : vector<1024x32xbf16>, vector<32x32xbf16>, vector<1024x32xf32> -> vector<1024x32xf32>
    %c0_3 = arith.constant 0 : index
    %c0_4 = arith.constant 0 : index
    %3 = vector.load %arg8[%c0_3, %c0_4] : memref<1x32xf32, #tpu.memory_space<vmem>>, vector<1x32xf32>
    %4 = vector.broadcast %3 : vector<1x32xf32> to vector<1024x32xf32>
    %5 = arith.mulf %2, %4 : vector<1024x32xf32>
    %c0_5 = arith.constant 0 : index
    %c0_6 = arith.constant 0 : index
    %6 = vector.load %arg9[%c0_5, %c0_6] : memref<1x32xf32, #tpu.memory_space<vmem>>, vector<1x32xf32>
    %7 = vector.broadcast %6 : vector<1x32xf32> to vector<1024x32xf32>
    %8 = arith.addf %5, %7 : vector<1024x32xf32>
    %cst_7 = arith.constant 0.000000e+00 : f32
    %9 = vector.broadcast %cst_7 : f32 to vector<1024x32xf32>
    %10 = arith.maximumf %8, %9 : vector<1024x32xf32>
    %11 = vector.shape_cast %10 : vector<1024x32xf32> to vector<1x32x32x32xf32>
    %12 = vector.shape_cast %11 : vector<1x32x32x32xf32> to vector<1x16x2x32x32xf32>
    %13 = vector.extract_strided_slice %12 {offsets = [0, 0, 0, 0, 0], sizes = [1, 16, 1, 32, 32], strides = [1, 1, 1, 1, 1]} : vector<1x16x2x32x32xf32> to vector<1x16x1x32x32xf32>
    %14 = vector.shape_cast %13 : vector<1x16x1x32x32xf32> to vector<1x16x32x32xf32>
    %15 = vector.extract_strided_slice %12 {offsets = [0, 0, 1, 0, 0], sizes = [1, 16, 1, 32, 32], strides = [1, 1, 1, 1, 1]} : vector<1x16x2x32x32xf32> to vector<1x16x1x32x32xf32>
    %16 = vector.shape_cast %15 : vector<1x16x1x32x32xf32> to vector<1x16x32x32xf32>
    %17 = arith.maximumf %14, %16 : vector<1x16x32x32xf32>
    %c0_8 = arith.constant 0 : index
    %c0_9 = arith.constant 0 : index
    %c0_10 = arith.constant 0 : index
    %c0_11 = arith.constant 0 : index
    %18 = vector.load %arg22[%c0_8, %c0_9, %c0_10, %c0_11] : memref<1x16x32x32xf32, #tpu.memory_space<vmem>>, vector<1x16x32x32xf32>
    tpu.vector_store %arg22[%c0_8, %c0_9, %c0_10, %c0_11], %17 {strides = array<i32>} : memref<1x16x32x32xf32, #tpu.memory_space<vmem>>, vector<1x16x32x32xf32>,
    %c0_12 = arith.constant 0 : index
    %c0_13 = arith.constant 0 : index
    %c0_14 = arith.constant 0 : index
    %c0_15 = arith.constant 0 : index
    %19 = tpu.strided_load %arg22[%c0_12, %c0_13, %c0_14, %c0_15] {strides = array<i32: 1, 1, 2, 1>} : memref<1x16x32x32xf32, #tpu.memory_space<vmem>>, vector<1x16x16x32xf32>
    %c0_16 = arith.constant 0 : index
    %c0_17 = arith.constant 0 : index
    %c1 = arith.constant 1 : index
    %c0_18 = arith.constant 0 : index
    %20 = tpu.strided_load %arg22[%c0_16, %c0_17, %c1, %c0_18] {strides = array<i32: 1, 1, 2, 1>} : memref<1x16x32x32xf32, #tpu.memory_space<vmem>>, vector<1x16x16x32xf32>
    %21 = arith.maximumf %19, %20 : vector<1x16x16x32xf32>
    %cst_19 = arith.constant 0.000000e+00 : bf16
    %22 = vector.broadcast %cst_19 : bf16 to vector<1x16x1x32xbf16>
    %23 = arith.truncf %21 : vector<1x16x16x32xf32> to vector<1x16x16x32xbf16>
    %24 = tpu.concatenate %22, %23, %22 in 2 : vector<1x16x1x32xbf16>, vector<1x16x16x32xbf16>, vector<1x16x1x32xbf16> -> vector<1x16x18x32xbf16>
    %cst_20 = arith.constant 0.000000e+00 : bf16
    %25 = vector.broadcast %cst_20 : bf16 to vector<1x1x18x32xbf16>
    %26 = tpu.concatenate %25, %24, %25 in 1 : vector<1x1x18x32xbf16>, vector<1x16x18x32xbf16>, vector<1x1x18x32xbf16> -> vector<1x18x18x32xbf16>
    %c0_21 = arith.constant 0 : index
    %c0_22 = arith.constant 0 : index
    %c0_23 = arith.constant 0 : index
    %c0_24 = arith.constant 0 : index
    %27 = vector.load %arg19[%c0_21, %c0_22, %c0_23, %c0_24] : memref<1x18x18x32xbf16, #tpu.memory_space<vmem>>, vector<1x18x18x32xbf16>
    tpu.vector_store %arg19[%c0_21, %c0_22, %c0_23, %c0_24], %26 {strides = array<i32>} : memref<1x18x18x32xbf16, #tpu.memory_space<vmem>>, vector<1x18x18x32xbf16>,
    %c0_25 = arith.constant 0 : index
    %c0_26 = arith.constant 0 : index
    %c0_27 = arith.constant 0 : index
    %c0_28 = arith.constant 0 : index
    %28 = vector.load %arg19[%c0_25, %c0_26, %c0_27, %c0_28] : memref<1x18x18x32xbf16, #tpu.memory_space<vmem>>, vector<1x16x16x32xbf16>
    %c0_29 = arith.constant 0 : index
    %c0_30 = arith.constant 0 : index
    %c1_31 = arith.constant 1 : index
    %c0_32 = arith.constant 0 : index
    %29 = vector.load %arg19[%c0_29, %c0_30, %c1_31, %c0_32] : memref<1x18x18x32xbf16, #tpu.memory_space<vmem>>, vector<1x16x16x32xbf16>
    %c0_33 = arith.constant 0 : index
    %c0_34 = arith.constant 0 : index
    %c2 = arith.constant 2 : index
    %c0_35 = arith.constant 0 : index
    %30 = vector.load %arg19[%c0_33, %c0_34, %c2, %c0_35] : memref<1x18x18x32xbf16, #tpu.memory_space<vmem>>, vector<1x16x16x32xbf16>
    %c0_36 = arith.constant 0 : index
    %c1_37 = arith.constant 1 : index
    %c0_38 = arith.constant 0 : index
    %c0_39 = arith.constant 0 : index
    %31 = vector.load %arg19[%c0_36, %c1_37, %c0_38, %c0_39] : memref<1x18x18x32xbf16, #tpu.memory_space<vmem>>, vector<1x16x16x32xbf16>
    %c0_40 = arith.constant 0 : index
    %c1_41 = arith.constant 1 : index
    %c1_42 = arith.constant 1 : index
    %c0_43 = arith.constant 0 : index
    %32 = vector.load %arg19[%c0_40, %c1_41, %c1_42, %c0_43] : memref<1x18x18x32xbf16, #tpu.memory_space<vmem>>, vector<1x16x16x32xbf16>
    %c0_44 = arith.constant 0 : index
    %c1_45 = arith.constant 1 : index
    %c2_46 = arith.constant 2 : index
    %c0_47 = arith.constant 0 : index
    %33 = vector.load %arg19[%c0_44, %c1_45, %c2_46, %c0_47] : memref<1x18x18x32xbf16, #tpu.memory_space<vmem>>, vector<1x16x16x32xbf16>
    %c0_48 = arith.constant 0 : index
    %c2_49 = arith.constant 2 : index
    %c0_50 = arith.constant 0 : index
    %c0_51 = arith.constant 0 : index
    %34 = vector.load %arg19[%c0_48, %c2_49, %c0_50, %c0_51] : memref<1x18x18x32xbf16, #tpu.memory_space<vmem>>, vector<1x16x16x32xbf16>
    %c0_52 = arith.constant 0 : index
    %c2_53 = arith.constant 2 : index
    %c1_54 = arith.constant 1 : index
    %c0_55 = arith.constant 0 : index
    %35 = vector.load %arg19[%c0_52, %c2_53, %c1_54, %c0_55] : memref<1x18x18x32xbf16, #tpu.memory_space<vmem>>, vector<1x16x16x32xbf16>
    %c0_56 = arith.constant 0 : index
    %c2_57 = arith.constant 2 : index
    %c2_58 = arith.constant 2 : index
    %c0_59 = arith.constant 0 : index
    %36 = vector.load %arg19[%c0_56, %c2_57, %c2_58, %c0_59] : memref<1x18x18x32xbf16, #tpu.memory_space<vmem>>, vector<1x16x16x32xbf16>
    %37 = tpu.concatenate %28, %29, %30, %31, %32, %33, %34, %35, %36 in 3 : vector<1x16x16x32xbf16>, vector<1x16x16x32xbf16>, vector<1x16x16x32xbf16>, vector<1x16x16x32xbf16>, vector<1x16x16x32xbf16>, vector<1x16x16x32xbf16>, vector<1x16x16x32xbf16>, vector<1x16x16x32xbf16>, vector<1x16x16x32xbf16> -> vector<1x16x16x288xbf16>
    %38 = vector.shape_cast %37 : vector<1x16x16x288xbf16> to vector<256x288xbf16>
    %c0_60 = arith.constant 0 : index
    %c0_61 = arith.constant 0 : index
    %39 = vector.load %arg3[%c0_60, %c0_61] : memref<288x64xbf16, #tpu.memory_space<vmem>>, vector<288x64xbf16>
    %cst_62 = arith.constant dense<0.000000e+00> : vector<256x64xf32>
    %40 = tpu.matmul %38, %39, %cst_62 {dimension_numbers = #tpu.dot_dimension_numbers<[1], [0], [0], [1], [0, 0, 1, 1], [], []>} : vector<256x288xbf16>, vector<288x64xbf16>, vector<256x64xf32> -> vector<256x64xf32>
    %c0_63 = arith.constant 0 : index
    %c0_64 = arith.constant 0 : index
    %41 = vector.load %arg10[%c0_63, %c0_64] : memref<1x64xf32, #tpu.memory_space<vmem>>, vector<1x64xf32>
    %42 = vector.broadcast %41 : vector<1x64xf32> to vector<256x64xf32>
    %43 = arith.mulf %40, %42 : vector<256x64xf32>
    %c0_65 = arith.constant 0 : index
    %c0_66 = arith.constant 0 : index
    %44 = vector.load %arg11[%c0_65, %c0_66] : memref<1x64xf32, #tpu.memory_space<vmem>>, vector<1x64xf32>
    %45 = vector.broadcast %44 : vector<1x64xf32> to vector<256x64xf32>
    %46 = arith.addf %43, %45 : vector<256x64xf32>
    %cst_67 = arith.constant 0.000000e+00 : f32
    %47 = vector.broadcast %cst_67 : f32 to vector<256x64xf32>
    %48 = arith.maximumf %46, %47 : vector<256x64xf32>
    %49 = vector.shape_cast %48 : vector<256x64xf32> to vector<1x16x16x64xf32>
    %50 = vector.shape_cast %49 : vector<1x16x16x64xf32> to vector<1x8x2x16x64xf32>
    %51 = vector.extract_strided_slice %50 {offsets = [0, 0, 0, 0, 0], sizes = [1, 8, 1, 16, 64], strides = [1, 1, 1, 1, 1]} : vector<1x8x2x16x64xf32> to vector<1x8x1x16x64xf32>
    %52 = vector.shape_cast %51 : vector<1x8x1x16x64xf32> to vector<1x8x16x64xf32>
    %53 = vector.extract_strided_slice %50 {offsets = [0, 0, 1, 0, 0], sizes = [1, 8, 1, 16, 64], strides = [1, 1, 1, 1, 1]} : vector<1x8x2x16x64xf32> to vector<1x8x1x16x64xf32>
    %54 = vector.shape_cast %53 : vector<1x8x1x16x64xf32> to vector<1x8x16x64xf32>
    %55 = arith.maximumf %52, %54 : vector<1x8x16x64xf32>
    %c0_68 = arith.constant 0 : index
    %c0_69 = arith.constant 0 : index
    %c0_70 = arith.constant 0 : index
    %c0_71 = arith.constant 0 : index
    %56 = vector.load %arg23[%c0_68, %c0_69, %c0_70, %c0_71] : memref<1x8x16x64xf32, #tpu.memory_space<vmem>>, vector<1x8x16x64xf32>
    tpu.vector_store %arg23[%c0_68, %c0_69, %c0_70, %c0_71], %55 {strides = array<i32>} : memref<1x8x16x64xf32, #tpu.memory_space<vmem>>, vector<1x8x16x64xf32>,
    %c0_72 = arith.constant 0 : index
    %c0_73 = arith.constant 0 : index
    %c0_74 = arith.constant 0 : index
    %c0_75 = arith.constant 0 : index
    %57 = tpu.strided_load %arg23[%c0_72, %c0_73, %c0_74, %c0_75] {strides = array<i32: 1, 1, 2, 1>} : memref<1x8x16x64xf32, #tpu.memory_space<vmem>>, vector<1x8x8x64xf32>
    %c0_76 = arith.constant 0 : index
    %c0_77 = arith.constant 0 : index
    %c1_78 = arith.constant 1 : index
    %c0_79 = arith.constant 0 : index
    %58 = tpu.strided_load %arg23[%c0_76, %c0_77, %c1_78, %c0_79] {strides = array<i32: 1, 1, 2, 1>} : memref<1x8x16x64xf32, #tpu.memory_space<vmem>>, vector<1x8x8x64xf32>
    %59 = arith.maximumf %57, %58 : vector<1x8x8x64xf32>
    %cst_80 = arith.constant 0.000000e+00 : bf16
    %60 = vector.broadcast %cst_80 : bf16 to vector<1x8x1x64xbf16>
    %61 = arith.truncf %59 : vector<1x8x8x64xf32> to vector<1x8x8x64xbf16>
    %62 = tpu.concatenate %60, %61, %60 in 2 : vector<1x8x1x64xbf16>, vector<1x8x8x64xbf16>, vector<1x8x1x64xbf16> -> vector<1x8x10x64xbf16>
    %cst_81 = arith.constant 0.000000e+00 : bf16
    %63 = vector.broadcast %cst_81 : bf16 to vector<1x1x10x64xbf16>
    %64 = tpu.concatenate %63, %62, %63 in 1 : vector<1x1x10x64xbf16>, vector<1x8x10x64xbf16>, vector<1x1x10x64xbf16> -> vector<1x10x10x64xbf16>
    %c0_82 = arith.constant 0 : index
    %c0_83 = arith.constant 0 : index
    %c0_84 = arith.constant 0 : index
    %c0_85 = arith.constant 0 : index
    %65 = vector.load %arg20[%c0_82, %c0_83, %c0_84, %c0_85] : memref<1x10x10x64xbf16, #tpu.memory_space<vmem>>, vector<1x10x10x64xbf16>
    tpu.vector_store %arg20[%c0_82, %c0_83, %c0_84, %c0_85], %64 {strides = array<i32>} : memref<1x10x10x64xbf16, #tpu.memory_space<vmem>>, vector<1x10x10x64xbf16>,
    %c0_86 = arith.constant 0 : index
    %c0_87 = arith.constant 0 : index
    %c0_88 = arith.constant 0 : index
    %c0_89 = arith.constant 0 : index
    %66 = vector.load %arg20[%c0_86, %c0_87, %c0_88, %c0_89] : memref<1x10x10x64xbf16, #tpu.memory_space<vmem>>, vector<1x8x8x64xbf16>
    %c0_90 = arith.constant 0 : index
    %c0_91 = arith.constant 0 : index
    %c1_92 = arith.constant 1 : index
    %c0_93 = arith.constant 0 : index
    %67 = vector.load %arg20[%c0_90, %c0_91, %c1_92, %c0_93] : memref<1x10x10x64xbf16, #tpu.memory_space<vmem>>, vector<1x8x8x64xbf16>
    %c0_94 = arith.constant 0 : index
    %c0_95 = arith.constant 0 : index
    %c2_96 = arith.constant 2 : index
    %c0_97 = arith.constant 0 : index
    %68 = vector.load %arg20[%c0_94, %c0_95, %c2_96, %c0_97] : memref<1x10x10x64xbf16, #tpu.memory_space<vmem>>, vector<1x8x8x64xbf16>
    %c0_98 = arith.constant 0 : index
    %c1_99 = arith.constant 1 : index
    %c0_100 = arith.constant 0 : index
    %c0_101 = arith.constant 0 : index
    %69 = vector.load %arg20[%c0_98, %c1_99, %c0_100, %c0_101] : memref<1x10x10x64xbf16, #tpu.memory_space<vmem>>, vector<1x8x8x64xbf16>
    %c0_102 = arith.constant 0 : index
    %c1_103 = arith.constant 1 : index
    %c1_104 = arith.constant 1 : index
    %c0_105 = arith.constant 0 : index
    %70 = vector.load %arg20[%c0_102, %c1_103, %c1_104, %c0_105] : memref<1x10x10x64xbf16, #tpu.memory_space<vmem>>, vector<1x8x8x64xbf16>
    %c0_106 = arith.constant 0 : index
    %c1_107 = arith.constant 1 : index
    %c2_108 = arith.constant 2 : index
    %c0_109 = arith.constant 0 : index
    %71 = vector.load %arg20[%c0_106, %c1_107, %c2_108, %c0_109] : memref<1x10x10x64xbf16, #tpu.memory_space<vmem>>, vector<1x8x8x64xbf16>
    %c0_110 = arith.constant 0 : index
    %c2_111 = arith.constant 2 : index
    %c0_112 = arith.constant 0 : index
    %c0_113 = arith.constant 0 : index
    %72 = vector.load %arg20[%c0_110, %c2_111, %c0_112, %c0_113] : memref<1x10x10x64xbf16, #tpu.memory_space<vmem>>, vector<1x8x8x64xbf16>
    %c0_114 = arith.constant 0 : index
    %c2_115 = arith.constant 2 : index
    %c1_116 = arith.constant 1 : index
    %c0_117 = arith.constant 0 : index
    %73 = vector.load %arg20[%c0_114, %c2_115, %c1_116, %c0_117] : memref<1x10x10x64xbf16, #tpu.memory_space<vmem>>, vector<1x8x8x64xbf16>
    %c0_118 = arith.constant 0 : index
    %c2_119 = arith.constant 2 : index
    %c2_120 = arith.constant 2 : index
    %c0_121 = arith.constant 0 : index
    %74 = vector.load %arg20[%c0_118, %c2_119, %c2_120, %c0_121] : memref<1x10x10x64xbf16, #tpu.memory_space<vmem>>, vector<1x8x8x64xbf16>
    %75 = tpu.concatenate %66, %67, %68, %69, %70, %71, %72, %73, %74 in 3 : vector<1x8x8x64xbf16>, vector<1x8x8x64xbf16>, vector<1x8x8x64xbf16>, vector<1x8x8x64xbf16>, vector<1x8x8x64xbf16>, vector<1x8x8x64xbf16>, vector<1x8x8x64xbf16>, vector<1x8x8x64xbf16>, vector<1x8x8x64xbf16> -> vector<1x8x8x576xbf16>
    %76 = vector.shape_cast %75 : vector<1x8x8x576xbf16> to vector<64x576xbf16>
    %c0_122 = arith.constant 0 : index
    %c0_123 = arith.constant 0 : index
    %77 = vector.load %arg4[%c0_122, %c0_123] : memref<576x64xbf16, #tpu.memory_space<vmem>>, vector<576x64xbf16>
    %cst_124 = arith.constant dense<0.000000e+00> : vector<64x64xf32>
    %78 = tpu.matmul %76, %77, %cst_124 {dimension_numbers = #tpu.dot_dimension_numbers<[1], [0], [0], [1], [0, 0, 1, 1], [], []>} : vector<64x576xbf16>, vector<576x64xbf16>, vector<64x64xf32> -> vector<64x64xf32>
    %c0_125 = arith.constant 0 : index
    %c0_126 = arith.constant 0 : index
    %79 = vector.load %arg12[%c0_125, %c0_126] : memref<1x64xf32, #tpu.memory_space<vmem>>, vector<1x64xf32>
    %80 = vector.broadcast %79 : vector<1x64xf32> to vector<64x64xf32>
    %81 = arith.mulf %78, %80 : vector<64x64xf32>
    %c0_127 = arith.constant 0 : index
    %c0_128 = arith.constant 0 : index
    %82 = vector.load %arg13[%c0_127, %c0_128] : memref<1x64xf32, #tpu.memory_space<vmem>>, vector<1x64xf32>
    %83 = vector.broadcast %82 : vector<1x64xf32> to vector<64x64xf32>
    %84 = arith.addf %81, %83 : vector<64x64xf32>
    %cst_129 = arith.constant 0.000000e+00 : f32
    %85 = vector.broadcast %cst_129 : f32 to vector<64x64xf32>
    %86 = arith.maximumf %84, %85 : vector<64x64xf32>
    %87 = vector.shape_cast %86 : vector<64x64xf32> to vector<1x8x8x64xf32>
    %cst_130 = arith.constant 0.000000e+00 : bf16
    %88 = vector.broadcast %cst_130 : bf16 to vector<1x8x1x64xbf16>
    %89 = arith.truncf %87 : vector<1x8x8x64xf32> to vector<1x8x8x64xbf16>
    %90 = tpu.concatenate %88, %89, %88 in 2 : vector<1x8x1x64xbf16>, vector<1x8x8x64xbf16>, vector<1x8x1x64xbf16> -> vector<1x8x10x64xbf16>
    %cst_131 = arith.constant 0.000000e+00 : bf16
    %91 = vector.broadcast %cst_131 : bf16 to vector<1x1x10x64xbf16>
    %92 = tpu.concatenate %91, %90, %91 in 1 : vector<1x1x10x64xbf16>, vector<1x8x10x64xbf16>, vector<1x1x10x64xbf16> -> vector<1x10x10x64xbf16>
    %c0_132 = arith.constant 0 : index
    %c0_133 = arith.constant 0 : index
    %c0_134 = arith.constant 0 : index
    %c0_135 = arith.constant 0 : index
    %93 = vector.load %arg21[%c0_132, %c0_133, %c0_134, %c0_135] : memref<1x10x10x64xbf16, #tpu.memory_space<vmem>>, vector<1x10x10x64xbf16>
    tpu.vector_store %arg21[%c0_132, %c0_133, %c0_134, %c0_135], %92 {strides = array<i32>} : memref<1x10x10x64xbf16, #tpu.memory_space<vmem>>, vector<1x10x10x64xbf16>,
    %c0_136 = arith.constant 0 : index
    %c0_137 = arith.constant 0 : index
    %c0_138 = arith.constant 0 : index
    %c0_139 = arith.constant 0 : index
    %94 = vector.load %arg21[%c0_136, %c0_137, %c0_138, %c0_139] : memref<1x10x10x64xbf16, #tpu.memory_space<vmem>>, vector<1x8x8x64xbf16>
    %c0_140 = arith.constant 0 : index
    %c0_141 = arith.constant 0 : index
    %c1_142 = arith.constant 1 : index
    %c0_143 = arith.constant 0 : index
    %95 = vector.load %arg21[%c0_140, %c0_141, %c1_142, %c0_143] : memref<1x10x10x64xbf16, #tpu.memory_space<vmem>>, vector<1x8x8x64xbf16>
    %c0_144 = arith.constant 0 : index
    %c0_145 = arith.constant 0 : index
    %c2_146 = arith.constant 2 : index
    %c0_147 = arith.constant 0 : index
    %96 = vector.load %arg21[%c0_144, %c0_145, %c2_146, %c0_147] : memref<1x10x10x64xbf16, #tpu.memory_space<vmem>>, vector<1x8x8x64xbf16>
    %c0_148 = arith.constant 0 : index
    %c1_149 = arith.constant 1 : index
    %c0_150 = arith.constant 0 : index
    %c0_151 = arith.constant 0 : index
    %97 = vector.load %arg21[%c0_148, %c1_149, %c0_150, %c0_151] : memref<1x10x10x64xbf16, #tpu.memory_space<vmem>>, vector<1x8x8x64xbf16>
    %c0_152 = arith.constant 0 : index
    %c1_153 = arith.constant 1 : index
    %c1_154 = arith.constant 1 : index
    %c0_155 = arith.constant 0 : index
    %98 = vector.load %arg21[%c0_152, %c1_153, %c1_154, %c0_155] : memref<1x10x10x64xbf16, #tpu.memory_space<vmem>>, vector<1x8x8x64xbf16>
    %c0_156 = arith.constant 0 : index
    %c1_157 = arith.constant 1 : index
    %c2_158 = arith.constant 2 : index
    %c0_159 = arith.constant 0 : index
    %99 = vector.load %arg21[%c0_156, %c1_157, %c2_158, %c0_159] : memref<1x10x10x64xbf16, #tpu.memory_space<vmem>>, vector<1x8x8x64xbf16>
    %c0_160 = arith.constant 0 : index
    %c2_161 = arith.constant 2 : index
    %c0_162 = arith.constant 0 : index
    %c0_163 = arith.constant 0 : index
    %100 = vector.load %arg21[%c0_160, %c2_161, %c0_162, %c0_163] : memref<1x10x10x64xbf16, #tpu.memory_space<vmem>>, vector<1x8x8x64xbf16>
    %c0_164 = arith.constant 0 : index
    %c2_165 = arith.constant 2 : index
    %c1_166 = arith.constant 1 : index
    %c0_167 = arith.constant 0 : index
    %101 = vector.load %arg21[%c0_164, %c2_165, %c1_166, %c0_167] : memref<1x10x10x64xbf16, #tpu.memory_space<vmem>>, vector<1x8x8x64xbf16>
    %c0_168 = arith.constant 0 : index
    %c2_169 = arith.constant 2 : index
    %c2_170 = arith.constant 2 : index
    %c0_171 = arith.constant 0 : index
    %102 = vector.load %arg21[%c0_168, %c2_169, %c2_170, %c0_171] : memref<1x10x10x64xbf16, #tpu.memory_space<vmem>>, vector<1x8x8x64xbf16>
    %103 = tpu.concatenate %94, %95, %96, %97, %98, %99, %100, %101, %102 in 3 : vector<1x8x8x64xbf16>, vector<1x8x8x64xbf16>, vector<1x8x8x64xbf16>, vector<1x8x8x64xbf16>, vector<1x8x8x64xbf16>, vector<1x8x8x64xbf16>, vector<1x8x8x64xbf16>, vector<1x8x8x64xbf16>, vector<1x8x8x64xbf16> -> vector<1x8x8x576xbf16>
    %104 = vector.shape_cast %103 : vector<1x8x8x576xbf16> to vector<64x576xbf16>
    %c0_172 = arith.constant 0 : index
    %c0_173 = arith.constant 0 : index
    %105 = vector.load %arg5[%c0_172, %c0_173] : memref<576x64xbf16, #tpu.memory_space<vmem>>, vector<576x64xbf16>
    %cst_174 = arith.constant dense<0.000000e+00> : vector<64x64xf32>
    %106 = tpu.matmul %104, %105, %cst_174 {dimension_numbers = #tpu.dot_dimension_numbers<[1], [0], [0], [1], [0, 0, 1, 1], [], []>} : vector<64x576xbf16>, vector<576x64xbf16>, vector<64x64xf32> -> vector<64x64xf32>
    %c0_175 = arith.constant 0 : index
    %c0_176 = arith.constant 0 : index
    %107 = vector.load %arg14[%c0_175, %c0_176] : memref<1x64xf32, #tpu.memory_space<vmem>>, vector<1x64xf32>
    %108 = vector.broadcast %107 : vector<1x64xf32> to vector<64x64xf32>
    %109 = arith.mulf %106, %108 : vector<64x64xf32>
    %c0_177 = arith.constant 0 : index
    %c0_178 = arith.constant 0 : index
    %110 = vector.load %arg15[%c0_177, %c0_178] : memref<1x64xf32, #tpu.memory_space<vmem>>, vector<1x64xf32>
    %111 = vector.broadcast %110 : vector<1x64xf32> to vector<64x64xf32>
    %112 = arith.addf %109, %111 : vector<64x64xf32>
    %113 = vector.shape_cast %112 : vector<64x64xf32> to vector<1x8x8x64xf32>
    %114 = arith.addf %113, %59 : vector<1x8x8x64xf32>
    %cst_179 = arith.constant 0.000000e+00 : f32
    %115 = vector.broadcast %cst_179 : f32 to vector<1x8x8x64xf32>
    %116 = arith.maximumf %114, %115 : vector<1x8x8x64xf32>
    %117 = vector.shape_cast %116 : vector<1x8x8x64xf32> to vector<1x4x2x8x64xf32>
    %118 = vector.extract_strided_slice %117 {offsets = [0, 0, 0, 0, 0], sizes = [1, 4, 1, 8, 64], strides = [1, 1, 1, 1, 1]} : vector<1x4x2x8x64xf32> to vector<1x4x1x8x64xf32>
    %119 = vector.shape_cast %118 : vector<1x4x1x8x64xf32> to vector<1x4x8x64xf32>
    %120 = vector.extract_strided_slice %117 {offsets = [0, 0, 1, 0, 0], sizes = [1, 4, 1, 8, 64], strides = [1, 1, 1, 1, 1]} : vector<1x4x2x8x64xf32> to vector<1x4x1x8x64xf32>
    %121 = vector.shape_cast %120 : vector<1x4x1x8x64xf32> to vector<1x4x8x64xf32>
    %122 = arith.maximumf %119, %121 : vector<1x4x8x64xf32>
    %c0_180 = arith.constant 0 : index
    %c0_181 = arith.constant 0 : index
    %c0_182 = arith.constant 0 : index
    %c0_183 = arith.constant 0 : index
    %123 = vector.load %arg24[%c0_180, %c0_181, %c0_182, %c0_183] : memref<1x4x8x64xf32, #tpu.memory_space<vmem>>, vector<1x4x8x64xf32>
    tpu.vector_store %arg24[%c0_180, %c0_181, %c0_182, %c0_183], %122 {strides = array<i32>} : memref<1x4x8x64xf32, #tpu.memory_space<vmem>>, vector<1x4x8x64xf32>,
    %c0_184 = arith.constant 0 : index
    %c0_185 = arith.constant 0 : index
    %c0_186 = arith.constant 0 : index
    %c0_187 = arith.constant 0 : index
    %124 = tpu.strided_load %arg24[%c0_184, %c0_185, %c0_186, %c0_187] {strides = array<i32: 1, 1, 2, 1>} : memref<1x4x8x64xf32, #tpu.memory_space<vmem>>, vector<1x4x4x64xf32>
    %c0_188 = arith.constant 0 : index
    %c0_189 = arith.constant 0 : index
    %c1_190 = arith.constant 1 : index
    %c0_191 = arith.constant 0 : index
    %125 = tpu.strided_load %arg24[%c0_188, %c0_189, %c1_190, %c0_191] {strides = array<i32: 1, 1, 2, 1>} : memref<1x4x8x64xf32, #tpu.memory_space<vmem>>, vector<1x4x4x64xf32>
    %126 = arith.maximumf %124, %125 : vector<1x4x4x64xf32>
    %127 = vector.extract_strided_slice %126 {offsets = [0, 0, 0, 0], sizes = [1, 1, 1, 64], strides = [1, 1, 1, 1]} : vector<1x4x4x64xf32> to vector<1x1x1x64xf32>
    %128 = vector.shape_cast %127 : vector<1x1x1x64xf32> to vector<1x64xf32>
    %129 = vector.extract_strided_slice %126 {offsets = [0, 0, 1, 0], sizes = [1, 1, 1, 64], strides = [1, 1, 1, 1]} : vector<1x4x4x64xf32> to vector<1x1x1x64xf32>
    %130 = vector.shape_cast %129 : vector<1x1x1x64xf32> to vector<1x64xf32>
    %131 = vector.extract_strided_slice %126 {offsets = [0, 0, 2, 0], sizes = [1, 1, 1, 64], strides = [1, 1, 1, 1]} : vector<1x4x4x64xf32> to vector<1x1x1x64xf32>
    %132 = vector.shape_cast %131 : vector<1x1x1x64xf32> to vector<1x64xf32>
    %133 = vector.extract_strided_slice %126 {offsets = [0, 0, 3, 0], sizes = [1, 1, 1, 64], strides = [1, 1, 1, 1]} : vector<1x4x4x64xf32> to vector<1x1x1x64xf32>
    %134 = vector.shape_cast %133 : vector<1x1x1x64xf32> to vector<1x64xf32>
    %135 = vector.extract_strided_slice %126 {offsets = [0, 1, 0, 0], sizes = [1, 1, 1, 64], strides = [1, 1, 1, 1]} : vector<1x4x4x64xf32> to vector<1x1x1x64xf32>
    %136 = vector.shape_cast %135 : vector<1x1x1x64xf32> to vector<1x64xf32>
    %137 = vector.extract_strided_slice %126 {offsets = [0, 1, 1, 0], sizes = [1, 1, 1, 64], strides = [1, 1, 1, 1]} : vector<1x4x4x64xf32> to vector<1x1x1x64xf32>
    %138 = vector.shape_cast %137 : vector<1x1x1x64xf32> to vector<1x64xf32>
    %139 = vector.extract_strided_slice %126 {offsets = [0, 1, 2, 0], sizes = [1, 1, 1, 64], strides = [1, 1, 1, 1]} : vector<1x4x4x64xf32> to vector<1x1x1x64xf32>
    %140 = vector.shape_cast %139 : vector<1x1x1x64xf32> to vector<1x64xf32>
    %141 = vector.extract_strided_slice %126 {offsets = [0, 1, 3, 0], sizes = [1, 1, 1, 64], strides = [1, 1, 1, 1]} : vector<1x4x4x64xf32> to vector<1x1x1x64xf32>
    %142 = vector.shape_cast %141 : vector<1x1x1x64xf32> to vector<1x64xf32>
    %143 = vector.extract_strided_slice %126 {offsets = [0, 2, 0, 0], sizes = [1, 1, 1, 64], strides = [1, 1, 1, 1]} : vector<1x4x4x64xf32> to vector<1x1x1x64xf32>
    %144 = vector.shape_cast %143 : vector<1x1x1x64xf32> to vector<1x64xf32>
    %145 = vector.extract_strided_slice %126 {offsets = [0, 2, 1, 0], sizes = [1, 1, 1, 64], strides = [1, 1, 1, 1]} : vector<1x4x4x64xf32> to vector<1x1x1x64xf32>
    %146 = vector.shape_cast %145 : vector<1x1x1x64xf32> to vector<1x64xf32>
    %147 = vector.extract_strided_slice %126 {offsets = [0, 2, 2, 0], sizes = [1, 1, 1, 64], strides = [1, 1, 1, 1]} : vector<1x4x4x64xf32> to vector<1x1x1x64xf32>
    %148 = vector.shape_cast %147 : vector<1x1x1x64xf32> to vector<1x64xf32>
    %149 = vector.extract_strided_slice %126 {offsets = [0, 2, 3, 0], sizes = [1, 1, 1, 64], strides = [1, 1, 1, 1]} : vector<1x4x4x64xf32> to vector<1x1x1x64xf32>
    %150 = vector.shape_cast %149 : vector<1x1x1x64xf32> to vector<1x64xf32>
    %151 = vector.extract_strided_slice %126 {offsets = [0, 3, 0, 0], sizes = [1, 1, 1, 64], strides = [1, 1, 1, 1]} : vector<1x4x4x64xf32> to vector<1x1x1x64xf32>
    %152 = vector.shape_cast %151 : vector<1x1x1x64xf32> to vector<1x64xf32>
    %153 = vector.extract_strided_slice %126 {offsets = [0, 3, 1, 0], sizes = [1, 1, 1, 64], strides = [1, 1, 1, 1]} : vector<1x4x4x64xf32> to vector<1x1x1x64xf32>
    %154 = vector.shape_cast %153 : vector<1x1x1x64xf32> to vector<1x64xf32>
    %155 = vector.extract_strided_slice %126 {offsets = [0, 3, 2, 0], sizes = [1, 1, 1, 64], strides = [1, 1, 1, 1]} : vector<1x4x4x64xf32> to vector<1x1x1x64xf32>
    %156 = vector.shape_cast %155 : vector<1x1x1x64xf32> to vector<1x64xf32>
    %157 = vector.extract_strided_slice %126 {offsets = [0, 3, 3, 0], sizes = [1, 1, 1, 64], strides = [1, 1, 1, 1]} : vector<1x4x4x64xf32> to vector<1x1x1x64xf32>
    %158 = vector.shape_cast %157 : vector<1x1x1x64xf32> to vector<1x64xf32>
    %159 = tpu.concatenate %128, %130, %132, %134, %136, %138, %140, %142, %144, %146, %148, %150, %152, %154, %156, %158 in 1 : vector<1x64xf32>, vector<1x64xf32>, vector<1x64xf32>, vector<1x64xf32>, vector<1x64xf32>, vector<1x64xf32>, vector<1x64xf32>, vector<1x64xf32>, vector<1x64xf32>, vector<1x64xf32>, vector<1x64xf32>, vector<1x64xf32>, vector<1x64xf32>, vector<1x64xf32>, vector<1x64xf32>, vector<1x64xf32> -> vector<1x1024xf32>
    %160 = arith.truncf %159 : vector<1x1024xf32> to vector<1x1024xbf16>
    %c0_192 = arith.constant 0 : index
    %c0_193 = arith.constant 0 : index
    %161 = vector.load %arg6[%c0_192, %c0_193] : memref<1024x256xbf16, #tpu.memory_space<vmem>>, vector<1024x256xbf16>
    %cst_194 = arith.constant dense<0.000000e+00> : vector<1x256xf32>
    %162 = tpu.matmul %160, %161, %cst_194 {dimension_numbers = #tpu.dot_dimension_numbers<[1], [0], [0], [1], [0, 0, 1, 1], [], []>} : vector<1x1024xbf16>, vector<1024x256xbf16>, vector<1x256xf32> -> vector<1x256xf32>
    %c0_195 = arith.constant 0 : index
    %c0_196 = arith.constant 0 : index
    %163 = vector.load %arg16[%c0_195, %c0_196] : memref<1x256xf32, #tpu.memory_space<vmem>>, vector<1x256xf32>
    %164 = arith.addf %162, %163 : vector<1x256xf32>
    %cst_197 = arith.constant 0.000000e+00 : f32
    %165 = vector.broadcast %cst_197 : f32 to vector<1x256xf32>
    %166 = arith.maximumf %164, %165 : vector<1x256xf32>
    %167 = arith.truncf %166 : vector<1x256xf32> to vector<1x256xbf16>
    %c0_198 = arith.constant 0 : index
    %c0_199 = arith.constant 0 : index
    %168 = vector.load %arg7[%c0_198, %c0_199] : memref<256x128xbf16, #tpu.memory_space<vmem>>, vector<256x128xbf16>
    %cst_200 = arith.constant dense<0.000000e+00> : vector<1x128xf32>
    %169 = tpu.matmul %167, %168, %cst_200 {dimension_numbers = #tpu.dot_dimension_numbers<[1], [0], [0], [1], [0, 0, 1, 1], [], []>} : vector<1x256xbf16>, vector<256x128xbf16>, vector<1x128xf32> -> vector<1x128xf32>
    %c0_201 = arith.constant 0 : index
    %c0_202 = arith.constant 0 : index
    %170 = vector.load %arg17[%c0_201, %c0_202] : memref<1x128xf32, #tpu.memory_space<vmem>>, vector<1x128xf32>
    %171 = arith.addf %169, %170 : vector<1x128xf32>
    %c0_203 = arith.constant 0 : index
    %c0_204 = arith.constant 0 : index
    %c0_205 = arith.constant 0 : index
    %172 = vector.load %arg18[%c0_203, %c0_204, %c0_205] : memref<1x1x128xf32, #tpu.memory_space<vmem>>, vector<1x1x128xf32>
    %173 = vector.shape_cast %172 : vector<1x1x128xf32> to vector<1x128xf32>
    %174 = vector.shape_cast %171 : vector<1x128xf32> to vector<1x1x128xf32>
    tpu.vector_store %arg18[%c0_203, %c0_204, %c0_205], %174 {strides = array<i32>} : memref<1x1x128xf32, #tpu.memory_space<vmem>>, vector<1x1x128xf32>,
    return
  }
  func.func @transform_0(%arg0: i32) -> (i32, i32) {
    %c0_i32 = arith.constant 0 : i32
    %c0_i32_0 = arith.constant 0 : i32
    return %arg0, %c0_i32 : i32, i32
  }
  func.func @transform_1(%arg0: i32) -> (i32, i32) {
    %c0_i32 = arith.constant 0 : i32
    %c0_i32_0 = arith.constant 0 : i32
    %c0_i32_1 = arith.constant 0 : i32
    return %c0_i32, %c0_i32_0 : i32, i32
  }
  func.func @transform_2(%arg0: i32) -> (i32, i32) {
    %c0_i32 = arith.constant 0 : i32
    %c0_i32_0 = arith.constant 0 : i32
    %c0_i32_1 = arith.constant 0 : i32
    return %c0_i32, %c0_i32_0 : i32, i32
  }
  func.func @transform_3(%arg0: i32) -> (i32, i32) {
    %c0_i32 = arith.constant 0 : i32
    %c0_i32_0 = arith.constant 0 : i32
    %c0_i32_1 = arith.constant 0 : i32
    return %c0_i32, %c0_i32_0 : i32, i32
  }
  func.func @transform_4(%arg0: i32) -> (i32, i32) {
    %c0_i32 = arith.constant 0 : i32
    %c0_i32_0 = arith.constant 0 : i32
    %c0_i32_1 = arith.constant 0 : i32
    return %c0_i32, %c0_i32_0 : i32, i32
  }
  func.func @transform_5(%arg0: i32) -> (i32, i32) {
    %c0_i32 = arith.constant 0 : i32
    %c0_i32_0 = arith.constant 0 : i32
    %c0_i32_1 = arith.constant 0 : i32
    return %c0_i32, %c0_i32_0 : i32, i32
  }
  func.func @transform_6(%arg0: i32) -> (i32, i32) {
    %c0_i32 = arith.constant 0 : i32
    %c0_i32_0 = arith.constant 0 : i32
    %c0_i32_1 = arith.constant 0 : i32
    return %c0_i32, %c0_i32_0 : i32, i32
  }
  func.func @transform_7(%arg0: i32) -> (i32, i32) {
    %c0_i32 = arith.constant 0 : i32
    %c0_i32_0 = arith.constant 0 : i32
    %c0_i32_1 = arith.constant 0 : i32
    return %c0_i32, %c0_i32_0 : i32, i32
  }
  func.func @transform_8(%arg0: i32) -> (i32, i32) {
    %c0_i32 = arith.constant 0 : i32
    %c0_i32_0 = arith.constant 0 : i32
    %c0_i32_1 = arith.constant 0 : i32
    return %c0_i32, %c0_i32_0 : i32, i32
  }
  func.func @transform_9(%arg0: i32) -> (i32, i32) {
    %c0_i32 = arith.constant 0 : i32
    %c0_i32_0 = arith.constant 0 : i32
    %c0_i32_1 = arith.constant 0 : i32
    return %c0_i32, %c0_i32_0 : i32, i32
  }
  func.func @transform_10(%arg0: i32) -> (i32, i32) {
    %c0_i32 = arith.constant 0 : i32
    %c0_i32_0 = arith.constant 0 : i32
    %c0_i32_1 = arith.constant 0 : i32
    return %c0_i32, %c0_i32_0 : i32, i32
  }
  func.func @transform_11(%arg0: i32) -> (i32, i32) {
    %c0_i32 = arith.constant 0 : i32
    %c0_i32_0 = arith.constant 0 : i32
    %c0_i32_1 = arith.constant 0 : i32
    return %c0_i32, %c0_i32_0 : i32, i32
  }
  func.func @transform_12(%arg0: i32) -> (i32, i32) {
    %c0_i32 = arith.constant 0 : i32
    %c0_i32_0 = arith.constant 0 : i32
    %c0_i32_1 = arith.constant 0 : i32
    return %c0_i32, %c0_i32_0 : i32, i32
  }
  func.func @transform_13(%arg0: i32) -> (i32, i32) {
    %c0_i32 = arith.constant 0 : i32
    %c0_i32_0 = arith.constant 0 : i32
    %c0_i32_1 = arith.constant 0 : i32
    return %c0_i32, %c0_i32_0 : i32, i32
  }
  func.func @transform_14(%arg0: i32) -> (i32, i32) {
    %c0_i32 = arith.constant 0 : i32
    %c0_i32_0 = arith.constant 0 : i32
    %c0_i32_1 = arith.constant 0 : i32
    return %c0_i32, %c0_i32_0 : i32, i32
  }
  func.func @transform_15(%arg0: i32) -> (i32, i32) {
    %c0_i32 = arith.constant 0 : i32
    %c0_i32_0 = arith.constant 0 : i32
    %c0_i32_1 = arith.constant 0 : i32
    return %c0_i32, %c0_i32_0 : i32, i32
  }
  func.func @transform_16(%arg0: i32) -> (i32, i32) {
    %c0_i32 = arith.constant 0 : i32
    %c0_i32_0 = arith.constant 0 : i32
    %c0_i32_1 = arith.constant 0 : i32
    return %c0_i32, %c0_i32_0 : i32, i32
  }
  func.func @transform_17(%arg0: i32) -> (i32, i32, i32) {
    %c0_i32 = arith.constant 0 : i32
    %c0_i32_0 = arith.constant 0 : i32
    %c0_i32_1 = arith.constant 0 : i32
    return %arg0, %c0_i32, %c0_i32_0 : i32, i32, i32
  }
}

</mosaic_0001>

<bundles_post_ra>
// kernel: custom_cnn_forward.1
= control target key start
LH: loop header
LB: loop body
LE: loop exit
PB: predicated region body
PF: predicated region fallthrough
CT: control target
= control target key end

     0   :  { %s15597_s0 = inlined_call_operand.vmem [shape: bf16[2048,32], index: 0, kind: input, shape index: {}]   ;;  %s15598_s1 = inlined_call_operand.vmem [shape: bf16[32,32], index: 1, kind: input, shape index: {}]   ;;  %s15599_s2 = inlined_call_operand.vmem [shape: bf16[288,64], index: 2, kind: input, shape index: {}]   ;;  %s15600_s3 = inlined_call_operand.vmem [shape: bf16[576,64], index: 3, kind: input, shape index: {}]   ;;  %s15601_s4 = inlined_call_operand.vmem [shape: bf16[576,64], index: 4, kind: input, shape index: {}]   ;;  %s15602_s5 = inlined_call_operand.vmem [shape: bf16[1024,256], index: 5, kind: input, shape index: {}]   ;;  %s15603_s6 = inlined_call_operand.vmem [shape: bf16[256,128], index: 6, kind: input, shape index: {}]   ;;  %s15604_s7 = inlined_call_operand.vmem [shape: f32[1,32], index: 7, kind: input, shape index: {}]   ;;  %s15605_s8 = inlined_call_operand.vmem [shape: f32[1,32], index: 8, kind: input, shape index: {}]   ;;  %s15606_s9 = inlined_call_operand.vmem [shape: f32[1,64], index: 9, kind: input, shape index: {}]   ;;  %s15607_s10 = inlined_call_operand.vmem [shape: f32[1,64], index: 10, kind: input, shape index: {}]   ;;  %s15608_s11 = inlined_call_operand.vmem [shape: f32[1,64], index: 11, kind: input, shape index: {}]   ;;  %s15609_s12 = inlined_call_operand.vmem [shape: f32[1,64], index: 12, kind: input, shape index: {}]   ;;  %s15610_s13 = inlined_call_operand.vmem [shape: f32[1,64], index: 13, kind: input, shape index: {}]   ;;  %s15611_s14 = inlined_call_operand.vmem [shape: f32[1,64], index: 14, kind: input, shape index: {}]   ;;  %s15612_s15 = inlined_call_operand.vmem [shape: f32[1,256], index: 15, kind: input, shape index: {}]   ;;  %s15613_s16 = inlined_call_operand.vmem [shape: f32[1,128], index: 16, kind: input, shape index: {}]   ;;  %s15614_s17 = inlined_call_operand.hbm [shape: f32[2,1,128], index: 17, kind: output, shape index: {}]  }
   0x1   :  { %15672 = sst [smem:[#allocation40_spill]] %s15597_s0 }
   0x2   :  { %15673 = sst [smem:[#allocation41_spill]] %s15598_s1 }
   0x3   :  { %15674 = sst [smem:[#allocation42_spill]] %s15599_s2 }
   0x4   :  { %15675 = sst [smem:[#allocation43_spill]] %s15600_s3 }
   0x5   :  { %15676 = sst [smem:[#allocation44_spill]] %s15604_s7 }
   0x6   :  { %22 = vsyncpa [#allocation9], 0 }
   0x7   :  { %24 = vsyncpa [#allocation9 + $0x1], 0  ;;  %s11836_s24 = smov 0   ;;  %s11838_s25 = smov 0  }
   0x8   :  { %s11840_s26 = smov 0   ;;  %s11842_s27 = smov 0  }
   0x9 LB: > { %15677 = sst [smem:[#allocation11_spill]] %s11735_s26  ;;  %s11857_s28 = sadd.s32 4294967295, %s11739_s27   ;;  %s11739_s27 = sphi %s11842_s27, %s15831_s27   ;;  %s11735_s26 = sphi %s11840_s26, %s15833_s26   ;;  %s11731_s25 = sphi %s11838_s25, %s15835_s25   ;;  %s11727_s24 = sphi %s11836_s24, %s15834_s24  }
   0xa   : > { %s9591_s29 = sadd.s32 4294967294, %s11739_s27   ;;  %s11861_s0 = sadd.s32 1, %s11739_s27  }
   0xb   : > { %15678 = sst [smem:[#allocation12_spill]] %s11861_s0  ;;  %s399_s30 = sadd.s32 1, %s11735_s26 }
   0xc   : > { %s396_s18 = ssub.s32 %s11739_s27, %s11861_s0  ;;  %p409_p0 = scmp.ne.s32.totalorder %s11735_s26, %s11731_s25 }
   0xd   : > { %p397_p1 = scmp.eq.s32.totalorder %s396_s18, 0  ;;  %p410_p2 = scmp.eq.s32.totalorder %s11857_s28, 1 }
   0xe   : > { %p415_p3 = scmp.ne.s32.totalorder %s11731_s25, %s11727_s24  ;;  %p416_p4 = scmp.eq.s32.totalorder %s9591_s29, 1 }
   0xf   : > { %s11872_s19 = scalar_select %p397_p1, %s11735_s26, %s399_s30  }
  0x10   : > { %p11874_p5 = por %p410_p2, %p409_p0  ;;  %p11878_p6 = por %p416_p4, %p415_p3 }
  0x11   : > { %15679 = sst [smem:[#allocation13_spill]] %s11872_s19  ;;  %p9594_p7 = scmp.ge.s32.totalorder %s11739_s27, 1 }
  0x12   : > { %p491_p8 = scmp.lt.s32.totalorder %s11739_s27, 3 }
  0x14   : > { %p492_p9 = pnand %p9594_p7, %p491_p8 }
  0x16   : > { %495 = sbr.rel (%p492_p9) target bundleno = 2557 (0x9fd), region = 88 }
  0x1d   : > { %s15682_s23 = sld [smem:[#allocation41_spill]]  ;;  %s9595_s29 = sshll.u32 %s11857_s28, 7  ;;  %vm1013_vm0 = vcmask 261120   ;;  %v11741_v63 = vmov 0   ;;  %vm2814_vm1 = vcmask 257024   ;;  %vm2817_vm2 = vcmask 253952  }
  0x1e   : > { %p543_p10 = scmp.lt.s32.totalorder %s9595_s29, 255  ;;  %s15683_s21 = sld [smem:[#allocation40_spill]]  ;;  %vm3465_vm3 = vcmask 1046528   ;;  %vm3192_vm4 = vsmask.f32 7424  ;;  %vm2596_vm5 = vcmask 1040384  }
  0x1f   : > { %s15666_s26 = smov 64   ;;  %s15638_s0 = smov 32   ;;  %vm2597_vm6 = vsmask.f32 256  ;;  %vm4538_vm8 = vcmask 523264   ;;  %vm4571_vm9 = vcmask 785408  }
  0x20   : > { %s15837_s29 = smov (!%p543_p10, %s9595_s29), 255  ;;  %s15687_s7 = sld [smem:[#allocation44_spill]]  ;;  %vm12221_vm7 = vmand %vm2596_vm5, %vm2597_vm6  ;;  %vm5590_vm10 = vcmask 519168   ;;  %vm5592_vm11 = vcmask 516096   ;;  %vm5523_vm12 = vcmask 1044480  }
  0x21   : > { %s9596_s19 = sshll.u32 %s15837_s29, 2  ;;  %s15691_s2 = sld [smem:[#allocation42_spill]]  ;;  %vm5524_vm13 = vsmask.f32 4352 }
  0x22   : > { %s11744_s30 = smov 96   ;;  %s15723_s18 = smov 32   ;;  %vm14035_vm14 = vmand %vm5523_vm12, %vm5524_vm13 }
  0x23   : > { %v11049_v0 = vld [vmem:[%s15682_s23] sm:$0xff]   ;;  %v11050_v1 = vld [vmem:[%s15682_s23 + $0x8] sm:$0xff]   ;;  %s15799_s3 = sld [smem:[#allocation43_spill]] }
  0x24   : > { %10768 = vmatprep.subr.bf16.mxu0 %v11049_v0  ;;  %10968 = vmatprep.subr.bf16.mxu1 %v11049_v0  ;;  %s11894_s22 = scalar_lea.vmem %s15683_s21, %s9596_s19 }
  0x25   : > { %10769 = vmatpush3.bf16.msra.mxu0 %v11049_v0  ;;  %10970 = vmatpush3.bf16.msra.mxu1 %v11049_v0  ;;  %v11051_v2 = vld [vmem:[%s11894_s22] sm:$0xff]   ;;  %v11053_v4 = vld [vmem:[%s11894_s22 + $0x8] sm:$0xff]   ;;  %v11055_v6 = vld [vmem:[%s11894_s22 + $0x10] sm:$0xff]   ;;  %v12016_v0 = vcombine.low %v11741_v63, %v11741_v63 }
  0x26   : > { %10770 = vmatprep.subr.bf16.mxu0 %v11050_v1  ;;  %10969 = vmatprep.subr.bf16.mxu1 %v11050_v1  ;;  %v11052_v3 = vld [vmem:[%s11894_s22 + $0x120] sm:$0xff]   ;;  %v11054_v5 = vld [vmem:[%s11894_s22 + $0x128] sm:$0xff]   ;;  %v11056_v7 = vld [vmem:[%s11894_s22 + $0x130] sm:$0xff]  }
  0x27   : > { %10772 = vmatprep.mubr.msk.bf16.mxu0 %vm1013_vm0, %v11051_v2  ;;  %10844 = vmatprep.mubr.msk.bf16.mxu1 %vm1013_vm0, %v11052_v3  ;;  %v11057_v8 = vld [vmem:[%s11894_s22 + $0x18] sm:$0xff]   ;;  %v11059_v10 = vld [vmem:[%s11894_s22 + $0x20] sm:$0xff]   ;;  %v11061_v12 = vld [vmem:[%s11894_s22 + $0x28] sm:$0xff]   ;;  %15684 = vst [vmem:[#allocation14_spill] sm:$0xff] %v12016_v0 }
  0x28   : > { %v11058_v9 = vld [vmem:[%s11894_s22 + $0x138] sm:$0xff]   ;;  %v11060_v11 = vld [vmem:[%s11894_s22 + $0x140] sm:$0xff]   ;;  %v11062_v13 = vld [vmem:[%s11894_s22 + $0x148] sm:$0xff]   ;;  %2815 = vst.msk [vmem:[#allocation2] sm:$0xf] %vm2814_vm1, %v12016_v0 }
  0x29   : > { %10771 = vmatpush3.bf16.msra.mxu0 %v11050_v1  ;;  %10971 = vmatpush3.bf16.msra.mxu1 %v11050_v1  ;;  %v11063_v14 = vld [vmem:[%s11894_s22 + $0x30] sm:$0xff]   ;;  %v11065_v16 = vld [vmem:[%s11894_s22 + $0x38] sm:$0xff]   ;;  %v11067_v18 = vld [vmem:[%s11894_s22 + $0x40] sm:$0xff]   ;;  %v12018_v1 = vcombine.high %v11741_v63, %v11741_v63  ;;  %2867 = vst.msk [vmem:[#allocation2 + $0xcc] sm:$0xf] %vm2814_vm1, %v12016_v0 }
  0x2a   : > { %v11064_v15 = vld [vmem:[%s11894_s22 + $0x150] sm:$0xff]   ;;  %v11066_v17 = vld [vmem:[%s11894_s22 + $0x158] sm:$0xff]   ;;  %v11070_v19 = vld [vmem:[%s11894_s22 + $0x160] sm:$0xff]   ;;  %2818 = vst.msk [vmem:[#allocation2 + $0x8] sm:$0x1] %vm2817_vm2, %v12016_v0 }
  0x2b   : > { %v11068_v20 = vld [vmem:[%s11894_s22 + $0x48] sm:$0xff]   ;;  %v11069_v21 = vld [vmem:[%s11894_s22 + $0x50] sm:$0xff]   ;;  %v11071_v24 = vld [vmem:[%s11894_s22 + $0x58] sm:$0xff]   ;;  %15685 = vst [vmem:[#allocation15_spill] sm:$0xff] %v12018_v1 }
  0x2c   : > { %10773 = vmatmul.mubr.msk.bf16.vlgmr.msra.gmra.mrb[0].mxu0 %vm1013_vm0, %v11053_v4  ;;  %10845 = vmatmul.mubr.msk.bf16.vlgmr.msra.gmra.mrb[0].mxu1 %vm1013_vm0, %v11054_v5  ;;  %v11072_v22 = vld [vmem:[%s11894_s22 + $0x168] sm:$0xff]   ;;  %v11074_v23 = vld [vmem:[%s11894_s22 + $0x170] sm:$0xff]   ;;  %v11073_v25 = vld [vmem:[%s11894_s22 + $0x60] sm:$0xff]   ;;  %2816 = vst.msk [vmem:[#allocation2 + $0x4] sm:$0xf] %vm2814_vm1, %v12018_v1 }
  0x2d   : > { %10776 = vmatprep.mubr.msk.bf16.mxu0 %vm1013_vm0, %v11055_v6  ;;  %10848 = vmatprep.mubr.msk.bf16.mxu1 %vm1013_vm0, %v11056_v7  ;;  %v11076_v26 = vld [vmem:[%s11894_s22 + $0x178] sm:$0xff]   ;;  %v11093_v27 = vld [vmem:[%s11894_s22 + $0x180] sm:$0xff]   ;;  %v11075_v28 = vld [vmem:[%s11894_s22 + $0x68] sm:$0xff]   ;;  %2868 = vst.msk [vmem:[#allocation2 + $0xd0] sm:$0xf] %vm2814_vm1, %v12018_v1 }
  0x2e   : > { %v11077_v29 = vld [vmem:[%s11894_s22 + $0x70] sm:$0xff]   ;;  %v11094_v30 = vld [vmem:[%s11894_s22 + $0x188] sm:$0xff]   ;;  %v11078_v32 = vld [vmem:[%s11894_s22 + $0x78] sm:$0xff]   ;;  %2869 = vst.msk [vmem:[#allocation2 + $0xd4] sm:$0x1] %vm2817_vm2, %v12016_v0 }
  0x2f   : > { %v11097_v31 = vld [vmem:[%s11894_s22 + $0x190] sm:$0xff]   ;;  %v11079_v33 = vld [vmem:[%s11894_s22 + $0x80] sm:$0xff]   ;;  %v11098_v34 = vld [vmem:[%s11894_s22 + $0x198] sm:$0xff]  }
  0x30   : > { %v11101_v35 = vld [vmem:[%s11894_s22 + $0x1a0] sm:$0xff]   ;;  %v11080_v36 = vld [vmem:[%s11894_s22 + $0x88] sm:$0xff]   ;;  %v11081_v37 = vld [vmem:[%s11894_s22 + $0x90] sm:$0xff]  }
  0x31   : > { %v11102_v38 = vld [vmem:[%s11894_s22 + $0x1a8] sm:$0xff]   ;;  %v11105_v39 = vld [vmem:[%s11894_s22 + $0x1b0] sm:$0xff]   ;;  %v11082_v40 = vld [vmem:[%s11894_s22 + $0x98] sm:$0xff]  }
  0x32   : > { %v11083_v41 = vld [vmem:[%s11894_s22 + $0xa0] sm:$0xff]   ;;  %v11106_v42 = vld [vmem:[%s11894_s22 + $0x1b8] sm:$0xff]   ;;  %v11084_v44 = vld [vmem:[%s11894_s22 + $0xa8] sm:$0xff]  }
  0x33   : > { %v11107_v43 = vld [vmem:[%s11894_s22 + $0x1c0] sm:$0xff]   ;;  %v11085_v45 = vld [vmem:[%s11894_s22 + $0xb0] sm:$0xff]   ;;  %v11108_v46 = vld [vmem:[%s11894_s22 + $0x1c8] sm:$0xff]  }
  0x34   : > { %10777 = vmatmul.mubr.msk.bf16.gmra.mrb[4].mxu0 %vm1013_vm0, %v11057_v8  ;;  %10849 = vmatmul.mubr.msk.bf16.gmra.mrb[4].mxu1 %vm1013_vm0, %v11058_v9  ;;  %v11109_v47 = vld [vmem:[%s11894_s22 + $0x1d0] sm:$0xff]   ;;  %v11086_v48 = vld [vmem:[%s11894_s22 + $0xb8] sm:$0xff]   ;;  %v11087_v49 = vld [vmem:[%s11894_s22 + $0xc0] sm:$0xff]  }
  0x35   : > { %10780 = vmatprep.mubr.msk.bf16.mxu0 %vm1013_vm0, %v11059_v10  ;;  %10852 = vmatprep.mubr.msk.bf16.mxu1 %vm1013_vm0, %v11060_v11  ;;  %v11110_v50 = vld [vmem:[%s11894_s22 + $0x1d8] sm:$0xff]   ;;  %v11111_v51 = vld [vmem:[%s11894_s22 + $0x1e0] sm:$0xff]   ;;  %v11088_v52 = vld [vmem:[%s11894_s22 + $0xc8] sm:$0xff]  }
  0x36   : > { %v11089_v53 = vld [vmem:[%s11894_s22 + $0xd0] sm:$0xff]   ;;  %v11112_v54 = vld [vmem:[%s11894_s22 + $0x1e8] sm:$0xff]   ;;  %v11090_v56 = vld [vmem:[%s11894_s22 + $0xd8] sm:$0xff]  }
  0x37   : > { %v11113_v55 = vld [vmem:[%s11894_s22 + $0x1f0] sm:$0xff]   ;;  %v11091_v57 = vld [vmem:[%s11894_s22 + $0xe0] sm:$0xff]   ;;  %v11114_v58 = vld [vmem:[%s11894_s22 + $0x1f8] sm:$0xff]  }
  0x38   : > { %v11092_v59 = vld [vmem:[%s11894_s22 + $0xe8] sm:$0xff]   ;;  %v11095_v60 = vld [vmem:[%s11894_s22 + $0xf0] sm:$0xff]   ;;  %v11096_v61 = vld [vmem:[%s11894_s22 + $0xf8] sm:$0xff]  }
  0x39   : > { %v11099_v62 = vld [vmem:[%s11894_s22 + $0x100] sm:$0xff]   ;;  %v11100_v2 = vld [vmem:[%s11894_s22 + $0x108] sm:$0xff]   ;;  %v11103_v3 = vld [vmem:[%s11894_s22 + $0x110] sm:$0xff]  }
  0x3a   : > { %v2871_v4 = vld [vmem:[#allocation2 + $0x4] sm:$0xf]  ;;  %v2870_v5 = vld [vmem:[#allocation2] sm:$0xf]  ;;  %v11104_v9 = vld [vmem:[%s11894_s22 + $0x118] sm:$0xff]  }
  0x3b   : > { %v12036_v6 = vcombine.low %v2870_v5, %v2871_v4  ;;  %v11115_v7 = vld [vmem:[#allocation2 + $0x8] ss:$0 sps:$4 sm:$0x11]   ;;  %v2918_v10 = vld [vmem:[#allocation2] sm:$0xe] }
  0x3c   : > { %10781 = vmatmul.mubr.msk.bf16.gmra.mrb[8].mxu0 %vm1013_vm0, %v11061_v12  ;;  %10853 = vmatmul.mubr.msk.bf16.gmra.mrb[8].mxu1 %vm1013_vm0, %v11062_v13  ;;  %v9811_v11 = vcombine.low %v2918_v10, %v2871_v4 }
  0x3d   : > { %10784 = vmatprep.mubr.msk.bf16.mxu0 %vm1013_vm0, %v11063_v14  ;;  %10856 = vmatprep.mubr.msk.bf16.mxu1 %vm1013_vm0, %v11064_v15  ;;  %15686 = vst [vmem:[#allocation16_spill] sm:$0xff] %v12036_v6  ;;  %v3196_v8 = vshll.u32 %v12036_v6, 16  ;;  %v3194_v12 = vshrl.u32 %v12036_v6, 16  ;;  %v3201_v14 = vshll.u32 %v11115_v7, 16 }
  0x3e   : > { %v3466_v15 = vrot.slane %v9811_v11, 1 }
  0x3f   : > { %v3198_v13 = vrot.slane %v3196_v8, 1 }
  0x44   : > { %10785 = vmatmul.mubr.msk.bf16.gmra.mrb[12].mxu0 %vm1013_vm0, %v11065_v16  ;;  %10857 = vmatmul.mubr.msk.bf16.gmra.mrb[12].mxu1 %vm1013_vm0, %v11066_v17  ;;  %v3467_v16 = vrot.slane %v11115_v7, 1  ;;  %v3199_v17 = vor.u32 %v3198_v13, %v3194_v12 }
  0x45   : > { %10788 = vmatprep.mubr.msk.bf16.mxu0 %vm1013_vm0, %v11067_v18  ;;  %10860 = vmatprep.mubr.msk.bf16.mxu1 %vm1013_vm0, %v11070_v19  ;;  %v3203_v18 = vrot.slane %v3201_v14, 1 }
  0x46   : > { %v3468_v19 = vsel %vm3465_vm3, %v3466_v15, %v3467_v16 }
  0x47   : > { %3514 = vrot.lane.b32.xlu1 %v3468_v19, %s15666_s26 }
  0x4c   : > { %10789 = vmatmul.mubr.msk.bf16.gmra.mrb[16].mxu0 %vm1013_vm0, %v11068_v20  ;;  %10861 = vmatmul.mubr.msk.bf16.gmra.mrb[16].mxu1 %vm1013_vm0, %v11072_v22  ;;  %v3204_v20 = vsel %vm3192_vm4, %v3199_v17, %v3203_v18 }
  0x4d   : > { %10792 = vmatprep.mubr.msk.bf16.mxu0 %vm1013_vm0, %v11069_v21  ;;  %10864 = vmatprep.mubr.msk.bf16.mxu1 %vm1013_vm0, %v11074_v23  ;;  %v12051_v21 = vld [vmem:[%s15687_s7] ss:$0 sm:$0xff] }
  0x4e   : > { %3385 = vrot.lane.b32.xlu0 %v3204_v20, %s15638_s0 }
  0x54   : > { %10793 = vmatmul.mubr.msk.bf16.gmra.mrb[20].mxu0 %vm1013_vm0, %v11071_v24  ;;  %10865 = vmatmul.mubr.msk.bf16.gmra.mrb[20].mxu1 %vm1013_vm0, %v11076_v26  ;;  %v12057_v24 = vld [vmem:[%s15605_s8] ss:$0 sm:$0xff] }
  0x55   : > { %10796 = vmatprep.mubr.msk.bf16.mxu0 %vm1013_vm0, %v11073_v25  ;;  %10868 = vmatprep.mubr.msk.bf16.mxu1 %vm1013_vm0, %v11093_v27 }
  0x5c   : > { %10797 = vmatmul.mubr.msk.bf16.gmra.mrb[24].mxu0 %vm1013_vm0, %v11075_v28  ;;  %10869 = vmatmul.mubr.msk.bf16.gmra.mrb[24].mxu1 %vm1013_vm0, %v11094_v30 }
  0x5d   : > { %10800 = vmatprep.mubr.msk.bf16.mxu0 %vm1013_vm0, %v11077_v29  ;;  %10872 = vmatprep.mubr.msk.bf16.mxu1 %vm1013_vm0, %v11097_v31 }
  0x64   : > { %10801 = vmatmul.mubr.msk.bf16.gmra.mrb[28].mxu0 %vm1013_vm0, %v11078_v32  ;;  %10873 = vmatmul.mubr.msk.bf16.gmra.mrb[28].mxu1 %vm1013_vm0, %v11098_v34 }
  0x65   : > { %10804 = vmatprep.mubr.msk.bf16.mxu0 %vm1013_vm0, %v11079_v33  ;;  %10876 = vmatprep.mubr.msk.bf16.mxu1 %vm1013_vm0, %v11101_v35 }
  0x6c   : > { %10805 = vmatmul.mubr.msk.bf16.gmra.mrb[32].mxu0 %vm1013_vm0, %v11080_v36  ;;  %10877 = vmatmul.mubr.msk.bf16.gmra.mrb[32].mxu1 %vm1013_vm0, %v11102_v38 }
  0x6d   : > { %10808 = vmatprep.mubr.msk.bf16.mxu0 %vm1013_vm0, %v11081_v37  ;;  %10880 = vmatprep.mubr.msk.bf16.mxu1 %vm1013_vm0, %v11105_v39 }
  0x74   : > { %10809 = vmatmul.mubr.msk.bf16.gmra.mrb[36].mxu0 %vm1013_vm0, %v11082_v40  ;;  %10881 = vmatmul.mubr.msk.bf16.gmra.mrb[36].mxu1 %vm1013_vm0, %v11106_v42 }
  0x75   : > { %10812 = vmatprep.mubr.msk.bf16.mxu0 %vm1013_vm0, %v11083_v41  ;;  %10884 = vmatprep.mubr.msk.bf16.mxu1 %vm1013_vm0, %v11107_v43 }
  0x7c   : > { %10813 = vmatmul.mubr.msk.bf16.gmra.mrb[40].mxu0 %vm1013_vm0, %v11084_v44  ;;  %10885 = vmatmul.mubr.msk.bf16.gmra.mrb[40].mxu1 %vm1013_vm0, %v11108_v46 }
  0x7d   : > { %10816 = vmatprep.mubr.msk.bf16.mxu0 %vm1013_vm0, %v11085_v45  ;;  %10888 = vmatprep.mubr.msk.bf16.mxu1 %vm1013_vm0, %v11109_v47 }
  0x84   : > { %10817 = vmatmul.mubr.msk.bf16.gmra.mrb[44].mxu0 %vm1013_vm0, %v11086_v48  ;;  %10889 = vmatmul.mubr.msk.bf16.gmra.mrb[44].mxu1 %vm1013_vm0, %v11110_v50 }
  0x85   : > { %10820 = vmatprep.mubr.msk.bf16.mxu0 %vm1013_vm0, %v11087_v49  ;;  %10892 = vmatprep.mubr.msk.bf16.mxu1 %vm1013_vm0, %v11111_v51 }
  0x8c   : > { %10821 = vmatmul.mubr.msk.bf16.gmra.mrb[48].mxu0 %vm1013_vm0, %v11088_v52  ;;  %10893 = vmatmul.mubr.msk.bf16.gmra.mrb[48].mxu1 %vm1013_vm0, %v11112_v54 }
  0x8d   : > { %10824 = vmatprep.mubr.msk.bf16.mxu0 %vm1013_vm0, %v11089_v53  ;;  %10896 = vmatprep.mubr.msk.bf16.mxu1 %vm1013_vm0, %v11113_v55 }
  0x94   : > { %10825 = vmatmul.mubr.msk.bf16.gmra.mrb[52].mxu0 %vm1013_vm0, %v11090_v56  ;;  %10897 = vmatmul.mubr.msk.bf16.gmra.mrb[52].mxu1 %vm1013_vm0, %v11114_v58 }
  0x95   : > { %10828 = vmatprep.mubr.msk.bf16.mxu0 %vm1013_vm0, %v11091_v57 }
  0x9c   : > { %10829 = vmatmul.mubr.msk.bf16.gmra.mrb[56].mxu0 %vm1013_vm0, %v11092_v59 }
  0x9d   : > { %10832 = vmatprep.mubr.msk.bf16.mxu0 %vm1013_vm0, %v11095_v60 }
  0xa4   : > { %10833 = vmatmul.mubr.msk.bf16.gmra.mrb[60].mxu0 %vm1013_vm0, %v11096_v61 }
  0xa5   : > { %10836 = vmatprep.mubr.msk.bf16.mxu0 %vm1013_vm0, %v11099_v62 }
  0xac   : > { %10837 = vmatmul.mubr.msk.bf16.gmra.mrb[64].mxu0 %vm1013_vm0, %v11100_v2 }
  0xad   : > { %10840 = vmatprep.mubr.msk.bf16.mxu0 %vm1013_vm0, %v11103_v3 }
  0xb4   : > { %10841 = vmatmul.mubr.msk.bf16.gmra.mrb[68].mxu0 %vm1013_vm0, %v11104_v9 }
  0xff   : > { %v10774_v22 = vpop.f32.mrb[0].mxu0  ;;  %v10846_v26 = vpop.f32.mrb[0].mxu1 }
 0x100   : > { %v1760_v23 = vmul.f32 %v10774_v22, %v12051_v21  ;;  %v1240_v25 = vpop.f32.mrb[1].mxu0  ;;  %v1832_v29 = vmul.f32 %v10846_v26, %v12051_v21  ;;  %v1528_v30 = vpop.f32.mrb[1].mxu1 }
 0x101   : > { %v1758_v27 = vmul.f32 %v12051_v21, %v1240_v25  ;;  %v10775_v28 = vpop.f32.mrb[2].mxu0  ;;  %v1830_v33 = vmul.f32 %v12051_v21, %v1528_v30  ;;  %v10847_v34 = vpop.f32.mrb[2].mxu1 }
 0x102   : > { %v1761_v31 = vmul.f32 %v10775_v28, %v12051_v21  ;;  %v1243_v32 = vpop.f32.mrb[3].mxu0  ;;  %v1895_v35 = vadd.f32 %v12057_v24, %v1760_v23  ;;  %v1833_v38 = vmul.f32 %v10847_v34, %v12051_v21  ;;  %v1531_v39 = vpop.f32.mrb[3].mxu1  ;;  %v1967_v41 = vadd.f32 %v12057_v24, %v1832_v29 }
 0x103   : > { %v1893_v36 = vadd.f32 %v12057_v24, %v1758_v27  ;;  %v1759_v37 = vmul.f32 %v12051_v21, %v1243_v32  ;;  %v1965_v42 = vadd.f32 %v12057_v24, %v1830_v33  ;;  %v1831_v43 = vmul.f32 %v12051_v21, %v1531_v39 }
 0x104   : > { %v1896_v40 = vadd.f32 %v12057_v24, %v1761_v31  ;;  %v1968_v45 = vadd.f32 %v12057_v24, %v1833_v38  ;;  %v2023_v47 = vmax.f32 %v1895_v35, 0.0  ;;  %v2095_v51 = vmax.f32 %v1967_v41, 0.0 }
 0x105   : > { %v1894_v44 = vadd.f32 %v12057_v24, %v1759_v37  ;;  %v1966_v46 = vadd.f32 %v12057_v24, %v1831_v43  ;;  %v2021_v48 = vmax.f32 %v1893_v36, 0.0  ;;  %v2093_v52 = vmax.f32 %v1965_v42, 0.0 }
 0x106   : > { %v2024_v50 = vmax.f32 %v1896_v40, 0.0  ;;  %v2096_v57 = vmax.f32 %v1968_v45, 0.0 }
 0x107   : > { %v10778_v49 = vpop.f32.mrb[4].mxu0  ;;  %v10850_v54 = vpop.f32.mrb[4].mxu1  ;;  %v2022_v56 = vmax.f32 %v1894_v44, 0.0  ;;  %v2094_v62 = vmax.f32 %v1966_v46, 0.0 }
 0x108   : > { %v1764_v53 = vmul.f32 %v10778_v49, %v12051_v21  ;;  %v1256_v55 = vpop.f32.mrb[5].mxu0  ;;  %v1836_v58 = vmul.f32 %v10850_v54, %v12051_v21  ;;  %v1544_v60 = vpop.f32.mrb[5].mxu1 }
 0x109   : > { %v1762_v59 = vmul.f32 %v12051_v21, %v1256_v55  ;;  %v10779_v61 = vpop.f32.mrb[6].mxu0  ;;  %v1834_v2 = vmul.f32 %v12051_v21, %v1544_v60  ;;  %v10851_v4 = vpop.f32.mrb[6].mxu1 }
 0x10a   : > { %v1899_v63 = vadd.f32 %v12057_v24, %v1764_v53  ;;  %v1765_v3 = vmul.f32 %v10779_v61, %v12051_v21  ;;  %v1259_v5 = vpop.f32.mrb[7].mxu0  ;;  %v1971_v7 = vadd.f32 %v12057_v24, %v1836_v58  ;;  %v1837_v9 = vmul.f32 %v10851_v4, %v12051_v21  ;;  %v1547_v11 = vpop.f32.mrb[7].mxu1 }
 0x10b   : > { %v1897_v8 = vadd.f32 %v12057_v24, %v1762_v59  ;;  %v1763_v10 = vmul.f32 %v12051_v21, %v1259_v5  ;;  %v1969_v13 = vadd.f32 %v12057_v24, %v1834_v2  ;;  %v1835_v15 = vmul.f32 %v12051_v21, %v1547_v11 }
 0x10c   : > { %v2027_v12 = vmax.f32 %v1899_v63, 0.0  ;;  %v1900_v14 = vadd.f32 %v12057_v24, %v1765_v3  ;;  %v2099_v16 = vmax.f32 %v1971_v7, 0.0  ;;  %v1972_v18 = vadd.f32 %v12057_v24, %v1837_v9 }
 0x10d   : > { %v2025_v17 = vmax.f32 %v1897_v8, 0.0  ;;  %v1898_v19 = vadd.f32 %v12057_v24, %v1763_v10  ;;  %v2097_v22 = vmax.f32 %v1969_v13, 0.0  ;;  %v1970_v25 = vadd.f32 %v12057_v24, %v1835_v15 }
 0x10e   : > { %v2151_v20 = vmax.f32 %v2023_v47, %v2027_v12  ;;  %v2028_v23 = vmax.f32 %v1900_v14, 0.0  ;;  %v2187_v26 = vmax.f32 %v2095_v51, %v2099_v16  ;;  %v2100_v28 = vmax.f32 %v1972_v18, 0.0 }
 0x10f   : > { %v2149_v27 = vmax.f32 %v2021_v48, %v2025_v17  ;;  %v2026_v29 = vmax.f32 %v1898_v19, 0.0  ;;  %v10782_v30 = vpop.f32.mrb[8].mxu0  ;;  %v2185_v31 = vmax.f32 %v2093_v52, %v2097_v22  ;;  %v2098_v33 = vmax.f32 %v1970_v25, 0.0  ;;  %v10854_v36 = vpop.f32.mrb[8].mxu1 }
 0x110   : > { %2215 = vst.msk [vmem:[#allocation5 + $0x10] sm:$0xff] %vm1013_vm0, %v2151_v20  ;;  %v2152_v32 = vmax.f32 %v2024_v50, %v2028_v23  ;;  %v1768_v34 = vmul.f32 %v10782_v30, %v12051_v21  ;;  %v1272_v35 = vpop.f32.mrb[9].mxu0  ;;  %2251 = vst.msk [vmem:[#allocation5 + $0x130] sm:$0xff] %vm1013_vm0, %v2187_v26  ;;  %v2188_v37 = vmax.f32 %v2096_v57, %v2100_v28  ;;  %v1560_v42 = vpop.f32.mrb[9].mxu1 }
 0x111   : > { %2213 = vst.msk [vmem:[#allocation5] sm:$0xff] %vm1013_vm0, %v2149_v27  ;;  %v2150_v38 = vmax.f32 %v2022_v56, %v2026_v29  ;;  %v1766_v39 = vmul.f32 %v12051_v21, %v1272_v35  ;;  %v10783_v40 = vpop.f32.mrb[10].mxu0  ;;  %v1840_v41 = vmul.f32 %v10854_v36, %v12051_v21  ;;  %2249 = vst.msk [vmem:[#allocation5 + $0x120] sm:$0xff] %vm1013_vm0, %v2185_v31  ;;  %v10855_v47 = vpop.f32.mrb[10].mxu1 }
 0x112   : > { %2216 = vst.msk [vmem:[#allocation5 + $0x18] sm:$0xff] %vm1013_vm0, %v2152_v32  ;;  %v2186_v43 = vmax.f32 %v2094_v62, %v2098_v33  ;;  %v1769_v44 = vmul.f32 %v10783_v40, %v12051_v21  ;;  %v1275_v45 = vpop.f32.mrb[11].mxu0  ;;  %v1838_v46 = vmul.f32 %v12051_v21, %v1560_v42  ;;  %2252 = vst.msk [vmem:[#allocation5 + $0x138] sm:$0xff] %vm1013_vm0, %v2188_v37  ;;  %v1563_v52 = vpop.f32.mrb[11].mxu1 }
 0x113   : > { %2214 = vst.msk [vmem:[#allocation5 + $0x8] sm:$0xff] %vm1013_vm0, %v2150_v38  ;;  %v1903_v48 = vadd.f32 %v12057_v24, %v1768_v34  ;;  %v1901_v49 = vadd.f32 %v12057_v24, %v1766_v39  ;;  %v1767_v50 = vmul.f32 %v12051_v21, %v1275_v45  ;;  %v1841_v51 = vmul.f32 %v10855_v47, %v12051_v21 }
 0x114   : > { %2250 = vst.msk [vmem:[#allocation5 + $0x128] sm:$0xff] %vm1013_vm0, %v2186_v43  ;;  %v12108_v53 = vadd.f32 %v12057_v24, %v1769_v44  ;;  %v1975_v54 = vadd.f32 %v12057_v24, %v1840_v41  ;;  %v1973_v55 = vadd.f32 %v12057_v24, %v1838_v46  ;;  %v1839_v58 = vmul.f32 %v12051_v21, %v1563_v52 }
 0x115   : > { %v12113_v56 = vadd.f32 %v12057_v24, %v1767_v50  ;;  %v12116_v57 = vadd.f32 %v12057_v24, %v1841_v51  ;;  %v2031_v59 = vmax.f32 %v1903_v48, 0.0  ;;  %v2029_v60 = vmax.f32 %v1901_v49, 0.0 }
 0x116   : > { %v2032_v62 = vmax.f32 %v12108_v53, 0.0  ;;  %v2103_v63 = vmax.f32 %v1975_v54, 0.0  ;;  %v2101_v2 = vmax.f32 %v1973_v55, 0.0  ;;  %v12128_v16 = vadd.f32 %v12057_v24, %v1839_v58 }
 0x117   : > { %v10786_v61 = vpop.f32.mrb[12].mxu0  ;;  %v10858_v4 = vpop.f32.mrb[12].mxu1  ;;  %v2030_v7 = vmax.f32 %v12113_v56, 0.0  ;;  %v2104_v8 = vmax.f32 %v12116_v57, 0.0 }
 0x118   : > { %v1772_v3 = vmul.f32 %v10786_v61, %v12051_v21  ;;  %v1288_v5 = vpop.f32.mrb[13].mxu0  ;;  %v1844_v9 = vmul.f32 %v10858_v4, %v12051_v21  ;;  %v1576_v11 = vpop.f32.mrb[13].mxu1  ;;  %v2102_v41 = vmax.f32 %v12128_v16, 0.0 }
 0x119   : > { %v1770_v10 = vmul.f32 %v12051_v21, %v1288_v5  ;;  %v10787_v12 = vpop.f32.mrb[14].mxu0  ;;  %v12125_v13 = vld [vmem:[#allocation5 + $0x10] ss:$2 sm:$0xff]  ;;  %v2379_v15 = vld [vmem:[#allocation5 + $0x131] ss:$2 sm:$0xff]  ;;  %v1842_v18 = vmul.f32 %v12051_v21, %v1576_v11  ;;  %v10859_v32 = vpop.f32.mrb[14].mxu1 }
 0x11a   : > { %v2315_v14 = vld [vmem:[#allocation5 + $0x130] ss:$2 sm:$0xff]  ;;  %v1907_v17 = vadd.f32 %v12057_v24, %v1772_v3  ;;  %v1773_v19 = vmul.f32 %v10787_v12, %v12051_v21  ;;  %v12133_v20 = vld [vmem:[#allocation5 + $0x11] ss:$2 sm:$0xff]  ;;  %v1979_v25 = vadd.f32 %v12057_v24, %v1844_v9  ;;  %v2277_v28 = vld [vmem:[#allocation5] ss:$2 sm:$0xff]  ;;  %v1845_v38 = vmul.f32 %v10859_v32, %v12051_v21 }
 0x11b   : > { %v2313_v22 = vld [vmem:[#allocation5 + $0x120] ss:$2 sm:$0xff]  ;;  %v2377_v23 = vld [vmem:[#allocation5 + $0x121] ss:$2 sm:$0xff]  ;;  %v1905_v26 = vadd.f32 %v12057_v24, %v1770_v10  ;;  %v2423_v27 = vmax.f32 %v2315_v14, %v2379_v15  ;;  %v1977_v31 = vadd.f32 %v12057_v24, %v1842_v18  ;;  %v1291_v33 = vpop.f32.mrb[15].mxu0  ;;  %v1579_v39 = vpop.f32.mrb[15].mxu1  ;;  %v2405_v40 = vmax.f32 %v12125_v13, %v12133_v20 }
 0x11c   : > { %v2422_v29 = vmax.f32 %v2313_v22, %v2377_v23  ;;  %v2035_v30 = vmax.f32 %v1907_v17, 0.0  ;;  %v2341_v34 = vld [vmem:[#allocation5 + $0x1] ss:$2 sm:$0xff]  ;;  %v2107_v35 = vmax.f32 %v1979_v25, 0.0  ;;  %v1908_v37 = vadd.f32 %v12057_v24, %v1773_v19 }
 0x11d   : > { %v2033_v36 = vmax.f32 %v1905_v26, 0.0  ;;  %v2105_v43 = vmax.f32 %v1977_v31, 0.0  ;;  %v1980_v47 = vadd.f32 %v12057_v24, %v1845_v38  ;;  %v2404_v49 = vmax.f32 %v2277_v28, %v2341_v34 }
 0x11e   : > { %v2155_v42 = vmax.f32 %v2031_v59, %v2035_v30  ;;  %v2191_v44 = vmax.f32 %v2103_v63, %v2107_v35  ;;  %v2036_v46 = vmax.f32 %v1908_v37, 0.0  ;;  %v12144_v50 = vpack.c.bf16 %v2423_v27, %v2422_v29 }
 0x11f   : > { %v2153_v45 = vmax.f32 %v2029_v60, %v2033_v36  ;;  %v10790_v48 = vpop.f32.mrb[16].mxu0  ;;  %v2189_v51 = vmax.f32 %v2101_v2, %v2105_v43  ;;  %v1771_v52 = vmul.f32 %v12051_v21, %v1291_v33  ;;  %v10862_v54 = vpop.f32.mrb[16].mxu1  ;;  %v2108_v57 = vmax.f32 %v1980_v47, 0.0 }
 0x120   : > { %2219 = vst.msk [vmem:[#allocation5 + $0x30] sm:$0xff] %vm1013_vm0, %v2155_v42  ;;  %v1304_v53 = vpop.f32.mrb[17].mxu0  ;;  %2255 = vst.msk [vmem:[#allocation5 + $0x150] sm:$0xff] %vm1013_vm0, %v2191_v44  ;;  %v2156_v55 = vmax.f32 %v2032_v62, %v2036_v46  ;;  %v1843_v58 = vmul.f32 %v12051_v21, %v1579_v39  ;;  %v1776_v59 = vmul.f32 %v10790_v48, %v12051_v21  ;;  %v1592_v61 = vpop.f32.mrb[17].mxu1  ;;  %v2516_v23 = vshrl.u32 %v12144_v50, 16 }
 0x121   : > { %2217 = vst.msk [vmem:[#allocation5 + $0x20] sm:$0xff] %vm1013_vm0, %v2153_v45  ;;  %v10791_v60 = vpop.f32.mrb[18].mxu0  ;;  %2253 = vst.msk [vmem:[#allocation5 + $0x140] sm:$0xff] %vm1013_vm0, %v2189_v51  ;;  %v1906_v63 = vadd.f32 %v12057_v24, %v1771_v52  ;;  %v1774_v2 = vmul.f32 %v12051_v21, %v1304_v53  ;;  %v1848_v5 = vmul.f32 %v10862_v54, %v12051_v21  ;;  %v10863_v9 = vpop.f32.mrb[18].mxu1  ;;  %v2519_v48 = vshll.u32 %v12144_v50, 16 }
 0x122   : > { %v1777_v3 = vmul.f32 %v10791_v60, %v12051_v21  ;;  %v1307_v4 = vpop.f32.mrb[19].mxu0  ;;  %2220 = vst.msk [vmem:[#allocation5 + $0x38] sm:$0xff] %vm1013_vm0, %v2156_v55  ;;  %v2192_v62 = vmax.f32 %v2104_v8, %v2108_v57  ;;  %v1978_v10 = vadd.f32 %v12057_v24, %v1843_v58  ;;  %v1911_v11 = vadd.f32 %v12057_v24, %v1776_v59  ;;  %v1595_v13 = vpop.f32.mrb[19].mxu1 }
 0x123   : > { %v1775_v12 = vmul.f32 %v12051_v21, %v1307_v4  ;;  %v2034_v14 = vmax.f32 %v1906_v63, 0.0  ;;  %v1909_v15 = vadd.f32 %v12057_v24, %v1774_v2  ;;  %v12166_v17 = vadd.f32 %v12057_v24, %v1848_v5 }
 0x124   : > { %v12163_v16 = vadd.f32 %v12057_v24, %v1777_v3  ;;  %2256 = vst.msk [vmem:[#allocation5 + $0x158] sm:$0xff] %vm1013_vm0, %v2192_v62  ;;  %v2106_v18 = vmax.f32 %v1978_v10, 0.0  ;;  %v1846_v19 = vmul.f32 %v12051_v21, %v1592_v61  ;;  %v12173_v20 = vpack.c.bf16 %v2405_v40, %v2404_v49 }
 0x125   : > { %v12170_v8 = vadd.f32 %v12057_v24, %v1775_v12  ;;  %v2154_v22 = vmax.f32 %v2030_v7, %v2034_v14  ;;  %v2039_v26 = vmax.f32 %v1911_v11, 0.0  ;;  %v2037_v27 = vmax.f32 %v1909_v15, 0.0 }
 0x126   : > { %v2190_v25 = vmax.f32 %v2102_v41, %v2106_v18  ;;  %v2040_v29 = vmax.f32 %v12163_v16, 0.0  ;;  %v2111_v32 = vmax.f32 %v12166_v17, 0.0  ;;  %v12183_v56 = vadd.f32 %v12057_v24, %v1846_v19 }
 0x127   : > { %v10794_v28 = vpop.f32.mrb[20].mxu0  ;;  %2218 = vst.msk [vmem:[#allocation5 + $0x28] sm:$0xff] %vm1013_vm0, %v2154_v22  ;;  %v10866_v7 = vpop.f32.mrb[20].mxu1  ;;  %v2038_v33 = vmax.f32 %v12170_v8, 0.0  ;;  %v1849_v36 = vmul.f32 %v10863_v9, %v12051_v21  ;;  %v1847_v42 = vmul.f32 %v12051_v21, %v1595_v13  ;;  %v12196_v47 = vrot.slane %v2516_v23, 7 }
 0x128   : > { %v1780_v30 = vmul.f32 %v10794_v28, %v12051_v21  ;;  %v1320_v31 = vpop.f32.mrb[21].mxu0  ;;  %2254 = vst.msk [vmem:[#allocation5 + $0x148] sm:$0xff] %vm1013_vm0, %v2190_v25  ;;  %v1852_v37 = vmul.f32 %v10866_v7, %v12051_v21  ;;  %v1608_v38 = vpop.f32.mrb[21].mxu1  ;;  %v2109_v55 = vmax.f32 %v12183_v56, 0.0  ;;  %v2453_v25 = vshrl.u32 %v12173_v20, 16 }
 0x129   : > { %v1778_v34 = vmul.f32 %v12051_v21, %v1320_v31  ;;  %v10795_v35 = vpop.f32.mrb[22].mxu0  ;;  %v1850_v43 = vmul.f32 %v12051_v21, %v1608_v38  ;;  %v10867_v44 = vpop.f32.mrb[22].mxu1  ;;  %v2283_v51 = vld [vmem:[#allocation5 + $0x30] ss:$2 sm:$0xff]  ;;  %v2347_v52 = vld [vmem:[#allocation5 + $0x31] ss:$2 sm:$0xff]  ;;  %v1984_v60 = vadd.f32 %v12057_v24, %v1849_v36  ;;  %v2521_v14 = vor.u32 %v2519_v48, %v12196_v47 }
 0x12a   : > { %v1915_v39 = vadd.f32 %v12057_v24, %v1780_v30  ;;  %v1781_v40 = vmul.f32 %v10795_v35, %v12051_v21  ;;  %v1323_v41 = vpop.f32.mrb[23].mxu0  ;;  %v1611_v49 = vpop.f32.mrb[23].mxu1  ;;  %v1987_v57 = vadd.f32 %v12057_v24, %v1852_v37  ;;  %v1853_v5 = vmul.f32 %v10867_v44, %v12051_v21 }
 0x12b   : > { %v1913_v45 = vadd.f32 %v12057_v24, %v1778_v34  ;;  %v1779_v46 = vmul.f32 %v12051_v21, %v1323_v41  ;;  %v1985_v61 = vadd.f32 %v12057_v24, %v1850_v43  ;;  %v2319_v63 = vld [vmem:[#allocation5 + $0x150] ss:$2 sm:$0xff]  ;;  %v2383_v2 = vld [vmem:[#allocation5 + $0x151] ss:$2 sm:$0xff]  ;;  %v2407_v9 = vmax.f32 %v2283_v51, %v2347_v52 }
 0x12c   : > { %v2043_v53 = vmax.f32 %v1915_v39, 0.0  ;;  %v1916_v54 = vadd.f32 %v12057_v24, %v1781_v40  ;;  %v2115_v4 = vmax.f32 %v1987_v57, 0.0  ;;  %v2425_v56 = vmax.f32 %v2319_v63, %v2383_v2 }
 0x12d   : > { %v2041_v58 = vmax.f32 %v1913_v45, 0.0  ;;  %v1914_v59 = vadd.f32 %v12057_v24, %v1779_v46  ;;  %v2113_v28 = vmax.f32 %v1985_v61, 0.0  ;;  %v2112_v36 = vmax.f32 %v1984_v60, 0.0 }
 0x12e   : > { %v2159_v50 = vmax.f32 %v2039_v26, %v2043_v53  ;;  %v2044_v3 = vmax.f32 %v1916_v54, 0.0  ;;  %v2281_v62 = vld [vmem:[#allocation5 + $0x20] ss:$2 sm:$0xff]  ;;  %v2345_v10 = vld [vmem:[#allocation5 + $0x21] ss:$2 sm:$0xff]  ;;  %v2195_v19 = vmax.f32 %v2111_v32, %v2115_v4  ;;  %v15688_v32 = vmov 0 }
 0x12f   : > { %v2157_v11 = vmax.f32 %v2037_v27, %v2041_v58  ;;  %v2042_v12 = vmax.f32 %v1914_v59, 0.0  ;;  %v10798_v13 = vpop.f32.mrb[24].mxu0  ;;  %v2406_v15 = vmax.f32 %v2281_v62, %v2345_v10  ;;  %v2317_v16 = vld [vmem:[#allocation5 + $0x140] ss:$2 sm:$0xff]  ;;  %v2381_v17 = vld [vmem:[#allocation5 + $0x141] ss:$2 sm:$0xff]  ;;  %v1982_v27 = vadd.f32 %v12057_v24, %v1847_v42 }
 0x130   : > { %2223 = vst.msk [vmem:[#allocation5 + $0x50] sm:$0xff] %vm1013_vm0, %v2159_v50  ;;  %v2160_v18 = vmax.f32 %v2040_v29, %v2044_v3  ;;  %v1784_v8 = vmul.f32 %v10798_v13, %v12051_v21  ;;  %v1336_v22 = vpop.f32.mrb[25].mxu0  ;;  %v12209_v23 = vpop.f32.mrb[24].mxu1  ;;  %v2424_v7 = vmax.f32 %v2317_v16, %v2381_v17  ;;  %2259 = vst.msk [vmem:[#allocation5 + $0x170] sm:$0xff] %vm1013_vm0, %v2195_v19  ;;  %v15689_v32 = vsel %vm12221_vm7, 4294967295, %v15688_v32  ;;  %v11179_v50 = vld [vmem:[%s15691_s2 + $0x40] sm:$0xff]  }
 0x131   : > { %2221 = vst.msk [vmem:[#allocation5 + $0x40] sm:$0xff] %vm1013_vm0, %v2157_v11  ;;  %v2158_v26 = vmax.f32 %v2038_v33, %v2042_v12  ;;  %v10799_v30 = vpop.f32.mrb[26].mxu0  ;;  %v12214_v31 = vpop.f32.mrb[25].mxu1  ;;  %v1988_v29 = vadd.f32 %v12057_v24, %v1853_v5  ;;  %15690 = vst [vmem:[#allocation17_spill] sm:$0xff] %v15689_v32  ;;  %v1851_v33 = vmul.f32 %v12051_v21, %v1611_v49  ;;  %v2608_v39 = vsel %vm12221_vm7, 0, %v2521_v14 }
 0x132   : > { %2224 = vst.msk [vmem:[#allocation5 + $0x58] sm:$0xff] %vm1013_vm0, %v2160_v18  ;;  %v1339_v34 = vpop.f32.mrb[27].mxu0  ;;  %v12226_v35 = vpop.f32.mrb[26].mxu1  ;;  %v1782_v37 = vmul.f32 %v12051_v21, %v1336_v22  ;;  %v2193_v38 = vmax.f32 %v2109_v55, %v2113_v28  ;;  %v12234_v41 = vpack.c.bf16 %v2407_v9, %v2406_v15  ;;  %v1919_v42 = vadd.f32 %v12057_v24, %v1784_v8 }
 0x133   : > { %2222 = vst.msk [vmem:[#allocation5 + $0x48] sm:$0xff] %vm1013_vm0, %v2158_v26  ;;  %v12232_v40 = vpop.f32.mrb[27].mxu1  ;;  %v2110_v43 = vmax.f32 %v1982_v27, 0.0  ;;  %v2116_v44 = vmax.f32 %v1988_v29, 0.0  ;;  %v9758_v45 = vcombine.low %v2608_v39, %v2608_v39  ;;  %v12238_v46 = vpack.c.bf16 %v2425_v56, %v2424_v7  ;;  %10440 = vmatprep.subr.bf16.mxu1 %v11179_v50  ;;  %v11184_v27 = vld [vmem:[%s15691_s2] sm:$0xff]  }
 0x134   : > { %2257 = vst.msk [vmem:[#allocation5 + $0x160] sm:$0xff] %vm1013_vm0, %v2193_v38  ;;  %v1785_v48 = vmul.f32 %v10799_v30, %v12051_v21  ;;  %v9759_v49 = vcombine.high %v2608_v39, %v2608_v39  ;;  %v1986_v51 = vadd.f32 %v12057_v24, %v1851_v33  ;;  %v1917_v52 = vadd.f32 %v12057_v24, %v1782_v37 }
 0x135   : > { %v2196_v53 = vmax.f32 %v2112_v36, %v2116_v44  ;;  %2846 = vst.msk [vmem:[#allocation2 + $0x78] sm:$0xf] %vm2814_vm1, %v9758_v45  ;;  %v2455_v54 = vrot.slane %v2453_v25, 7  ;;  %v2456_v55 = vshll.u32 %v12173_v20, 16  ;;  %v2460_v58 = vshrl.u32 %v12234_v41, 16  ;;  %10441 = vmatpush3.bf16.msra.mxu1 %v11184_v27 }
 0x136   : > { %v2047_v59 = vmax.f32 %v1919_v42, 0.0  ;;  %2847 = vst.msk [vmem:[#allocation2 + $0x7c] sm:$0xf] %vm2814_vm1, %v9759_v49  ;;  %v2114_v60 = vmax.f32 %v1986_v51, 0.0  ;;  %v1783_v20 = vmul.f32 %v12051_v21, %v1339_v34  ;;  %v2624_v12 = vsel %vm12221_vm7, %v12196_v47, 0 }
 0x137   : > { %v10802_v57 = vpop.f32.mrb[28].mxu0  ;;  %v12248_v2 = vpop.f32.mrb[28].mxu1  ;;  %2260 = vst.msk [vmem:[#allocation5 + $0x178] sm:$0xff] %vm1013_vm0, %v2196_v53  ;;  %v2458_v3 = vor.u32 %v2456_v55, %v2455_v54  ;;  %v2615_v4 = vsel %vm12221_vm7, %v2455_v54, 0  ;;  %v2045_v15 = vmax.f32 %v1917_v52, 0.0  ;;  %v1920_v16 = vadd.f32 %v12057_v24, %v1785_v48 }
 0x138   : > { %v1788_v61 = vmul.f32 %v10802_v57, %v12051_v21  ;;  %v1352_v63 = vpop.f32.mrb[29].mxu0  ;;  %v2194_v62 = vmax.f32 %v2110_v43, %v2114_v60  ;;  %v9733_v10 = vcombine.low %v2615_v4, %v2615_v4  ;;  %v12262_v14 = vpop.f32.mrb[29].mxu1  ;;  %v1918_v28 = vadd.f32 %v12057_v24, %v1783_v20 }
 0x139   : > { %v1786_v5 = vmul.f32 %v12051_v21, %v1352_v63  ;;  %v10803_v9 = vpop.f32.mrb[30].mxu0  ;;  %v2599_v17 = vsel %vm12221_vm7, 0, %v2458_v3  ;;  %v12268_v8 = vpop.f32.mrb[30].mxu1  ;;  %v9760_v56 = vcombine.low %v2624_v12, %v2624_v12  ;;  %v12285_v42 = vrot.slane %v2460_v58, 7  ;;  %v2287_v54 = vld [vmem:[#allocation5 + $0x50] ss:$2 sm:$0xff] }
 0x13a   : > { %v1923_v11 = vadd.f32 %v12057_v24, %v1788_v61  ;;  %v1355_v13 = vpop.f32.mrb[31].mxu0  ;;  %2258 = vst.msk [vmem:[#allocation5 + $0x168] sm:$0xff] %vm1013_vm0, %v2194_v62  ;;  %v9731_v19 = vcombine.low %v2599_v17, %v2599_v17  ;;  %v9732_v22 = vcombine.high %v2599_v17, %v2599_v17  ;;  %v1789_v25 = vmul.f32 %v10803_v9, %v12051_v21  ;;  %v12273_v26 = vpop.f32.mrb[31].mxu1  ;;  %v2351_v55 = vld [vmem:[#allocation5 + $0x51] ss:$2 sm:$0xff] }
 0x13b   : > { %v1921_v18 = vadd.f32 %v12057_v24, %v1786_v5  ;;  %2821 = vst.msk [vmem:[#allocation2 + $0x14] sm:$0x1] %vm2817_vm2, %v9733_v10  ;;  %v1787_v7 = vmul.f32 %v12051_v21, %v1355_v13  ;;  %2848 = vst.msk [vmem:[#allocation2 + $0x80] sm:$0x1] %vm2817_vm2, %v9760_v56  ;;  %v2463_v43 = vshll.u32 %v12234_v41, 16  ;;  %v2523_v44 = vshrl.u32 %v12238_v46, 16 }
 0x13c   : > { %v2051_v47 = vmax.f32 %v1923_v11, 0.0  ;;  %v3016_v29 = vld [vmem:[#allocation2 + $0x78] sm:$0xf]  ;;  %2819 = vst.msk [vmem:[#allocation2 + $0xc] sm:$0xf] %vm2814_vm1, %v9731_v19  ;;  %v1924_v34 = vadd.f32 %v12057_v24, %v1789_v25  ;;  %v2048_v48 = vmax.f32 %v1920_v16, 0.0  ;;  %v2409_v5 = vmax.f32 %v2287_v54, %v2351_v55 }
 0x13d   : > { %v2049_v30 = vmax.f32 %v1921_v18, 0.0  ;;  %2820 = vst.msk [vmem:[#allocation2 + $0x10] sm:$0xf] %vm2814_vm1, %v9732_v22  ;;  %v3017_v36 = vld [vmem:[#allocation2 + $0x7c] sm:$0xf]  ;;  %v1922_v38 = vadd.f32 %v12057_v24, %v1787_v7  ;;  %v2046_v49 = vmax.f32 %v1918_v28, 0.0 }
 0x13e   : > { %v2163_v33 = vmax.f32 %v2047_v59, %v2051_v47  ;;  %v12289_v45 = vcombine.low %v3016_v29, %v3017_v36  ;;  %v2992_v51 = vld [vmem:[#allocation2 + $0x78] sm:$0xe]  ;;  %v2052_v52 = vmax.f32 %v1924_v34, 0.0  ;;  %v2954_v59 = vld [vmem:[#allocation2 + $0x7c] sm:$0xf]  ;;  %v12297_v4 = vrot.slane %v2523_v44, 7 }
 0x13f   : > { %v2161_v37 = vmax.f32 %v2045_v15, %v2049_v30  ;;  %v10806_v39 = vpop.f32.mrb[32].mxu0  ;;  %v2050_v53 = vmax.f32 %v1922_v38, 0.0  ;;  %v2285_v57 = vld [vmem:[#allocation5 + $0x40] ss:$2 sm:$0xff]  ;;  %v2349_v58 = vld [vmem:[#allocation5 + $0x41] ss:$2 sm:$0xff]  ;;  %v9868_v50 = vcombine.low %v2992_v51, %v2954_v59 }
 0x140   : > { %2227 = vst.msk [vmem:[#allocation5 + $0x70] sm:$0xff] %vm1013_vm0, %v2163_v33  ;;  %4122 = vrot.lane.b32.xlu0 %v12289_v45, %s15666_s26  ;;  %v2164_v60 = vmax.f32 %v2048_v48, %v2052_v52  ;;  %v12295_v3 = vld [vmem:[#allocation2 + $0x7c] sm:$0xf]  ;;  %v2928_v20 = vld [vmem:[#allocation2 + $0x78] sm:$0xe]  ;;  %v2408_v12 = vmax.f32 %v2285_v57, %v2349_v58  ;;  %v4285_v13 = vshll.u32 %v12289_v45, 16  ;;  %v1792_v30 = vmul.f32 %v10806_v39, %v12051_v21 }
 0x141   : > { %2225 = vst.msk [vmem:[#allocation5 + $0x60] sm:$0xff] %vm1013_vm0, %v2161_v37  ;;  %v2162_v61 = vmax.f32 %v2046_v49, %v2050_v53  ;;  %v2953_v11 = vld [vmem:[#allocation2 + $0x78] sm:$0xf]  ;;  %v2323_v18 = vld [vmem:[#allocation5 + $0x170] ss:$2 sm:$0xff]  ;;  %v9821_v28 = vcombine.low %v2928_v20, %v12295_v3  ;;  %v3973_v29 = vrot.slane %v9868_v50, 1  ;;  %v2465_v20 = vor.u32 %v2463_v43, %v12285_v42 }
 0x142   : > { %v11122_v63 = vld [vmem:[#allocation2 + $0x14] ss:$0 sps:$4 sm:$0x11]   ;;  %2228 = vst.msk [vmem:[#allocation5 + $0x78] sm:$0xff] %vm1013_vm0, %v2164_v60  ;;  %v2387_v19 = vld [vmem:[#allocation5 + $0x171] ss:$2 sm:$0xff]  ;;  %v12311_v44 = vpack.c.bf16 %v2409_v5, %v2408_v12  ;;  %v12314_v49 = vcombine.low %v2953_v11, %v2954_v59  ;;  %v12323_v50 = vadd.f32 %v12057_v24, %v1792_v30 }
 0x143   : > { %v2935_v9 = vld [vmem:[#allocation2 + $0xc] sm:$0xf]  ;;  %2226 = vst.msk [vmem:[#allocation5 + $0x68] sm:$0xff] %vm1013_vm0, %v2162_v61  ;;  %v11125_v17 = vld [vmem:[#allocation2 + $0x80] ss:$0 sps:$4 sm:$0x11]   ;;  %v2427_v58 = vmax.f32 %v2323_v18, %v2387_v19 }
 0x144   : > { %v2936_v62 = vld [vmem:[#allocation2 + $0x10] sm:$0xf]  ;;  %v2983_v10 = vld [vmem:[#allocation2 + $0xc] sm:$0xe]  ;;  %v2321_v22 = vld [vmem:[#allocation5 + $0x160] ss:$2 sm:$0xff] }
 0x145   : > { %v12302_v15 = vcombine.low %v2935_v9, %v2936_v62  ;;  %v9859_v16 = vcombine.low %v2983_v10, %v2936_v62  ;;  %v2385_v47 = vld [vmem:[#allocation5 + $0x161] ss:$2 sm:$0xff]  ;;  %v2873_v25 = vld [vmem:[#allocation2 + $0x10] sm:$0xf]  ;;  %v2919_v27 = vld [vmem:[#allocation2 + $0xc] sm:$0xe] }
 0x146   : > { %v3947_v7 = vrot.slane %v11122_v63, 1  ;;  %v2872_v33 = vld [vmem:[#allocation2 + $0xc] sm:$0xf]  ;;  %v4283_v34 = vshrl.u32 %v12289_v45, 16  ;;  %v3974_v36 = vrot.slane %v11125_v17, 1  ;;  %v9812_v38 = vcombine.low %v2919_v27, %v2873_v25  ;;  %15693 = vst [vmem:[#allocation19_spill] sm:$0xff] %v12314_v49 }
 0x147   : > { %15692 = vst [vmem:[#allocation18_spill] sm:$0xff] %v12302_v15  ;;  %3626 = vrot.lane.b32.xlu1 %v12302_v15, %s11744_s30  ;;  %v3946_v56 = vrot.slane %v9859_v16, 1  ;;  %v12309_v37 = vld [vmem:[#allocation2 + $0x14] ss:$0 sps:$4 sm:$0x11]   ;;  %v4287_v51 = vrot.slane %v4285_v13, 1  ;;  %v12318_v54 = vcombine.low %v2872_v33, %v2873_v25  ;;  %v2426_v60 = vmax.f32 %v2321_v22, %v2385_v47 }
 0x148   : > { %v11129_v39 = vld [vmem:[#allocation2 + $0x80] ss:$0 sps:$4 sm:$0x11]   ;;  %v3469_v52 = vrot.slane %v9812_v38, 1  ;;  %v3470_v53 = vrot.slane %v12309_v37, 1  ;;  %v3496_v55 = vrot.slane %v9821_v28, 1  ;;  %v3975_v5 = vsel %vm3465_vm3, %v3973_v29, %v3974_v36 }
 0x149   : > { %v3948_v48 = vsel %vm3465_vm3, %v3946_v56, %v3947_v7  ;;  %15694 = vst [vmem:[#allocation20_spill] sm:$0xff] %v12318_v54  ;;  %v2890_v45 = vld [vmem:[#allocation2 + $0x78] sm:$0xf]  ;;  %v1368_v57 = vpop.f32.mrb[33].mxu0  ;;  %v2291_v61 = vld [vmem:[#allocation5 + $0x70] ss:$2 sm:$0xff]  ;;  %v4288_v62 = vor.u32 %v4287_v51, %v4283_v34  ;;  %v12342_v56 = vpack.c.bf16 %v2427_v58, %v2426_v60 }
 0x14a   : > { %3994 = vrot.lane.b32.xlu0 %v3948_v48, %s15638_s0  ;;  %v2355_v59 = vld [vmem:[#allocation5 + $0x71] ss:$2 sm:$0xff]  ;;  %v2289_v63 = vld [vmem:[#allocation5 + $0x60] ss:$2 sm:$0xff]  ;;  %v2353_v9 = vld [vmem:[#allocation5 + $0x61] ss:$2 sm:$0xff]  ;;  %v1790_v12 = vmul.f32 %v12051_v21, %v1368_v57  ;;  %v3471_v16 = vsel %vm3465_vm3, %v3469_v52, %v3470_v53 }
 0x14b   : > { %3644 = vrot.lane.b32.xlu1 %v12314_v49, %s11744_s30  ;;  %v4290_v10 = vshll.u32 %v11129_v39, 16  ;;  %v11131_v11 = vld [vmem:[#allocation2 + $0x80] ss:$0 sps:$4 sm:$0x11]   ;;  %v2411_v13 = vmax.f32 %v2291_v61, %v2355_v59  ;;  %v2410_v17 = vmax.f32 %v2289_v63, %v2353_v9  ;;  %v10807_v18 = vpop.f32.mrb[34].mxu0  ;;  %v2526_v19 = vshll.u32 %v12238_v46, 16 }
 0x14c   : > { %v12332_v22 = vpop.f32.mrb[32].mxu1  ;;  %v3497_v43 = vrot.slane %v11131_v11, 1  ;;  %v1793_v47 = vmul.f32 %v10807_v18, %v12051_v21  ;;  %v3208_v25 = vshll.u32 %v12318_v54, 16  ;;  %v1371_v27 = vpop.f32.mrb[35].mxu0  ;;  %v11190_v30 = vld [vmem:[%s15691_s2 + $0x48] sm:$0xff]   ;;  %v12346_v46 = vcombine.low %v2890_v45, %v12295_v3 }
 0x14d   : > { %v4292_v41 = vrot.slane %v4290_v10, 1  ;;  %v12337_v28 = vpop.f32.mrb[33].mxu1  ;;  %v2528_v7 = vor.u32 %v2526_v19, %v12297_v4  ;;  %v3213_v29 = vshll.u32 %v12309_v37, 16  ;;  %v10810_v33 = vpop.f32.mrb[36].mxu0  ;;  %v11191_v36 = vld [vmem:[%s15691_s2 + $0x8] sm:$0xff]   ;;  %v2055_v38 = vmax.f32 %v12323_v50, 0.0  ;;  %10442 = vmatprep.subr.bf16.mxu1 %v11190_v30 }
 0x14e   : > { %4012 = vrot.lane.b32.xlu0 %v3975_v5, %s15638_s0  ;;  %15695 = vst [vmem:[#allocation21_spill] sm:$0xff] %v12346_v46  ;;  %v12350_v34 = vpop.f32.mrb[34].mxu1  ;;  %v12357_v48 = vadd.f32 %v12057_v24, %v1790_v12  ;;  %v3206_v39 = vshrl.u32 %v12318_v54, 16  ;;  %v3210_v3 = vrot.slane %v3208_v25, 1  ;;  %v1384_v51 = vpop.f32.mrb[37].mxu0  ;;  %v12362_v37 = vpack.c.bf16 %v2411_v13, %v2410_v17  ;;  %10443 = vmatpush3.bf16.msra.mxu1 %v11191_v36 }
 0x14f   : > { %3516 = vrot.lane.b32.xlu1 %v3471_v16, %s15666_s26  ;;  %v12360_v52 = vpop.f32.mrb[35].mxu1  ;;  %v4293_v53 = vsel %vm3192_vm4, %v4288_v62, %v4292_v41  ;;  %v3498_v45 = vsel %vm3465_vm3, %v3496_v55, %v3497_v43  ;;  %v2609_v57 = vsel %vm12221_vm7, 0, %v2528_v7  ;;  %v10811_v58 = vpop.f32.mrb[38].mxu0  ;;  %v12372_v61 = vadd.f32 %v12057_v24, %v1793_v47 }
 0x150   : > { %v12368_v60 = vpop.f32.mrb[36].mxu1  ;;  %v9761_v59 = vcombine.low %v2609_v57, %v2609_v57  ;;  %v9762_v63 = vcombine.high %v2609_v57, %v2609_v57  ;;  %v3211_v5 = vor.u32 %v3210_v3, %v3206_v39  ;;  %v1387_v9 = vpop.f32.mrb[39].mxu0  ;;  %v3215_v55 = vrot.slane %v3213_v29, 1 }
 0x151   : > { %v12374_v10 = vpop.f32.mrb[37].mxu1  ;;  %v3314_v62 = vshrl.u32 %v12346_v46, 16  ;;  %v3316_v12 = vshll.u32 %v12346_v46, 16  ;;  %v3321_v13 = vshll.u32 %v11131_v11, 16  ;;  %v10814_v16 = vpop.f32.mrb[40].mxu0  ;;  %v1791_v18 = vmul.f32 %v12051_v21, %v1371_v27 }
 0x152   : > { %4394 = vrot.lane.b32.xlu0 %v4293_v53, %s11744_s30  ;;  %v12379_v17 = vpop.f32.mrb[38].mxu1  ;;  %2849 = vst.msk [vmem:[#allocation2 + $0x84] sm:$0xf] %vm2814_vm1, %v9761_v59  ;;  %2850 = vst.msk [vmem:[#allocation2 + $0x88] sm:$0xf] %vm2814_vm1, %v9762_v63  ;;  %v2600_v19 = vsel %vm12221_vm7, 0, %v2465_v20  ;;  %v1796_v43 = vmul.f32 %v10810_v33, %v12051_v21  ;;  %v3216_v25 = vsel %vm3192_vm4, %v3211_v5, %v3215_v55 }
 0x153   : > { %3534 = vrot.lane.b32.xlu1 %v3498_v45, %s15666_s26  ;;  %v2616_v41 = vsel %vm12221_vm7, %v12285_v42, 0  ;;  %v1400_v47 = vpop.f32.mrb[41].mxu0  ;;  %v12390_v11 = vpop.f32.mrb[39].mxu1  ;;  %v3318_v30 = vrot.slane %v3316_v12, 1  ;;  %v3323_v7 = vrot.slane %v3321_v13, 1  ;;  %v9734_v29 = vcombine.low %v2600_v19, %v2600_v19  ;;  %v11197_v55 = vld [vmem:[%s15691_s2 + $0x50] sm:$0xff]  }
 0x154   : > { %v12393_v36 = vpop.f32.mrb[42].mxu0  ;;  %v12395_v27 = vpop.f32.mrb[40].mxu1  ;;  %v9735_v39 = vcombine.high %v2600_v19, %v2600_v19  ;;  %v9736_v20 = vcombine.low %v2616_v41, %v2616_v41  ;;  %v1931_v3 = vadd.f32 %v12057_v24, %v1796_v43  ;;  %v1794_v42 = vmul.f32 %v12051_v21, %v1384_v51  ;;  %v12431_v19 = vld [vmem:[%s15605_s8] ss:$0 sm:$0xff]  ;;  %10444 = vmatprep.subr.bf16.mxu1 %v11197_v55 }
 0x155   : > { %v12399_v53 = vpop.f32.mrb[43].mxu0  ;;  %v12401_v33 = vpop.f32.mrb[41].mxu1  ;;  %v3319_v45 = vor.u32 %v3318_v30, %v3314_v62  ;;  %2822 = vst.msk [vmem:[#allocation2 + $0x18] sm:$0xf] %vm2814_vm1, %v9734_v29  ;;  %v1797_v57 = vmul.f32 %v10811_v58, %v12051_v21  ;;  %v2625_v59 = vsel %vm12221_vm7, %v12297_v4, 0  ;;  %v1795_v63 = vmul.f32 %v12051_v21, %v1387_v9 }
 0x156   : > { %v12412_v51 = vpop.f32.mrb[42].mxu1  ;;  %2823 = vst.msk [vmem:[#allocation2 + $0x1c] sm:$0xf] %vm2814_vm1, %v9735_v39  ;;  %v2059_v62 = vmax.f32 %v1931_v3, 0.0  ;;  %v1929_v58 = vadd.f32 %v12057_v24, %v1794_v42  ;;  %v9763_v12 = vcombine.low %v2625_v59, %v2625_v59  ;;  %v12423_v21 = vld [vmem:[%s15687_s7] ss:$0 sm:$0xff]  ;;  %v1926_v41 = vadd.f32 %v12431_v19, %v1791_v18 }
 0x157   : > { %3387 = vrot.lane.b32.xlu1 %v3216_v25, %s15638_s0  ;;  %v12410_v5 = vpop.f32.mrb[44].mxu0  ;;  %2824 = vst.msk [vmem:[#allocation2 + $0x20] sm:$0x1] %vm2817_vm2, %v9736_v20  ;;  %v1800_v4 = vmul.f32 %v12423_v21, %v10814_v16  ;;  %v12426_v13 = vpop.f32.mrb[43].mxu1  ;;  %v1932_v24 = vadd.f32 %v12431_v19, %v1797_v57  ;;  %v1930_v43 = vadd.f32 %v12431_v19, %v1795_v63  ;;  %v2053_v16 = vmax.f32 %v12357_v48, 0.0 }
 0x158   : > { %v1416_v9 = vpop.f32.mrb[45].mxu0  ;;  %v1798_v25 = vmul.f32 %v12423_v21, %v1400_v47  ;;  %v12439_v29 = vpop.f32.mrb[44].mxu1  ;;  %v3324_v39 = vsel %vm3192_vm4, %v3319_v45, %v3323_v7  ;;  %v2167_v20 = vmax.f32 %v2055_v38, %v2059_v62  ;;  %v2057_v3 = vmax.f32 %v1929_v58, 0.0  ;;  %2851 = vst.msk [vmem:[#allocation2 + $0x8c] sm:$0x1] %vm2817_vm2, %v9763_v12 }
 0x159   : > { %v12437_v30 = vpop.f32.mrb[46].mxu0  ;;  %15696 = vst [vmem:[#allocation22_spill] sm:$0xff] %v12439_v29  ;;  %v12448_v42 = vpop.f32.mrb[45].mxu1  ;;  %v2056_v57 = vmax.f32 %v12372_v61, 0.0  ;;  %v3018_v59 = vld [vmem:[#allocation2 + $0x84] sm:$0xf]  ;;  %v12457_v45 = vadd.f32 %v12431_v19, %v1800_v4 }
 0x15a   : > { %v12446_v18 = vpop.f32.mrb[47].mxu0  ;;  %15697 = vst [vmem:[#allocation23_spill] sm:$0xff] %v12448_v42  ;;  %v3019_v63 = vld [vmem:[#allocation2 + $0x88] sm:$0xf]  ;;  %2231 = vst.msk [vmem:[#allocation5 + $0x90] sm:$0xff] %vm1013_vm0, %v2167_v20  ;;  %v2165_v50 = vmax.f32 %v2053_v16, %v2057_v3  ;;  %v2060_v38 = vmax.f32 %v1932_v24, 0.0  ;;  %v12462_v61 = vadd.f32 %v12431_v19, %v1798_v25 }
 0x15b   : > { %3405 = vrot.lane.b32.xlu1 %v3324_v39, %s15638_s0  ;;  %v12453_v48 = vcombine.low %v3018_v59, %v3019_v63  ;;  %v2993_v7 = vld [vmem:[#allocation2 + $0x84] sm:$0xe]  ;;  %v12459_v55 = vpop.f32.mrb[46].mxu1  ;;  %v2054_v62 = vmax.f32 %v1926_v41, 0.0  ;;  %v2956_v58 = vld [vmem:[#allocation2 + $0x88] sm:$0xf]  ;;  %v1801_v63 = vmul.f32 %v12423_v21, %v12393_v36  ;;  %v1804_v36 = vmul.f32 %v12423_v21, %v12410_v5 }
 0x15c   : > { %15698 = vst [vmem:[#allocation24_spill] sm:$0xff] %v12459_v55  ;;  %v2058_v12 = vmax.f32 %v1930_v43, 0.0  ;;  %v12464_v47 = vpop.f32.mrb[47].mxu1  ;;  %v11202_v39 = vld [vmem:[%s15691_s2 + $0x10] sm:$0xff]   ;;  %v2984_v4 = vld [vmem:[#allocation2 + $0x18] sm:$0xe]  ;;  %v2168_v41 = vmax.f32 %v2056_v57, %v2060_v38  ;;  %v9869_v25 = vcombine.low %v2993_v7, %v2956_v58  ;;  %v1799_v38 = vmul.f32 %v12423_v21, %v12399_v53 }
 0x15d   : > { %15699 = vst [vmem:[#allocation25_spill] sm:$0xff] %v12464_v47  ;;  %4124 = vrot.lane.b32.xlu0 %v12453_v48, %s15666_s26  ;;  %2229 = vst.msk [vmem:[#allocation5 + $0x80] sm:$0xff] %vm1013_vm0, %v2165_v50  ;;  %v3000_v43 = vld [vmem:[#allocation2 + $0x18] sm:$0xf]  ;;  %v2938_v20 = vld [vmem:[#allocation2 + $0x1c] sm:$0xf]  ;;  %10445 = vmatpush3.bf16.msra.mxu1 %v11202_v39  ;;  %v1802_v7 = vmul.f32 %v12423_v21, %v1416_v9 }
 0x15e   : > { %v3001_v3 = vld [vmem:[#allocation2 + $0x1c] sm:$0xf]  ;;  %v2166_v59 = vmax.f32 %v2054_v62, %v2058_v12  ;;  %v4297_v24 = vshll.u32 %v12453_v48, 16  ;;  %v11135_v1 = vld [vmem:[#allocation2 + $0x20] ss:$0 sps:$4 sm:$0x11]   ;;  %v9860_v16 = vcombine.low %v2984_v4, %v2938_v20 }
 0x15f   : > { %2232 = vst.msk [vmem:[#allocation5 + $0x98] sm:$0xff] %vm1013_vm0, %v2168_v41  ;;  %v9875_v0 = vcombine.low %v3000_v43, %v3001_v3  ;;  %v11139_v50 = vld [vmem:[#allocation2 + $0x8c] ss:$0 sps:$4 sm:$0x11]   ;;  %v3950_v58 = vrot.slane %v11135_v1, 1  ;;  %v3976_v39 = vrot.slane %v9869_v25, 1  ;;  %v12488_v3 = vadd.f32 %v12431_v19, %v1801_v63 }
 0x160   : > { %2230 = vst.msk [vmem:[#allocation5 + $0x88] sm:$0xff] %vm1013_vm0, %v2166_v59  ;;  %v3949_v62 = vrot.slane %v9860_v16, 1  ;;  %v3977_v4 = vrot.slane %v11139_v50, 1  ;;  %v11141_v41 = vld [vmem:[#allocation2 + $0x20] ss:$0 sps:$4 sm:$0x11]   ;;  %v1805_v1 = vmul.f32 %v12423_v21, %v12437_v30  ;;  %v1803_v63 = vmul.f32 %v12423_v21, %v12446_v18 }
 0x161   : > { %4106 = vrot.lane.b32.xlu1 %v9875_v0, %s15666_s26  ;;  %v4189_v12 = vshll.u32 %v9875_v0, 16  ;;  %v4187_v43 = vshrl.u32 %v9875_v0, 16  ;;  %v4295_v59 = vshrl.u32 %v12453_v48, 16  ;;  %v2937_v5 = vld [vmem:[#allocation2 + $0x18] sm:$0xf]  ;;  %v4299_v46 = vrot.slane %v4297_v24, 1 }
 0x162   : > { %v3951_v53 = vsel %vm3465_vm3, %v3949_v62, %v3950_v58  ;;  %v4194_v9 = vshll.u32 %v11141_v41, 16  ;;  %v12495_v16 = vcombine.low %v2937_v5, %v2938_v20  ;;  %v11142_v25 = vld [vmem:[#allocation2 + $0x8c] ss:$0 sps:$4 sm:$0x11]   ;;  %v2875_v0 = vld [vmem:[#allocation2 + $0x1c] sm:$0xf]  ;;  %v12501_v48 = vmul.f32 %v12423_v21, %v12209_v23 }
 0x163   : > { %v4191_v57 = vrot.slane %v4189_v12, 1  ;;  %3996 = vrot.lane.b32.xlu0 %v3951_v53, %s15638_s0  ;;  %v2920_v50 = vld [vmem:[#allocation2 + $0x18] sm:$0xe]  ;;  %v12504_v24 = vadd.f32 %v12431_v19, %v1799_v38  ;;  %v1939_v30 = vadd.f32 %v12431_v19, %v1804_v36  ;;  %v12509_v20 = vmul.f32 %v12423_v21, %v12214_v31  ;;  %v11143_v6 = vld [vmem:[#allocation2 + $0x20] ss:$0 sps:$4 sm:$0x11]  }
 0x164   : > { %15700 = vst [vmem:[#allocation26_spill] sm:$0xff] %v12495_v16  ;;  %v2874_v62 = vld [vmem:[#allocation2 + $0x18] sm:$0xf]  ;;  %v12513_v58 = vmul.f32 %v12423_v21, %v12226_v35  ;;  %v2064_v23 = vmax.f32 %v12488_v3, 0.0  ;;  %v9813_v38 = vcombine.low %v2920_v50, %v2875_v0  ;;  %v1937_v36 = vadd.f32 %v12431_v19, %v1802_v7  ;;  %v10822_v3 = vpop.f32.mrb[48].mxu0 }
 0x165   : > { %3628 = vrot.lane.b32.xlu1 %v12495_v16, %s11744_s30  ;;  %v12522_v41 = vcombine.low %v2874_v62, %v2875_v0  ;;  %v3978_v31 = vsel %vm3465_vm3, %v3976_v39, %v3977_v4  ;;  %v4192_v53 = vor.u32 %v4191_v57, %v4187_v43  ;;  %v4302_v5 = vshll.u32 %v11142_v25, 16  ;;  %v1432_v39 = vpop.f32.mrb[49].mxu0  ;;  %v12533_v4 = vpop.f32.mrb[48].mxu1 }
 0x166   : > { %v12515_v18 = vld [vmem:[#allocation5 + $0x90] ss:$2 sm:$0xff]  ;;  %v12517_v12 = vld [vmem:[#allocation5 + $0x91] ss:$2 sm:$0xff]  ;;  %v1940_v35 = vadd.f32 %v12431_v19, %v1805_v1  ;;  %v4196_v49 = vrot.slane %v4194_v9, 1  ;;  %v4300_v54 = vor.u32 %v4299_v46, %v4295_v59  ;;  %v3472_v15 = vrot.slane %v9813_v38, 1 }
 0x167   : > { %15701 = vst [vmem:[#allocation27_spill] sm:$0xff] %v12522_v41  ;;  %4014 = vrot.lane.b32.xlu0 %v3978_v31, %s15638_s0  ;;  %v1938_v16 = vadd.f32 %v12431_v19, %v1803_v63  ;;  %v4304_v50 = vrot.slane %v4302_v5, 1  ;;  %v2062_v7 = vmax.f32 %v12504_v24, 0.0  ;;  %v3220_v57 = vshll.u32 %v12522_v41, 16  ;;  %15702 = vst [vmem:[#allocation28_spill] sm:$0xff] %v12533_v4  ;;  %v12538_v25 = vpop.f32.mrb[50].mxu0 }
 0x168   : > { %v3473_v43 = vrot.slane %v11143_v6, 1  ;;  %v3218_v1 = vshrl.u32 %v12522_v41, 16  ;;  %v3225_v46 = vshll.u32 %v11143_v6, 16  ;;  %v15703_v59 = vshrl.u32 %v12311_v44, 16  ;;  %v12540_v63 = vpop.f32.mrb[49].mxu1  ;;  %v12544_v5 = vpop.f32.mrb[51].mxu0 }
 0x169   : > { %15704 = vst [vmem:[#allocation29_spill] sm:$0xff] %v12540_v63  ;;  %v4197_v62 = vsel %vm3192_vm4, %v4192_v53, %v4196_v49  ;;  %v3222_v38 = vrot.slane %v3220_v57, 1  ;;  %v2470_v24 = vshll.u32 %v12311_v44, 16  ;;  %v2067_v31 = vmax.f32 %v1939_v30, 0.0  ;;  %v12546_v0 = vpop.f32.mrb[50].mxu1  ;;  %v11208_v6 = vld [vmem:[%s15691_s2 + $0x58] sm:$0xff]  }
 0x16a   : > { %v2469_v9 = vrot.slane %v15703_v59, 7  ;;  %15705 = vst [vmem:[#allocation30_spill] sm:$0xff] %v12546_v0  ;;  %v12551_v41 = vld [vmem:[#allocation5 + $0x80] ss:$2 sm:$0xff]  ;;  %v4305_v59 = vsel %vm3192_vm4, %v4300_v54, %v4304_v50  ;;  %v3474_v49 = vsel %vm3465_vm3, %v3472_v15, %v3473_v43  ;;  %v3227_v53 = vrot.slane %v3225_v46, 1  ;;  %v10826_v44 = vpop.f32.mrb[52].mxu0  ;;  %10446 = vmatprep.subr.bf16.mxu1 %v11208_v6 }
 0x16b   : > { %4378 = vrot.lane.b32.xlu0 %v4197_v62, %s11744_s30  ;;  %v2065_v57 = vmax.f32 %v1937_v36, 0.0  ;;  %v12556_v30 = vpop.f32.mrb[51].mxu1  ;;  %v2357_v63 = vld [vmem:[#allocation5 + $0x81] ss:$2 sm:$0xff]  ;;  %3518 = vrot.lane.b32.xlu1 %v3474_v49, %s15666_s26  ;;  %v3223_v0 = vor.u32 %v3222_v38, %v3218_v1  ;;  %v15706_v47 = vmax.f32 %v12457_v45, 0.0  ;;  %v2068_v42 = vmax.f32 %v1940_v35, 0.0 }
 0x16c   : > { %v2472_v4 = vor.u32 %v2470_v24, %v2469_v9  ;;  %v12561_v29 = vpop.f32.mrb[53].mxu0  ;;  %v12563_v62 = vpop.f32.mrb[52].mxu1  ;;  %v15707_v15 = vmax.f32 %v12462_v61, 0.0  ;;  %v15708_v36 = vshrl.u32 %v12342_v56, 16  ;;  %v2533_v43 = vshll.u32 %v12342_v56, 16 }
 0x16d   : > { %v2171_v55 = vmax.f32 %v15706_v47, %v2067_v31  ;;  %v2066_v1 = vmax.f32 %v1938_v16, 0.0  ;;  %v12572_v46 = vpop.f32.mrb[54].mxu0  ;;  %v12574_v45 = vpop.f32.mrb[53].mxu1  ;;  %v3228_v47 = vsel %vm3192_vm4, %v3223_v0, %v3227_v53  ;;  %v2172_v61 = vmax.f32 %v2064_v23, %v2068_v42 }
 0x16e   : > { %v2169_v54 = vmax.f32 %v15707_v15, %v2065_v57  ;;  %v12569_v50 = vrot.slane %v15708_v36, 7  ;;  %15710 = vst [vmem:[#allocation32_spill] sm:$0xff] %v12574_v45  ;;  %v2601_v35 = vsel %vm12221_vm7, 0, %v2472_v4  ;;  %v2617_v38 = vsel %vm12221_vm7, %v2469_v9, 0  ;;  %v12582_v24 = vpop.f32.mrb[55].mxu0  ;;  %v12584_v31 = vpop.f32.mrb[54].mxu1 }
 0x16f   : > { %2235 = vst.msk [vmem:[#allocation5 + $0xb0] sm:$0xff] %vm1013_vm0, %v2171_v55  ;;  %15711 = vst [vmem:[#allocation33_spill] sm:$0xff] %v12584_v31  ;;  %4396 = vrot.lane.b32.xlu0 %v4305_v59, %s11744_s30  ;;  %v9737_v56 = vcombine.low %v2601_v35, %v2601_v35  ;;  %v9738_v16 = vcombine.high %v2601_v35, %v2601_v35  ;;  %v2170_v6 = vmax.f32 %v2062_v7, %v2066_v1  ;;  %v12589_v4 = vpop.f32.mrb[56].mxu0  ;;  %v12591_v55 = vpop.f32.mrb[55].mxu1 }
 0x170   : > { %15709 = vst [vmem:[#allocation31_spill] sm:$0xff] %v12569_v50  ;;  %2233 = vst.msk [vmem:[#allocation5 + $0xa0] sm:$0xff] %vm1013_vm0, %v2169_v54  ;;  %v2535_v0 = vor.u32 %v2533_v43, %v12569_v50  ;;  %v2412_v42 = vmax.f32 %v12551_v41, %v2357_v63  ;;  %3389 = vrot.lane.b32.xlu1 %v3228_v47, %s15638_s0  ;;  %v9739_v23 = vcombine.low %v2617_v38, %v2617_v38  ;;  %v12598_v49 = vpop.f32.mrb[57].mxu0 }
 0x171   : > { %15712 = vst [vmem:[#allocation34_spill] sm:$0xff] %v12591_v55  ;;  %2236 = vst.msk [vmem:[#allocation5 + $0xb8] sm:$0xff] %vm1013_vm0, %v2172_v61  ;;  %v1808_v9 = vmul.f32 %v12423_v21, %v10822_v3  ;;  %v1806_v59 = vmul.f32 %v12423_v21, %v1432_v39  ;;  %v15713_v41 = vshrl.u32 %v12362_v37, 16  ;;  %v2477_v53 = vshll.u32 %v12362_v37, 16  ;;  %v12608_v57 = vpop.f32.mrb[58].mxu0  ;;  %v11209_v3 = vld [vmem:[%s15691_s2 + $0x18] sm:$0xff]  }
 0x172   : > { %2825 = vst.msk [vmem:[#allocation2 + $0x24] sm:$0xf] %vm2814_vm1, %v9737_v56  ;;  %2826 = vst.msk [vmem:[#allocation2 + $0x28] sm:$0xf] %vm2814_vm1, %v9738_v16  ;;  %v2610_v7 = vsel %vm12221_vm7, 0, %v2535_v0  ;;  %v1809_v54 = vmul.f32 %v12423_v21, %v12538_v25  ;;  %v12616_v36 = vpop.f32.mrb[59].mxu0  ;;  %v12620_v43 = vadd.f32 %v12431_v19, %v12501_v48  ;;  %v1812_v47 = vmul.f32 %v12423_v21, %v10826_v44 }
 0x173   : > { %2234 = vst.msk [vmem:[#allocation5 + $0xa8] sm:$0xff] %vm1013_vm0, %v2170_v6  ;;  %v2476_v63 = vrot.slane %v15713_v41, 7  ;;  %v9764_v39 = vcombine.low %v2610_v7, %v2610_v7  ;;  %v9765_v15 = vcombine.high %v2610_v7, %v2610_v7  ;;  %v1943_v37 = vadd.f32 %v12431_v19, %v1808_v9  ;;  %10447 = vmatpush3.bf16.msra.mxu1 %v11209_v3  ;;  %v11214_v25 = vld [vmem:[%s15691_s2 + $0x60] sm:$0xff]   ;;  %v11221_v3 = vld [vmem:[%s15691_s2 + $0x28] sm:$0xff]  }
 0x174   : > { %2827 = vst.msk [vmem:[#allocation2 + $0x2c] sm:$0x1] %vm2817_vm2, %v9739_v23  ;;  %v12626_v35 = vadd.f32 %v12431_v19, %v12509_v20  ;;  %v11215_v61 = vld [vmem:[%s15691_s2 + $0x20] sm:$0xff]   ;;  %v15714_v48 = vmax.f32 %v12515_v18, %v12517_v12  ;;  %v12642_v20 = vadd.f32 %v12431_v19, %v1806_v59  ;;  %v12648_v56 = vadd.f32 %v12431_v19, %v12513_v58  ;;  %v11220_v58 = vld [vmem:[%s15691_s2 + $0x68] sm:$0xff]  }
 0x175   : > { %v2479_v1 = vor.u32 %v2477_v53, %v2476_v63  ;;  %2852 = vst.msk [vmem:[#allocation2 + $0x90] sm:$0xf] %vm2814_vm1, %v9764_v39  ;;  %2853 = vst.msk [vmem:[#allocation2 + $0x94] sm:$0xf] %vm2814_vm1, %v9765_v15  ;;  %v1855_v16 = vmul.f32 %v12423_v21, %v12232_v40  ;;  %v1807_v18 = vmul.f32 %v12423_v21, %v12544_v5  ;;  %10448 = vmatprep.subr.bf16.mxu1 %v11214_v25 }
 0x176   : > { %v12637_v38 = vpack.c.bf16 %v15714_v48, %v2412_v42  ;;  %v1947_v0 = vadd.f32 %v12431_v19, %v1812_v47  ;;  %v1860_v42 = vmul.f32 %v12423_v21, %v12248_v2  ;;  %v12665_v40 = vadd.f32 %v12431_v19, %v1809_v54 }
 0x177   : > { %v12644_v44 = vpop.f32.mrb[60].mxu0  ;;  %v2602_v12 = vsel %vm12221_vm7, 0, %v2479_v1  ;;  %v1858_v59 = vmul.f32 %v12423_v21, %v12262_v14  ;;  %v2071_v7 = vmax.f32 %v1943_v37, 0.0  ;;  %v2618_v2 = vsel %vm12221_vm7, %v2476_v63, 0  ;;  %10449 = vmatpush3.bf16.msra.mxu1 %v11215_v61 }
 0x178   : > { %v12657_v6 = vpop.f32.mrb[61].mxu0  ;;  %v9740_v23 = vcombine.low %v2602_v12, %v2602_v12  ;;  %v9741_v5 = vcombine.high %v2602_v12, %v2602_v12  ;;  %v2075_v41 = vmax.f32 %v1947_v0, 0.0  ;;  %v1861_v53 = vmul.f32 %v12423_v21, %v12268_v8  ;;  %10450 = vmatprep.subr.bf16.mxu1 %v11220_v58  ;;  %v2299_v0 = vld [vmem:[#allocation5 + $0xb0] ss:$2 sm:$0xff] }
 0x179   : > { %v12667_v9 = vpop.f32.mrb[62].mxu0  ;;  %v3002_v15 = vld [vmem:[#allocation2 + $0x24] sm:$0xf]  ;;  %v3003_v54 = vld [vmem:[#allocation2 + $0x28] sm:$0xf]  ;;  %v1810_v14 = vmul.f32 %v12423_v21, %v12561_v29  ;;  %v9742_v63 = vcombine.low %v2618_v2, %v2618_v2  ;;  %v12687_v61 = vadd.f32 %v12431_v19, %v1807_v18  ;;  %v1859_v12 = vmul.f32 %v12423_v21, %v12273_v26 }
 0x17a   : > { %2828 = vst.msk [vmem:[#allocation2 + $0x30] sm:$0xf] %vm2814_vm1, %v9740_v23  ;;  %2829 = vst.msk [vmem:[#allocation2 + $0x34] sm:$0xf] %vm2814_vm1, %v9741_v5  ;;  %v12684_v8 = vcombine.low %v3002_v15, %v3003_v54  ;;  %v2939_v37 = vld [vmem:[#allocation2 + $0x24] sm:$0xf]  ;;  %v2175_v48 = vmax.f32 %v2071_v7, %v2075_v41  ;;  %v1813_v58 = vmul.f32 %v12423_v21, %v12572_v46 }
 0x17b   : > { %v2940_v47 = vld [vmem:[#allocation2 + $0x28] sm:$0xf]  ;;  %v2985_v25 = vld [vmem:[#allocation2 + $0x24] sm:$0xe]  ;;  %2830 = vst.msk [vmem:[#allocation2 + $0x38] sm:$0x1] %vm2817_vm2, %v9742_v63  ;;  %v12701_v26 = vadd.f32 %v12431_v19, %v1855_v16  ;;  %v12704_v41 = vadd.f32 %v12431_v19, %v1860_v42  ;;  %v12707_v15 = vadd.f32 %v12431_v19, %v1858_v59  ;;  %10451 = vmatpush3.bf16.msra.mxu1 %v11221_v3 }
 0x17c   : > { %v12691_v23 = vcombine.low %v2939_v37, %v2940_v47  ;;  %v9861_v5 = vcombine.low %v2985_v25, %v2940_v47  ;;  %4108 = vrot.lane.b32.xlu0 %v12684_v8, %s15666_s26  ;;  %v2363_v18 = vld [vmem:[#allocation5 + $0xb1] ss:$2 sm:$0xff]  ;;  %2239 = vst.msk [vmem:[#allocation5 + $0xd0] sm:$0xff] %vm1013_vm0, %v2175_v48  ;;  %v4201_v46 = vshll.u32 %v12684_v8, 16  ;;  %v2297_v63 = vld [vmem:[#allocation5 + $0xa0] ss:$2 sm:$0xff]  ;;  %v1945_v47 = vadd.f32 %v12431_v19, %v1810_v14 }
 0x17d   : > { %v3020_v2 = vld [vmem:[#allocation2 + $0x90] sm:$0xf]  ;;  %v3021_v7 = vld [vmem:[#allocation2 + $0x94] sm:$0xf]  ;;  %v2361_v37 = vld [vmem:[#allocation5 + $0xa1] ss:$2 sm:$0xff]  ;;  %v1811_v16 = vmul.f32 %v12423_v21, %v12582_v24  ;;  %v1816_v48 = vmul.f32 %v12423_v21, %v12589_v4  ;;  %v2415_v39 = vmax.f32 %v2299_v0, %v2363_v18  ;;  %v1948_v24 = vadd.f32 %v12431_v19, %v1813_v58 }
 0x17e   : > { %15715 = vst [vmem:[#allocation35_spill] sm:$0xff] %v12691_v23  ;;  %v12710_v54 = vcombine.low %v3020_v2, %v3021_v7  ;;  %3630 = vrot.lane.b32.xlu1 %v12691_v23, %s11744_s30  ;;  %v12717_v42 = vpop.f32.mrb[63].mxu0  ;;  %v11152_v25 = vld [vmem:[#allocation2 + $0x2c] ss:$0 sps:$4 sm:$0x11]   ;;  %v2070_v3 = vmax.f32 %v12687_v61, 0.0  ;;  %v12723_v2 = vadd.f32 %v12431_v19, %v1861_v53  ;;  %v12726_v7 = vadd.f32 %v12431_v19, %v1859_v12 }
 0x17f   : > { %v2877_v59 = vld [vmem:[#allocation2 + $0x28] sm:$0xf]  ;;  %v3952_v14 = vrot.slane %v9861_v5, 1  ;;  %v2921_v29 = vld [vmem:[#allocation2 + $0x24] sm:$0xe]  ;;  %v1814_v1 = vmul.f32 %v12423_v21, %v12598_v49  ;;  %v2414_v61 = vmax.f32 %v2297_v63, %v2361_v37  ;;  %v3953_v50 = vrot.slane %v11152_v25, 1 }
 0x180   : > { %15716 = vst [vmem:[#allocation36_spill] sm:$0xff] %v12710_v54  ;;  %4126 = vrot.lane.b32.xlu0 %v12710_v54, %s15666_s26  ;;  %v11153_v4 = vld [vmem:[#allocation2 + $0x2c] ss:$0 sps:$4 sm:$0x11]   ;;  %v9814_v23 = vcombine.low %v2921_v29, %v2877_v59  ;;  %v4199_v53 = vshrl.u32 %v12684_v8, 16  ;;  %v4203_v12 = vrot.slane %v4201_v46, 1  ;;  %v1946_v0 = vadd.f32 %v12431_v19, %v1811_v16 }
 0x181   : > { %v2876_v55 = vld [vmem:[#allocation2 + $0x24] sm:$0xf]  ;;  %v2073_v31 = vmax.f32 %v1945_v47, 0.0  ;;  %v1817_v5 = vmul.f32 %v12423_v21, %v12608_v57  ;;  %v3476_v18 = vrot.slane %v11153_v4, 1  ;;  %v12740_v63 = vadd.f32 %v12431_v19, %v1816_v48  ;;  %v12742_v37 = vpop.f32.mrb[64].mxu0 }
 0x182   : > { %v3475_v58 = vrot.slane %v9814_v23, 1  ;;  %v12737_v49 = vcombine.low %v2876_v55, %v2877_v59  ;;  %v11156_v45 = vld [vmem:[#allocation2 + $0x2c] ss:$0 sps:$4 sm:$0x11]   ;;  %v3954_v8 = vsel %vm3465_vm3, %v3952_v14, %v3953_v50  ;;  %v3004_v29 = vld [vmem:[#allocation2 + $0x30] sm:$0xf]  ;;  %v12748_v57 = vadd.f32 %v12431_v19, %v1814_v1 }
 0x183   : > { %v3005_v46 = vld [vmem:[#allocation2 + $0x34] sm:$0xf]  ;;  %v15718_v47 = vmax.f32 %v12642_v20, 0.0  ;;  %v2076_v25 = vmax.f32 %v1948_v24, 0.0  ;;  %v12750_v23 = vpack.c.bf16 %v2415_v39, %v2414_v61  ;;  %v4204_v59 = vor.u32 %v4203_v12, %v4199_v53  ;;  %v12754_v54 = vpop.f32.mrb[65].mxu0 }
 0x184   : > { %15717 = vst [vmem:[#allocation37_spill] sm:$0xff] %v12737_v49  ;;  %3998 = vrot.lane.b32.xlu0 %v3954_v8, %s15638_s0  ;;  %v3477_v55 = vsel %vm3465_vm3, %v3475_v58, %v3476_v18  ;;  %v4206_v48 = vshll.u32 %v11156_v45, 16  ;;  %v3232_v50 = vshll.u32 %v12737_v49, 16  ;;  %v3237_v20 = vshll.u32 %v11153_v4, 16  ;;  %v2942_v14 = vld [vmem:[#allocation2 + $0x34] sm:$0xf] }
 0x185   : > { %v2173_v16 = vmax.f32 %v15718_v47, %v2073_v31  ;;  %3520 = vrot.lane.b32.xlu1 %v3477_v55, %s15666_s26  ;;  %v9877_v31 = vcombine.low %v3004_v29, %v3005_v46  ;;  %v1815_v39 = vmul.f32 %v12423_v21, %v12616_v36  ;;  %v2986_v24 = vld [vmem:[#allocation2 + $0x30] sm:$0xe]  ;;  %v15719_v61 = vmax.f32 %v12665_v40, 0.0  ;;  %v11161_v29 = vld [vmem:[#allocation2 + $0x38] ss:$0 sps:$4 sm:$0x11]  }
 0x186   : > { %v4208_v1 = vrot.slane %v4206_v48, 1  ;;  %v2074_v45 = vmax.f32 %v1946_v0, 0.0  ;;  %v1820_v12 = vmul.f32 %v12423_v21, %v12644_v44  ;;  %v3230_v58 = vshrl.u32 %v12737_v49, 16  ;;  %v2941_v47 = vld [vmem:[#allocation2 + $0x30] sm:$0xf] }
 0x187   : > { %2237 = vst.msk [vmem:[#allocation5 + $0xc0] sm:$0xff] %vm1013_vm0, %v2173_v16  ;;  %v2176_v53 = vmax.f32 %v15719_v61, %v2076_v25  ;;  %v3234_v18 = vrot.slane %v3232_v50, 1  ;;  %v4213_v4 = vshll.u32 %v9877_v31, 16  ;;  %v9862_v8 = vcombine.low %v2986_v24, %v2942_v14  ;;  %v2879_v36 = vld [vmem:[#allocation2 + $0x34] sm:$0xf] }
 0x188   : > { %v4209_v46 = vsel %vm3192_vm4, %v4204_v59, %v4208_v1  ;;  %v2174_v16 = vmax.f32 %v2070_v3, %v2074_v45  ;;  %v12769_v40 = vadd.f32 %v12431_v19, %v1817_v5  ;;  %v1818_v0 = vmul.f32 %v12423_v21, %v12657_v6  ;;  %v2922_v48 = vld [vmem:[#allocation2 + $0x30] sm:$0xe]  ;;  %v11162_v24 = vld [vmem:[#allocation2 + $0x38] ss:$0 sps:$4 sm:$0x11]  }
 0x189   : > { %2240 = vst.msk [vmem:[#allocation5 + $0xd8] sm:$0xff] %vm1013_vm0, %v2176_v53  ;;  %4380 = vrot.lane.b32.xlu0 %v4209_v46, %s11744_s30  ;;  %v3235_v25 = vor.u32 %v3234_v18, %v3230_v58  ;;  %v3239_v55 = vrot.slane %v3237_v20, 1  ;;  %v2878_v50 = vld [vmem:[#allocation2 + $0x30] sm:$0xf]  ;;  %v12776_v59 = vadd.f32 %v12431_v19, %v1815_v39  ;;  %v3955_v1 = vrot.slane %v9862_v8, 1  ;;  %v12787_v39 = vpop.f32.mrb[66].mxu0 }
 0x18a   : > { %v9815_v3 = vcombine.low %v2922_v48, %v2879_v36  ;;  %v12778_v61 = vcombine.low %v2878_v50, %v2879_v36  ;;  %2238 = vst.msk [vmem:[#allocation5 + $0xc8] sm:$0xff] %vm1013_vm0, %v2174_v16  ;;  %v1955_v6 = vadd.f32 %v12431_v19, %v1820_v12  ;;  %v12783_v53 = vcombine.low %v2941_v47, %v2942_v14  ;;  %v11165_v45 = vld [vmem:[#allocation2 + $0x38] ss:$0 sps:$4 sm:$0x11]   ;;  %v12791_v16 = vpop.f32.mrb[67].mxu0  ;;  %v11223_v14 = vld [vmem:[%s15691_s2 + $0x70] sm:$0xff]  }
 0x18b   : > { %v3240_v5 = vsel %vm3192_vm4, %v3235_v25, %v3239_v55  ;;  %v4215_v20 = vrot.slane %v4213_v4, 1  ;;  %v1821_v58 = vmul.f32 %v12423_v21, %v12667_v9  ;;  %v3956_v18 = vrot.slane %v11161_v29, 1  ;;  %v12798_v25 = vpop.f32.mrb[68].mxu0  ;;  %v11224_v29 = vld [vmem:[%s15691_s2 + $0x30] sm:$0xff]   ;;  %v11228_v55 = vld [vmem:[%s15691_s2 + $0x78] sm:$0xff]   ;;  %10452 = vmatprep.subr.bf16.mxu1 %v11223_v14 }
 0x18c   : > { %15720 = vst [vmem:[#allocation38_spill] sm:$0xff] %v12778_v61  ;;  %15721 = vst [vmem:[#allocation39_spill] sm:$0xff] %v12783_v53  ;;  %3391 = vrot.lane.b32.xlu1 %v3240_v5, %s15638_s0  ;;  %v3478_v8 = vrot.slane %v9815_v3, 1  ;;  %v4211_v46 = vshrl.u32 %v9877_v31, 16  ;;  %v3244_v36 = vshll.u32 %v12778_v61, 16  ;;  %v3479_v12 = vrot.slane %v11162_v24, 1  ;;  %10453 = vmatpush3.bf16.msra.mxu1 %v11224_v29 }
 0x18d   : > { %4110 = vrot.lane.b32.xlu0 %v9877_v31, %s15666_s26  ;;  %v4218_v4 = vshll.u32 %v11165_v45, 16  ;;  %v3249_v9 = vshll.u32 %v11162_v24, 16  ;;  %v1953_v47 = vadd.f32 %v12431_v19, %v1818_v0  ;;  %v3957_v48 = vsel %vm3465_vm3, %v3955_v1, %v3956_v18  ;;  %v12808_v5 = vpop.f32.mrb[69].mxu0  ;;  %v11229_v1 = vld [vmem:[%s15691_s2 + $0x38] sm:$0xff]   ;;  %10454 = vmatprep.subr.bf16.mxu1 %v11228_v55 }
 0x18e   : > { %v4216_v50 = vor.u32 %v4215_v20, %v4211_v46  ;;  %v3242_v31 = vshrl.u32 %v12778_v61, 16  ;;  %v3246_v3 = vrot.slane %v3244_v36, 1  ;;  %v3480_v0 = vsel %vm3465_vm3, %v3478_v8, %v3479_v12 }
 0x18f   : > { %v2079_v24 = vmax.f32 %v12740_v63, 0.0  ;;  %v1956_v45 = vadd.f32 %v12431_v19, %v1821_v58  ;;  %v1819_v44 = vmul.f32 %v12423_v21, %v12717_v42  ;;  %v4220_v20 = vrot.slane %v4218_v4, 1  ;;  %v12824_v58 = vpop.f32.mrb[70].mxu0 }
 0x190   : > { %3632 = vrot.lane.b32.xlu1 %v12783_v53, %s11744_s30  ;;  %v2077_v18 = vmax.f32 %v12748_v57, 0.0  ;;  %v15722_v8 = vshrl.u32 %v12637_v38, 16  ;;  %v2484_v63 = vshll.u32 %v12637_v38, 16  ;;  %v3247_v42 = vor.u32 %v3246_v3, %v3242_v31  ;;  %v12832_v61 = vpop.f32.mrb[71].mxu0  ;;  %10455 = vmatpush3.bf16.msra.mxu1 %v11229_v1 }
 0x191   : > { %4000 = vrot.lane.b32.xlu0 %v3957_v48, %s15723_s18  ;;  %v3251_v36 = vrot.slane %v3249_v9, 1  ;;  %v2080_v14 = vmax.f32 %v12769_v40, 0.0  ;;  %v2083_v12 = vmax.f32 %v1955_v6, 0.0  ;;  %v4221_v29 = vsel %vm3192_vm4, %v4216_v50, %v4220_v20  ;;  %v2303_v50 = vld [vmem:[#allocation5 + $0xd0] ss:$2 sm:$0xff] }
 0x192   : > { %v2483_v46 = vrot.slane %v15722_v8, 7  ;;  %v1954_v8 = vadd.f32 %v12431_v19, %v1819_v44  ;;  %v2081_v55 = vmax.f32 %v1953_v47, 0.0  ;;  %v2084_v53 = vmax.f32 %v1956_v45, 0.0  ;;  %v2367_v44 = vld [vmem:[#allocation5 + $0xd1] ss:$2 sm:$0xff] }
 0x193   : > { %v2179_v49 = vmax.f32 %v2079_v24, %v2083_v12  ;;  %v2078_v6 = vmax.f32 %v12776_v59, 0.0  ;;  %v2119_v9 = vmax.f32 %v12620_v43, 0.0  ;;  %v2117_v48 = vmax.f32 %v12626_v35, 0.0  ;;  %v2301_v24 = vld [vmem:[#allocation5 + $0xc0] ss:$2 sm:$0xff] }
 0x194   : > { %v2486_v4 = vor.u32 %v2484_v63, %v2483_v46  ;;  %v2619_v57 = vsel %vm12221_vm7, %v2483_v46, 0  ;;  %3522 = vrot.lane.b32.xlu1 %v3480_v0, %s15666_s26  ;;  %v2177_v47 = vmax.f32 %v2077_v18, %v2081_v55  ;;  %v2180_v0 = vmax.f32 %v2080_v14, %v2084_v53  ;;  %v2365_v1 = vld [vmem:[#allocation5 + $0xc1] ss:$2 sm:$0xff] }
 0x195   : > { %v9745_v38 = vcombine.low %v2619_v57, %v2619_v57  ;;  %4382 = vrot.lane.b32.xlu0 %v4221_v29, %s11744_s30  ;;  %2243 = vst.msk [vmem:[#allocation5 + $0xf0] sm:$0xff] %vm1013_vm0, %v2179_v49  ;;  %v3252_v45 = vsel %vm3192_vm4, %v3247_v42, %v3251_v36  ;;  %v2082_v59 = vmax.f32 %v1954_v8, 0.0  ;;  %v2120_v43 = vmax.f32 %v12648_v56, 0.0 }
 0x196   : > { %v2603_v40 = vsel %vm12221_vm7, 0, %v2486_v4  ;;  %v2118_v35 = vmax.f32 %v12701_v26, 0.0  ;;  %2241 = vst.msk [vmem:[#allocation5 + $0xe0] sm:$0xff] %vm1013_vm0, %v2177_v47  ;;  %2244 = vst.msk [vmem:[#allocation5 + $0xf8] sm:$0xff] %vm1013_vm0, %v2180_v0  ;;  %v2123_v49 = vmax.f32 %v12704_v41, 0.0  ;;  %v2121_v53 = vmax.f32 %v12707_v15, 0.0 }
 0x197   : > { %v9743_v31 = vcombine.low %v2603_v40, %v2603_v40  ;;  %v9744_v3 = vcombine.high %v2603_v40, %v2603_v40  ;;  %2833 = vst.msk [vmem:[#allocation2 + $0x44] sm:$0x1] %vm2817_vm2, %v9745_v38  ;;  %v1824_v20 = vmul.f32 %v12423_v21, %v12742_v37  ;;  %v2124_v56 = vmax.f32 %v12723_v2, 0.0 }
 0x198   : > { %3393 = vrot.lane.b32.xlu1 %v3252_v45, %s15723_s18  ;;  %v2178_v26 = vmax.f32 %v2078_v6, %v2082_v59  ;;  %v1822_v18 = vmul.f32 %v12423_v21, %v12754_v54  ;;  %v2122_v46 = vmax.f32 %v12726_v7, 0.0  ;;  %v1825_v63 = vmul.f32 %v12423_v21, %v12787_v39 }
 0x199   : > { %2831 = vst.msk [vmem:[#allocation2 + $0x3c] sm:$0xf] %vm2814_vm1, %v9743_v31  ;;  %2832 = vst.msk [vmem:[#allocation2 + $0x40] sm:$0xf] %vm2814_vm1, %v9744_v3  ;;  %v2199_v42 = vmax.f32 %v2119_v9, %v2123_v49  ;;  %v2197_v41 = vmax.f32 %v2117_v48, %v2121_v53  ;;  %v12862_v15 = vadd.f32 %v12431_v19, %v1824_v20  ;;  %v15724_v29 = vshrl.u32 %v12750_v23, 16 }
 0x19a   : > { %v2200_v36 = vmax.f32 %v2120_v43, %v2124_v56  ;;  %v2417_v37 = vmax.f32 %v2303_v50, %v2367_v44  ;;  %v2416_v14 = vmax.f32 %v2301_v24, %v2365_v1  ;;  %2242 = vst.msk [vmem:[#allocation5 + $0xe8] sm:$0xff] %vm1013_vm0, %v2178_v26  ;;  %v12866_v2 = vadd.f32 %v12431_v19, %v1822_v18 }
 0x19b   : > { %v2198_v12 = vmax.f32 %v2118_v35, %v2122_v46  ;;  %2263 = vst.msk [vmem:[#allocation5 + $0x190] sm:$0xff] %vm1013_vm0, %v2199_v42  ;;  %2261 = vst.msk [vmem:[#allocation5 + $0x180] sm:$0xff] %vm1013_vm0, %v2197_v41  ;;  %v1864_v54 = vmul.f32 %v12423_v21, %v12332_v22  ;;  %v12875_v39 = vadd.f32 %v12431_v19, %v1825_v63  ;;  %v12879_v4 = vrot.slane %v15724_v29, 7 }
 0x19c   : > { %2264 = vst.msk [vmem:[#allocation5 + $0x198] sm:$0xff] %vm1013_vm0, %v2200_v36  ;;  %v2087_v8 = vmax.f32 %v12862_v15, 0.0  ;;  %v1828_v38 = vmul.f32 %v12423_v21, %v12798_v25  ;;  %v1862_v22 = vmul.f32 %v12423_v21, %v12337_v28  ;;  %v12888_v55 = vpack.c.bf16 %v2417_v37, %v2416_v14 }
 0x19d   : > { %2262 = vst.msk [vmem:[#allocation5 + $0x188] sm:$0xff] %vm1013_vm0, %v2198_v12  ;;  %v2085_v9 = vmax.f32 %v12866_v2, 0.0  ;;  %v2491_v48 = vshll.u32 %v12750_v23, 16  ;;  %v1826_v50 = vmul.f32 %v12423_v21, %v12808_v5  ;;  %v1823_v25 = vmul.f32 %v12423_v21, %v12791_v16  ;;  %v2307_v26 = vld [vmem:[#allocation5 + $0xf0] ss:$2 sm:$0xff] }
 0x19e   : > { %v11170_v7 = vld [vmem:[#allocation2 + $0x44] ss:$0 sps:$4 sm:$0x11]   ;;  %v1829_v28 = vmul.f32 %v12423_v21, %v12824_v58  ;;  %v12899_v0 = vadd.f32 %v12431_v19, %v1864_v54  ;;  %v2088_v5 = vmax.f32 %v12875_v39, 0.0  ;;  %v1963_v58 = vadd.f32 %v12431_v19, %v1828_v38  ;;  %v2371_v18 = vld [vmem:[#allocation5 + $0xf1] ss:$2 sm:$0xff] }
 0x19f   : > { %v12881_v57 = vld [vmem:[#allocation2 + $0x44] ss:$0 sps:$4 sm:$0x11]   ;;  %v2493_v43 = vor.u32 %v2491_v48, %v12879_v4  ;;  %v3959_v1 = vrot.slane %v11170_v7, 1  ;;  %v1961_v46 = vadd.f32 %v12431_v19, %v1826_v50  ;;  %v1827_v36 = vmul.f32 %v12423_v21, %v12832_v61 }
 0x1a0   : > { %v3006_v40 = vld [vmem:[#allocation2 + $0x3c] sm:$0xf]  ;;  %v3007_v6 = vld [vmem:[#allocation2 + $0x40] sm:$0xf]  ;;  %v3482_v20 = vrot.slane %v12881_v57, 1  ;;  %v1964_v41 = vadd.f32 %v12431_v19, %v1829_v28  ;;  %v1865_v37 = vmul.f32 %v12423_v21, %v12350_v34  ;;  %v1863_v29 = vmul.f32 %v12423_v21, %v12360_v52 }
 0x1a1   : > { %v9878_v44 = vcombine.low %v3006_v40, %v3007_v6  ;;  %v2943_v31 = vld [vmem:[#allocation2 + $0x3c] sm:$0xf]  ;;  %v2944_v3 = vld [vmem:[#allocation2 + $0x40] sm:$0xf]  ;;  %v2419_v40 = vmax.f32 %v2307_v26, %v2371_v18  ;;  %v3261_v50 = vshll.u32 %v12881_v57, 16 }
 0x1a2   : > { %v2987_v47 = vld [vmem:[#allocation2 + $0x3c] sm:$0xe]  ;;  %v12901_v24 = vcombine.low %v2943_v31, %v2944_v3  ;;  %v2881_v23 = vld [vmem:[#allocation2 + $0x40] sm:$0xf]  ;;  %v2604_v31 = vsel %vm12221_vm7, 0, %v2493_v43  ;;  %v2092_v26 = vmax.f32 %v1964_v41, 0.0 }
 0x1a3   : > { %v9863_v45 = vcombine.low %v2987_v47, %v2944_v3  ;;  %v2923_v59 = vld [vmem:[#allocation2 + $0x3c] sm:$0xe]  ;;  %4112 = vrot.lane.b32.xlu0 %v9878_v44, %s15666_s26  ;;  %v4225_v35 = vshll.u32 %v9878_v44, 16  ;;  %v11174_v42 = vld [vmem:[#allocation2 + $0x44] ss:$0 sps:$4 sm:$0x11]   ;;  %v9746_v47 = vcombine.low %v2604_v31, %v2604_v31  ;;  %v9747_v28 = vcombine.high %v2604_v31, %v2604_v31 }
 0x1a4   : > { %v9816_v16 = vcombine.low %v2923_v59, %v2881_v23  ;;  %v2880_v49 = vld [vmem:[#allocation2 + $0x3c] sm:$0xf]  ;;  %3634 = vrot.lane.b32.xlu1 %v12901_v24, %s11744_s30  ;;  %v4223_v12 = vshrl.u32 %v9878_v44, 16  ;;  %v4230_v6 = vshll.u32 %v11174_v42, 16 }
 0x1a5   : > { %v3958_v53 = vrot.slane %v9863_v45, 1  ;;  %v12910_v56 = vcombine.low %v2880_v49, %v2881_v23  ;;  %v4227_v54 = vrot.slane %v4225_v35, 1  ;;  %v2305_v7 = vld [vmem:[#allocation5 + $0xe0] ss:$2 sm:$0xff]  ;;  %v2369_v61 = vld [vmem:[#allocation5 + $0xe1] ss:$2 sm:$0xff]  ;;  %v1958_v45 = vadd.f32 %v12431_v19, %v1823_v25 }
 0x1a6   : > { %v3481_v63 = vrot.slane %v9816_v16, 1  ;;  %v2418_v44 = vmax.f32 %v2305_v7, %v2369_v61  ;;  %v4232_v3 = vrot.slane %v4230_v6, 1  ;;  %v12933_v23 = vld [vmem:[%s15605_s8] ss:$0 sm:$0xff]  ;;  %2834 = vst.msk [vmem:[#allocation2 + $0x48] sm:$0xf] %vm2814_vm1, %v9746_v47 }
 0x1a7   : > { %v3960_v14 = vsel %vm3465_vm3, %v3958_v53, %v3959_v1  ;;  %v3256_v48 = vshll.u32 %v12910_v56, 16  ;;  %v4228_v34 = vor.u32 %v4227_v54, %v4223_v12  ;;  %v3254_v52 = vshrl.u32 %v12910_v56, 16  ;;  %2835 = vst.msk [vmem:[#allocation2 + $0x4c] sm:$0xf] %vm2814_vm1, %v9747_v28  ;;  %v12970_v12 = vld [vmem:[%s15687_s7] ss:$0 sm:$0xff] }
 0x1a8   : > { %4002 = vrot.lane.b32.xlu0 %v3960_v14, %s15723_s18  ;;  %v3483_v38 = vsel %vm3465_vm3, %v3481_v63, %v3482_v20  ;;  %v12936_v59 = vadd.f32 %v12933_v23, %v1862_v22  ;;  %v1962_v57 = vadd.f32 %v12933_v23, %v1827_v36  ;;  %v3263_v1 = vrot.slane %v3261_v50, 1 }
 0x1a9   : > { %3524 = vrot.lane.b32.xlu1 %v3483_v38, %s15666_s26  ;;  %v3258_v21 = vrot.slane %v3256_v48, 1  ;;  %v4233_v43 = vsel %vm3192_vm4, %v4228_v34, %v4232_v3  ;;  %v2620_v19 = vsel %vm12221_vm7, %v12879_v4, 0  ;;  %v12945_v25 = vpack.c.bf16 %v2419_v40, %v2418_v44  ;;  %v12994_v3 = vpop.permute.xlu0 %3385 }
 0x1aa   : > { %v9748_v22 = vcombine.low %v2620_v19, %v2620_v19  ;;  %v2091_v16 = vmax.f32 %v1963_v58, 0.0  ;;  %v12949_v49 = vadd.f32 %v12933_v23, %v1865_v37  ;;  %v2089_v20 = vmax.f32 %v1961_v46, 0.0 }
 0x1ab   : > { %v3259_v35 = vor.u32 %v3258_v21, %v3254_v52  ;;  %v12953_v18 = vadd.f32 %v12933_v23, %v1863_v29  ;;  %v2495_v4 = vshrl.u32 %v12888_v55, 16  ;;  %v2086_v63 = vmax.f32 %v1958_v45, 0.0 }
 0x1ac   : > { %4384 = vrot.lane.b32.xlu0 %v4233_v43, %s11744_s30  ;;  %2836 = vst.msk [vmem:[#allocation2 + $0x50] sm:$0x1] %vm2817_vm2, %v9748_v22  ;;  %v2183_v58 = vmax.f32 %v2087_v8, %v2091_v16  ;;  %v2090_v42 = vmax.f32 %v1962_v57, 0.0  ;;  %v2181_v36 = vmax.f32 %v2085_v9, %v2089_v20  ;;  %v2184_v46 = vmax.f32 %v2088_v5, %v2092_v26 }
 0x1ad   : > { %v3264_v53 = vsel %vm3192_vm4, %v3259_v35, %v3263_v1  ;;  %v2502_v41 = vshrl.u32 %v12945_v25, 16  ;;  %v2127_v37 = vmax.f32 %v12899_v0, 0.0  ;;  %v1868_v15 = vmul.f32 %v12970_v12, %v12368_v60  ;;  %v3008_v0 = vld [vmem:[#allocation2 + $0x48] sm:$0xf] }
 0x1ae   : > { %3395 = vrot.lane.b32.xlu1 %v3264_v53, %s15723_s18  ;;  %2247 = vst.msk [vmem:[#allocation5 + $0x110] sm:$0xff] %vm1013_vm0, %v2183_v58  ;;  %v2182_v14 = vmax.f32 %v2086_v63, %v2090_v42  ;;  %2245 = vst.msk [vmem:[#allocation5 + $0x100] sm:$0xff] %vm1013_vm0, %v2181_v36  ;;  %v2125_v2 = vmax.f32 %v12936_v59, 0.0  ;;  %v2128_v39 = vmax.f32 %v12949_v49, 0.0  ;;  %v2126_v8 = vmax.f32 %v12953_v18, 0.0 }
 0x1af   : > { %2248 = vst.msk [vmem:[#allocation5 + $0x118] sm:$0xff] %vm1013_vm0, %v2184_v46  ;;  %v1866_v9 = vmul.f32 %v12970_v12, %v12374_v10  ;;  %v2945_v5 = vld [vmem:[#allocation2 + $0x48] sm:$0xf]  ;;  %v2003_v54 = vadd.f32 %v12933_v23, %v1868_v15  ;;  %v1869_v60 = vmul.f32 %v12970_v12, %v12379_v17  ;;  %v12985_v7 = vrot.slane %v2495_v4, 7  ;;  %v3009_v38 = vld [vmem:[#allocation2 + $0x4c] sm:$0xf] }
 0x1b0   : > { %2246 = vst.msk [vmem:[#allocation5 + $0x108] sm:$0xff] %vm1013_vm0, %v2182_v14  ;;  %v2498_v29 = vshll.u32 %v12888_v55, 16  ;;  %v2946_v40 = vld [vmem:[#allocation2 + $0x4c] sm:$0xf]  ;;  %v2988_v6 = vld [vmem:[#allocation2 + $0x48] sm:$0xe]  ;;  %v1867_v48 = vmul.f32 %v12970_v12, %v12390_v11  ;;  %v9879_v10 = vcombine.low %v3008_v0, %v3009_v38  ;;  %v1872_v17 = vmul.f32 %v12970_v12, %v12395_v27 }
 0x1b1   : > { %v12990_v61 = vcombine.low %v2945_v5, %v2946_v40  ;;  %v9864_v34 = vcombine.low %v2988_v6, %v2946_v40  ;;  %v2883_v50 = vld [vmem:[#allocation2 + $0x4c] sm:$0xf]  ;;  %v2924_v44 = vld [vmem:[#allocation2 + $0x48] sm:$0xe]  ;;  %v2131_v21 = vmax.f32 %v2003_v54, 0.0  ;;  %v1870_v47 = vmul.f32 %v12970_v12, %v12401_v33  ;;  %v15725_v38 = vld [vmem:[#allocation22_spill] sm:$0xff]  ;;  %v13033_v40 = vpop.permute.xlu1 %3514 }
 0x1b2   : > { %v2882_v31 = vld [vmem:[#allocation2 + $0x48] sm:$0xf]  ;;  %v9817_v55 = vcombine.low %v2924_v44, %v2883_v50  ;;  %4114 = vrot.lane.b32.xlu0 %v9879_v10, %s15666_s26  ;;  %v4237_v11 = vshll.u32 %v9879_v10, 16  ;;  %v2001_v45 = vadd.f32 %v12933_v23, %v1866_v9  ;;  %v2004_v27 = vadd.f32 %v12933_v23, %v1869_v60  ;;  %v13021_v14 = vpop.permute.xlu0 %4122 }
 0x1b3   : > { %v11180_v52 = vld [vmem:[#allocation2 + $0x50] ss:$0 sps:$4 sm:$0x11]   ;;  %3636 = vrot.lane.b32.xlu1 %v12990_v61, %s11744_s30  ;;  %v13001_v28 = vcombine.low %v2882_v31, %v2883_v50  ;;  %v3961_v57 = vrot.slane %v9864_v34, 1  ;;  %v2203_v19 = vmax.f32 %v2127_v37, %v2131_v21  ;;  %v4235_v22 = vshrl.u32 %v9879_v10, 16 }
 0x1b4   : > { %v3962_v43 = vrot.slane %v11180_v52, 1  ;;  %v11181_v35 = vld [vmem:[#allocation2 + $0x50] ss:$0 sps:$4 sm:$0x11]   ;;  %v3484_v1 = vrot.slane %v9817_v55, 1  ;;  %v2002_v33 = vadd.f32 %v12933_v23, %v1867_v48  ;;  %v2500_v16 = vor.u32 %v2498_v29, %v12985_v7 }
 0x1b5   : > { %v13008_v53 = vadd.f32 %v12933_v23, %v1872_v17  ;;  %v3485_v26 = vrot.slane %v11181_v35, 1  ;;  %v11185_v4 = vld [vmem:[#allocation2 + $0x50] ss:$0 sps:$4 sm:$0x11]   ;;  %2267 = vst.msk [vmem:[#allocation5 + $0x1b0] sm:$0xff] %vm1013_vm0, %v2203_v19  ;;  %v13013_v63 = vadd.f32 %v12933_v23, %v1870_v47  ;;  %v1873_v58 = vmul.f32 %v12970_v12, %v12412_v51  ;;  %v13027_v51 = vld [vmem:[%s15691_s2 + $0x80] sm:$0xff]  }
 0x1b6   : > { %v3963_v20 = vsel %vm3465_vm3, %v3961_v57, %v3962_v43  ;;  %v4239_v42 = vrot.slane %v4237_v11, 1  ;;  %v3268_v36 = vshll.u32 %v13001_v28, 16  ;;  %v3273_v46 = vshll.u32 %v11181_v35, 16  ;;  %10900 = vmatprep.subr.bf16.mxu1 %v13027_v51  ;;  %v15726_v11 = vld [vmem:[#allocation23_spill] sm:$0xff]  ;;  %v15728_v43 = vld [vmem:[#allocation25_spill] sm:$0xff] }
 0x1b7   : > { %4004 = vrot.lane.b32.xlu0 %v3963_v20, %s15723_s18  ;;  %v1871_v37 = vmul.f32 %v12970_v12, %v12426_v13  ;;  %v3486_v15 = vsel %vm3465_vm3, %v3484_v1, %v3485_v26  ;;  %v4242_v9 = vshll.u32 %v11185_v4, 16  ;;  %v2129_v0 = vmax.f32 %v2001_v45, 0.0 }
 0x1b8   : > { %v2132_v5 = vmax.f32 %v2004_v27, 0.0  ;;  %3526 = vrot.lane.b32.xlu1 %v3486_v15, %s15666_s26  ;;  %v4240_v54 = vor.u32 %v4239_v42, %v4235_v22  ;;  %v3266_v60 = vshrl.u32 %v13001_v28, 16  ;;  %v3270_v29 = vrot.slane %v3268_v36, 1  ;;  %v15727_v27 = vld [vmem:[#allocation24_spill] sm:$0xff] }
 0x1b9   : > { %v1876_v13 = vmul.f32 %v12970_v12, %v15725_v38  ;;  %v4244_v6 = vrot.slane %v4242_v9, 1  ;;  %v2201_v48 = vmax.f32 %v2125_v2, %v2129_v0  ;;  %v2130_v34 = vmax.f32 %v2002_v33, 0.0  ;;  %v13069_v1 = vpop.permute.xlu1 %3626  ;;  %v2375_v0 = vld [vmem:[#allocation5 + $0x111] ss:$2 sm:$0xff] }
 0x1ba   : > { %v2204_v10 = vmax.f32 %v2128_v39, %v2132_v5  ;;  %v3271_v50 = vor.u32 %v3270_v29, %v3266_v60  ;;  %v3275_v44 = vrot.slane %v3273_v46, 1  ;;  %v2605_v31 = vsel %vm12221_vm7, 0, %v2500_v16  ;;  %v2309_v5 = vld [vmem:[#allocation5 + $0x100] ss:$2 sm:$0xff] }
 0x1bb   : > { %v2621_v17 = vsel %vm12221_vm7, %v12985_v7, 0  ;;  %v4245_v52 = vsel %vm3192_vm4, %v4240_v54, %v4244_v6  ;;  %2265 = vst.msk [vmem:[#allocation5 + $0x1a0] sm:$0xff] %vm1013_vm0, %v2201_v48  ;;  %v2202_v59 = vmax.f32 %v2126_v8, %v2130_v34  ;;  %v9749_v49 = vcombine.low %v2605_v31, %v2605_v31  ;;  %v2373_v48 = vld [vmem:[#allocation5 + $0x101] ss:$2 sm:$0xff] }
 0x1bc   : > { %2268 = vst.msk [vmem:[#allocation5 + $0x1b8] sm:$0xff] %vm1013_vm0, %v2204_v10  ;;  %v9750_v2 = vcombine.high %v2605_v31, %v2605_v31  ;;  %4386 = vrot.lane.b32.xlu0 %v4245_v52, %s11744_s30  ;;  %v3276_v39 = vsel %vm3192_vm4, %v3271_v50, %v3275_v44  ;;  %v9751_v55 = vcombine.low %v2621_v17, %v2621_v17  ;;  %v13053_v47 = vpop.permute.xlu0 %3994  ;;  %v2135_v18 = vmax.f32 %v13008_v53, 0.0 }
 0x1bd   : > { %v2008_v21 = vadd.f32 %v12933_v23, %v1873_v58  ;;  %3397 = vrot.lane.b32.xlu1 %v3276_v39, %s15723_s18  ;;  %2266 = vst.msk [vmem:[#allocation5 + $0x1a8] sm:$0xff] %vm1013_vm0, %v2202_v59  ;;  %v2006_v8 = vadd.f32 %v12933_v23, %v1871_v37  ;;  %v2011_v7 = vadd.f32 %v12933_v23, %v1876_v13  ;;  %v2133_v19 = vmax.f32 %v13013_v63, 0.0  ;;  %v2311_v63 = vld [vmem:[#allocation5 + $0x110] ss:$2 sm:$0xff]  ;;  %v13085_v6 = vpop.permute.xlu1 %3644 }
 0x1be   : > { %2837 = vst.msk [vmem:[#allocation2 + $0x54] sm:$0xf] %vm2814_vm1, %v9749_v49  ;;  %2838 = vst.msk [vmem:[#allocation2 + $0x58] sm:$0xf] %vm2814_vm1, %v9750_v2  ;;  %v1874_v45 = vmul.f32 %v12970_v12, %v15726_v11  ;;  %v1877_v57 = vmul.f32 %v12970_v12, %v15727_v27  ;;  %v1875_v35 = vmul.f32 %v12970_v12, %v15728_v43  ;;  %v2504_v33 = vrot.slane %v2502_v41, 7  ;;  %v15731_v11 = vld [vmem:[#allocation18_spill] sm:$0xff] }
 0x1bf   : > { %2839 = vst.msk [vmem:[#allocation2 + $0x5c] sm:$0x1] %vm2817_vm2, %v9751_v55  ;;  %v2139_v22 = vmax.f32 %v2011_v7, 0.0  ;;  %v2505_v16 = vshll.u32 %v12945_v25, 16  ;;  %v2136_v53 = vmax.f32 %v2008_v21, 0.0  ;;  %v2134_v58 = vmax.f32 %v2006_v8, 0.0 }
 0x1c0   : > { %v2009_v20 = vadd.f32 %v12933_v23, %v1874_v45  ;;  %v2012_v26 = vadd.f32 %v12933_v23, %v1877_v57  ;;  %v2010_v4 = vadd.f32 %v12933_v23, %v1875_v35  ;;  %v13078_v15 = vpop.permute.xlu0 %4012  ;;  %v2622_v9 = vsel %vm12221_vm7, %v2504_v33, 0  ;;  %15730 = vst [vmem:[#allocation23_spill] sm:$0xff] %v13085_v6  ;;  %v13101_v43 = vld [vmem:[#allocation5 + $0x190] ss:$2 sm:$0xff] }
 0x1c1   : > { %v2207_v42 = vmax.f32 %v2135_v18, %v2139_v22  ;;  %v2507_v36 = vor.u32 %v2505_v16, %v2504_v33  ;;  %15729 = vst [vmem:[#allocation22_spill] sm:$0xff] %v13078_v15  ;;  %v9754_v44 = vcombine.low %v2622_v9, %v2622_v9  ;;  %v2421_v55 = vmax.f32 %v2311_v63, %v2375_v0  ;;  %v13105_v16 = vpop.permute.xlu1 %3516  ;;  %v13114_v63 = vld [vmem:[#allocation5 + $0x181] ss:$2 sm:$0xff] }
 0x1c2   : > { %v2137_v46 = vmax.f32 %v2009_v20, 0.0  ;;  %v2140_v37 = vmax.f32 %v2012_v26, 0.0  ;;  %v2138_v41 = vmax.f32 %v2010_v4, 0.0  ;;  %v2420_v21 = vmax.f32 %v2309_v5, %v2373_v48  ;;  %v13107_v4 = vld [vmem:[#allocation5 + $0x191] ss:$2 sm:$0xff] }
 0x1c3   : > { %2271 = vst.msk [vmem:[#allocation5 + $0x1d0] sm:$0xff] %vm1013_vm0, %v2207_v42  ;;  %v2606_v25 = vsel %vm12221_vm7, 0, %v2507_v36  ;;  %v3709_v45 = vshll.u32 %v15731_v11, 16  ;;  %v2395_v5 = vld [vmem:[#allocation5 + $0x1b1] ss:$2 sm:$0xff] }
 0x1c4   : > { %v2205_v60 = vmax.f32 %v2133_v19, %v2137_v46  ;;  %v2208_v29 = vmax.f32 %v2136_v53, %v2140_v37  ;;  %v9752_v38 = vcombine.low %v2606_v25, %v2606_v25  ;;  %v9753_v13 = vcombine.high %v2606_v25, %v2606_v25  ;;  %2842 = vst.msk [vmem:[#allocation2 + $0x68] sm:$0x1] %vm2817_vm2, %v9754_v44  ;;  %v13096_v7 = vpop.permute.xlu0 %4394 }
 0x1c5   : > { %v3010_v54 = vld [vmem:[#allocation2 + $0x54] sm:$0xf]  ;;  %v3011_v10 = vld [vmem:[#allocation2 + $0x58] sm:$0xf]  ;;  %v2206_v50 = vmax.f32 %v2134_v58, %v2138_v41  ;;  %v13111_v42 = vpack.c.bf16 %v2421_v55, %v2420_v21 }
 0x1c6   : > { %v2947_v34 = vld [vmem:[#allocation2 + $0x54] sm:$0xf]  ;;  %v9880_v31 = vcombine.low %v3010_v54, %v3011_v10  ;;  %v2948_v17 = vld [vmem:[#allocation2 + $0x58] sm:$0xf]  ;;  %2269 = vst.msk [vmem:[#allocation5 + $0x1c0] sm:$0xff] %vm1013_vm0, %v2205_v60  ;;  %2272 = vst.msk [vmem:[#allocation5 + $0x1d8] sm:$0xff] %vm1013_vm0, %v2208_v29 }
 0x1c7   : > { %v2989_v52 = vld [vmem:[#allocation2 + $0x54] sm:$0xe]  ;;  %2840 = vst.msk [vmem:[#allocation2 + $0x60] sm:$0xf] %vm2814_vm1, %v9752_v38  ;;  %2841 = vst.msk [vmem:[#allocation2 + $0x64] sm:$0xf] %vm2814_vm1, %v9753_v13  ;;  %v13091_v59 = vcombine.low %v2947_v34, %v2948_v17 }
 0x1c8   : > { %v9865_v49 = vcombine.low %v2989_v52, %v2948_v17  ;;  %v11192_v2 = vld [vmem:[#allocation2 + $0x5c] ss:$0 sps:$4 sm:$0x11]   ;;  %v2885_v39 = vld [vmem:[#allocation2 + $0x58] sm:$0xf]  ;;  %2270 = vst.msk [vmem:[#allocation5 + $0x1c8] sm:$0xff] %vm1013_vm0, %v2206_v50  ;;  %4116 = vrot.lane.b32.xlu0 %v9880_v31, %s15666_s26 }
 0x1c9   : > { %v4249_v18 = vshll.u32 %v9880_v31, 16  ;;  %v2925_v8 = vld [vmem:[#allocation2 + $0x54] sm:$0xe]  ;;  %3638 = vrot.lane.b32.xlu1 %v13091_v59, %s11744_s30  ;;  %v3965_v35 = vrot.slane %v11192_v2, 1  ;;  %v4247_v20 = vshrl.u32 %v9880_v31, 16  ;;  %v13119_v54 = vrot.slane %v3709_v45, 1 }
 0x1ca   : > { %v3964_v27 = vrot.slane %v9865_v49, 1  ;;  %v2884_v57 = vld [vmem:[#allocation2 + $0x54] sm:$0xf]  ;;  %v11193_v19 = vld [vmem:[#allocation2 + $0x5c] ss:$0 sps:$4 sm:$0x11]   ;;  %v9818_v22 = vcombine.low %v2925_v8, %v2885_v39 }
 0x1cb   : > { %v13103_v33 = vcombine.low %v2884_v57, %v2885_v39  ;;  %v11196_v53 = vld [vmem:[#allocation2 + $0x5c] ss:$0 sps:$4 sm:$0x11]   ;;  %v4251_v26 = vrot.slane %v4249_v18, 1  ;;  %v3488_v37 = vrot.slane %v11193_v19, 1  ;;  %v3285_v0 = vshll.u32 %v11193_v19, 16  ;;  %v13133_v39 = vpop.permute.xlu1 %3534 }
 0x1cc   : > { %v13109_v58 = vld [vmem:[#allocation5 + $0x180] ss:$2 sm:$0xff]  ;;  %v3966_v36 = vsel %vm3465_vm3, %v3964_v27, %v3965_v35  ;;  %v3487_v46 = vrot.slane %v9818_v22, 1  ;;  %v4254_v25 = vshll.u32 %v11196_v53, 16  ;;  %v2509_v44 = vshrl.u32 %v13111_v42, 16  ;;  %v15733_v49 = vld [vmem:[#allocation28_spill] sm:$0xff] }
 0x1cd   : > { %4006 = vrot.lane.b32.xlu0 %v3966_v36, %s15723_s18  ;;  %v4252_v41 = vor.u32 %v4251_v26, %v4247_v20  ;;  %v3280_v9 = vshll.u32 %v13103_v33, 16  ;;  %v3278_v48 = vshrl.u32 %v13103_v33, 16  ;;  %v3287_v31 = vrot.slane %v3285_v0, 1  ;;  %15734 = vst [vmem:[#allocation25_spill] sm:$0xff] %v13133_v39  ;;  %v15735_v27 = vld [vmem:[#allocation29_spill] sm:$0xff]  ;;  %v15736_v53 = vld [vmem:[#allocation30_spill] sm:$0xff] }
 0x1ce   : > { %v3489_v60 = vsel %vm3465_vm3, %v3487_v46, %v3488_v37  ;;  %v4256_v13 = vrot.slane %v4254_v25, 1  ;;  %v3012_v34 = vld [vmem:[#allocation2 + $0x60] sm:$0xf]  ;;  %v3013_v17 = vld [vmem:[#allocation2 + $0x64] sm:$0xf]  ;;  %v1880_v2 = vmul.f32 %v12970_v12, %v15733_v49  ;;  %v1878_v57 = vmul.f32 %v12970_v12, %v15735_v27  ;;  %v15737_v37 = vld [vmem:[#allocation16_spill] sm:$0xff] }
 0x1cf   : > { %v13122_v29 = vpop.permute.xlu0 %4124  ;;  %3528 = vrot.lane.b32.xlu1 %v3489_v60, %s15666_s26  ;;  %v3282_v10 = vrot.slane %v3280_v9, 1  ;;  %v2949_v52 = vld [vmem:[#allocation2 + $0x60] sm:$0xf]  ;;  %v9881_v18 = vcombine.low %v3012_v34, %v3013_v17  ;;  %v2950_v8 = vld [vmem:[#allocation2 + $0x64] sm:$0xf]  ;;  %v1881_v20 = vmul.f32 %v12970_v12, %v15736_v53  ;;  %v1879_v26 = vmul.f32 %v12970_v12, %v12556_v30  ;;  %v15738_v60 = vld [vmem:[#allocation32_spill] sm:$0xff] }
 0x1d0   : > { %15732 = vst [vmem:[#allocation24_spill] sm:$0xff] %v13122_v29  ;;  %v4257_v55 = vsel %vm3192_vm4, %v4252_v41, %v4256_v13  ;;  %v2990_v45 = vld [vmem:[#allocation2 + $0x60] sm:$0xe]  ;;  %v11203_v19 = vld [vmem:[#allocation2 + $0x68] ss:$0 sps:$4 sm:$0x11]   ;;  %v1884_v36 = vmul.f32 %v12970_v12, %v12563_v62  ;;  %v13149_v41 = vsel %vm1013_vm0, %v15737_v37, %v12994_v3  ;;  %v1882_v13 = vmul.f32 %v12970_v12, %v15738_v60 }
 0x1d1   : > { %v3283_v21 = vor.u32 %v3282_v10, %v3278_v48  ;;  %4388 = vrot.lane.b32.xlu0 %v4257_v55, %s11744_s30  ;;  %v9866_v35 = vcombine.low %v2990_v45, %v2950_v8  ;;  %v2887_v22 = vld [vmem:[#allocation2 + $0x64] sm:$0xf]  ;;  %v2926_v25 = vld [vmem:[#allocation2 + $0x60] sm:$0xe]  ;;  %v4261_v30 = vshll.u32 %v9881_v18, 16  ;;  %v13157_v48 = vcombine.low %v2949_v52, %v2950_v8  ;;  %v15755_v39 = vld [vmem:[#allocation20_spill] sm:$0xff] }
 0x1d2   : > { %v13151_v9 = vld [vmem:[#allocation2 + $0x14] ss:$0 sps:$4 sm:$0x11]   ;;  %v2886_v10 = vld [vmem:[#allocation2 + $0x60] sm:$0xf]  ;;  %v2015_v34 = vadd.f32 %v12933_v23, %v1880_v2  ;;  %v3968_v3 = vrot.slane %v11203_v19, 1  ;;  %v9819_v49 = vcombine.low %v2926_v25, %v2887_v22  ;;  %v2016_v27 = vadd.f32 %v12933_v23, %v1881_v20  ;;  %v13173_v19 = vpop.permute.xlu1 %3387 }
 0x1d3   : > { %v3288_v46 = vsel %vm3192_vm4, %v3283_v21, %v3287_v31  ;;  %v3967_v62 = vrot.slane %v9866_v35, 1  ;;  %v11204_v17 = vld [vmem:[#allocation2 + $0x68] ss:$0 sps:$4 sm:$0x11]   ;;  %v13162_v55 = vcombine.low %v2886_v10, %v2887_v22  ;;  %v2013_v21 = vadd.f32 %v12933_v23, %v1878_v57  ;;  %v15740_v2 = vld [vmem:[#allocation33_spill] sm:$0xff] }
 0x1d4   : > { %3399 = vrot.lane.b32.xlu1 %v3288_v46, %s15723_s18  ;;  %v11207_v45 = vld [vmem:[#allocation2 + $0x68] ss:$0 sps:$4 sm:$0x11]   ;;  %v13168_v52 = vadd.f32 %v12933_v23, %v1879_v26  ;;  %v2019_v8 = vadd.f32 %v12933_v23, %v1884_v36  ;;  %v1885_v35 = vmul.f32 %v12970_v12, %v15740_v2  ;;  %v3490_v53 = vrot.slane %v9819_v49, 1 }
 0x1d5   : > { %v13160_v31 = vpop.permute.xlu0 %3996  ;;  %15739 = vst [vmem:[#allocation18_spill] sm:$0xff] %v13162_v55  ;;  %4118 = vrot.lane.b32.xlu0 %v9881_v18, %s15666_s26  ;;  %v3969_v22 = vsel %vm3465_vm3, %v3967_v62, %v3968_v3  ;;  %v3491_v46 = vrot.slane %v11204_v17, 1  ;;  %v2017_v57 = vadd.f32 %v12933_v23, %v1882_v13  ;;  %v4259_v20 = vshrl.u32 %v9881_v18, 16  ;;  %v2331_v0 = vld [vmem:[#allocation5 + $0x1b0] ss:$2 sm:$0xff] }
 0x1d6   : > { %v4263_v26 = vrot.slane %v4261_v30, 1  ;;  %v4266_v37 = vshll.u32 %v11207_v45, 16  ;;  %v3292_v36 = vshll.u32 %v13162_v55, 16  ;;  %v2143_v60 = vmax.f32 %v2015_v34, 0.0 }
 0x1d7   : > { %v3492_v25 = vsel %vm3465_vm3, %v3490_v53, %v3491_v46  ;;  %v2141_v10 = vmax.f32 %v2013_v21, 0.0  ;;  %v3297_v2 = vshll.u32 %v11204_v17, 16  ;;  %v3290_v13 = vshrl.u32 %v13162_v55, 16  ;;  %v13190_v46 = vpop.permute.xlu1 %3405 }
 0x1d8   : > { %3640 = vrot.lane.b32.xlu1 %v13157_v48, %s11744_s30  ;;  %v4264_v62 = vor.u32 %v4263_v26, %v4259_v20  ;;  %v4268_v3 = vrot.slane %v4266_v37, 1  ;;  %v3294_v49 = vrot.slane %v3292_v36, 1  ;;  %v2144_v50 = vmax.f32 %v2016_v27, 0.0  ;;  %15743 = vst [vmem:[#allocation29_spill] sm:$0xff] %v13190_v46  ;;  %v2329_v20 = vld [vmem:[#allocation5 + $0x1a0] ss:$2 sm:$0xff] }
 0x1d9   : > { %4008 = vrot.lane.b32.xlu0 %v3969_v22, %s15723_s18  ;;  %v13183_v38 = vpop.permute.xlu0 %4014  ;;  %v2147_v18 = vmax.f32 %v2019_v8, 0.0  ;;  %v2145_v30 = vmax.f32 %v2017_v57, 0.0  ;;  %v2020_v45 = vadd.f32 %v12933_v23, %v1885_v35  ;;  %v3299_v21 = vrot.slane %v3297_v2, 1  ;;  %v15742_v22 = vld [vmem:[#allocation34_spill] sm:$0xff] }
 0x1da   : > { %15741 = vst [vmem:[#allocation28_spill] sm:$0xff] %v13183_v38  ;;  %v4269_v34 = vsel %vm3192_vm4, %v4264_v62, %v4268_v3  ;;  %v3295_v17 = vor.u32 %v3294_v49, %v3290_v13  ;;  %v1883_v53 = vmul.f32 %v12970_v12, %v15742_v22  ;;  %v2393_v26 = vld [vmem:[#allocation5 + $0x1a1] ss:$2 sm:$0xff]  ;;  %v2511_v35 = vrot.slane %v2509_v44, 7 }
 0x1db   : > { %v2211_v27 = vmax.f32 %v2143_v60, %v2147_v18  ;;  %v2209_v8 = vmax.f32 %v2141_v10, %v2145_v30  ;;  %v2148_v57 = vmax.f32 %v2020_v45, 0.0  ;;  %v2142_v36 = vmax.f32 %v13168_v52, 0.0  ;;  %v15747_v49 = vld [vmem:[#allocation35_spill] sm:$0xff] }
 0x1dc   : > { %3530 = vrot.lane.b32.xlu1 %v3492_v25, %s15666_s26  ;;  %v3300_v37 = vsel %vm3192_vm4, %v3295_v17, %v3299_v21  ;;  %v2018_v25 = vadd.f32 %v12933_v23, %v1883_v53  ;;  %v2512_v12 = vshll.u32 %v13111_v42, 16  ;;  %v2431_v2 = vmax.f32 %v2331_v0, %v2395_v5  ;;  %v15745_v5 = vld [vmem:[#allocation26_spill] sm:$0xff] }
 0x1dd   : > { %4390 = vrot.lane.b32.xlu0 %v4269_v34, %s11744_s30  ;;  %v15744_v62 = vshrl.u32 %v15731_v11, 16  ;;  %2275 = vst.msk [vmem:[#allocation5 + $0x1f0] sm:$0xff] %vm1013_vm0, %v2211_v27  ;;  %2273 = vst.msk [vmem:[#allocation5 + $0x1e0] sm:$0xff] %vm1013_vm0, %v2209_v8  ;;  %v2212_v44 = vmax.f32 %v2144_v50, %v2148_v57  ;;  %v2623_v10 = vsel %vm12221_vm7, %v2511_v35, 0  ;;  %v2430_v3 = vmax.f32 %v2329_v20, %v2393_v26  ;;  %v4379_v42 = vpop.permute.xlu0 %4378 }
 0x1de   : > { %v2146_v52 = vmax.f32 %v2018_v25, 0.0  ;;  %v2514_v23 = vor.u32 %v2512_v12, %v2511_v35  ;;  %v9757_v13 = vcombine.low %v2623_v10, %v2623_v10  ;;  %v3721_v0 = vshll.u32 %v15745_v5, 16  ;;  %v2892_v25 = vld [vmem:[#allocation2 + $0x84] sm:$0xf]  ;;  %v13247_v12 = vld [vmem:[#allocation2 + $0x88] sm:$0xf] }
 0x1df   : > { %v3712_v60 = vor.u32 %v13119_v54, %v15744_v62  ;;  %v15746_v11 = vshll.u32 %v13151_v9, 16  ;;  %2276 = vst.msk [vmem:[#allocation5 + $0x1f8] sm:$0xff] %vm1013_vm0, %v2212_v44  ;;  %v3733_v18 = vshll.u32 %v15747_v49, 16  ;;  %v15748_v50 = vmax.f32 %v13109_v58, %v13114_v63  ;;  %v4107_v9 = vpop.permute.xlu1 %4106  ;;  %v11644_v44 = vld [vmem:[#allocation2 + $0x20] ss:$0 sps:$4 sm:$0x11]  }
 0x1e0   : > { %3401 = vrot.lane.b32.xlu1 %v3300_v37, %s15723_s18  ;;  %v15749_v30 = vmax.f32 %v13101_v43, %v13107_v4  ;;  %v2210_v34 = vmax.f32 %v2142_v36, %v2146_v52  ;;  %v2607_v17 = vsel %vm12221_vm7, 0, %v2514_v23  ;;  %2845 = vst.msk [vmem:[#allocation2 + $0x74] sm:$0x1] %vm2817_vm2, %v9757_v13  ;;  %v4540_v21 = vsel %vm4538_vm8, %v13149_v41, %v13033_v40  ;;  %v15750_v4 = vld [vmem:[#allocation31_spill] sm:$0xff] }
 0x1e1   : > { %v3716_v54 = vrot.slane %v15746_v11, 1  ;;  %v9755_v53 = vcombine.low %v2607_v17, %v2607_v17  ;;  %v9756_v58 = vcombine.high %v2607_v17, %v2607_v17  ;;  %v13227_v63 = vpack.c.bf16 %v2431_v2, %v2430_v3  ;;  %v13240_v57 = vpop.permute.xlu0 %4396  ;;  %v13253_v3 = vld [vmem:[#allocation5 + $0x1d0] ss:$2 sm:$0xff]  ;;  %v13255_v52 = vld [vmem:[#allocation5 + $0x1d1] ss:$2 sm:$0xff] }
 0x1e2   : > { %v13218_v45 = vpack.c.bf16 %v15749_v30, %v15748_v50  ;;  %2274 = vst.msk [vmem:[#allocation5 + $0x1e8] sm:$0xff] %vm1013_vm0, %v2210_v34  ;;  %v2626_v20 = vsel %vm12221_vm7, %v15750_v4, 0  ;;  %v3719_v26 = vshrl.u32 %v15745_v5, 16  ;;  %v3723_v27 = vrot.slane %v3721_v0, 1  ;;  %15751 = vst [vmem:[#allocation30_spill] sm:$0xff] %v13240_v57 }
 0x1e3   : > { %v3717_v22 = vsel %vm3192_vm4, %v3712_v60, %v3716_v54  ;;  %2843 = vst.msk [vmem:[#allocation2 + $0x6c] sm:$0xf] %vm2814_vm1, %v9755_v53  ;;  %2844 = vst.msk [vmem:[#allocation2 + $0x70] sm:$0xf] %vm2814_vm1, %v9756_v58  ;;  %v9766_v41 = vcombine.low %v2626_v20, %v2626_v20  ;;  %v4573_v36 = vsel %vm4571_vm9, %v4540_v21, %v13069_v1  ;;  %v13249_v2 = vrot.slane %v3733_v18, 1  ;;  %v13270_v30 = vpop.permute.xlu1 %3628 }
 0x1e4   : > { %v4622_v43 = vsel %vm1013_vm0, %v3717_v22, %v13053_v47  ;;  %v15752_v47 = vld [vmem:[#allocation36_spill] sm:$0xff]  ;;  %v2537_v62 = vshrl.u32 %v13218_v45, 16  ;;  %v3726_v10 = vshll.u32 %v11644_v44, 16  ;;  %v13260_v23 = vld [vmem:[#allocation5 + $0x1c0] ss:$2 sm:$0xff]  ;;  %v4509_v46 = vsel %vm1013_vm0, %v15755_v39, %v13173_v19 }
 0x1e5   : > { %v4669_v40 = vsel %vm4538_vm8, %v4622_v43, %v4107_v9  ;;  %v4309_v35 = vshll.u32 %v15752_v47, 16  ;;  %2854 = vst.msk [vmem:[#allocation2 + $0x98] sm:$0x1] %vm2817_vm2, %v9766_v41  ;;  %v13257_v1 = vld [vmem:[#allocation2 + $0x8c] ss:$0 sps:$4 sm:$0x11]   ;;  %v3724_v41 = vor.u32 %v3723_v27, %v3719_v26 }
 0x1e6   : > { %v4701_v8 = vsel %vm4571_vm9, %v4669_v40, %v4379_v42  ;;  %v13262_v13 = vld [vmem:[#allocation5 + $0x1c1] ss:$2 sm:$0xff]  ;;  %v13265_v42 = vcombine.low %v2892_v25, %v13247_v12  ;;  %v3728_v18 = vrot.slane %v3726_v10, 1  ;;  %v3333_v10 = vshll.u32 %v13257_v1, 16  ;;  %v11267_v39 = vld [vmem:[%s15691_s2 + $0x88] sm:$0xff]  }
 0x1e7   : > { %4972 = vmatprep.mubr.bf16.mxu1 %v4701_v8  ;;  %v11216_v5 = vld [vmem:[#allocation2 + $0x74] ss:$0 sps:$4 sm:$0x11]   ;;  %v4311_v20 = vrot.slane %v4309_v35, 1  ;;  %v2955_v44 = vld [vmem:[#allocation2 + $0x84] sm:$0xf]  ;;  %v13295_v57 = vpop.permute.xlu1 %3518 }
 0x1e8   : > { %4973 = vmatmul.mubr.bf16.vlgmr.msra.gmra.mrb[56].mxu1 %v4573_v36  ;;  %15753 = vst [vmem:[#allocation16_spill] sm:$0xff] %v13265_v42  ;;  %v13267_v0 = vld [vmem:[#allocation2 + $0x74] ss:$0 sps:$4 sm:$0x11]   ;;  %v3328_v40 = vshll.u32 %v13265_v42, 16 }
 0x1e9   : > { %10901 = vmatpush3.bf16.msra.mxu1 %v13027_v51  ;;  %v3494_v35 = vrot.slane %v13267_v0, 1  ;;  %v11645_v19 = vld [vmem:[#allocation2 + $0x88] sm:$0xf] }
 0x1ea   : > { %v3014_v11 = vld [vmem:[#allocation2 + $0x6c] sm:$0xf]  ;;  %v3015_v54 = vld [vmem:[#allocation2 + $0x70] sm:$0xf]  ;;  %v3330_v38 = vrot.slane %v3328_v40, 1  ;;  %10902 = vmatprep.subr.bf16.mxu1 %v11267_v39 }
 0x1eb   : > { %v9882_v17 = vcombine.low %v3014_v11, %v3015_v54  ;;  %v2951_v9 = vld [vmem:[#allocation2 + $0x6c] sm:$0xf]  ;;  %v2952_v21 = vld [vmem:[#allocation2 + $0x70] sm:$0xf] }
 0x1ec   : > { %v2991_v22 = vld [vmem:[#allocation2 + $0x6c] sm:$0xe]  ;;  %v13276_v53 = vcombine.low %v2951_v9, %v2952_v21  ;;  %v2889_v43 = vld [vmem:[#allocation2 + $0x70] sm:$0xf]  ;;  %v3971_v9 = vrot.slane %v11216_v5, 1 }
 0x1ed   : > { %v9867_v58 = vcombine.low %v2991_v22, %v2952_v21  ;;  %v2927_v4 = vld [vmem:[#allocation2 + $0x6c] sm:$0xe]  ;;  %4120 = vrot.lane.b32.xlu0 %v9882_v17, %s15666_s26  ;;  %v4273_v8 = vshll.u32 %v9882_v17, 16  ;;  %v2994_v11 = vld [vmem:[#allocation2 + $0x90] sm:$0xe]  ;;  %v3326_v21 = vshrl.u32 %v13265_v42, 16  ;;  %10903 = vmatpush3.bf16.msra.mxu1 %v11267_v39 }
 0x1ee   : > { %v13272_v34 = vpop.permute.xlu0 %4108  ;;  %v9820_v36 = vcombine.low %v2927_v4, %v2889_v43  ;;  %v2888_v25 = vld [vmem:[#allocation2 + $0x6c] sm:$0xf]  ;;  %3642 = vrot.lane.b32.xlu1 %v13276_v53, %s11744_s30  ;;  %v2929_v22 = vld [vmem:[#allocation2 + $0x84] sm:$0xe]  ;;  %v4271_v60 = vshrl.u32 %v9882_v17, 16 }
 0x1ef   : > { %v3970_v54 = vrot.slane %v9867_v58, 1  ;;  %v11222_v4 = vld [vmem:[#allocation2 + $0x74] ss:$0 sps:$4 sm:$0x11]   ;;  %v4275_v50 = vrot.slane %v4273_v8, 1  ;;  %v13293_v58 = vcombine.low %v2888_v25, %v2889_v43  ;;  %v2539_v8 = vrot.slane %v2537_v62, 7 }
 0x1f0   : > { %v3493_v51 = vrot.slane %v9820_v36, 1  ;;  %v11225_v5 = vld [vmem:[#allocation2 + $0x98] ss:$0 sps:$4 sm:$0x11]   ;;  %v4278_v27 = vshll.u32 %v11222_v4, 16  ;;  %v13305_v43 = vcombine.low %v2955_v44, %v11645_v19  ;;  %v9822_v62 = vcombine.low %v2929_v22, %v13247_v12 }
 0x1f1   : > { %v3972_v6 = vsel %vm3465_vm3, %v3970_v54, %v3971_v9  ;;  %15756 = vst [vmem:[#allocation33_spill] sm:$0xff] %v13293_v58  ;;  %v4276_v26 = vor.u32 %v4275_v50, %v4271_v60  ;;  %v13299_v17 = vld [vmem:[#allocation2 + $0x94] sm:$0xf]  ;;  %v4314_v40 = vshll.u32 %v11225_v5, 16  ;;  %v3729_v60 = vsel %vm3192_vm4, %v3724_v41, %v3728_v18  ;;  %v2894_v9 = vld [vmem:[#allocation2 + $0x90] sm:$0xf] }
 0x1f2   : > { %v13287_v37 = vpop.permute.xlu0 %4126  ;;  %4010 = vrot.lane.b32.xlu0 %v3972_v6, %s15723_s18  ;;  %v3495_v36 = vsel %vm3465_vm3, %v3493_v51, %v3494_v35  ;;  %15757 = vst [vmem:[#allocation34_spill] sm:$0xff] %v13305_v43  ;;  %v9870_v25 = vcombine.low %v2994_v11, %v13299_v17  ;;  %v2540_v6 = vshll.u32 %v13218_v45, 16  ;;  %v4280_v50 = vrot.slane %v4278_v27, 1  ;;  %v13315_v4 = vld [vmem:[#allocation2 + $0x98] ss:$0 sps:$4 sm:$0x11]  }
 0x1f3   : > { %15754 = vst [vmem:[#allocation32_spill] sm:$0xff] %v13287_v37  ;;  %3532 = vrot.lane.b32.xlu1 %v3495_v36, %s15666_s26  ;;  %v2627_v54 = vsel %vm12221_vm7, %v2539_v8, 0  ;;  %v3331_v35 = vor.u32 %v3330_v38, %v3326_v21  ;;  %v3335_v44 = vrot.slane %v3333_v10, 1  ;;  %v13317_v36 = vld [vmem:[#allocation2 + $0x94] sm:$0xf]  ;;  %v15758_v18 = vshrl.u32 %v15752_v47, 16 }
 0x1f4   : > { %v2542_v5 = vor.u32 %v2540_v6, %v2539_v8  ;;  %v9769_v11 = vcombine.low %v2627_v54, %v2627_v54  ;;  %v4281_v45 = vsel %vm3192_vm4, %v4276_v26, %v4280_v50  ;;  %v4316_v12 = vrot.slane %v4314_v40, 1  ;;  %v13331_v26 = vpop.permute.xlu1 %3389 }
 0x1f5   : > { %v4312_v41 = vor.u32 %v4311_v20, %v15758_v18  ;;  %v3304_v22 = vshll.u32 %v13293_v58, 16  ;;  %v4625_v27 = vsel %vm1013_vm0, %v3729_v60, %v13160_v31  ;;  %v3979_v38 = vrot.slane %v9870_v25, 1  ;;  %v13365_v18 = vld [vmem:[#allocation2 + $0x98] ss:$0 sps:$4 sm:$0x11]  }
 0x1f6   : > { %v13309_v51 = vpop.permute.xlu0 %3998  ;;  %4392 = vrot.lane.b32.xlu0 %v4281_v45, %s11744_s30  ;;  %v3500_v10 = vrot.slane %v13257_v1, 1  ;;  %v2611_v21 = vsel %vm12221_vm7, 0, %v2542_v5  ;;  %2857 = vst.msk [vmem:[#allocation2 + $0xa4] sm:$0x1] %vm2817_vm2, %v9769_v11  ;;  %v3499_v47 = vrot.slane %v9822_v62, 1  ;;  %v13335_v31 = vcombine.low %v2894_v9, %v13317_v36 }
 0x1f7   : > { %3646 = vrot.lane.b32.xlu1 %v13305_v43, %s11744_s30  ;;  %v9767_v20 = vcombine.low %v2611_v21, %v2611_v21  ;;  %v9768_v8 = vcombine.high %v2611_v21, %v2611_v21  ;;  %v3336_v19 = vsel %vm3192_vm4, %v3331_v35, %v3335_v44  ;;  %v3980_v40 = vrot.slane %v13315_v4, 1  ;;  %v2930_v9 = vld [vmem:[#allocation2 + $0x90] sm:$0xe]  ;;  %v15761_v35 = vld [vmem:[#allocation39_spill] sm:$0xff] }
 0x1f8   : > { %15759 = vst [vmem:[#allocation26_spill] sm:$0xff] %v13335_v31  ;;  %v4671_v1 = vsel %vm4538_vm8, %v4625_v27, %v13272_v34  ;;  %v4542_v25 = vsel %vm4538_vm8, %v4509_v46, %v13105_v16  ;;  %v4317_v6 = vsel %vm3192_vm4, %v4312_v41, %v4316_v12  ;;  %v3306_v60 = vrot.slane %v3304_v22, 1  ;;  %v13373_v41 = vpop.permute.xlu1 %3630  ;;  %v2339_v21 = vld [vmem:[#allocation5 + $0x1f0] ss:$2 sm:$0xff] }
 0x1f9   : > { %2855 = vst.msk [vmem:[#allocation2 + $0x9c] sm:$0xf] %vm2814_vm1, %v9767_v20  ;;  %2856 = vst.msk [vmem:[#allocation2 + $0xa0] sm:$0xf] %vm2814_vm1, %v9768_v8  ;;  %v15760_v50 = vshrl.u32 %v13227_v63, 16  ;;  %v2547_v54 = vshll.u32 %v13227_v63, 16  ;;  %v15762_v34 = vmax.f32 %v13260_v23, %v13262_v13  ;;  %v15763_v16 = vmax.f32 %v13253_v3, %v13255_v52 }
 0x1fa   : > { %v3745_v44 = vshll.u32 %v15761_v35, 16  ;;  %4398 = vrot.lane.b32.xlu0 %v4317_v6, %s11744_s30  ;;  %v4576_v63 = vsel %vm4571_vm9, %v4542_v25, %v13270_v30  ;;  %v3302_v11 = vshrl.u32 %v13293_v58, 16  ;;  %v3309_v45 = vshll.u32 %v13267_v0, 16  ;;  %v13371_v13 = vld [vmem:[#allocation2 + $0x24] sm:$0xe] }
 0x1fb   : > { %v4381_v39 = vpop.permute.xlu0 %4380  ;;  %v2546_v62 = vrot.slane %v15760_v50, 7  ;;  %v13356_v46 = vpack.c.bf16 %v15763_v16, %v15762_v34  ;;  %3407 = vrot.lane.b32.xlu1 %v3336_v19, %s15723_s18  ;;  %v3340_v12 = vshll.u32 %v13335_v31, 16  ;;  %v11646_v30 = vld [vmem:[#allocation2 + $0x2c] ss:$0 sps:$4 sm:$0x11]   ;;  %v9823_v27 = vcombine.low %v2930_v9, %v13317_v36 }
 0x1fc   : > { %v4704_v5 = vsel %vm4571_vm9, %v4671_v1, %v4381_v39  ;;  %v3738_v22 = vshll.u32 %v11646_v30, 16  ;;  %v2403_v20 = vld [vmem:[#allocation5 + $0x1f1] ss:$2 sm:$0xff]  ;;  %v3981_v8 = vsel %vm3465_vm3, %v3979_v38, %v3980_v40  ;;  %v3501_v39 = vsel %vm3465_vm3, %v3499_v47, %v3500_v10  ;;  %v2337_v50 = vld [vmem:[#allocation5 + $0x1e0] ss:$2 sm:$0xff] }
 0x1fd   : > { %v2549_v23 = vor.u32 %v2547_v54, %v2546_v62  ;;  %4980 = vmatprep.mubr.bf16.mxu1 %v4704_v5  ;;  %v2628_v3 = vsel %vm12221_vm7, %v2546_v62, 0  ;;  %v3307_v19 = vor.u32 %v3306_v60, %v3302_v11  ;;  %v13379_v1 = vld [vmem:[#allocation2 + $0xa4] ss:$0 sps:$4 sm:$0x11]   ;;  %v2957_v25 = vld [vmem:[#allocation2 + $0x90] sm:$0xf] }
 0x1fe   : > { %v9772_v0 = vcombine.low %v2628_v3, %v2628_v3  ;;  %4981 = vmatmul.mubr.bf16.gmra.mrb[60].mxu1 %v4576_v63  ;;  %v2401_v62 = vld [vmem:[#allocation5 + $0x1e1] ss:$2 sm:$0xff]  ;;  %4016 = vrot.lane.b32.xlu0 %v3981_v8, %s15723_s18  ;;  %v15764_v36 = vshrl.u32 %v15747_v49, 16  ;;  %v2551_v10 = vshrl.u32 %v13356_v46, 16  ;;  %v3311_v47 = vrot.slane %v3309_v45, 1 }
 0x1ff   : > { %v13369_v52 = vpop.permute.xlu0 %4110  ;;  %v2612_v6 = vsel %vm12221_vm7, 0, %v2549_v23  ;;  %3536 = vrot.lane.b32.xlu1 %v3501_v39, %s15666_s26  ;;  %v3338_v60 = vshrl.u32 %v13335_v31, 16  ;;  %v3345_v9 = vshll.u32 %v13365_v18, 16  ;;  %v11647_v16 = vld [vmem:[#allocation2 + $0x28] sm:$0xf]  ;;  %v3342_v23 = vrot.slane %v3340_v12, 1 }
 0x200   : > { %v3736_v54 = vor.u32 %v13249_v2, %v15764_v36  ;;  %v9770_v38 = vcombine.low %v2612_v6, %v2612_v6  ;;  %v9771_v40 = vcombine.high %v2612_v6, %v2612_v6  ;;  %2860 = vst.msk [vmem:[#allocation2 + $0xb0] sm:$0x1] %vm2817_vm2, %v9772_v0  ;;  %v9908_v5 = vcombine.low %v13371_v13, %v11647_v16  ;;  %v3022_v63 = vld [vmem:[#allocation2 + $0x9c] sm:$0xf]  ;;  %v13395_v49 = vld [vmem:[#allocation2 + $0xa0] sm:$0xf]  ;;  %v13412_v36 = vpop.permute.xlu1 %3520 }
 0x201   : > { %v15765_v2 = vld [vmem:[#allocation27_spill] sm:$0xff]  ;;  %v3740_v3 = vrot.slane %v3738_v22, 1  ;;  %v9886_v45 = vcombine.low %v3022_v63, %v13395_v49  ;;  %v3312_v30 = vsel %vm3192_vm4, %v3307_v19, %v3311_v47  ;;  %v4326_v0 = vshll.u32 %v13379_v1, 16  ;;  %v2995_v13 = vld [vmem:[#allocation2 + $0x9c] sm:$0xe] }
 0x202   : > { %v4511_v11 = vsel %vm1013_vm0, %v15765_v2, %v13331_v26  ;;  %2858 = vst.msk [vmem:[#allocation2 + $0xa8] sm:$0xf] %vm2814_vm1, %v9770_v38  ;;  %2859 = vst.msk [vmem:[#allocation2 + $0xac] sm:$0xf] %vm2814_vm1, %v9771_v40  ;;  %v3502_v8 = vrot.slane %v9823_v27, 1  ;;  %v2435_v39 = vmax.f32 %v2339_v21, %v2403_v20  ;;  %v2434_v6 = vmax.f32 %v2337_v50, %v2401_v62 }
 0x203   : > { %v13392_v34 = vpop.permute.xlu0 %4000  ;;  %3403 = vrot.lane.b32.xlu1 %v3312_v30, %s15723_s18  ;;  %v13407_v26 = vcombine.low %v2957_v25, %v13299_v17  ;;  %v13409_v12 = vld [vmem:[#allocation2 + $0xa0] sm:$0xf]  ;;  %v3741_v22 = vsel %vm3192_vm4, %v3736_v54, %v3740_v3  ;;  %v2896_v38 = vld [vmem:[#allocation2 + $0x9c] sm:$0xf]  ;;  %v4321_v19 = vshll.u32 %v9886_v45, 16  ;;  %4128 = vrot.lane.b32.xlu0 %v9886_v45, %s15666_s26  ;;  %v4319_v27 = vshrl.u32 %v9886_v45, 16 }
 0x204   : > { %v13414_v40 = vld [vmem:[#allocation2 + $0xa0] sm:$0xf]  ;;  %v13417_v21 = vld [vmem:[#allocation2 + $0xa4] ss:$0 sps:$4 sm:$0x11]   ;;  %v9871_v20 = vcombine.low %v2995_v13, %v13409_v12  ;;  %v4628_v17 = vsel %vm1013_vm0, %v3741_v22, %v13309_v51  ;;  %v3343_v50 = vor.u32 %v3342_v23, %v3338_v60  ;;  %v3347_v62 = vrot.slane %v3345_v9, 1  ;;  %v13449_v22 = vpop.permute.xlu1 %3391 }
 0x205   : > { %v4673_v54 = vsel %vm4538_vm8, %v4628_v17, %v13369_v52  ;;  %v4544_v47 = vsel %vm4538_vm8, %v4511_v11, %v13295_v57  ;;  %v4323_v16 = vrot.slane %v4321_v19, 1  ;;  %v4328_v63 = vrot.slane %v4326_v0, 1  ;;  %v13435_v60 = vld [vmem:[#allocation2 + $0xa4] ss:$0 sps:$4 sm:$0x11]  }
 0x206   : > { %v13427_v2 = vcombine.low %v2896_v38, %v13414_v40  ;;  %v13430_v45 = vpack.c.bf16 %v2435_v39, %v2434_v6  ;;  %v3503_v51 = vrot.slane %v13365_v18, 1  ;;  %v4579_v57 = vsel %vm4571_vm9, %v4544_v47, %v13373_v41  ;;  %v13444_v13 = vld [vmem:[#allocation2 + $0x2c] ss:$0 sps:$4 sm:$0x11]  }
 0x207   : > { %v4383_v25 = vpop.permute.xlu0 %4382  ;;  %3648 = vrot.lane.b32.xlu1 %v13407_v26, %s11744_s30  ;;  %v4324_v52 = vor.u32 %v4323_v16, %v4319_v27  ;;  %v3982_v9 = vrot.slane %v9871_v20, 1  ;;  %v3983_v11 = vrot.slane %v13417_v21, 1  ;;  %v13442_v0 = vrot.slane %v9908_v5, 1  ;;  %v13451_v41 = vld [vmem:[#allocation2 + $0xb0] ss:$0 sps:$4 sm:$0x11]  }
 0x208   : > { %15766 = vst [vmem:[#allocation35_spill] sm:$0xff] %v13427_v2  ;;  %v4707_v3 = vsel %vm4571_vm9, %v4673_v54, %v4383_v25  ;;  %v3743_v39 = vshrl.u32 %v15761_v35, 16  ;;  %v3348_v19 = vsel %vm3192_vm4, %v3343_v50, %v3347_v62  ;;  %v3352_v27 = vshll.u32 %v13427_v2, 16  ;;  %v2959_v62 = vld [vmem:[#allocation2 + $0x9c] sm:$0xf] }
 0x209   : > { %4988 = vmatprep.mubr.bf16.mxu1 %v4707_v3  ;;  %v3024_v23 = vld [vmem:[#allocation2 + $0xa8] sm:$0xf]  ;;  %v13440_v30 = vld [vmem:[#allocation2 + $0xac] sm:$0xf]  ;;  %v4329_v38 = vsel %vm3192_vm4, %v4324_v52, %v4328_v63  ;;  %v2553_v5 = vrot.slane %v2551_v10, 7  ;;  %v3747_v20 = vrot.slane %v3745_v44, 1  ;;  %v3984_v47 = vsel %vm3465_vm3, %v3982_v9, %v3983_v11 }
 0x20a   : > { %4989 = vmatmul.mubr.bf16.gmra.mrb[64].mxu1 %v4579_v57  ;;  %v9887_v6 = vcombine.low %v3024_v23, %v13440_v30  ;;  %v2558_v25 = vshrl.u32 %v13430_v45, 16  ;;  %4400 = vrot.lane.b32.xlu0 %v4329_v38, %s11744_s30  ;;  %v3504_v50 = vsel %vm3465_vm3, %v3502_v8, %v3503_v51  ;;  %v3357_v16 = vshll.u32 %v13435_v60, 16  ;;  %v2996_v63 = vld [vmem:[#allocation2 + $0xa8] sm:$0xe]  ;;  %v2931_v9 = vld [vmem:[#allocation2 + $0x9c] sm:$0xe]  ;;  %v13474_v8 = vpop.permute.xlu1 %3632 }
 0x20b   : > { %3409 = vrot.lane.b32.xlu1 %v3348_v19, %s15723_s18  ;;  %v2554_v10 = vshll.u32 %v13356_v46, 16  ;;  %v4338_v44 = vshll.u32 %v13451_v41, 16  ;;  %v3350_v3 = vshrl.u32 %v13427_v2, 16  ;;  %v2629_v57 = vsel %vm12221_vm7, %v2553_v5, 0  ;;  %v13476_v46 = vld [vmem:[#allocation2 + $0xac] sm:$0xf] }
 0x20c   : > { %v4333_v54 = vshll.u32 %v9887_v6, 16  ;;  %v4331_v35 = vshrl.u32 %v9887_v6, 16  ;;  %v3354_v23 = vrot.slane %v3352_v27, 1  ;;  %v9775_v11 = vcombine.low %v2629_v57, %v2629_v57  ;;  %v2898_v51 = vld [vmem:[#allocation2 + $0xa8] sm:$0xf] }
 0x20d   : > { %v2556_v38 = vor.u32 %v2554_v10, %v2553_v5  ;;  %v13478_v19 = vld [vmem:[#allocation2 + $0xac] sm:$0xf]  ;;  %v13481_v17 = vcombine.low %v2959_v62, %v13409_v12  ;;  %v13483_v18 = vld [vmem:[#allocation2 + $0xb0] ss:$0 sps:$4 sm:$0x11]   ;;  %v9872_v27 = vcombine.low %v2996_v63, %v13476_v46  ;;  %v3359_v10 = vrot.slane %v3357_v16, 1 }
 0x20e   : > { %v4335_v52 = vrot.slane %v4333_v54, 1  ;;  %4018 = vrot.lane.b32.xlu0 %v3984_v47, %s15723_s18  ;;  %v11649_v5 = vld [vmem:[#allocation2 + $0x38] ss:$0 sps:$4 sm:$0x11]   ;;  %2863 = vst.msk [vmem:[#allocation2 + $0xbc] sm:$0x1] %vm2817_vm2, %v9775_v11  ;;  %v9824_v31 = vcombine.low %v2931_v9, %v13414_v40  ;;  %v3355_v62 = vor.u32 %v3354_v23, %v3350_v3  ;;  %v13491_v37 = vcombine.low %v2898_v51, %v13478_v19 }
 0x20f   : > { %3538 = vrot.lane.b32.xlu1 %v3504_v50, %s15666_s26  ;;  %v3750_v54 = vshll.u32 %v11649_v5, 16  ;;  %v2613_v47 = vsel %vm12221_vm7, 0, %v2556_v38  ;;  %v4340_v12 = vrot.slane %v4338_v44, 1  ;;  %v3757_v63 = vshll.u32 %v12901_v24, 16 }
 0x210   : > { %v9773_v57 = vcombine.low %v2613_v47, %v2613_v47  ;;  %v9774_v2 = vcombine.high %v2613_v47, %v2613_v47  ;;  %v4336_v42 = vor.u32 %v4335_v52, %v4331_v35  ;;  %15767 = vst [vmem:[#allocation31_spill] sm:$0xff] %v13491_v37  ;;  %v3748_v38 = vor.u32 %v3747_v20, %v3743_v39  ;;  %v13507_v20 = vld [vmem:[#allocation2 + $0xb0] ss:$0 sps:$4 sm:$0x11]  }
 0x211   : > { %v2560_v16 = vrot.slane %v2558_v25, 7  ;;  %v2561_v40 = vshll.u32 %v13430_v45, 16  ;;  %v3841_v35 = vshll.u32 %v13407_v26, 16  ;;  %v3985_v44 = vrot.slane %v9872_v27, 1 }
 0x212   : > { %4130 = vrot.lane.b32.xlu0 %v9887_v6, %s15666_s26  ;;  %2861 = vst.msk [vmem:[#allocation2 + $0xb4] sm:$0xf] %vm2814_vm1, %v9773_v57  ;;  %2862 = vst.msk [vmem:[#allocation2 + $0xb8] sm:$0xf] %vm2814_vm1, %v9774_v2  ;;  %v3986_v3 = vrot.slane %v13483_v18, 1  ;;  %v3752_v52 = vrot.slane %v3750_v54, 1  ;;  %v13504_v6 = vpop.permute.xlu1 %3522  ;;  %v4341_v45 = vsel %vm3192_vm4, %v4336_v42, %v4340_v12  ;;  %v3360_v25 = vsel %vm3192_vm4, %v3355_v62, %v3359_v10 }
 0x213   : > { %3650 = vrot.lane.b32.xlu1 %v13481_v17, %s11744_s30  ;;  %v3505_v9 = vrot.slane %v9824_v31, 1  ;;  %v3506_v39 = vrot.slane %v13435_v60, 1  ;;  %v2563_v11 = vor.u32 %v2561_v40, %v2560_v16  ;;  %v2630_v2 = vsel %vm12221_vm7, %v2560_v16, 0  ;;  %v15768_v54 = vld [vmem:[#allocation37_spill] sm:$0xff]  ;;  %v2961_v10 = vld [vmem:[#allocation2 + $0xa8] sm:$0xf] }
 0x214   : > { %v3364_v51 = vshll.u32 %v13491_v37, 16  ;;  %v9778_v27 = vcombine.low %v2630_v2, %v2630_v2  ;;  %v3753_v31 = vsel %vm3192_vm4, %v3748_v38, %v3752_v52  ;;  %v4513_v42 = vsel %vm1013_vm0, %v15768_v54, %v13449_v22  ;;  %v2932_v52 = vld [vmem:[#allocation2 + $0xa8] sm:$0xe] }
 0x215   : > { %v4113_v50 = vpop.permute.xlu0 %4112  ;;  %v13517_v60 = vld [vmem:[#allocation2 + $0xbc] ss:$0 sps:$4 sm:$0x11]   ;;  %v2614_v5 = vsel %vm12221_vm7, 0, %v2563_v11  ;;  %v4631_v47 = vsel %vm1013_vm0, %v3753_v31, %v13392_v34  ;;  %v3987_v62 = vsel %vm3465_vm3, %v3985_v44, %v3986_v3  ;;  %v3507_v38 = vsel %vm3465_vm3, %v3505_v9, %v3506_v39 }
 0x216   : > { %4402 = vrot.lane.b32.xlu0 %v4341_v45, %s11744_s30  ;;  %v9776_v57 = vcombine.low %v2614_v5, %v2614_v5  ;;  %v9777_v12 = vcombine.high %v2614_v5, %v2614_v5  ;;  %2866 = vst.msk [vmem:[#allocation2 + $0xc8] sm:$0x1] %vm2817_vm2, %v9778_v27  ;;  %v4675_v16 = vsel %vm4538_vm8, %v4631_v47, %v4113_v50  ;;  %v3369_v40 = vshll.u32 %v13507_v20, 16  ;;  %v3030_v5 = vld [vmem:[#allocation2 + $0xcc] sm:$0xf] }
 0x217   : > { %3411 = vrot.lane.b32.xlu1 %v3360_v25, %s15723_s18  ;;  %v3362_v34 = vshrl.u32 %v13491_v37, 16  ;;  %v3366_v45 = vrot.slane %v3364_v51, 1  ;;  %v15769_v3 = vrot.slane %v13444_v13, 1  ;;  %v3759_v9 = vrot.slane %v3757_v63, 1  ;;  %v3394_v25 = vpop.permute.xlu1 %3393  ;;  %v13549_v13 = vld [vmem:[#allocation2 + $0xd0] sm:$0xf] }
 0x218   : > { %2864 = vst.msk [vmem:[#allocation2 + $0xc0] sm:$0xf] %vm2814_vm1, %v9776_v57  ;;  %2865 = vst.msk [vmem:[#allocation2 + $0xc4] sm:$0xf] %vm2814_vm1, %v9777_v12  ;;  %v4350_v51 = vshll.u32 %v13517_v60, 16  ;;  %v4546_v31 = vsel %vm4538_vm8, %v4513_v42, %v13412_v36  ;;  %v3843_v54 = vrot.slane %v3841_v35, 1  ;;  %v13553_v63 = vcombine.low %v2961_v10, %v13476_v46 }
 0x219   : > { %v3026_v2 = vld [vmem:[#allocation2 + $0xb4] sm:$0xf]  ;;  %v13531_v22 = vld [vmem:[#allocation2 + $0xb8] sm:$0xf]  ;;  %v13541_v50 = vsel %vm3465_vm3, %v13442_v0, %v15769_v3  ;;  %15771 = vst [vmem:[#allocation20_spill] sm:$0xff] %v13549_v13  ;;  %v3839_v0 = vshrl.u32 %v13407_v26, 16  ;;  %v4582_v47 = vsel %vm4571_vm9, %v4546_v31, %v13474_v8  ;;  %v3367_v10 = vor.u32 %v3366_v45, %v3362_v34 }
 0x21a   : > { %v13502_v23 = vpop.permute.xlu0 %4002  ;;  %15770 = vst [vmem:[#allocation36_spill] sm:$0xff] %v13541_v50  ;;  %4020 = vrot.lane.b32.xlu0 %v3987_v62, %s15723_s18  ;;  %v9888_v39 = vcombine.low %v3026_v2, %v13531_v22  ;;  %v2997_v27 = vld [vmem:[#allocation2 + $0xb4] sm:$0xe]  ;;  %v13557_v12 = vld [vmem:[#allocation2 + $0xb8] sm:$0xf]  ;;  %v3853_v8 = vshll.u32 %v13481_v17, 16 }
 0x21b   : > { %3540 = vrot.lane.b32.xlu1 %v3507_v38, %s15666_s26  ;;  %v2900_v57 = vld [vmem:[#allocation2 + $0xb4] sm:$0xf]  ;;  %v13559_v62 = vld [vmem:[#allocation2 + $0x9c] sm:$0xe]  ;;  %v2964_v42 = vld [vmem:[#allocation2 + $0xb8] sm:$0xf] }
 0x21c   : > { %v4345_v38 = vshll.u32 %v9888_v39, 16  ;;  %v4343_v36 = vshrl.u32 %v9888_v39, 16  ;;  %v13563_v35 = vld [vmem:[#allocation2 + $0xbc] ss:$0 sps:$4 sm:$0x11]   ;;  %v9873_v46 = vcombine.low %v2997_v27, %v2964_v42  ;;  %v13570_v3 = vcombine.low %v2900_v57, %v13557_v12 }
 0x21d   : > { %v11650_v31 = vld [vmem:[#allocation2 + $0x44] ss:$0 sps:$4 sm:$0x11]   ;;  %v2963_v45 = vld [vmem:[#allocation2 + $0xb4] sm:$0xf]  ;;  %v3509_v50 = vrot.slane %v13507_v20, 1 }
 0x21e   : > { %v4385_v11 = vpop.permute.xlu0 %4384  ;;  %4132 = vrot.lane.b32.xlu0 %v9888_v39, %s15666_s26  ;;  %v4347_v2 = vrot.slane %v4345_v38, 1  ;;  %15772 = vst [vmem:[#allocation39_spill] sm:$0xff] %v13570_v3  ;;  %v3762_v27 = vshll.u32 %v11650_v31, 16  ;;  %v13578_v39 = vcombine.low %v3030_v5, %v13549_v13  ;;  %v3635_v38 = vpop.permute.xlu1 %3634  ;;  %v3988_v37 = vrot.slane %v9873_v46, 1  ;;  %v15774_v5 = vld [vmem:[#allocation38_spill] sm:$0xff] }
 0x21f   : > { %v4710_v44 = vsel %vm4571_vm9, %v4675_v16, %v4385_v11  ;;  %v9825_v16 = vcombine.low %v2932_v52, %v13478_v19  ;;  %v3371_v11 = vrot.slane %v3369_v40, 1  ;;  %3652 = vrot.lane.b32.xlu1 %v13553_v63, %s11744_s30  ;;  %v13572_v19 = vld [vmem:[#allocation2 + $0xbc] ss:$0 sps:$4 sm:$0x11]   ;;  %v3865_v52 = vshll.u32 %v13553_v63, 16 }
 0x220   : > { %4996 = vmatprep.mubr.bf16.mxu1 %v4710_v44  ;;  %v4352_v44 = vrot.slane %v4350_v51, 1  ;;  %v15773_v40 = vshrl.u32 %v12901_v24, 16  ;;  %v3028_v57 = vld [vmem:[#allocation2 + $0xc0] sm:$0xf]  ;;  %v13582_v26 = vld [vmem:[#allocation2 + $0xc4] sm:$0xf]  ;;  %v13598_v13 = vor.u32 %v3843_v54, %v3839_v0 }
 0x221   : > { %4997 = vmatmul.mubr.bf16.gmra.mrb[68].mxu1 %v4582_v47  ;;  %v4348_v47 = vor.u32 %v4347_v2, %v4343_v36  ;;  %v3508_v32 = vrot.slane %v9825_v16, 1  ;;  %v3989_v31 = vrot.slane %v13563_v35, 1  ;;  %v3372_v24 = vsel %vm3192_vm4, %v3367_v10, %v3371_v11  ;;  %v13592_v36 = vld [vmem:[#allocation2 + $0xc8] ss:$0 sps:$4 sm:$0x11]  }
 0x222   : > { %v3760_v34 = vor.u32 %v3759_v9, %v15773_v40  ;;  %v9889_v9 = vcombine.low %v3028_v57, %v13582_v26  ;;  %v4515_v40 = vsel %vm1013_vm0, %v15774_v5, %v3394_v25  ;;  %v13594_v2 = vcombine.low %v2963_v45, %v2964_v42  ;;  %v2933_v57 = vld [vmem:[#allocation2 + $0xb4] sm:$0xe]  ;;  %v2965_v58 = vld [vmem:[#allocation2 + $0xc0] sm:$0xf]  ;;  %v13606_v29 = vpop.permute.xlu1 %3524 }
 0x223   : > { %v4353_v51 = vsel %vm3192_vm4, %v4348_v47, %v4352_v44  ;;  %3413 = vrot.lane.b32.xlu1 %v3372_v24, %s15723_s18  ;;  %v3376_v20 = vshll.u32 %v13570_v3, 16  ;;  %v3855_v46 = vrot.slane %v3853_v8, 1  ;;  %v3764_v10 = vrot.slane %v3762_v27, 1  ;;  %v2998_v44 = vld [vmem:[#allocation2 + $0xc0] sm:$0xe] }
 0x224   : > { %v4115_v16 = vpop.permute.xlu0 %4114  ;;  %4404 = vrot.lane.b32.xlu0 %v4353_v51, %s11744_s30  ;;  %v4357_v11 = vshll.u32 %v9889_v9, 16  ;;  %v3863_v25 = vshrl.u32 %v13553_v63, 16  ;;  %v3374_v47 = vshrl.u32 %v13570_v3, 16  ;;  %v3381_v42 = vshll.u32 %v13572_v19, 16  ;;  %v2966_v27 = vld [vmem:[#allocation2 + $0xc4] sm:$0xf] }
 0x225   : > { %v3378_v24 = vrot.slane %v3376_v20, 1  ;;  %v3867_v45 = vrot.slane %v3865_v52, 1  ;;  %v3990_v5 = vsel %vm3465_vm3, %v3988_v37, %v3989_v31  ;;  %v3765_v8 = vsel %vm3192_vm4, %v3760_v34, %v3764_v10 }
 0x226   : > { %v3510_v51 = vsel %vm3465_vm3, %v3508_v32, %v3509_v50  ;;  %v4355_v0 = vshrl.u32 %v9889_v9, 16  ;;  %v4359_v54 = vrot.slane %v4357_v11, 1  ;;  %v4362_v63 = vshll.u32 %v13592_v36, 16 }
 0x227   : > { %3542 = vrot.lane.b32.xlu1 %v3510_v51, %s15666_s26  ;;  %v3877_v20 = vshll.u32 %v13594_v2, 16  ;;  %v4634_v37 = vsel %vm1013_vm0, %v3765_v8, %v13502_v23  ;;  %v9874_v32 = vcombine.low %v2998_v44, %v2966_v27  ;;  %v4369_v50 = vshll.u32 %v13578_v39, 16 }
 0x228   : > { %4022 = vrot.lane.b32.xlu0 %v3990_v5, %s15723_s18  ;;  %v9826_v52 = vcombine.low %v2933_v57, %v13557_v12  ;;  %v3379_v34 = vor.u32 %v3378_v24, %v3374_v47  ;;  %v3383_v31 = vrot.slane %v3381_v42, 1  ;;  %v9842_v10 = vcombine.low %v2965_v58, %v2966_v27  ;;  %v11257_v12 = vld [vmem:[#allocation2 + $0xc8] ss:$0 sps:$4 sm:$0x11]   ;;  %v13629_v47 = vpop.permute.xlu1 %3395 }
 0x229   : > { %v13611_v3 = vpop.permute.xlu0 %4004  ;;  %v4548_v11 = vsel %vm4538_vm8, %v4515_v40, %v13504_v6  ;;  %v3875_v51 = vshrl.u32 %v13594_v2, 16  ;;  %v15775_v5 = vshrl.u32 %v13481_v17, 16  ;;  %v3868_v43 = vor.u32 %v3867_v45, %v3863_v25  ;;  %v13633_v25 = vld [vmem:[#allocation2 + $0xd4] ss:$0 sps:$4 sm:$0x11]  }
 0x22a   : > { %v4585_v15 = vsel %vm4571_vm9, %v4548_v11, %v3635_v38  ;;  %v4360_v23 = vor.u32 %v4359_v54, %v4355_v0  ;;  %v4364_v44 = vrot.slane %v4362_v63, 1  ;;  %v3879_v8 = vrot.slane %v3877_v20, 1  ;;  %v3060_v11 = vld [vmem:[#allocation2 + $0xa8] sm:$0xe] }
 0x22b   : > { %v3856_v55 = vor.u32 %v3855_v46, %v15775_v5  ;;  %3654 = vrot.lane.b32.xlu1 %v13594_v2, %s11744_s30  ;;  %v3889_v57 = vshll.u32 %v9842_v10, 16  ;;  %v3991_v58 = vrot.slane %v9874_v32, 1  ;;  %v4677_v6 = vsel %vm4538_vm8, %v4634_v37, %v4115_v16 }
 0x22c   : > { %4134 = vrot.lane.b32.xlu0 %v9889_v9, %s15666_s26  ;;  %v3511_v40 = vrot.slane %v9826_v52, 1  ;;  %v3846_v38 = vshll.u32 %v13315_v4, 16  ;;  %v3384_v17 = vsel %vm3192_vm4, %v3379_v34, %v3383_v31  ;;  %v3512_v46 = vrot.slane %v13572_v19, 1  ;;  %v3637_v37 = vpop.permute.xlu1 %3636 }
 0x22d   : > { %v3858_v2 = vshll.u32 %v13417_v21, 16  ;;  %v3870_v42 = vshll.u32 %v13483_v18, 16  ;;  %v3887_v9 = vshrl.u32 %v9842_v10, 16  ;;  %v3891_v45 = vrot.slane %v3889_v57, 1 }
 0x22e   : > { %v4387_v24 = vpop.permute.xlu0 %4386  ;;  %v3848_v27 = vrot.slane %v3846_v38, 1  ;;  %v4365_v4 = vsel %vm3192_vm4, %v4360_v23, %v4364_v44  ;;  %v3992_v0 = vrot.slane %v11257_v12, 1  ;;  %v4367_v63 = vshrl.u32 %v13578_v39, 16 }
 0x22f   : > { %v4713_v16 = vsel %vm4571_vm9, %v4677_v6, %v4387_v24  ;;  %3415 = vrot.lane.b32.xlu1 %v3384_v17, %s15723_s18  ;;  %v3860_v54 = vrot.slane %v3858_v2, 1  ;;  %v3872_v19 = vrot.slane %v3870_v42, 1  ;;  %v4371_v21 = vrot.slane %v4369_v50, 1  ;;  %v11651_v24 = vld [vmem:[#allocation2 + $0x50] ss:$0 sps:$4 sm:$0x11]  }
 0x230   : > { %5004 = vmatprep.mubr.bf16.mxu1 %v4713_v16  ;;  %4406 = vrot.lane.b32.xlu0 %v4365_v4, %s11744_s30  ;;  %v3880_v18 = vor.u32 %v3879_v8, %v3875_v51  ;;  %v3882_v20 = vshll.u32 %v13563_v35, 16  ;;  %v4374_v32 = vshll.u32 %v13633_v25, 16  ;;  %v13646_v52 = vsel %vm3192_vm4, %v13598_v13, %v3848_v27  ;;  %v3527_v6 = vpop.permute.xlu1 %3526 }
 0x231   : > { %5005 = vmatmul.mubr.bf16.gmra.mrb[72].mxu1 %v4585_v15  ;;  %v13649_v34 = vsel %vm3192_vm4, %v3856_v55, %v3860_v54  ;;  %v13652_v31 = vsel %vm3192_vm4, %v3868_v43, %v3872_v19  ;;  %v3513_v50 = vsel %vm3465_vm3, %v3511_v40, %v3512_v46  ;;  %v3892_v51 = vor.u32 %v3891_v45, %v3887_v9 }
 0x232   : > { %v3884_v15 = vrot.slane %v3882_v20, 1  ;;  %v3894_v5 = vshll.u32 %v11257_v12, 16  ;;  %v3993_v35 = vsel %vm3465_vm3, %v3991_v58, %v3992_v0  ;;  %v3769_v23 = vshll.u32 %v12990_v61, 16  ;;  %v3061_v0 = vld [vmem:[#allocation2 + $0xb4] sm:$0xe] }
 0x233   : > { %3544 = vrot.lane.b32.xlu1 %v3513_v50, %s15666_s26  ;;  %v15776_v43 = vcombine.low %v13559_v62, %v13395_v49  ;;  %v9919_v8 = vcombine.low %v3060_v11, %v13440_v30  ;;  %v4372_v57 = vor.u32 %v4371_v21, %v4367_v63  ;;  %v4376_v12 = vrot.slane %v4374_v32, 1  ;;  %v11652_v32 = vld [vmem:[#allocation2 + $0x5c] ss:$0 sps:$4 sm:$0x11]  }
 0x234   : > { %4024 = vrot.lane.b32.xlu0 %v3993_v35, %s15723_s18  ;;  %v13660_v55 = vsel %vm3192_vm4, %v3880_v18, %v3884_v15  ;;  %v3896_v13 = vrot.slane %v3894_v5, 1  ;;  %v4492_v40 = vrot.slane %v13379_v1, 1  ;;  %v3771_v38 = vrot.slane %v3769_v23, 1  ;;  %s10371_s18 = sshll.u32 %s11857_s28, 4  ;;  %s11745_s28 = smov [#allocation8]  }
 0x235   : > { %v4491_v44 = vrot.slane %v15776_v43, 1  ;;  %v4494_v17 = vrot.slane %v9919_v8, 1  ;;  %v4377_v49 = vsel %vm3192_vm4, %v4372_v57, %v4376_v12  ;;  %v3767_v46 = vshrl.u32 %v12990_v61, 16  ;;  %s15555_s21 = scalar_lea.hbm %s15614_s17, %s10371_s18 }
 0x236   : > { %v13667_v58 = vsel %vm3192_vm4, %v3892_v51, %v3896_v13  ;;  %v3774_v2 = vshll.u32 %v11651_v24, 16  ;;  %v4495_v42 = vrot.slane %v13451_v41, 1  ;;  %v3781_v16 = vshll.u32 %v13091_v59, 16 }
 0x237   : > { %3656 = vrot.lane.b32.xlu1 %v9842_v10, %s11744_s30  ;;  %v13675_v30 = vsel %vm3465_vm3, %v4491_v44, %v4492_v40  ;;  %v3772_v1 = vor.u32 %v3771_v38, %v3767_v46  ;;  %v3398_v10 = vpop.permute.xlu1 %3397  ;;  %v4517_v27 = vsel %vm1013_vm0, %v12910_v56, %v13629_v47  ;;  %v9920_v20 = vcombine.low %v3061_v0, %v13531_v22 }
 0x238   : > { %4136 = vrot.lane.b32.xlu0 %v13578_v39, %s15666_s26  ;;  %v13681_v39 = vsel %vm3465_vm3, %v4494_v17, %v4495_v42  ;;  %v3776_v45 = vrot.slane %v3774_v2, 1  ;;  %v4550_v21 = vsel %vm4538_vm8, %v4517_v27, %v13606_v29  ;;  %v3783_v18 = vrot.slane %v3781_v16, 1  ;;  %v11654_v16 = vld [vmem:[#allocation2 + $0x68] ss:$0 sps:$4 sm:$0x11]  }
 0x239   : > { %v4588_v56 = vsel %vm4571_vm9, %v4550_v21, %v3637_v37  ;;  %v3779_v47 = vshrl.u32 %v13091_v59, 16  ;;  %v3786_v11 = vshll.u32 %v11652_v32, 16  ;;  %v4497_v15 = vrot.slane %v9920_v20, 1 }
 0x23a   : > { %v4117_v62 = vpop.permute.xlu0 %4116  ;;  %v3777_v61 = vsel %vm3192_vm4, %v3772_v1, %v3776_v45  ;;  %v4498_v23 = vrot.slane %v13517_v60, 1  ;;  %v4519_v29 = vsel %vm1013_vm0, %v13001_v28, %v3398_v10  ;;  %v3062_v28 = vld [vmem:[#allocation2 + $0xc0] sm:$0xe]  ;;  %v3805_v17 = vshll.u32 %v13276_v53, 16 }
 0x23b   : > { %v3639_v4 = vpop.permute.xlu1 %3638  ;;  %v4637_v41 = vsel %vm1013_vm0, %v3777_v61, %v13611_v3  ;;  %v3784_v51 = vor.u32 %v3783_v18, %v3779_v47  ;;  %v3788_v5 = vrot.slane %v3786_v11, 1  ;;  %v4552_v57 = vsel %vm4538_vm8, %v4519_v29, %v3527_v6  ;;  %v11653_v10 = vld [vmem:[#allocation2 + $0x74] ss:$0 sps:$4 sm:$0x11]  }
 0x23c   : > { %4408 = vrot.lane.b32.xlu0 %v4377_v49, %s11744_s30  ;;  %v4679_v54 = vsel %vm4538_vm8, %v4637_v41, %v4117_v62  ;;  %v13702_v37 = vsel %vm3465_vm3, %v4497_v15, %v4498_v23  ;;  %v4591_v60 = vsel %vm4571_vm9, %v4552_v57, %v3639_v4  ;;  %v9921_v40 = vcombine.low %v3062_v28, %v13582_v26  ;;  %v11655_v11 = vld [vmem:[#allocation2 + $0x80] ss:$0 sps:$4 sm:$0x11]   ;;  %s11681_s30 = sshll.u32 %s11745_s28, 4  ;;  %s11682_s30 = int_to_ptr.vmem [resolvable:$false] %s11681_s30 }
 0x23d   : > { %v3789_v22 = vsel %vm3192_vm4, %v3784_v51, %v3788_v5  ;;  %v3793_v62 = vshll.u32 %v13157_v48, 16  ;;  %v4501_v46 = vrot.slane %v13592_v36, 1  ;;  %v3807_v24 = vrot.slane %v3805_v17, 1  ;;  %s11683_s2 = scalar_lea.vmem %s11682_s30, 32 }
 0x23e   : > { %v4500_v49 = vrot.slane %v9921_v40, 1  ;;  %v3803_v1 = vshrl.u32 %v13276_v53, 16  ;;  %v3791_v26 = vshrl.u32 %v13157_v48, 16  ;;  %v3798_v27 = vshll.u32 %v11654_v16, 16 }
 0x23f   : > { %v4007_v9 = vpop.permute.xlu0 %4006  ;;  %v3795_v42 = vrot.slane %v3793_v62, 1 }
 0x240   : > { %v4640_v59 = vsel %vm1013_vm0, %v3789_v22, %v4007_v9  ;;  %v13714_v6 = vsel %vm3465_vm3, %v4500_v49, %v4501_v46  ;;  %v3810_v9 = vshll.u32 %v11653_v10, 16  ;;  %v3808_v4 = vor.u32 %v3807_v24, %v3803_v1 }
 0x241   : > { %v3529_v3 = vpop.permute.xlu1 %3528  ;;  %v3796_v0 = vor.u32 %v3795_v42, %v3791_v26  ;;  %v15781_v42 = vld [vmem:[#allocation24_spill] sm:$0xff] }
 0x242   : > { %v3812_v41 = vrot.slane %v3810_v9, 1 }
 0x243   : > { %v4389_v19 = vpop.permute.xlu0 %4388 }
 0x244   : > { %v4716_v63 = vsel %vm4571_vm9, %v4679_v54, %v4389_v19  ;;  %v15777_v54 = vld [vmem:[#allocation19_spill] sm:$0xff]  ;;  %v3813_v21 = vsel %vm3192_vm4, %v3808_v4, %v3812_v41 }
 0x245   : > { %5012 = vmatprep.mubr.bf16.mxu1 %v4716_v63  ;;  %v3817_v19 = vshll.u32 %v15777_v54, 16  ;;  %v3800_v63 = vrot.slane %v3798_v27, 1  ;;  %v15783_v27 = vld [vmem:[#allocation33_spill] sm:$0xff] }
 0x246   : > { %5013 = vmatmul.mubr.bf16.gmra.mrb[76].mxu1 %v4588_v56  ;;  %v3400_v13 = vpop.permute.xlu1 %3399  ;;  %v3815_v56 = vshrl.u32 %v15777_v54, 16  ;;  %v15784_v54 = vld [vmem:[#allocation28_spill] sm:$0xff] }
 0x247   : > { %v4119_v50 = vpop.permute.xlu0 %4118  ;;  %v4521_v20 = vsel %vm1013_vm0, %v13103_v33, %v3400_v13  ;;  %v3801_v48 = vsel %vm3192_vm4, %v3796_v0, %v3800_v63  ;;  %v3819_v32 = vrot.slane %v3817_v19, 1  ;;  %v15785_v19 = vld [vmem:[#allocation32_spill] sm:$0xff] }
 0x248   : > { %v4681_v43 = vsel %vm4538_vm8, %v4640_v59, %v4119_v50  ;;  %v3822_v50 = vshll.u32 %v11655_v11, 16  ;;  %v4554_v33 = vsel %vm4538_vm8, %v4521_v20, %v3529_v3 }
 0x249   : > { %v3820_v13 = vor.u32 %v3819_v32, %v3815_v56 }
 0x24a   : > { %v3641_v12 = vpop.permute.xlu1 %3640  ;;  %v3824_v59 = vrot.slane %v3822_v50, 1 }
 0x24b   : > { %v4009_v35 = vpop.permute.xlu0 %4008  ;;  %v4594_v22 = vsel %vm4571_vm9, %v4554_v33, %v3641_v12  ;;  %v11656_v12 = vld [vmem:[#allocation2 + $0x8c] ss:$0 sps:$4 sm:$0x11]  }
 0x24c   : > { %v4643_v47 = vsel %vm1013_vm0, %v3801_v48, %v4009_v35  ;;  %v3825_v28 = vsel %vm3192_vm4, %v3820_v13, %v3824_v59  ;;  %v3834_v17 = vshll.u32 %v11656_v12, 16  ;;  %v15790_v59 = vld [vmem:[#allocation16_spill] sm:$0xff]  ;;  %v15791_v12 = vld [vmem:[#allocation26_spill] sm:$0xff] }
 0x24e   : > { %v3531_v38 = vpop.permute.xlu1 %3530  ;;  %v3836_v26 = vrot.slane %v3834_v17, 1 }
 0x24f   : > { %v4391_v44 = vpop.permute.xlu0 %4390 }
 0x250   : > { %v4719_v8 = vsel %vm4571_vm9, %v4681_v43, %v4391_v44  ;;  %v15778_v43 = vld [vmem:[#allocation34_spill] sm:$0xff] }
 0x251   : > { %5020 = vmatprep.mubr.bf16.mxu1 %v4719_v8  ;;  %v3829_v44 = vshll.u32 %v15778_v43, 16  ;;  %v3827_v3 = vshrl.u32 %v15778_v43, 16 }
 0x252   : > { %5021 = vmatmul.mubr.bf16.gmra.mrb[80].mxu1 %v4591_v60  ;;  %v3402_v2 = vpop.permute.xlu1 %3401  ;;  %v15779_v60 = vld [vmem:[#allocation18_spill] sm:$0xff] }
 0x253   : > { %v3831_v40 = vrot.slane %v3829_v44, 1 }
 0x25f   : > { %v4121_v45 = vpop.permute.xlu0 %4120 }
 0x260   : > { %v3643_v61 = vpop.permute.xlu1 %3642  ;;  %v4683_v15 = vsel %vm4538_vm8, %v4643_v47, %v4121_v45  ;;  %v3832_v45 = vor.u32 %v3831_v40, %v3827_v3  ;;  %v15787_v47 = vld [vmem:[#allocation29_spill] sm:$0xff] }
 0x264   : > { %v4011_v36 = vpop.permute.xlu0 %4010 }
 0x265   : > { %v3533_v18 = vpop.permute.xlu1 %3532  ;;  %v4646_v53 = vsel %vm1013_vm0, %v3813_v21, %v4011_v36  ;;  %v15786_v21 = vld [vmem:[#allocation23_spill] sm:$0xff] }
 0x266   : > { %v4685_v23 = vsel %vm4538_vm8, %v4646_v53, %v13021_v14  ;;  %v4523_v14 = vsel %vm1013_vm0, %v15779_v60, %v3402_v2  ;;  %v15782_v2 = vld [vmem:[#allocation30_spill] sm:$0xff] }
 0x267   : > { %v4725_v35 = vsel %vm4571_vm9, %v4685_v23, %v13096_v7  ;;  %v15780_v7 = vld [vmem:[#allocation22_spill] sm:$0xff]  ;;  %v4556_v24 = vsel %vm4538_vm8, %v4523_v14, %v3531_v38  ;;  %v3837_v38 = vsel %vm3192_vm4, %v3832_v45, %v3836_v26 }
 0x268   : > { %v4393_v51 = vpop.permute.xlu0 %4392  ;;  %v4649_v46 = vsel %vm1013_vm0, %v3825_v28, %v15780_v7  ;;  %v4597_v10 = vsel %vm4571_vm9, %v4556_v24, %v3643_v61  ;;  %v4652_v61 = vsel %vm1013_vm0, %v3837_v38, %v15784_v54 }
 0x269   : > { %v3647_v5 = vpop.permute.xlu1 %3646  ;;  %v4722_v29 = vsel %vm4571_vm9, %v4683_v15, %v4393_v51  ;;  %v4687_v1 = vsel %vm4538_vm8, %v4649_v46, %v15781_v42  ;;  %v4689_v63 = vsel %vm4538_vm8, %v4652_v61, %v15785_v19  ;;  %v15789_v51 = vld [vmem:[#allocation25_spill] sm:$0xff] }
 0x26a   : > { %5028 = vmatprep.mubr.bf16.mxu1 %v4722_v29  ;;  %v4728_v9 = vsel %vm4571_vm9, %v4687_v1, %v15782_v2 }
 0x26b   : > { %5029 = vmatmul.mubr.bf16.gmra.mrb[84].mxu1 %v4594_v22 }
 0x26c   : > { %v4399_v8 = vpop.permute.xlu0 %4398  ;;  %5036 = vmatprep.mubr.bf16.mxu1 %v4725_v35 }
 0x26d   : > { %v3408_v57 = vpop.permute.xlu1 %3407  ;;  %v4731_v20 = vsel %vm4571_vm9, %v4689_v63, %v4399_v8 }
 0x26e   : > { %v4529_v43 = vsel %vm1013_vm0, %v15790_v59, %v3408_v57  ;;  %v11659_v59 = vld [vmem:[#allocation2 + $0x34] sm:$0xf] }
 0x270   : > { %v4017_v49 = vpop.permute.xlu0 %4016 }
 0x271   : > { %v3537_v62 = vpop.permute.xlu1 %3536  ;;  %v4655_v15 = vsel %vm1013_vm0, %v13646_v52, %v4017_v49 }
 0x272   : > { %v4562_v52 = vsel %vm4538_vm8, %v4529_v43, %v3537_v62 }
 0x273   : > { %5037 = vmatmul.mubr.bf16.gmra.mrb[88].mxu1 %v4597_v10  ;;  %v15792_v10 = vld [vmem:[#allocation35_spill] sm:$0xff] }
 0x274   : > { %5044 = vmatprep.mubr.bf16.mxu1 %v4728_v9 }
 0x275   : > { %v3404_v16 = vpop.permute.xlu1 %3403  ;;  %v4129_v0 = vpop.permute.xlu0 %4128 }
 0x276   : > { %v4525_v4 = vsel %vm1013_vm0, %v15783_v27, %v3404_v16  ;;  %v4691_v29 = vsel %vm4538_vm8, %v4655_v15, %v4129_v0 }
 0x277   : > { %v4558_v41 = vsel %vm4538_vm8, %v4525_v4, %v3533_v18  ;;  %v15788_v18 = vld [vmem:[#allocation21_spill] sm:$0xff] }
 0x278   : > { %v4600_v53 = vsel %vm4571_vm9, %v4558_v41, %v15786_v21  ;;  %v4527_v32 = vsel %vm1013_vm0, %v15788_v18, %v15787_v47  ;;  %v15793_v41 = vld [vmem:[#allocation31_spill] sm:$0xff] }
 0x279   : > { %v3649_v36 = vpop.permute.xlu1 %3648  ;;  %v4560_v23 = vsel %vm4538_vm8, %v4527_v32, %v15789_v51  ;;  %v15794_v18 = vld [vmem:[#allocation39_spill] sm:$0xff]  ;;  %v3050_v51 = vld [vmem:[#allocation2 + $0x30] sm:$0xe] }
 0x27a   : > { %v4603_v33 = vsel %vm4571_vm9, %v4560_v23, %v3647_v5  ;;  %v4606_v5 = vsel %vm4571_vm9, %v4562_v52, %v3649_v36  ;;  %v9909_v43 = vcombine.low %v3050_v51, %v11659_v59  ;;  %v3052_v52 = vld [vmem:[#allocation2 + $0x48] sm:$0xe] }
 0x27b   : > { %5045 = vmatmul.mubr.bf16.gmra.mrb[92].mxu1 %v4600_v53  ;;  %v3048_v53 = vld [vmem:[#allocation2 + $0x18] sm:$0xe] }
 0x27c   : > { %v4401_v48 = vpop.permute.xlu0 %4400  ;;  %5052 = vmatprep.mubr.bf16.mxu1 %v4731_v20 }
 0x27d   : > { %v3410_v56 = vpop.permute.xlu1 %3409  ;;  %v4734_v22 = vsel %vm4571_vm9, %v4691_v29, %v4401_v48  ;;  %v11657_v48 = vld [vmem:[#allocation2 + $0x1c] sm:$0xf] }
 0x27e   : > { %v4531_v57 = vsel %vm1013_vm0, %v15791_v12, %v3410_v56  ;;  %v15795_v12 = vld [vmem:[#allocation36_spill] sm:$0xff] }
 0x280   : > { %v4019_v11 = vpop.permute.xlu0 %4018 }
 0x281   : > { %v3539_v50 = vpop.permute.xlu1 %3538  ;;  %v4658_v60 = vsel %vm1013_vm0, %v13649_v34, %v4019_v11 }
 0x282   : > { %v4564_v62 = vsel %vm4538_vm8, %v4531_v57, %v3539_v50 }
 0x283   : > { %5053 = vmatmul.mubr.bf16.gmra.mrb[96].mxu1 %v4603_v33 }
 0x284   : > { %v4131_v35 = vpop.permute.xlu0 %4130  ;;  %5060 = vmatprep.mubr.bf16.mxu1 %v4734_v22 }
 0x285   : > { %v3651_v13 = vpop.permute.xlu1 %3650  ;;  %v4693_v14 = vsel %vm4538_vm8, %v4658_v60, %v4131_v35  ;;  %v11658_v35 = vld [vmem:[#allocation2 + $0x20] ss:$0 sps:$4 sm:$0x11]   ;;  %v11660_v60 = vld [vmem:[#allocation2 + $0x38] ss:$0 sps:$4 sm:$0x11]  }
 0x286   : > { %v4609_v7 = vsel %vm4571_vm9, %v4564_v62, %v3651_v13  ;;  %v4459_v13 = vrot.slane %v11658_v35, 1 }
 0x288   : > { %v4403_v44 = vpop.permute.xlu0 %4402 }
 0x289   : > { %v3412_v8 = vpop.permute.xlu1 %3411  ;;  %v4737_v28 = vsel %vm4571_vm9, %v4693_v14, %v4403_v44  ;;  %v4465_v14 = vrot.slane %v11660_v60, 1 }
 0x28a   : > { %v4533_v2 = vsel %vm1013_vm0, %v15792_v10, %v3412_v8  ;;  %v3051_v8 = vld [vmem:[#allocation2 + $0x3c] sm:$0xe]  ;;  %v11663_v10 = vld [vmem:[#allocation2 + $0x44] ss:$0 sps:$4 sm:$0x11]  }
 0x28b   : > { %5061 = vmatmul.mubr.bf16.gmra.mrb[100].mxu1 %v4606_v5  ;;  %v11661_v5 = vld [vmem:[#allocation2 + $0x40] sm:$0xf] }
 0x28c   : > { %v4021_v3 = vpop.permute.xlu0 %4020  ;;  %5068 = vmatprep.mubr.bf16.mxu1 %v4737_v28  ;;  %v9910_v28 = vcombine.low %v3051_v8, %v11661_v5 }
 0x28d   : > { %v3541_v40 = vpop.permute.xlu1 %3540  ;;  %v4661_v34 = vsel %vm1013_vm0, %v13652_v31, %v4021_v3  ;;  %v11662_v3 = vld [vmem:[#allocation2 + $0x4c] sm:$0xf] }
 0x28e   : > { %v4566_v45 = vsel %vm4538_vm8, %v4533_v2, %v3541_v40  ;;  %v9911_v40 = vcombine.low %v3052_v52, %v11662_v3  ;;  %v4467_v62 = vrot.slane %v9910_v28, 1  ;;  %v4468_v2 = vrot.slane %v11663_v10, 1  ;;  %v11675_v28 = vld [vmem:[#allocation2 + $0x8c] ss:$0 sps:$4 sm:$0x11]  }
 0x28f   : > { %v4486_v3 = vrot.slane %v11675_v28, 1  ;;  %v15798_v28 = vld [vmem:[#allocation15_spill] sm:$0xff] }
 0x290   : > { %v4133_v17 = vpop.permute.xlu0 %4132  ;;  %5593 = vst.msk [vmem:[#allocation3 + $0x4] sm:$0x1] %vm5592_vm11, %v15798_v28  ;;  %5611 = vst.msk [vmem:[#allocation3 + $0x4c] sm:$0x1] %vm5592_vm11, %v15798_v28 }
 0x291   : > { %v3653_v49 = vpop.permute.xlu1 %3652  ;;  %v4695_v24 = vsel %vm4538_vm8, %v4661_v34, %v4133_v17  ;;  %7024 = vst.msk [vmem:[#allocation4 + $0x4] sm:$0x1] %vm5592_vm11, %v15798_v28  ;;  %7042 = vst.msk [vmem:[#allocation4 + $0x4c] sm:$0x1] %vm5592_vm11, %v15798_v28 }
 0x292   : > { %v4612_v16 = vsel %vm4571_vm9, %v4566_v45, %v3653_v49  ;;  %v11664_v45 = vld [vmem:[#allocation2 + $0x50] ss:$0 sps:$4 sm:$0x11]  }
 0x293   : > { %5069 = vmatmul.mubr.bf16.gmra.mrb[104].mxu1 %v4609_v7 }
 0x295   : > { %v3414_v46 = vpop.permute.xlu1 %3413 }
 0x296   : > { %v4405_v42 = vpop.permute.xlu0 %4404  ;;  %v4535_v38 = vsel %vm1013_vm0, %v15793_v41, %v3414_v46  ;;  %v4470_v46 = vrot.slane %v9911_v40, 1 }
 0x297   : > { %v4740_v1 = vsel %vm4571_vm9, %v4695_v24, %v4405_v42  ;;  %v3053_v24 = vld [vmem:[#allocation2 + $0x54] sm:$0xe] }
 0x298   : > { %5076 = vmatprep.mubr.bf16.mxu1 %v4740_v1  ;;  %v3054_v1 = vld [vmem:[#allocation2 + $0x60] sm:$0xe] }
 0x299   : > { %v3543_v9 = vpop.permute.xlu1 %3542 }
 0x29a   : > { %v4023_v26 = vpop.permute.xlu0 %4022  ;;  %v4568_v61 = vsel %vm4538_vm8, %v4535_v38, %v3543_v9 }
 0x29b   : > { %5077 = vmatmul.mubr.bf16.gmra.mrb[108].mxu1 %v4612_v16  ;;  %v4664_v31 = vsel %vm1013_vm0, %v13660_v55, %v4023_v26  ;;  %v9907_v55 = vcombine.low %v3048_v53, %v11657_v48  ;;  %v4471_v26 = vrot.slane %v11664_v45, 1  ;;  %v11665_v16 = vld [vmem:[#allocation2 + $0x58] sm:$0xf]  ;;  %v15796_v45 = vld [vmem:[#allocation20_spill] sm:$0xff] }
 0x29d   : > { %v3655_v27 = vpop.permute.xlu1 %3654  ;;  %v4458_v11 = vrot.slane %v9907_v55, 1  ;;  %v4472_v41 = vsel %vm3465_vm3, %v4470_v46, %v4471_v26 }
 0x29e   : > { %v4135_v4 = vpop.permute.xlu0 %4134  ;;  %v4615_v63 = vsel %vm4571_vm9, %v4568_v61, %v3655_v27  ;;  %v9912_v27 = vcombine.low %v3053_v24, %v11665_v16  ;;  %v3056_v61 = vld [vmem:[#allocation2 + $0x78] sm:$0xe] }
 0x29f   : > { %v4697_v36 = vsel %vm4538_vm8, %v4664_v31, %v4135_v4  ;;  %v4460_v44 = vsel %vm3465_vm3, %v4458_v11, %v4459_v13  ;;  %v4469_v4 = vsel %vm3465_vm3, %v4467_v62, %v4468_v2  ;;  %v11666_v31 = vld [vmem:[#allocation2 + $0x64] sm:$0xf]  ;;  %v3063_v2 = vld [vmem:[#allocation2 + $0xcc] sm:$0xe] }
 0x2a0   : > { %v4473_v38 = vrot.slane %v9912_v27, 1  ;;  %v9922_v26 = vcombine.low %v3063_v2, %v15796_v45  ;;  %v4504_v27 = vrot.slane %v13633_v25, 1  ;;  %v11275_v2 = vld [vmem:[%s15799_s3 + $0x100] sm:$0xff]   ;;  %v11279_v45 = vld [vmem:[%s15799_s3 + $0x108] sm:$0xff]  }
 0x2a1   : > { %v3416_v0 = vpop.permute.xlu1 %3415  ;;  %10936 = vmatprep.subr.bf16.mxu0 %v11275_v2 }
 0x2a2   : > { %v4407_v54 = vpop.permute.xlu0 %4406  ;;  %v4537_v32 = vsel %vm1013_vm0, %v15794_v18, %v3416_v0  ;;  %v9913_v0 = vcombine.low %v3054_v1, %v11666_v31  ;;  %v4503_v16 = vrot.slane %v9922_v26, 1  ;;  %10937 = vmatpush3.bf16.msra.mxu0 %v11275_v2 }
 0x2a3   : > { %v4743_v19 = vsel %vm4571_vm9, %v4697_v36, %v4407_v54  ;;  %v3055_v54 = vld [vmem:[#allocation2 + $0x6c] sm:$0xe]  ;;  %10938 = vmatprep.subr.bf16.mxu0 %v11279_v45 }
 0x2a4   : > { %5084 = vmatprep.mubr.bf16.mxu1 %v4743_v19  ;;  %v4476_v36 = vrot.slane %v9913_v0, 1  ;;  %v11667_v19 = vld [vmem:[#allocation2 + $0x5c] ss:$0 sps:$4 sm:$0x11]  }
 0x2a5   : > { %5085 = vmatmul.mubr.bf16.gmra.mrb[112].mxu1 %v4615_v63  ;;  %v3545_v21 = vpop.permute.xlu1 %3544  ;;  %v4474_v63 = vrot.slane %v11667_v19, 1 }
 0x2a6   : > { %v4025_v20 = vpop.permute.xlu0 %4024  ;;  %v4570_v15 = vsel %vm4538_vm8, %v4537_v32, %v3545_v21  ;;  %v11668_v21 = vld [vmem:[#allocation2 + $0x68] ss:$0 sps:$4 sm:$0x11]   ;;  %10939 = vmatpush3.bf16.msra.mxu0 %v11279_v45 }
 0x2a7   : > { %v4667_v50 = vsel %vm1013_vm0, %v13667_v58, %v4025_v20  ;;  %v4464_v58 = vrot.slane %v9909_v43, 1  ;;  %v4477_v53 = vrot.slane %v11668_v21, 1  ;;  %v11669_v20 = vld [vmem:[#allocation2 + $0x70] sm:$0xf]  ;;  %v4475_v55 = vsel %vm3465_vm3, %v4473_v38, %v4474_v63  ;;  %v11674_v43 = vld [vmem:[#allocation2 + $0x94] sm:$0xf] }
 0x2a8   : > { %v9914_v48 = vcombine.low %v3055_v54, %v11669_v20 }
 0x2a9   : > { %v3657_v47 = vpop.permute.xlu1 %3656  ;;  %v4466_v57 = vsel %vm3465_vm3, %v4464_v58, %v4465_v14  ;;  %v4478_v18 = vsel %vm3465_vm3, %v4476_v36, %v4477_v53 }
 0x2aa   : > { %v4137_v56 = vpop.permute.xlu0 %4136  ;;  %v4618_v33 = vsel %vm4571_vm9, %v4570_v15, %v3657_v47  ;;  %v4479_v32 = vrot.slane %v9914_v48, 1  ;;  %v11671_v15 = vld [vmem:[#allocation2 + $0x80] ss:$0 sps:$4 sm:$0x11]  }
 0x2ab   : > { %v4699_v23 = vsel %vm4538_vm8, %v4667_v50, %v4137_v56  ;;  %v11670_v56 = vld [vmem:[#allocation2 + $0x7c] sm:$0xf]  ;;  %v3057_v50 = vld [vmem:[#allocation2 + $0x84] sm:$0xe]  ;;  %v4483_v51 = vrot.slane %v11671_v15, 1 }
 0x2ac   : > { %v9915_v47 = vcombine.low %v3056_v61, %v11670_v56 }
 0x2ae   : > { %v4409_v29 = vpop.permute.xlu0 %4408  ;;  %v4482_v11 = vrot.slane %v9915_v47, 1 }
 0x2af   : > { %v4746_v22 = vsel %vm4571_vm9, %v4699_v23, %v4409_v29  ;;  %v3058_v23 = vld [vmem:[#allocation2 + $0x90] sm:$0xe]  ;;  %v11672_v29 = vld [vmem:[#allocation2 + $0x74] ss:$0 sps:$4 sm:$0x11]  }
 0x2b0   : > { %5092 = vmatprep.mubr.bf16.mxu1 %v4746_v22  ;;  %v11673_v22 = vld [vmem:[#allocation2 + $0x88] sm:$0xf]  ;;  %v4484_v58 = vsel %vm3465_vm3, %v4482_v11, %v4483_v51 }
 0x2b1   : > { %5093 = vmatmul.mubr.bf16.gmra.mrb[116].mxu1 %v4618_v33  ;;  %v4480_v33 = vrot.slane %v11672_v29, 1  ;;  %v9916_v35 = vcombine.low %v3057_v50, %v11673_v22 }
 0x2b2   : > { %10904 = vmatprep.mubr.msk.bf16.mxu1 %vm1013_vm0, %v4460_v44  ;;  %v9917_v44 = vcombine.low %v3058_v23, %v11674_v43 }
 0x2b3   : > { %v4481_v13 = vsel %vm3465_vm3, %v4479_v32, %v4480_v33  ;;  %v4485_v5 = vrot.slane %v9916_v35, 1 }
 0x2b9   : > { %10905 = vmatmul.mubr.msk.bf16.vlgmr.msra.gmra.mrb[120].mxu1 %vm1013_vm0, %v15795_v12  ;;  %v4488_v12 = vrot.slane %v9917_v44, 1 }
 0x2ba   : > { %10908 = vmatprep.mubr.msk.bf16.mxu1 %vm1013_vm0, %v4466_v57  ;;  %v11676_v57 = vld [vmem:[#allocation2 + $0x98] ss:$0 sps:$4 sm:$0x11]  }
 0x2bb   : > { %v10456_v17 = vpop.f32.mrb[56].mxu1 }
 0x2bc   : > { %v10457_v49 = vpop.f32.mrb[57].mxu1 }
 0x2bd   : > { %v13810_v7 = vadd.f32 %v10457_v49, %v10456_v17  ;;  %v10459_v34 = vpop.f32.mrb[58].mxu1  ;;  %v4489_v17 = vrot.slane %v11676_v57, 1  ;;  %v4487_v49 = vsel %vm3465_vm3, %v4485_v5, %v4486_v3  ;;  %v15797_v5 = vld [vmem:[#allocation14_spill] sm:$0xff] }
 0x2be   : > { %v10460_v42 = vpop.f32.mrb[59].mxu1  ;;  %5591 = vst.msk [vmem:[#allocation3] sm:$0xf] %vm5590_vm10, %v15797_v5  ;;  %5610 = vst.msk [vmem:[#allocation3 + $0x48] sm:$0xf] %vm5590_vm10, %v15797_v5 }
 0x2bf   : > { %v13812_v9 = vadd.f32 %v10460_v42, %v10459_v34  ;;  %v4490_v62 = vsel %vm3465_vm3, %v4488_v12, %v4489_v17  ;;  %7023 = vst.msk [vmem:[#allocation4] sm:$0xf] %vm5590_vm10, %v15797_v5  ;;  %7041 = vst.msk [vmem:[#allocation4 + $0x48] sm:$0xf] %vm5590_vm10, %v15797_v5  ;;  %v13933_v5 = vld [vmem:[%s15606_s9] ss:$0 sm:$0xff] }
 0x2c1   : > { %10909 = vmatmul.mubr.msk.bf16.gmra.mrb[124].mxu1 %vm1013_vm0, %v4469_v4  ;;  %v4505_v4 = vsel %vm3465_vm3, %v4503_v16, %v4504_v27 }
 0x2c2   : > { %10912 = vmatprep.mubr.msk.bf16.mxu1 %vm1013_vm0, %v4472_v41 }
 0x2c9   : > { %10913 = vmatmul.mubr.msk.bf16.gmra.mrb[128].mxu1 %vm1013_vm0, %v4475_v55 }
 0x2ca   : > { %10916 = vmatprep.mubr.msk.bf16.mxu1 %vm1013_vm0, %v4478_v18 }
 0x2d1   : > { %v10462_v59 = vpop.f32.mrb[60].mxu1  ;;  %10917 = vmatmul.mubr.msk.bf16.gmra.mrb[132].mxu1 %vm1013_vm0, %v4481_v13 }
 0x2d2   : > { %v10463_v8 = vpop.f32.mrb[61].mxu1  ;;  %10920 = vmatprep.mubr.msk.bf16.mxu1 %vm1013_vm0, %v4484_v58 }
 0x2d3   : > { %v13826_v52 = vadd.f32 %v10463_v8, %v10462_v59  ;;  %v10465_v60 = vpop.f32.mrb[62].mxu1 }
 0x2d4   : > { %v10466_v14 = vpop.f32.mrb[63].mxu1 }
 0x2d5   : > { %v13828_v40 = vadd.f32 %v10466_v14, %v10465_v60 }
 0x2d9   : > { %10921 = vmatmul.mubr.msk.bf16.gmra.mrb[136].mxu1 %vm1013_vm0, %v4487_v49 }
 0x2da   : > { %10924 = vmatprep.mubr.msk.bf16.mxu1 %vm1013_vm0, %v4490_v62 }
 0x2dd   : > { %v10468_v34 = vpop.f32.mrb[64].mxu1 }
 0x2de   : > { %v10469_v46 = vpop.f32.mrb[65].mxu1 }
 0x2df   : > { %v13834_v24 = vadd.f32 %v10469_v46, %v10468_v34  ;;  %v10471_v42 = vpop.f32.mrb[66].mxu1 }
 0x2e0   : > { %v10472_v1 = vpop.f32.mrb[67].mxu1 }
 0x2e1   : > { %v13836_v10 = vadd.f32 %v10472_v1, %v10471_v42  ;;  %10925 = vmatmul.mubr.msk.bf16.gmra.mrb[140].mxu1 %vm1013_vm0, %v13675_v30 }
 0x2e2   : > { %10928 = vmatprep.mubr.msk.bf16.mxu1 %vm1013_vm0, %v13681_v39 }
 0x2e9   : > { %10929 = vmatmul.mubr.msk.bf16.gmra.mrb[144].mxu1 %vm1013_vm0, %v13702_v37 }
 0x2ea   : > { %10932 = vmatprep.mubr.msk.bf16.mxu1 %vm1013_vm0, %v13714_v6 }
 0x2f1   : > { %10933 = vmatmul.mubr.msk.bf16.gmra.mrb[148].mxu1 %vm1013_vm0, %v4505_v4 }
 0x2f4   : > { %v10474_v31 = vpop.f32.mrb[68].mxu1 }
 0x2f5   : > { %v10475_v30 = vpop.f32.mrb[69].mxu1 }
 0x2f6   : > { %v13850_v0 = vadd.f32 %v10475_v30, %v10474_v31  ;;  %v10477_v39 = vpop.f32.mrb[70].mxu1  ;;  %v11281_v31 = vld [vmem:[%s15799_s3 + $0x110] sm:$0xff]  }
 0x2f7   : > { %v10478_v41 = vpop.f32.mrb[71].mxu1  ;;  %10940 = vmatprep.subr.bf16.mxu0 %v11281_v31 }
 0x2f8   : > { %v13852_v38 = vadd.f32 %v10478_v41, %v10477_v39  ;;  %v11283_v41 = vld [vmem:[%s15799_s3 + $0x118] sm:$0xff]   ;;  %10941 = vmatpush3.bf16.msra.mxu0 %v11281_v31 }
 0x2f9   : > { %10942 = vmatprep.subr.bf16.mxu0 %v11283_v41 }
 0x2fc   : > { %10943 = vmatpush3.bf16.msra.mxu0 %v11283_v41 }
 0x304   : > { %v10480_v36 = vpop.f32.mrb[72].mxu1 }
 0x305   : > { %v10481_v37 = vpop.f32.mrb[73].mxu1 }
 0x306   : > { %v13854_v54 = vadd.f32 %v10481_v37, %v10480_v36  ;;  %v10483_v61 = vpop.f32.mrb[74].mxu1 }
 0x307   : > { %v10484_v6 = vpop.f32.mrb[75].mxu1 }
 0x308   : > { %v13856_v19 = vadd.f32 %v10484_v6, %v10483_v61 }
 0x319   : > { %v10486_v25 = vpop.f32.mrb[76].mxu1 }
 0x31a   : > { %v10487_v63 = vpop.f32.mrb[77].mxu1 }
 0x31b   : > { %v13858_v21 = vadd.f32 %v10487_v63, %v10486_v25  ;;  %v10489_v53 = vpop.f32.mrb[78].mxu1 }
 0x31c   : > { %v10490_v20 = vpop.f32.mrb[79].mxu1 }
 0x31d   : > { %v13860_v48 = vadd.f32 %v10490_v20, %v10489_v53 }
 0x325   : > { %v10492_v55 = vpop.f32.mrb[80].mxu1 }
 0x326   : > { %v10493_v56 = vpop.f32.mrb[81].mxu1 }
 0x327   : > { %v13862_v47 = vadd.f32 %v10493_v56, %v10492_v55  ;;  %v10495_v18 = vpop.f32.mrb[82].mxu1 }
 0x328   : > { %v10496_v32 = vpop.f32.mrb[83].mxu1 }
 0x329   : > { %v13864_v11 = vadd.f32 %v10496_v32, %v10495_v18 }
 0x33e   : > { %v10498_v50 = vpop.f32.mrb[84].mxu1 }
 0x33f   : > { %v10499_v15 = vpop.f32.mrb[85].mxu1 }
 0x340   : > { %v13866_v51 = vadd.f32 %v10499_v15, %v10498_v50  ;;  %v10501_v23 = vpop.f32.mrb[86].mxu1 }
 0x341   : > { %v10502_v29 = vpop.f32.mrb[87].mxu1 }
 0x342   : > { %v13868_v33 = vadd.f32 %v10502_v29, %v10501_v23 }
 0x346   : > { %v10504_v22 = vpop.f32.mrb[88].mxu1 }
 0x347   : > { %v10505_v35 = vpop.f32.mrb[89].mxu1 }
 0x348   : > { %v13870_v13 = vadd.f32 %v10505_v35, %v10504_v22  ;;  %v10507_v59 = vpop.f32.mrb[90].mxu1 }
 0x349   : > { %v10508_v43 = vpop.f32.mrb[91].mxu1 }
 0x34a   : > { %v13872_v44 = vadd.f32 %v10508_v43, %v10507_v59 }
 0x34e   : > { %v10510_v58 = vpop.f32.mrb[92].mxu1 }
 0x34f   : > { %v10511_v8 = vpop.f32.mrb[93].mxu1 }
 0x350   : > { %v13874_v60 = vadd.f32 %v10511_v8, %v10510_v58  ;;  %v10513_v14 = vpop.f32.mrb[94].mxu1 }
 0x351   : > { %v10514_v3 = vpop.f32.mrb[95].mxu1 }
 0x352   : > { %v13892_v12 = vadd.f32 %v10514_v3, %v10513_v14 }
 0x356   : > { %v10516_v57 = vpop.f32.mrb[96].mxu1 }
 0x357   : > { %v10517_v17 = vpop.f32.mrb[97].mxu1 }
 0x358   : > { %v13894_v49 = vadd.f32 %v10517_v17, %v10516_v57  ;;  %v10519_v62 = vpop.f32.mrb[98].mxu1  ;;  %v13939_v57 = vld [vmem:[%s15607_s10] ss:$0 sm:$0xff] }
 0x359   : > { %v10520_v34 = vpop.f32.mrb[99].mxu1 }
 0x35a   : > { %v13896_v46 = vadd.f32 %v10520_v34, %v10519_v62 }
 0x35e   : > { %v10522_v42 = vpop.f32.mrb[100].mxu1 }
 0x35f   : > { %v10523_v1 = vpop.f32.mrb[101].mxu1 }
 0x360   : > { %v13904_v26 = vadd.f32 %v10523_v1, %v10522_v42  ;;  %v10525_v16 = vpop.f32.mrb[102].mxu1 }
 0x361   : > { %v10526_v27 = vpop.f32.mrb[103].mxu1 }
 0x362   : > { %v13906_v4 = vadd.f32 %v10526_v27, %v10525_v16 }
 0x366   : > { %v10528_v30 = vpop.f32.mrb[104].mxu1 }
 0x367   : > { %v10529_v39 = vpop.f32.mrb[105].mxu1 }
 0x368   : > { %v13914_v36 = vadd.f32 %v10529_v39, %v10528_v30  ;;  %v10531_v37 = vpop.f32.mrb[106].mxu1 }
 0x369   : > { %v10532_v61 = vpop.f32.mrb[107].mxu1 }
 0x36a   : > { %v13916_v6 = vadd.f32 %v10532_v61, %v10531_v37 }
 0x36e   : > { %v10534_v25 = vpop.f32.mrb[108].mxu1 }
 0x36f   : > { %v10535_v63 = vpop.f32.mrb[109].mxu1 }
 0x370   : > { %v13918_v53 = vadd.f32 %v10535_v63, %v10534_v25  ;;  %v10537_v20 = vpop.f32.mrb[110].mxu1 }
 0x371   : > { %v10538_v55 = vpop.f32.mrb[111].mxu1 }
 0x372   : > { %v13920_v56 = vadd.f32 %v10538_v55, %v10537_v20 }
 0x378   : > { %v10540_v18 = vpop.f32.mrb[112].mxu1 }
 0x379   : > { %v10541_v32 = vpop.f32.mrb[113].mxu1 }
 0x37a   : > { %v13922_v50 = vadd.f32 %v10541_v32, %v10540_v18  ;;  %v10543_v15 = vpop.f32.mrb[114].mxu1 }
 0x37b   : > { %v10544_v23 = vpop.f32.mrb[115].mxu1 }
 0x37c   : > { %v13924_v29 = vadd.f32 %v10544_v23, %v10543_v15  ;;  %v11308_v15 = vld [vmem:[%s15799_s3 + $0x48] sm:$0xff]  }
 0x37d   : > { %v11309_v23 = vld [vmem:[%s15799_s3 + $0x8] sm:$0xff]  }
 0x384   : > { %v10546_v22 = vpop.f32.mrb[116].mxu1 }
 0x385   : > { %v10547_v35 = vpop.f32.mrb[117].mxu1 }
 0x386   : > { %v13926_v59 = vadd.f32 %v10547_v35, %v10546_v22  ;;  %v10549_v43 = vpop.f32.mrb[118].mxu1  ;;  %v11310_v22 = vld [vmem:[%s15799_s3 + $0x50] sm:$0xff]  }
 0x387   : > { %v10550_v58 = vpop.f32.mrb[119].mxu1 }
 0x388   : > { %v13928_v8 = vadd.f32 %v10550_v58, %v10549_v43 }
 0x38c   : > { %v10906_v14 = vpop.f32.mrb[120].mxu1 }
 0x38d   : > { %v5144_v28 = vadd.f32 %v10906_v14, %v13826_v52  ;;  %v5135_v3 = vpop.f32.mrb[121].mxu1 }
 0x38e   : > { %v5136_v17 = vadd.f32 %v13810_v7, %v5135_v3  ;;  %v10907_v62 = vpop.f32.mrb[122].mxu1  ;;  %v11305_v7 = vld [vmem:[%s15799_s3 + $0x40] sm:$0xff]  }
 0x38f   : > { %v5271_v34 = vmul.f32 %v13933_v5, %v5144_v28  ;;  %v5147_v42 = vadd.f32 %v10907_v62, %v13828_v40  ;;  %v5138_v1 = vpop.f32.mrb[123].mxu1  ;;  %v11306_v40 = vld [vmem:[%s15799_s3] sm:$0xff]   ;;  %10570 = vmatprep.subr.bf16.mxu1 %v11305_v7 }
 0x390   : > { %v5269_v2 = vmul.f32 %v13933_v5, %v5136_v17  ;;  %v5139_v45 = vadd.f32 %v13812_v9, %v5138_v1  ;;  %10571 = vmatpush3.bf16.msra.mxu1 %v11306_v40  ;;  %v11311_v17 = vld [vmem:[%s15799_s3 + $0x10] sm:$0xff]  }
 0x391   : > { %v5310_v52 = vadd.f32 %v13939_v57, %v5271_v34  ;;  %v5272_v16 = vmul.f32 %v13933_v5, %v5147_v42  ;;  %10572 = vmatprep.subr.bf16.mxu1 %v11308_v15 }
 0x392   : > { %v5308_v27 = vadd.f32 %v13939_v57, %v5269_v2  ;;  %v5270_v31 = vmul.f32 %v13933_v5, %v5139_v45 }
 0x393   : > { %v5342_v30 = vmax.f32 %v5310_v52, 0.0  ;;  %v5311_v39 = vadd.f32 %v13939_v57, %v5272_v16 }
 0x394   : > { %v5340_v9 = vmax.f32 %v5308_v27, 0.0  ;;  %v5309_v41 = vadd.f32 %v13939_v57, %v5270_v31  ;;  %v10910_v37 = vpop.f32.mrb[124].mxu1  ;;  %10573 = vmatpush3.bf16.msra.mxu1 %v11309_v23  ;;  %v11313_v31 = vld [vmem:[%s15799_s3 + $0x18] sm:$0xff]  }
 0x395   : > { %v5343_v61 = vmax.f32 %v5311_v39, 0.0  ;;  %v5160_v25 = vadd.f32 %v10910_v37, %v13850_v0  ;;  %v5151_v63 = vpop.f32.mrb[125].mxu1  ;;  %10574 = vmatprep.subr.bf16.mxu1 %v11310_v22 }
 0x396   : > { %v5372_v20 = vmax.f32 %v5340_v9, %v5342_v30  ;;  %v5341_v55 = vmax.f32 %v5309_v41, 0.0  ;;  %v5152_v18 = vadd.f32 %v13834_v24, %v5151_v63  ;;  %v10911_v32 = vpop.f32.mrb[126].mxu1  ;;  %v11314_v9 = vld [vmem:[%s15799_s3 + $0x60] sm:$0xff]  }
 0x397   : > { %v5275_v0 = vmul.f32 %v13933_v5, %v5160_v25  ;;  %v5163_v35 = vadd.f32 %v10911_v32, %v13852_v38  ;;  %v5154_v43 = vpop.f32.mrb[127].mxu1 }
 0x398   : > { %5388 = vst.msk [vmem:[#allocation6] sm:$0xff] %vm4538_vm8, %v5372_v20  ;;  %v5373_v24 = vmax.f32 %v5341_v55, %v5343_v61  ;;  %v5273_v58 = vmul.f32 %v13933_v5, %v5152_v18  ;;  %v5155_v14 = vadd.f32 %v13836_v10, %v5154_v43  ;;  %v11312_v10 = vld [vmem:[%s15799_s3 + $0x58] sm:$0xff]   ;;  %10575 = vmatpush3.bf16.msra.mxu1 %v11311_v17 }
 0x399   : > { %v5314_v28 = vadd.f32 %v13939_v57, %v5275_v0  ;;  %v5276_v3 = vmul.f32 %v13933_v5, %v5163_v35  ;;  %10576 = vmatprep.subr.bf16.mxu1 %v11312_v10 }
 0x39a   : > { %5389 = vst.msk [vmem:[#allocation6 + $0x8] sm:$0xff] %vm4538_vm8, %v5373_v24  ;;  %v5312_v38 = vadd.f32 %v13939_v57, %v5273_v58  ;;  %v5274_v62 = vmul.f32 %v13933_v5, %v5155_v14 }
 0x39b   : > { %v5346_v34 = vmax.f32 %v5314_v28, 0.0  ;;  %v5315_v42 = vadd.f32 %v13939_v57, %v5276_v3  ;;  %v14012_v28 = vld [vmem:[#allocation3] sm:$0xf] }
 0x39c   : > { %v5344_v1 = vmax.f32 %v5312_v38, 0.0  ;;  %v5313_v2 = vadd.f32 %v13939_v57, %v5274_v62  ;;  %v10914_v45 = vpop.f32.mrb[128].mxu1  ;;  %10577 = vmatpush3.bf16.msra.mxu1 %v11313_v31 }
 0x39d   : > { %v5347_v52 = vmax.f32 %v5315_v42, 0.0  ;;  %v5176_v16 = vadd.f32 %v10914_v45, %v13858_v21  ;;  %v5167_v27 = vpop.f32.mrb[129].mxu1  ;;  %10578 = vmatprep.subr.bf16.mxu1 %v11314_v9 }
 0x39e   : > { %v5374_v7 = vmax.f32 %v5344_v1, %v5346_v34  ;;  %v5345_v40 = vmax.f32 %v5313_v2, 0.0  ;;  %v5168_v30 = vadd.f32 %v13854_v54, %v5167_v27  ;;  %v10915_v39 = vpop.f32.mrb[130].mxu1  ;;  %v14015_v34 = vld [vmem:[#allocation3 + $0x4] sm:$0x1] }
 0x39f   : > { %v5279_v41 = vmul.f32 %v13933_v5, %v5176_v16  ;;  %v5179_v21 = vadd.f32 %v10915_v39, %v13860_v48  ;;  %v5170_v37 = vpop.f32.mrb[131].mxu1 }
 0x3a0   : > { %5390 = vst.msk [vmem:[#allocation6 + $0x10] sm:$0xff] %vm4538_vm8, %v5374_v7  ;;  %v5375_v61 = vmax.f32 %v5345_v40, %v5347_v52  ;;  %v5277_v25 = vmul.f32 %v13933_v5, %v5168_v30  ;;  %v5171_v63 = vadd.f32 %v13856_v19, %v5170_v37 }
 0x3a1   : > { %v5404_v20 = vld [vmem:[#allocation6] ss:$2 sm:$0xff]  ;;  %v5420_v54 = vld [vmem:[#allocation6 + $0x1] ss:$2 sm:$0xff]  ;;  %v5318_v55 = vadd.f32 %v13939_v57, %v5279_v41  ;;  %v5280_v18 = vmul.f32 %v13933_v5, %v5179_v21  ;;  %v15802_v41 = vmov 0 }
 0x3a2   : > { %v14002_v32 = vmax.f32 %v5404_v20, %v5420_v54  ;;  %5391 = vst.msk [vmem:[#allocation6 + $0x18] sm:$0xff] %vm4538_vm8, %v5375_v61  ;;  %v5316_v48 = vadd.f32 %v13939_v57, %v5277_v25  ;;  %v5278_v15 = vmul.f32 %v13933_v5, %v5171_v63  ;;  %v15803_v41 = vsel %vm14035_vm14, 4294967295, %v15802_v41 }
 0x3a3   : > { %v5350_v23 = vmax.f32 %v5318_v55, 0.0  ;;  %v5319_v22 = vadd.f32 %v13939_v57, %v5280_v18  ;;  %15804 = vst [vmem:[#allocation38_spill] sm:$0xff] %v15803_v41 }
 0x3a4   : > { %15800 = vst [vmem:[#allocation27_spill] sm:$0xff] %v14002_v32  ;;  %v5443_v19 = vpack.c.bf16 %v14002_v32, %v14002_v32  ;;  %v5348_v0 = vmax.f32 %v5316_v48, 0.0  ;;  %v5317_v35 = vadd.f32 %v13939_v57, %v5278_v15  ;;  %v10918_v43 = vpop.f32.mrb[132].mxu1 }
 0x3a5   : > { %v5351_v24 = vmax.f32 %v5319_v22, 0.0  ;;  %v5192_v58 = vadd.f32 %v10918_v43, %v13866_v51  ;;  %v5183_v14 = vpop.f32.mrb[133].mxu1 }
 0x3a6   : > { %v5376_v3 = vmax.f32 %v5348_v0, %v5350_v23  ;;  %v5349_v17 = vmax.f32 %v5317_v35, 0.0  ;;  %v5184_v38 = vadd.f32 %v13862_v47, %v5183_v14  ;;  %v10919_v62 = vpop.f32.mrb[134].mxu1  ;;  %v5452_v10 = vshrl.u32 %v5443_v19, 16  ;;  %v11316_v0 = vld [vmem:[%s15799_s3 + $0x68] sm:$0xff]  }
 0x3a7   : > { %v5283_v42 = vmul.f32 %v13933_v5, %v5192_v58  ;;  %v5195_v1 = vadd.f32 %v10919_v62, %v13868_v33  ;;  %v5186_v2 = vpop.f32.mrb[135].mxu1  ;;  %v5455_v45 = vshll.u32 %v5443_v19, 16  ;;  %v14026_v33 = vcombine.low %v14012_v28, %v14015_v34  ;;  %v11315_v19 = vld [vmem:[%s15799_s3 + $0x20] sm:$0xff]  }
 0x3a8   : > { %5392 = vst.msk [vmem:[#allocation6 + $0x20] sm:$0xff] %vm4538_vm8, %v5376_v3  ;;  %v5377_v51 = vmax.f32 %v5349_v17, %v5351_v24  ;;  %v5281_v52 = vmul.f32 %v13933_v5, %v5184_v38  ;;  %v5187_v16 = vadd.f32 %v13864_v11, %v5186_v2  ;;  %v5454_v27 = vrot.slane %v5452_v10, 7  ;;  %10579 = vmatpush3.bf16.msra.mxu1 %v11315_v19  ;;  %v11317_v10 = vld [vmem:[%s15799_s3 + $0x28] sm:$0xff]  }
 0x3a9   : > { %v5406_v47 = vld [vmem:[#allocation6 + $0x10] ss:$2 sm:$0xff]  ;;  %v5422_v31 = vld [vmem:[#allocation6 + $0x11] ss:$2 sm:$0xff]  ;;  %v5322_v7 = vadd.f32 %v13939_v57, %v5283_v42  ;;  %v5284_v40 = vmul.f32 %v13933_v5, %v5195_v1  ;;  %v5729_v22 = vshll.u32 %v14026_v33, 16  ;;  %v5727_v2 = vshrl.u32 %v14026_v33, 16  ;;  %10580 = vmatprep.subr.bf16.mxu1 %v11316_v0 }
 0x3aa   : > { %v14028_v30 = vmax.f32 %v5406_v47, %v5422_v31  ;;  %5393 = vst.msk [vmem:[#allocation6 + $0x28] sm:$0xff] %vm4538_vm8, %v5377_v51  ;;  %v5320_v39 = vadd.f32 %v13939_v57, %v5281_v52  ;;  %v5282_v9 = vmul.f32 %v13933_v5, %v5187_v16  ;;  %v5457_v11 = vor.u32 %v5455_v45, %v5454_v27 }
 0x3ab   : > { %v5354_v21 = vmax.f32 %v5322_v7, 0.0  ;;  %v5323_v37 = vadd.f32 %v13939_v57, %v5284_v40  ;;  %v5731_v40 = vrot.slane %v5729_v22, 1 }
 0x3ac   : > { %15801 = vst [vmem:[#allocation37_spill] sm:$0xff] %v14028_v30  ;;  %v5444_v61 = vpack.c.bf16 %v14028_v30, %v14028_v30  ;;  %v5352_v25 = vmax.f32 %v5320_v39, 0.0  ;;  %v5321_v63 = vadd.f32 %v13939_v57, %v5282_v9  ;;  %v10922_v20 = vpop.f32.mrb[136].mxu1  ;;  %v5515_v55 = vsel %vm12221_vm7, 0, %v5457_v11  ;;  %10581 = vmatpush3.bf16.msra.mxu1 %v11317_v10 }
 0x3ad   : > { %v5355_v18 = vmax.f32 %v5323_v37, 0.0  ;;  %v5208_v48 = vadd.f32 %v10922_v20, %v13874_v60  ;;  %v5199_v15 = vpop.f32.mrb[137].mxu1  ;;  %v5526_v23 = vsel %vm14035_vm14, %v5515_v55, 0  ;;  %v5732_v22 = vor.u32 %v5731_v40, %v5727_v2 }
 0x3ae   : > { %v5378_v35 = vmax.f32 %v5352_v25, %v5354_v21  ;;  %v5353_v43 = vmax.f32 %v5321_v63, 0.0  ;;  %v5200_v24 = vadd.f32 %v13870_v13, %v5199_v15  ;;  %v10923_v58 = vpop.f32.mrb[138].mxu1  ;;  %v9959_v60 = vcombine.low %v5526_v23, %v5526_v23 }
 0x3af   : > { %v5287_v14 = vmul.f32 %v13933_v5, %v5208_v48  ;;  %v5211_v3 = vadd.f32 %v10923_v58, %v13892_v12  ;;  %v5202_v17 = vpop.f32.mrb[139].mxu1  ;;  %v9960_v38 = vcombine.high %v5526_v23, %v5526_v23  ;;  %v5459_v62 = vshrl.u32 %v5444_v61, 16  ;;  %v11318_v12 = vld [vmem:[%s15799_s3 + $0x70] sm:$0xff]  }
 0x3b0   : > { %5394 = vst.msk [vmem:[#allocation6 + $0x30] sm:$0xff] %vm4538_vm8, %v5378_v35  ;;  %v5379_v42 = vmax.f32 %v5353_v43, %v5355_v18  ;;  %v5285_v1 = vmul.f32 %v13933_v5, %v5200_v24  ;;  %v5203_v13 = vadd.f32 %v13872_v44, %v5202_v17  ;;  %v5462_v47 = vshll.u32 %v5444_v61, 16  ;;  %10582 = vmatprep.subr.bf16.mxu1 %v11318_v12 }
 0x3b1   : > { %5594 = vst.msk [vmem:[#allocation3 + $0x8] sm:$0xf] %vm5590_vm10, %v9959_v60  ;;  %v5408_v45 = vld [vmem:[#allocation6 + $0x20] ss:$2 sm:$0xff]  ;;  %v5424_v51 = vld [vmem:[#allocation6 + $0x21] ss:$2 sm:$0xff]  ;;  %v5326_v52 = vadd.f32 %v13939_v57, %v5287_v14  ;;  %v5288_v16 = vmul.f32 %v13933_v5, %v5211_v3 }
 0x3b2   : > { %5595 = vst.msk [vmem:[#allocation3 + $0xc] sm:$0x1] %vm5592_vm11, %v9960_v38  ;;  %v5461_v27 = vrot.slane %v5459_v62, 7  ;;  %v14072_v44 = vmax.f32 %v5408_v45, %v5424_v51  ;;  %v5324_v31 = vadd.f32 %v13939_v57, %v5285_v1  ;;  %v5286_v7 = vmul.f32 %v13933_v5, %v5203_v13  ;;  %v11319_v51 = vld [vmem:[%s15799_s3 + $0x30] sm:$0xff]  }
 0x3b3   : > { %5395 = vst.msk [vmem:[#allocation6 + $0x38] sm:$0xff] %vm4538_vm8, %v5379_v42  ;;  %v5358_v33 = vmax.f32 %v5326_v52, 0.0  ;;  %v5327_v39 = vadd.f32 %v13939_v57, %v5288_v16  ;;  %v11320_v52 = vld [vmem:[%s15799_s3 + $0x78] sm:$0xff]   ;;  %10583 = vmatpush3.bf16.msra.mxu1 %v11319_v51 }
 0x3b4   : > { %15806 = vst [vmem:[#allocation19_spill] sm:$0xff] %v14072_v44  ;;  %v5464_v9 = vor.u32 %v5462_v47, %v5461_v27  ;;  %v5445_v11 = vpack.c.bf16 %v14072_v44, %v14072_v44  ;;  %v5356_v21 = vmax.f32 %v5324_v31, 0.0  ;;  %v5325_v37 = vadd.f32 %v13939_v57, %v5286_v7  ;;  %v10926_v61 = vpop.f32.mrb[140].mxu1  ;;  %10584 = vmatprep.subr.bf16.mxu1 %v11320_v52 }
 0x3b5   : > { %v5359_v25 = vmax.f32 %v5327_v39, 0.0  ;;  %v5224_v63 = vadd.f32 %v10926_v61, %v13904_v26  ;;  %v5215_v20 = vpop.f32.mrb[141].mxu1 }
 0x3b6   : > { %v5516_v55 = vsel %vm12221_vm7, 0, %v5464_v9  ;;  %v5466_v18 = vshrl.u32 %v5445_v11, 16  ;;  %v5380_v48 = vmax.f32 %v5356_v21, %v5358_v33  ;;  %v5357_v15 = vmax.f32 %v5325_v37, 0.0  ;;  %v10927_v23 = vpop.f32.mrb[142].mxu1 }
 0x3b7   : > { %v5291_v19 = vmul.f32 %v13933_v5, %v5224_v63  ;;  %v5216_v0 = vadd.f32 %v13894_v49, %v5215_v20  ;;  %v5227_v35 = vadd.f32 %v10927_v23, %v13906_v4  ;;  %v5218_v43 = vpop.f32.mrb[143].mxu1  ;;  %v5527_v26 = vsel %vm14035_vm14, %v5516_v55, 0  ;;  %v11321_v55 = vld [vmem:[%s15799_s3 + $0x38] sm:$0xff]  }
 0x3b8   : > { %v5637_v24 = vld [vmem:[#allocation3 + $0x8] sm:$0xf]  ;;  %v5468_v58 = vrot.slane %v5466_v18, 7  ;;  %5396 = vst.msk [vmem:[#allocation6 + $0x40] sm:$0xff] %vm4538_vm8, %v5380_v48  ;;  %v5381_v60 = vmax.f32 %v5357_v15, %v5359_v25  ;;  %v5219_v14 = vadd.f32 %v13896_v46, %v5218_v43  ;;  %v9961_v12 = vcombine.low %v5527_v26, %v5527_v26  ;;  %10585 = vmatpush3.bf16.msra.mxu1 %v11321_v55 }
 0x3b9   : > { %v14091_v3 = vld [vmem:[#allocation3 + $0xc] sm:$0x1]  ;;  %v9991_v17 = vcombine.low %v5637_v24, %v5637_v24  ;;  %v14093_v38 = vld [vmem:[#allocation3 + $0x8] sm:$0xf]  ;;  %v5330_v4 = vadd.f32 %v13939_v57, %v5291_v19  ;;  %v5289_v10 = vmul.f32 %v13933_v5, %v5216_v0  ;;  %v5292_v42 = vmul.f32 %v13933_v5, %v5227_v35 }
 0x3ba   : > { %v5410_v62 = vld [vmem:[#allocation6 + $0x30] ss:$2 sm:$0xff]  ;;  %v5426_v49 = vld [vmem:[#allocation6 + $0x31] ss:$2 sm:$0xff]  ;;  %v14099_v1 = vcombine.low %v5637_v24, %v14091_v3  ;;  %v14101_v13 = vld [vmem:[#allocation3 + $0xc] sm:$0x1]  ;;  %v5290_v46 = vmul.f32 %v13933_v5, %v5219_v14  ;;  %v9962_v45 = vcombine.high %v5527_v26, %v5527_v26 }
 0x3bb   : > { %v14103_v2 = vmax.f32 %v5410_v62, %v5426_v49  ;;  %5397 = vst.msk [vmem:[#allocation6 + $0x48] sm:$0xff] %vm4538_vm8, %v5381_v60  ;;  %5854 = vrot.lane.b32.xlu0 %v9991_v17, %s15666_s26  ;;  %v5469_v16 = vshll.u32 %v5445_v11, 16  ;;  %v5362_v27 = vmax.f32 %v5330_v4, 0.0  ;;  %v5328_v47 = vadd.f32 %v13939_v57, %v5289_v10 }
 0x3bc   : > { %v5331_v31 = vadd.f32 %v13939_v57, %v5292_v42  ;;  %v5329_v40 = vadd.f32 %v13939_v57, %v5290_v46  ;;  %v10930_v33 = vpop.f32.mrb[144].mxu1  ;;  %5596 = vst.msk [vmem:[#allocation3 + $0x10] sm:$0xf] %vm5590_vm10, %v9961_v12  ;;  %v14125_v39 = vcombine.low %v14093_v38, %v14101_v13 }
 0x3bd   : > { %15807 = vst [vmem:[#allocation34_spill] sm:$0xff] %v14103_v2  ;;  %v14118_v7 = vpack.c.bf16 %v14103_v2, %v14103_v2  ;;  %5597 = vst.msk [vmem:[#allocation3 + $0x14] sm:$0x1] %vm5592_vm11, %v9962_v45  ;;  %v5360_v9 = vmax.f32 %v5328_v47, 0.0  ;;  %v5240_v21 = vadd.f32 %v10930_v33, %v13918_v53  ;;  %v5231_v37 = vpop.f32.mrb[145].mxu1  ;;  %v5471_v61 = vor.u32 %v5469_v16, %v5468_v58 }
 0x3be   : > { %v5363_v11 = vmax.f32 %v5331_v31, 0.0  ;;  %v5361_v25 = vmax.f32 %v5329_v40, 0.0  ;;  %v5232_v63 = vadd.f32 %v13914_v36, %v5231_v37  ;;  %v10931_v20 = vpop.f32.mrb[146].mxu1  ;;  %v5736_v26 = vshll.u32 %v14125_v39, 16  ;;  %v5653_v2 = vld [vmem:[#allocation3 + $0x8] sm:$0xe] }
 0x3bf   : > { %5782 = vrot.lane.b32.xlu0 %v5732_v22, %s15666_s26  ;;  %v5382_v18 = vmax.f32 %v5360_v9, %v5362_v27  ;;  %v5295_v48 = vmul.f32 %v13933_v5, %v5240_v21  ;;  %v5243_v15 = vadd.f32 %v10931_v20, %v13920_v56  ;;  %v5234_v23 = vpop.f32.mrb[147].mxu1  ;;  %v5473_v53 = vshrl.u32 %v14118_v7, 16 }
 0x3c0   : > { %v5383_v19 = vmax.f32 %v5361_v25, %v5363_v11  ;;  %v5293_v0 = vmul.f32 %v13933_v5, %v5232_v63  ;;  %v5235_v36 = vadd.f32 %v13916_v6, %v5234_v23  ;;  %v5517_v56 = vsel %vm12221_vm7, 0, %v5471_v61 }
 0x3c1   : > { %5398 = vst.msk [vmem:[#allocation6 + $0x50] sm:$0xff] %vm4538_vm8, %v5382_v18  ;;  %v5334_v43 = vadd.f32 %v13939_v57, %v5295_v48  ;;  %v5296_v24 = vmul.f32 %v13933_v5, %v5243_v15  ;;  %v5528_v14 = vsel %vm14035_vm14, %v5517_v56, 0  ;;  %v5738_v10 = vrot.slane %v5736_v26, 1 }
 0x3c2   : > { %v5412_v35 = vld [vmem:[#allocation6 + $0x40] ss:$2 sm:$0xff]  ;;  %v5428_v22 = vld [vmem:[#allocation6 + $0x41] ss:$2 sm:$0xff]  ;;  %5399 = vst.msk [vmem:[#allocation6 + $0x58] sm:$0xff] %vm4538_vm8, %v5383_v19  ;;  %v5332_v6 = vadd.f32 %v13939_v57, %v5293_v0  ;;  %v5294_v60 = vmul.f32 %v13933_v5, %v5235_v36  ;;  %v9963_v42 = vcombine.low %v5528_v14, %v5528_v14  ;;  %v5476_v16 = vshll.u32 %v14118_v7, 16 }
 0x3c3   : > { %v14144_v58 = vmax.f32 %v5412_v35, %v5428_v22  ;;  %v5366_v17 = vmax.f32 %v5334_v43, 0.0  ;;  %v5335_v62 = vadd.f32 %v13939_v57, %v5296_v24  ;;  %v5638_v49 = vld [vmem:[#allocation3 + $0x10] sm:$0xf]  ;;  %v5475_v33 = vrot.slane %v5473_v53, 7 }
 0x3c4   : > { %v14152_v4 = vld [vmem:[#allocation3 + $0x14] sm:$0x1]  ;;  %v5364_v12 = vmax.f32 %v5332_v6, 0.0  ;;  %v5333_v45 = vadd.f32 %v13939_v57, %v5294_v60  ;;  %v9992_v51 = vcombine.low %v5638_v49, %v5638_v49  ;;  %v10934_v52 = vpop.f32.mrb[148].mxu1  ;;  %5598 = vst.msk [vmem:[#allocation3 + $0x18] sm:$0xf] %vm5590_vm10, %v9963_v42  ;;  %v9964_v0 = vcombine.high %v5528_v14, %v5528_v14 }
 0x3c5   : > { %15808 = vst [vmem:[#allocation18_spill] sm:$0xff] %v14144_v58  ;;  %v14156_v46 = vpack.c.bf16 %v14144_v58, %v14144_v58  ;;  %v5367_v27 = vmax.f32 %v5335_v62, 0.0  ;;  %v14161_v47 = vcombine.low %v5638_v49, %v14152_v4  ;;  %v5256_v31 = vadd.f32 %v10934_v52, %v13926_v59  ;;  %v5247_v40 = vpop.f32.mrb[149].mxu1  ;;  %v14170_v20 = vld [vmem:[#allocation3 + $0x10] sm:$0xf] }
 0x3c6   : > { %v5384_v9 = vmax.f32 %v5364_v12, %v5366_v17  ;;  %v5365_v11 = vmax.f32 %v5333_v45, 0.0  ;;  %5856 = vrot.lane.b32.xlu1 %v9992_v51, %s15666_s26  ;;  %v10935_v21 = vpop.f32.mrb[150].mxu1  ;;  %v5734_v37 = vshrl.u32 %v14125_v39, 16  ;;  %v5248_v25 = vadd.f32 %v13922_v50, %v5247_v40  ;;  %v14172_v59 = vld [vmem:[#allocation3 + $0x14] sm:$0x1] }
 0x3c7   : > { %v5480_v61 = vshrl.u32 %v14156_v46, 16  ;;  %v5299_v7 = vmul.f32 %v13933_v5, %v5256_v31  ;;  %v5250_v63 = vpop.f32.mrb[151].mxu1  ;;  %v5259_v18 = vadd.f32 %v10935_v21, %v13928_v8  ;;  %v5483_v39 = vshll.u32 %v14156_v46, 16  ;;  %5599 = vst.msk [vmem:[#allocation3 + $0x1c] sm:$0x1] %vm5592_vm11, %v9964_v0 }
 0x3c8   : > { %5400 = vst.msk [vmem:[#allocation6 + $0x60] sm:$0xff] %vm4538_vm8, %v5384_v9  ;;  %v5385_v55 = vmax.f32 %v5365_v11, %v5367_v27  ;;  %v5739_v48 = vor.u32 %v5738_v10, %v5734_v37  ;;  %v5251_v15 = vadd.f32 %v13924_v29, %v5250_v63  ;;  %v5297_v50 = vmul.f32 %v13933_v5, %v5248_v25  ;;  %v14194_v49 = vld [vmem:[#allocation3 + $0x14] sm:$0x1]  ;;  %v5678_v52 = vld [vmem:[#allocation3 + $0x10] sm:$0xe] }
 0x3c9   : > { %v5414_v23 = vld [vmem:[#allocation6 + $0x50] ss:$2 sm:$0xff]  ;;  %v5430_v53 = vld [vmem:[#allocation6 + $0x51] ss:$2 sm:$0xff]  ;;  %v5338_v19 = vadd.f32 %v13939_v57, %v5299_v7  ;;  %v5300_v35 = vmul.f32 %v13933_v5, %v5259_v18  ;;  %v9977_v29 = vcombine.low %v14170_v20, %v14172_v59  ;;  %v5482_v22 = vrot.slane %v5480_v61, 7 }
 0x3ca   : > { %v14180_v36 = vmax.f32 %v5414_v23, %v5430_v53  ;;  %5401 = vst.msk [vmem:[#allocation6 + $0x68] sm:$0xff] %vm4538_vm8, %v5385_v55  ;;  %5784 = vrot.lane.b32.xlu1 %v5739_v48, %s15666_s26  ;;  %v5298_v8 = vmul.f32 %v13933_v5, %v5251_v15  ;;  %v5336_v24 = vadd.f32 %v13939_v57, %v5297_v50 }
 0x3cb   : > { %v5370_v43 = vmax.f32 %v5338_v19, 0.0  ;;  %v5478_v26 = vor.u32 %v5476_v16, %v5475_v33  ;;  %v5339_v6 = vadd.f32 %v13939_v57, %v5300_v35  ;;  %v5639_v14 = vld [vmem:[#allocation3 + $0x18] sm:$0xf]  ;;  %v5741_v17 = vshrl.u32 %v9977_v29, 16 }
 0x3cc   : > { %15809 = vst [vmem:[#allocation22_spill] sm:$0xff] %v14180_v36  ;;  %v5448_v56 = vpack.c.bf16 %v14180_v36, %v14180_v36  ;;  %v5337_v60 = vadd.f32 %v13939_v57, %v5298_v8  ;;  %v5368_v5 = vmax.f32 %v5336_v24, 0.0  ;;  %v9993_v62 = vcombine.low %v5639_v14, %v5639_v14  ;;  %v5679_v9 = vld [vmem:[#allocation3 + $0x18] sm:$0xe] }
 0x3cd   : > { %v5743_v10 = vshll.u32 %v9977_v29, 16  ;;  %v5518_v42 = vsel %vm12221_vm7, 0, %v5478_v26  ;;  %v5371_v45 = vmax.f32 %v5339_v6, 0.0  ;;  %v5485_v31 = vor.u32 %v5483_v39, %v5482_v22  ;;  %v14201_v37 = vld [vmem:[#allocation3 + $0x18] sm:$0xf] }
 0x3ce   : > { %v5487_v46 = vshrl.u32 %v5448_v56, 16  ;;  %v5490_v12 = vshll.u32 %v5448_v56, 16  ;;  %v5369_v51 = vmax.f32 %v5337_v60, 0.0  ;;  %v5386_v16 = vmax.f32 %v5368_v5, %v5370_v43  ;;  %5858 = vrot.lane.b32.xlu0 %v9993_v62, %s15666_s26  ;;  %v14210_v48 = vld [vmem:[#allocation3 + $0x1c] sm:$0x1]  ;;  %v11322_v5 = vld [vmem:[%s15799_s3 + $0xc0] sm:$0xff]  }
 0x3cf   : > { %v5745_v27 = vrot.slane %v5743_v10, 1  ;;  %v5529_v57 = vsel %vm14035_vm14, %v5518_v42, 0  ;;  %v10023_v25 = vcombine.low %v5678_v52, %v14194_v49  ;;  %v5519_v55 = vsel %vm12221_vm7, 0, %v5485_v31  ;;  %v14214_v15 = vld [vmem:[#allocation3 + $0x1c] sm:$0x1]  ;;  %10610 = vmatprep.subr.bf16.mxu1 %v11322_v5 }
 0x3d0   : > { %v5489_v40 = vrot.slane %v5487_v46, 7  ;;  %v5387_v33 = vmax.f32 %v5369_v51, %v5371_v45  ;;  %v9965_v11 = vcombine.low %v5529_v57, %v5529_v57  ;;  %v9966_v21 = vcombine.high %v5529_v57, %v5529_v57  ;;  %5402 = vst.msk [vmem:[#allocation6 + $0x70] sm:$0xff] %vm4538_vm8, %v5386_v16  ;;  %v14230_v26 = vld [vmem:[#allocation3 + $0x1c] sm:$0x1] }
 0x3d1   : > { %v5416_v61 = vld [vmem:[#allocation6 + $0x60] ss:$2 sm:$0xff]  ;;  %v5432_v7 = vld [vmem:[#allocation6 + $0x61] ss:$2 sm:$0xff]  ;;  %v5746_v63 = vor.u32 %v5745_v27, %v5741_v17  ;;  %v5530_v39 = vsel %vm14035_vm14, %v5519_v55, 0  ;;  %v10024_v53 = vcombine.low %v5679_v9, %v14210_v48  ;;  %v9978_v19 = vcombine.low %v14201_v37, %v14214_v15 }
 0x3d2   : > { %v14207_v18 = vmax.f32 %v5416_v61, %v5432_v7  ;;  %5403 = vst.msk [vmem:[#allocation6 + $0x78] sm:$0xff] %vm4538_vm8, %v5387_v33  ;;  %v5492_v23 = vor.u32 %v5490_v12, %v5489_v40  ;;  %v9967_v50 = vcombine.low %v5530_v39, %v5530_v39  ;;  %v9968_v0 = vcombine.high %v5530_v39, %v5530_v39 }
 0x3d3   : > { %5600 = vst.msk [vmem:[#allocation3 + $0x20] sm:$0xf] %vm5590_vm10, %v9965_v11  ;;  %5786 = vrot.lane.b32.xlu0 %v5746_v63, %s15666_s26  ;;  %v6134_v29 = vrot.slane %v10023_v25, 1  ;;  %v6135_v22 = vrot.slane %v10024_v53, 1  ;;  %v5750_v43 = vshll.u32 %v9978_v19, 16  ;;  %v14238_v46 = vcombine.low %v5639_v14, %v14230_v26 }
 0x3d4   : > { %15810 = vst [vmem:[#allocation24_spill] sm:$0xff] %v14207_v18  ;;  %5601 = vst.msk [vmem:[#allocation3 + $0x24] sm:$0x1] %vm5592_vm11, %v9966_v21  ;;  %v5449_v35 = vpack.c.bf16 %v14207_v18, %v14207_v18  ;;  %v5520_v8 = vsel %vm12221_vm7, 0, %v5492_v23  ;;  %v5748_v14 = vshrl.u32 %v9978_v19, 16 }
 0x3d5   : > { %5602 = vst.msk [vmem:[#allocation3 + $0x28] sm:$0xf] %vm5590_vm10, %v9967_v50  ;;  %v5531_v24 = vsel %vm14035_vm14, %v5520_v8, 0  ;;  %v10035_v17 = vcombine.low %v6134_v29, %v6135_v22  ;;  %v5752_v42 = vrot.slane %v5750_v43, 1 }
 0x3d6   : > { %5603 = vst.msk [vmem:[#allocation3 + $0x2c] sm:$0x1] %vm5592_vm11, %v9968_v0  ;;  %v5494_v56 = vshrl.u32 %v5449_v35, 16  ;;  %v9969_v6 = vcombine.low %v5531_v24, %v5531_v24  ;;  %v9970_v60 = vcombine.high %v5531_v24, %v5531_v24  ;;  %v5497_v10 = vshll.u32 %v5449_v35, 16 }
 0x3d7   : > { %10944 = vmatprep.mubr.msk.bf16.mxu0 %vm4538_vm8, %v10035_v17  ;;  %v5753_v63 = vor.u32 %v5752_v42, %v5748_v14 }
 0x3d8   : > { %v5496_v62 = vrot.slane %v5494_v56, 7  ;;  %5604 = vst.msk [vmem:[#allocation3 + $0x30] sm:$0xf] %vm5590_vm10, %v9969_v6 }
 0x3d9   : > { %5605 = vst.msk [vmem:[#allocation3 + $0x34] sm:$0x1] %vm5592_vm11, %v9970_v60  ;;  %v5418_v12 = vld [vmem:[#allocation6 + $0x70] ss:$2 sm:$0xff]  ;;  %v5434_v45 = vld [vmem:[#allocation6 + $0x71] ss:$2 sm:$0xff] }
 0x3da   : > { %v14241_v51 = vld [vmem:[#allocation3 + $0x20] sm:$0xf]  ;;  %v14243_v52 = vmax.f32 %v5418_v12, %v5434_v45  ;;  %v5499_v40 = vor.u32 %v5497_v10, %v5496_v62 }
 0x3db   : > { %v9994_v16 = vcombine.low %v14241_v51, %v14241_v51  ;;  %v14247_v27 = vld [vmem:[#allocation3 + $0x24] sm:$0x1]  ;;  %v5680_v57 = vld [vmem:[#allocation3 + $0x20] sm:$0xe] }
 0x3dc   : > { %15811 = vst [vmem:[#allocation30_spill] sm:$0xff] %v14243_v52  ;;  %v14249_v31 = vld [vmem:[#allocation3 + $0x20] sm:$0xf]  ;;  %v10025_v33 = vcombine.low %v5680_v57, %v14247_v27  ;;  %v14252_v9 = vld [vmem:[#allocation3 + $0x24] sm:$0x1]  ;;  %v5450_v11 = vpack.c.bf16 %v14243_v52, %v14243_v52  ;;  %v5521_v19 = vsel %vm12221_vm7, 0, %v5499_v40 }
 0x3dd   : > { %5860 = vrot.lane.b32.xlu1 %v9994_v16, %s15666_s26  ;;  %v5641_v21 = vld [vmem:[#allocation3 + $0x28] sm:$0xf]  ;;  %v14257_v61 = vld [vmem:[#allocation3 + $0x2c] sm:$0x1]  ;;  %v9979_v25 = vcombine.low %v14249_v31, %v14252_v9  ;;  %v5532_v56 = vsel %vm14035_vm14, %v5521_v19, 0 }
 0x3de   : > { %v5681_v7 = vld [vmem:[#allocation3 + $0x28] sm:$0xe]  ;;  %v9995_v55 = vcombine.low %v5641_v21, %v5641_v21  ;;  %v14264_v53 = vld [vmem:[#allocation3 + $0x2c] sm:$0x1]  ;;  %v5501_v50 = vshrl.u32 %v5450_v11, 16  ;;  %v5504_v0 = vshll.u32 %v5450_v11, 16  ;;  %v9971_v5 = vcombine.low %v5532_v56, %v5532_v56 }
 0x3df   : > { %v10026_v39 = vcombine.low %v5681_v7, %v14257_v61  ;;  %v14262_v23 = vld [vmem:[#allocation3 + $0x28] sm:$0xf]  ;;  %v6136_v35 = vrot.slane %v10025_v33, 1  ;;  %v5757_v8 = vshll.u32 %v9979_v25, 16  ;;  %v5755_v22 = vshrl.u32 %v9979_v25, 16 }
 0x3e0   : > { %5862 = vrot.lane.b32.xlu0 %v9995_v55, %s15666_s26  ;;  %v5642_v43 = vld [vmem:[#allocation3 + $0x30] sm:$0xf]  ;;  %v9980_v24 = vcombine.low %v14262_v23, %v14264_v53  ;;  %v5503_v6 = vrot.slane %v5501_v50, 7  ;;  %v9972_v12 = vcombine.high %v5532_v56, %v5532_v56  ;;  %v14276_v45 = vld [vmem:[#allocation3 + $0x34] sm:$0x1] }
 0x3e1   : > { %v6137_v29 = vrot.slane %v10026_v39, 1  ;;  %5788 = vrot.lane.b32.xlu1 %v5753_v63, %s15666_s26  ;;  %v5759_v60 = vrot.slane %v5757_v8, 1  ;;  %v9996_v17 = vcombine.low %v5642_v43, %v5642_v43  ;;  %v14274_v62 = vld [vmem:[#allocation3 + $0x30] sm:$0xf]  ;;  %5606 = vst.msk [vmem:[#allocation3 + $0x38] sm:$0xf] %vm5590_vm10, %v9971_v5 }
 0x3e2   : > { %v5764_v42 = vshll.u32 %v9980_v24, 16  ;;  %v9981_v57 = vcombine.low %v14274_v62, %v14276_v45  ;;  %v14281_v40 = vld [vmem:[#allocation3 + $0x10] sm:$0xf]  ;;  %v5506_v14 = vor.u32 %v5504_v0, %v5503_v6  ;;  %5607 = vst.msk [vmem:[#allocation3 + $0x3c] sm:$0x1] %vm5592_vm11, %v9972_v12  ;;  %v5762_v11 = vshrl.u32 %v9980_v24, 16 }
 0x3e3   : > { %v10040_v10 = vcombine.low %v6136_v35, %v6137_v29  ;;  %v5760_v16 = vor.u32 %v5759_v60, %v5755_v22  ;;  %v14287_v7 = vld [vmem:[#allocation3 + $0x34] sm:$0x1]  ;;  %v14291_v63 = vld [vmem:[#allocation3 + $0x4c] sm:$0x1]  ;;  %v5685_v55 = vld [vmem:[#allocation3 + $0x48] sm:$0xe]  ;;  %v10015_v19 = vcombine.low %v14281_v40, %v14194_v49 }
 0x3e4   : > { %v5766_v33 = vrot.slane %v5764_v42, 1  ;;  %v5522_v25 = vsel %vm12221_vm7, 0, %v5506_v14  ;;  %v5682_v39 = vld [vmem:[#allocation3 + $0x30] sm:$0xe]  ;;  %v14297_v0 = vld [vmem:[#allocation3 + $0x2c] sm:$0x1] }
 0x3e5   : > { %10945 = vmatmul.mubr.msk.bf16.vlgmr.msra.gmra.mrb[72].mxu0 %vm4538_vm8, %v10040_v10  ;;  %5790 = vrot.lane.b32.xlu0 %v5760_v16, %s15666_s26  ;;  %v5533_v50 = vsel %vm14035_vm14, %v5522_v25, 0  ;;  %v5771_v8 = vshll.u32 %v9981_v57, 16  ;;  %v14299_v24 = vld [vmem:[#allocation3 + $0x24] sm:$0x1]  ;;  %v14301_v56 = vld [vmem:[#allocation3 + $0x34] sm:$0x1]  ;;  %v14309_v6 = vcombine.low %v5641_v21, %v14297_v0  ;;  %v10027_v5 = vcombine.low %v5682_v39, %v14287_v7 }
 0x3e6   : > { %5864 = vrot.lane.b32.xlu1 %v9996_v17, %s15666_s26  ;;  %v5767_v35 = vor.u32 %v5766_v33, %v5762_v11  ;;  %v9973_v29 = vcombine.low %v5533_v50, %v5533_v50  ;;  %v9974_v22 = vcombine.high %v5533_v50, %v5533_v50  ;;  %v14306_v49 = vld [vmem:[#allocation3 + $0x18] sm:$0xf]  ;;  %v10030_v10 = vcombine.low %v5685_v55, %v14291_v63  ;;  %v14329_v50 = vld [vmem:[#allocation3 + $0x20] sm:$0xf] }
 0x3e7   : > { %v14317_v12 = vcombine.low %v14241_v51, %v14299_v24  ;;  %v14320_v16 = vcombine.low %v5642_v43, %v14301_v56  ;;  %v5773_v21 = vrot.slane %v5771_v8, 1  ;;  %v6041_v11 = vshll.u32 %v10015_v19, 16 }
 0x3e8   : > { %5608 = vst.msk [vmem:[#allocation3 + $0x40] sm:$0xf] %vm5590_vm10, %v9973_v29  ;;  %v5643_v60 = vld [vmem:[#allocation3 + $0x38] sm:$0xf]  ;;  %v5769_v51 = vshrl.u32 %v9981_v57, 16  ;;  %v10016_v43 = vcombine.low %v14306_v49, %v14210_v48  ;;  %v6138_v29 = vrot.slane %v10027_v5, 1  ;;  %v10017_v44 = vcombine.low %v14329_v50, %v14247_v27 }
 0x3e9   : > { %5609 = vst.msk [vmem:[#allocation3 + $0x44] sm:$0x1] %vm5592_vm11, %v9974_v22  ;;  %v5683_v17 = vld [vmem:[#allocation3 + $0x38] sm:$0xe]  ;;  %v9997_v14 = vcombine.low %v5643_v60, %v5643_v60  ;;  %v14322_v33 = vld [vmem:[#allocation3 + $0x3c] sm:$0x1] }
 0x3ea   : > { %5792 = vrot.lane.b32.xlu1 %v5767_v35, %s15666_s26  ;;  %v14313_v42 = vld [vmem:[#allocation3 + $0x38] sm:$0xf]  ;;  %v14324_v25 = vld [vmem:[#allocation3 + $0x3c] sm:$0x1]  ;;  %v10028_v39 = vcombine.low %v5683_v17, %v14322_v33  ;;  %v6141_v52 = vrot.slane %v10030_v10, 1  ;;  %v5774_v18 = vor.u32 %v5773_v21, %v5769_v51  ;;  %v6039_v36 = vshrl.u32 %v10015_v19, 16 }
 0x3eb   : > { %v9982_v55 = vcombine.low %v14313_v42, %v14324_v25  ;;  %v14331_v35 = vld [vmem:[#allocation3 + $0x3c] sm:$0x1]  ;;  %5866 = vrot.lane.b32.xlu0 %v9997_v14, %s15666_s26  ;;  %v6043_v58 = vrot.slane %v6041_v11, 1  ;;  %v6048_v5 = vshll.u32 %v10016_v43, 16  ;;  %v10007_v19 = vcombine.low %v5653_v2, %v14091_v3  ;;  %v14346_v10 = vld [vmem:[#allocation3 + $0x28] sm:$0xf] }
 0x3ec   : > { %v14337_v8 = vcombine.low %v5643_v60, %v14331_v35  ;;  %v6139_v22 = vrot.slane %v10028_v39, 1  ;;  %v6055_v51 = vshll.u32 %v10017_v44, 16  ;;  %v10018_v3 = vcombine.low %v14346_v10, %v14257_v61  ;;  %v5654_v2 = vld [vmem:[#allocation3 + $0x10] sm:$0xe]  ;;  %v14363_v61 = vld [vmem:[#allocation3 + $0x38] sm:$0xf] }
 0x3ed   : > { %v5778_v17 = vshll.u32 %v9982_v55, 16  ;;  %v6044_v21 = vor.u32 %v6043_v58, %v6039_v36  ;;  %v6046_v36 = vshrl.u32 %v10016_v43, 16 }
 0x3ee   : > { %v10045_v30 = vcombine.low %v6138_v29, %v6139_v22  ;;  %v6057_v58 = vrot.slane %v6055_v51, 1 }
 0x3ef   : > { %v5644_v14 = vld [vmem:[#allocation3 + $0x40] sm:$0xf]  ;;  %5794 = vrot.lane.b32.xlu0 %v5774_v18, %s15666_s26  ;;  %v5780_v41 = vrot.slane %v5778_v17, 1  ;;  %v5776_v18 = vshrl.u32 %v9982_v55, 16  ;;  %v5974_v17 = vrot.slane %v10007_v19, 1 }
 0x3f0   : > { %v5676_v57 = vld [vmem:[#allocation3 + $0x44] sm:$0x1]  ;;  %v5684_v32 = vld [vmem:[#allocation3 + $0x40] sm:$0xe]  ;;  %v9998_v48 = vcombine.low %v5644_v14, %v5644_v14  ;;  %10948 = vmatprep.mubr.msk.bf16.mxu0 %vm4538_vm8, %v10045_v30  ;;  %v6050_v30 = vrot.slane %v6048_v5, 1 }
 0x3f1   : > { %v10029_v60 = vcombine.low %v5684_v32, %v5676_v57  ;;  %v14342_v39 = vld [vmem:[#allocation3 + $0x44] sm:$0x1]  ;;  %v14352_v32 = vld [vmem:[#allocation3 + $0x30] sm:$0xf]  ;;  %v5781_v22 = vor.u32 %v5780_v41, %v5776_v18  ;;  %v14367_v43 = vld [vmem:[#allocation3 + $0x40] sm:$0xf] }
 0x3f2   : > { %v14349_v27 = vcombine.low %v5644_v14, %v14342_v39  ;;  %5868 = vrot.lane.b32.xlu1 %v9998_v48, %s15666_s26  ;;  %v10019_v55 = vcombine.low %v14352_v32, %v14287_v7  ;;  %v5655_v14 = vld [vmem:[#allocation3 + $0x18] sm:$0xe]  ;;  %v6051_v41 = vor.u32 %v6050_v30, %v6046_v36  ;;  %v10008_v48 = vcombine.low %v5654_v2, %v14152_v4  ;;  %v5656_v18 = vld [vmem:[#allocation3 + $0x20] sm:$0xe]  ;;  %v5657_v30 = vld [vmem:[#allocation3 + $0x28] sm:$0xe] }
 0x3f3   : > { %v6140_v11 = vrot.slane %v10029_v60, 1  ;;  %6094 = vrot.lane.b32.xlu0 %v6044_v21, %s15666_s26  ;;  %v6062_v60 = vshll.u32 %v10018_v3, 16  ;;  %v10009_v19 = vcombine.low %v5655_v14, %v14230_v26  ;;  %v14374_v26 = vld [vmem:[#allocation3 + $0x48] sm:$0xf] }
 0x3f4   : > { %v6069_v21 = vshll.u32 %v10019_v55, 16  ;;  %v5975_v7 = vrot.slane %v10008_v48, 1  ;;  %v6067_v2 = vshrl.u32 %v10019_v55, 16  ;;  %v5658_v48 = vld [vmem:[#allocation3 + $0x30] sm:$0xe] }
 0x3f5   : > { %v10050_v29 = vcombine.low %v6140_v11, %v6141_v52  ;;  %v6053_v52 = vshrl.u32 %v10017_v44, 16  ;;  %v6064_v11 = vrot.slane %v6062_v60, 1  ;;  %v10020_v44 = vcombine.low %v14363_v61, %v14322_v33 }
 0x3f6   : > { %5796 = vrot.lane.b32.xlu1 %v5781_v22, %s15666_s26  ;;  %v5976_v4 = vrot.slane %v10009_v19, 1  ;;  %v6071_v51 = vrot.slane %v6069_v21, 1  ;;  %v10021_v22 = vcombine.low %v14367_v43, %v5676_v57  ;;  %v10011_v33 = vcombine.low %v5657_v30, %v14297_v0  ;;  %v5659_v19 = vld [vmem:[#allocation3 + $0x38] sm:$0xe] }
 0x3f7   : > { %10949 = vmatmul.mubr.msk.bf16.gmra.mrb[76].mxu0 %vm4538_vm8, %v10050_v29  ;;  %5982 = vrot.lane.b32.xlu0 %v5974_v17, %s15666_s26  ;;  %v6058_v5 = vor.u32 %v6057_v58, %v6053_v52  ;;  %v6060_v29 = vshrl.u32 %v10018_v3, 16  ;;  %v10010_v58 = vcombine.low %v5656_v18, %v14299_v24  ;;  %v6076_v36 = vshll.u32 %v10020_v44, 16 }
 0x3f8   : > { %v6072_v14 = vor.u32 %v6071_v51, %v6067_v2  ;;  %v6083_v52 = vshll.u32 %v10021_v22, 16  ;;  %v10022_v3 = vcombine.low %v14374_v26, %v14291_v63  ;;  %v5978_v60 = vrot.slane %v10011_v33, 1  ;;  %v5629_v2 = vld [vmem:[#allocation3 + $0x8] sm:$0xe] }
 0x3f9   : > { %v6065_v17 = vor.u32 %v6064_v11, %v6060_v29  ;;  %v5977_v57 = vrot.slane %v10010_v58, 1  ;;  %v6074_v24 = vshrl.u32 %v10020_v44, 16  ;;  %v6081_v21 = vshrl.u32 %v10021_v22, 16  ;;  %v5660_v29 = vld [vmem:[#allocation3 + $0x40] sm:$0xe] }
 0x3fa   : > { %6096 = vrot.lane.b32.xlu1 %v6051_v41, %s15666_s26  ;;  %v6078_v41 = vrot.slane %v6076_v36, 1  ;;  %v6085_v55 = vrot.slane %v6083_v52, 1  ;;  %v10013_v63 = vcombine.low %v5659_v19, %v14331_v35  ;;  %v6088_v18 = vshrl.u32 %v10022_v3, 16  ;;  %v5628_v35 = vld [vmem:[#allocation3] sm:$0xe] }
 0x3fb   : > { %6098 = vrot.lane.b32.xlu0 %v6058_v5, %s15666_s26  ;;  %v6090_v5 = vshll.u32 %v10022_v3, 16  ;;  %v10014_v22 = vcombine.low %v5660_v29, %v14342_v39  ;;  %v9984_v58 = vcombine.low %v5629_v2, %v14101_v13  ;;  %v11323_v13 = vld [vmem:[%s15799_s3 + $0x80] sm:$0xff]   ;;  %v5630_v19 = vld [vmem:[#allocation3 + $0x10] sm:$0xe] }
 0x3fc   : > { %v6079_v0 = vor.u32 %v6078_v41, %v6074_v24  ;;  %v6086_v11 = vor.u32 %v6085_v55, %v6081_v21  ;;  %v5980_v44 = vrot.slane %v10013_v63, 1  ;;  %v11324_v24 = vld [vmem:[%s15799_s3 + $0xc8] sm:$0xff]   ;;  %v5631_v21 = vld [vmem:[#allocation3 + $0x18] sm:$0xe] }
 0x3fd   : > { %v5823_v33 = vrot.slane %v9984_v58, 1  ;;  %v9986_v63 = vcombine.low %v5631_v21, %v14214_v15  ;;  %v5632_v15 = vld [vmem:[#allocation3 + $0x20] sm:$0xe]  ;;  %v5634_v21 = vld [vmem:[#allocation3 + $0x30] sm:$0xe] }
 0x3fe   : > { %5984 = vrot.lane.b32.xlu1 %v5975_v7, %s15666_s26  ;;  %v10012_v7 = vcombine.low %v5658_v48, %v14301_v56  ;;  %v5981_v56 = vrot.slane %v10014_v22, 1  ;;  %v5633_v22 = vld [vmem:[#allocation3 + $0x28] sm:$0xe]  ;;  %v9987_v58 = vcombine.low %v5632_v15, %v14252_v9  ;;  %v5904_v15 = vshll.u32 %v14161_v47, 16 }
 0x3ff   : > { %5986 = vrot.lane.b32.xlu0 %v5976_v4, %s15666_s26  ;;  %v6092_v4 = vrot.slane %v6090_v5, 1  ;;  %v11327_v5 = vld [vmem:[%s15799_s3 + $0x90] sm:$0xff]   ;;  %v5825_v29 = vrot.slane %v9986_v63, 1 }
 0x400   : > { %v5979_v51 = vrot.slane %v10012_v7, 1 }
 0x401   : > { %v6093_v30 = vor.u32 %v6092_v4, %v6088_v18  ;;  %v11329_v18 = vld [vmem:[%s15799_s3 + $0x98] sm:$0xff]   ;;  %v11330_v4 = vld [vmem:[%s15799_s3 + $0xe0] sm:$0xff]  }
 0x402   : > { %6100 = vrot.lane.b32.xlu1 %v6065_v17, %s15666_s26  ;;  %v9983_v17 = vcombine.low %v5628_v35, %v14015_v34 }
 0x403   : > { %6102 = vrot.lane.b32.xlu0 %v6072_v14, %s15666_s26 }
 0x404   : > { %v5822_v14 = vrot.slane %v9983_v17, 1 }
 0x406   : > { %5988 = vrot.lane.b32.xlu1 %v5977_v57, %s15666_s26 }
 0x407   : > { %5990 = vrot.lane.b32.xlu0 %v5978_v60, %s15666_s26 }
 0x40a   : > { %6104 = vrot.lane.b32.xlu1 %v6079_v0, %s15666_s26  ;;  %v11328_v0 = vld [vmem:[%s15799_s3 + $0xd8] sm:$0xff]  }
 0x40b   : > { %6106 = vrot.lane.b32.xlu0 %v6086_v11, %s15666_s26  ;;  %v9985_v11 = vcombine.low %v5630_v19, %v14172_v59 }
 0x40e   : > { %5992 = vrot.lane.b32.xlu1 %v5979_v51, %s15666_s26  ;;  %v5824_v51 = vrot.slane %v9985_v11, 1  ;;  %v9989_v11 = vcombine.low %v5634_v21, %v14276_v45 }
 0x40f   : > { %5994 = vrot.lane.b32.xlu0 %v5980_v44, %s15666_s26  ;;  %v11331_v44 = vld [vmem:[%s15799_s3 + $0xa0] sm:$0xff]  }
 0x412   : > { %6108 = vrot.lane.b32.xlu1 %v6093_v30, %s15666_s26 }
 0x416   : > { %5996 = vrot.lane.b32.xlu1 %v5981_v56, %s15666_s26  ;;  %v11333_v56 = vld [vmem:[%s15799_s3 + $0xe8] sm:$0xff]   ;;  %s15812_s26 = smov 64  }
 0x42d   : > { %v5855_v36 = vpop.permute.xlu0 %5854 }
 0x42e   : > { %v6168_v57 = vsel %vm4538_vm8, %v5822_v14, %v5855_v36  ;;  %v9988_v36 = vcombine.low %v5633_v22, %v14264_v53  ;;  %v11334_v14 = vld [vmem:[%s15799_s3 + $0xa8] sm:$0xff]  }
 0x431   : > { %v5783_v3 = vpop.permute.xlu0 %5782 }
 0x432   : > { %v6144_v48 = vsel %vm4538_vm8, %v14012_v28, %v5783_v3  ;;  %v11325_v28 = vld [vmem:[%s15799_s3 + $0x88] sm:$0xff]   ;;  %v11335_v3 = vld [vmem:[%s15799_s3 + $0xf0] sm:$0xff]  }
 0x438   : > { %v5857_v52 = vpop.permute.xlu1 %5856 }
 0x439   : > { %v6171_v39 = vsel %vm4538_vm8, %v5823_v33, %v5857_v52 }
 0x43a   : > { %v10032_v41 = vcombine.low %v6168_v57, %v6171_v39  ;;  %v5826_v39 = vrot.slane %v9987_v58, 1 }
 0x43c   : > { %6678 = vmatprep.mubr.bf16.mxu1 %v10032_v41  ;;  %v5785_v60 = vpop.permute.xlu1 %5784  ;;  %v5827_v41 = vrot.slane %v9988_v36, 1  ;;  %v5895_v36 = vshrl.u32 %v14099_v1, 16 }
 0x43d   : > { %v6147_v34 = vsel %vm4538_vm8, %v14093_v38, %v5785_v60  ;;  %v11326_v38 = vld [vmem:[%s15799_s3 + $0xd0] sm:$0xff]  }
 0x43e   : > { %v10031_v55 = vcombine.low %v6144_v48, %v6147_v34  ;;  %v11336_v48 = vld [vmem:[%s15799_s3 + $0xb0] sm:$0xff]   ;;  %v11337_v34 = vld [vmem:[%s15799_s3 + $0xf8] sm:$0xff]  }
 0x440   : > { %6679 = vmatmul.mubr.bf16.vlgmr.msra.gmra.mrb[152].mxu1 %v10031_v55  ;;  %v5859_v7 = vpop.permute.xlu0 %5858 }
 0x441   : > { %10611 = vmatpush3.bf16.msra.mxu1 %v11323_v13  ;;  %v6174_v35 = vsel %vm4538_vm8, %v5824_v51, %v5859_v7 }
 0x442   : > { %10612 = vmatprep.subr.bf16.mxu1 %v11324_v24  ;;  %v11338_v24 = vld [vmem:[%s15799_s3 + $0xb8] sm:$0xff]  }
 0x445   : > { %10613 = vmatpush3.bf16.msra.mxu1 %v11325_v28  ;;  %v5787_v59 = vpop.permute.xlu0 %5786 }
 0x446   : > { %10614 = vmatprep.subr.bf16.mxu1 %v11326_v38  ;;  %v6150_v57 = vsel %vm4538_vm8, %v14170_v20, %v5787_v59 }
 0x449   : > { %10615 = vmatpush3.bf16.msra.mxu1 %v11327_v5 }
 0x44a   : > { %10616 = vmatprep.subr.bf16.mxu1 %v11328_v0  ;;  %v5635_v0 = vld [vmem:[#allocation3 + $0x38] sm:$0xe] }
 0x44b   : > { %v9990_v63 = vcombine.low %v5635_v0, %v14324_v25 }
 0x44d   : > { %10617 = vmatpush3.bf16.msra.mxu1 %v11329_v18  ;;  %v5829_v51 = vrot.slane %v9990_v63, 1 }
 0x44e   : > { %10618 = vmatprep.subr.bf16.mxu1 %v11330_v4  ;;  %v5828_v4 = vrot.slane %v9989_v11, 1 }
 0x44f   : > { %v5861_v30 = vpop.permute.xlu1 %5860 }
 0x450   : > { %v6177_v2 = vsel %vm4538_vm8, %v5825_v29, %v5861_v30  ;;  %v5897_v30 = vshll.u32 %v14099_v1, 16 }
 0x451   : > { %v10037_v17 = vcombine.low %v6174_v35, %v6177_v2  ;;  %10619 = vmatpush3.bf16.msra.mxu1 %v11331_v44 }
 0x452   : > { %v5863_v52 = vpop.permute.xlu0 %5862  ;;  %10620 = vmatprep.subr.bf16.mxu1 %v11333_v56  ;;  %v5899_v2 = vrot.slane %v5897_v30, 1 }
 0x453   : > { %6686 = vmatprep.mubr.bf16.mxu1 %v10037_v17  ;;  %v5789_v33 = vpop.permute.xlu1 %5788  ;;  %v6180_v20 = vsel %vm4538_vm8, %v5826_v39, %v5863_v52  ;;  %v5906_v17 = vrot.slane %v5904_v15, 1 }
 0x454   : > { %v6153_v9 = vsel %vm4538_vm8, %v14201_v37, %v5789_v33 }
 0x455   : > { %v10036_v53 = vcombine.low %v6150_v57, %v6153_v9  ;;  %10621 = vmatpush3.bf16.msra.mxu1 %v11334_v14  ;;  %v5902_v14 = vshrl.u32 %v14161_v47, 16  ;;  %v5900_v57 = vor.u32 %v5899_v2, %v5895_v36  ;;  %v5944_v2 = vshrl.u32 %v14349_v27, 16 }
 0x456   : > { %10622 = vmatprep.subr.bf16.mxu1 %v11335_v3 }
 0x457   : > { %6687 = vmatmul.mubr.bf16.gmra.mrb[156].mxu1 %v10036_v53  ;;  %v5791_v37 = vpop.permute.xlu0 %5790  ;;  %v5907_v9 = vor.u32 %v5906_v17, %v5902_v14  ;;  %v5918_v53 = vshll.u32 %v14317_v12, 16 }
 0x458   : > { %v5865_v60 = vpop.permute.xlu1 %5864  ;;  %v6156_v38 = vsel %vm4538_vm8, %v14249_v31, %v5791_v37  ;;  %v5916_v37 = vshrl.u32 %v14317_v12, 16 }
 0x459   : > { %v6183_v13 = vsel %vm4538_vm8, %v5827_v41, %v5865_v60  ;;  %10623 = vmatpush3.bf16.msra.mxu1 %v11336_v48  ;;  %v5920_v60 = vrot.slane %v5918_v53, 1 }
 0x45a   : > { %v10042_v55 = vcombine.low %v6180_v20, %v6183_v13  ;;  %10624 = vmatprep.subr.bf16.mxu1 %v11337_v34  ;;  %v5909_v20 = vshrl.u32 %v14238_v46, 16 }
 0x45c   : > { %6694 = vmatprep.mubr.bf16.mxu1 %v10042_v55  ;;  %v5793_v28 = vpop.permute.xlu1 %5792 }
 0x45d   : > { %v6159_v5 = vsel %vm4538_vm8, %v14262_v23, %v5793_v28  ;;  %10625 = vmatpush3.bf16.msra.mxu1 %v11338_v24  ;;  %v5867_v7 = vpop.permute.xlu0 %5866 }
 0x45e   : > { %v10041_v19 = vcombine.low %v6156_v38, %v6159_v5  ;;  %v6186_v44 = vsel %vm4538_vm8, %v5828_v4, %v5867_v7  ;;  %v5925_v38 = vshll.u32 %v14309_v6, 16  ;;  %v5921_v5 = vor.u32 %v5920_v60, %v5916_v37 }
 0x460   : > { %6695 = vmatmul.mubr.bf16.gmra.mrb[160].mxu1 %v10041_v19  ;;  %v5932_v19 = vshll.u32 %v14320_v16, 16  ;;  %v5927_v11 = vrot.slane %v5925_v38, 1 }
 0x461   : > { %v5795_v18 = vpop.permute.xlu0 %5794 }
 0x462   : > { %v6162_v45 = vsel %vm4538_vm8, %v14274_v62, %v5795_v18  ;;  %v5923_v18 = vshrl.u32 %v14309_v6, 16 }
 0x464   : > { %v5869_v29 = vpop.permute.xlu1 %5868 }
 0x465   : > { %v6189_v31 = vsel %vm4538_vm8, %v5829_v51, %v5869_v29  ;;  %v6095_v59 = vpop.permute.xlu0 %6094  ;;  %v5930_v51 = vshrl.u32 %v14320_v16, 16 }
 0x466   : > { %v10047_v23 = vcombine.low %v6186_v44, %v6189_v31  ;;  %v6216_v33 = vsel %vm4538_vm8, %v14281_v40, %v6095_v59  ;;  %v5928_v44 = vor.u32 %v5927_v11, %v5923_v18  ;;  %v5939_v31 = vshll.u32 %v14337_v8, 16 }
 0x468   : > { %6702 = vmatprep.mubr.bf16.mxu1 %v10047_v23  ;;  %v5797_v22 = vpop.permute.xlu1 %5796  ;;  %v5946_v23 = vshll.u32 %v14349_v27, 16 }
 0x469   : > { %v6165_v25 = vsel %vm4538_vm8, %v14313_v42, %v5797_v22  ;;  %v5983_v56 = vpop.permute.xlu0 %5982  ;;  %v5911_v42 = vshll.u32 %v14238_v46, 16 }
 0x46a   : > { %v10046_v35 = vcombine.low %v6162_v45, %v6165_v25  ;;  %v6192_v1 = vsel %vm4538_vm8, %v5900_v57, %v5983_v56  ;;  %v5941_v45 = vrot.slane %v5939_v31, 1  ;;  %v5948_v25 = vrot.slane %v5946_v23, 1  ;;  %v11388_v31 = vld [vmem:[%s15601_s4 + $0x18] sm:$0xff]   ;;  %v11390_v23 = vld [vmem:[%s15601_s4 + $0x20] sm:$0xff]  }
 0x46b   : > { %v5913_v40 = vrot.slane %v5911_v42, 1  ;;  %v5937_v56 = vshrl.u32 %v14337_v8, 16 }
 0x46c   : > { %6703 = vmatmul.mubr.bf16.gmra.mrb[164].mxu1 %v10046_v35  ;;  %v6097_v58 = vpop.permute.xlu1 %6096  ;;  %v5949_v14 = vor.u32 %v5948_v25, %v5944_v2 }
 0x46d   : > { %v6219_v52 = vsel %vm4538_vm8, %v14306_v49, %v6097_v58  ;;  %v6099_v62 = vpop.permute.xlu0 %6098  ;;  %v5914_v28 = vor.u32 %v5913_v40, %v5909_v20  ;;  %v5942_v36 = vor.u32 %v5941_v45, %v5937_v56 }
 0x46e   : > { %v10034_v3 = vcombine.low %v6216_v33, %v6219_v52  ;;  %v6222_v34 = vsel %vm4538_vm8, %v14329_v50, %v6099_v62 }
 0x470   : > { %6743 = vmatprep.mubr.bf16.mxu1 %v10034_v3  ;;  %v5985_v39 = vpop.permute.xlu1 %5984 }
 0x471   : > { %v6195_v47 = vsel %vm4538_vm8, %v5907_v9, %v5985_v39  ;;  %v5987_v41 = vpop.permute.xlu0 %5986  ;;  %v14527_v39 = vld [vmem:[#allocation4] sm:$0xf] }
 0x472   : > { %v10033_v48 = vcombine.low %v6192_v1, %v6195_v47  ;;  %v6198_v0 = vsel %vm4538_vm8, %v5914_v28, %v5987_v41  ;;  %v14529_v1 = vld [vmem:[#allocation4 + $0x4] sm:$0x1] }
 0x473   : > { %v10109_v47 = vcombine.low %v14527_v39, %v14529_v1 }
 0x474   : > { %6744 = vmatmul.mubr.bf16.vlgmr.msra.gmra.mrb[168].mxu1 %v10033_v48  ;;  %v6101_v49 = vpop.permute.xlu1 %6100 }
 0x475   : > { %v6225_v13 = vsel %vm4538_vm8, %v14346_v10, %v6101_v49  ;;  %v6103_v55 = vpop.permute.xlu0 %6102  ;;  %v5934_v10 = vrot.slane %v5932_v19, 1  ;;  %v7158_v41 = vshrl.u32 %v10109_v47, 16  ;;  %v7160_v48 = vshll.u32 %v10109_v47, 16 }
 0x476   : > { %v10039_v24 = vcombine.low %v6222_v34, %v6225_v13  ;;  %v6228_v63 = vsel %vm4538_vm8, %v14352_v32, %v6103_v55 }
 0x477   : > { %v5935_v59 = vor.u32 %v5934_v10, %v5930_v51  ;;  %v7162_v40 = vrot.slane %v7160_v48, 1  ;;  %v11385_v10 = vld [vmem:[%s15601_s4 + $0x50] sm:$0xff]  }
 0x478   : > { %6751 = vmatprep.mubr.bf16.mxu1 %v10039_v24  ;;  %v5989_v21 = vpop.permute.xlu1 %5988  ;;  %v11386_v51 = vld [vmem:[%s15601_s4 + $0x10] sm:$0xff]  }
 0x479   : > { %v6201_v50 = vsel %vm4538_vm8, %v5921_v5, %v5989_v21  ;;  %v5991_v46 = vpop.permute.xlu0 %5990  ;;  %v7163_v60 = vor.u32 %v7162_v40, %v7158_v41 }
 0x47a   : > { %v10038_v7 = vcombine.low %v6198_v0, %v6201_v50  ;;  %v6204_v22 = vsel %vm4538_vm8, %v5928_v44, %v5991_v46  ;;  %v11381_v0 = vld [vmem:[%s15601_s4 + $0x40] sm:$0xff]   ;;  %v11383_v46 = vld [vmem:[%s15601_s4 + $0x48] sm:$0xff]   ;;  %v11387_v44 = vld [vmem:[%s15601_s4 + $0x58] sm:$0xff]  }
 0x47b   : > { %7213 = vrot.lane.b32.xlu0 %v7163_v60, %s15812_s26  ;;  %v11382_v50 = vld [vmem:[%s15601_s4] sm:$0xff]   ;;  %10658 = vmatprep.subr.bf16.mxu1 %v11381_v0 }
 0x47c   : > { %6752 = vmatmul.mubr.bf16.gmra.mrb[172].mxu1 %v10038_v7  ;;  %v6105_v12 = vpop.permute.xlu1 %6104  ;;  %v11384_v7 = vld [vmem:[%s15601_s4 + $0x8] sm:$0xff]  }
 0x47d   : > { %v6231_v4 = vsel %vm4538_vm8, %v14363_v61, %v6105_v12  ;;  %v6107_v30 = vpop.permute.xlu0 %6106  ;;  %10659 = vmatpush3.bf16.msra.mxu1 %v11382_v50 }
 0x47e   : > { %v10044_v29 = vcombine.low %v6228_v63, %v6231_v4  ;;  %v6234_v16 = vsel %vm4538_vm8, %v14367_v43, %v6107_v30  ;;  %10660 = vmatprep.subr.bf16.mxu1 %v11383_v46  ;;  %v11391_v30 = vld [vmem:[%s15601_s4 + $0x68] sm:$0xff]  }
 0x480   : > { %6759 = vmatprep.mubr.bf16.mxu1 %v10044_v29  ;;  %v5993_v15 = vpop.permute.xlu1 %5992 }
 0x481   : > { %v6207_v32 = vsel %vm4538_vm8, %v5935_v59, %v5993_v15  ;;  %v5995_v17 = vpop.permute.xlu0 %5994  ;;  %10661 = vmatpush3.bf16.msra.mxu1 %v11384_v7  ;;  %v11389_v59 = vld [vmem:[%s15601_s4 + $0x60] sm:$0xff]  }
 0x482   : > { %v10043_v6 = vcombine.low %v6204_v22, %v6207_v32  ;;  %v6210_v52 = vsel %vm4538_vm8, %v5942_v36, %v5995_v17  ;;  %10662 = vmatprep.subr.bf16.mxu1 %v11385_v10  ;;  %v11392_v32 = vld [vmem:[%s15601_s4 + $0x28] sm:$0xff]  }
 0x484   : > { %6760 = vmatmul.mubr.bf16.gmra.mrb[176].mxu1 %v10043_v6  ;;  %v6109_v61 = vpop.permute.xlu1 %6108 }
 0x485   : > { %v6237_v35 = vsel %vm4538_vm8, %v14374_v26, %v6109_v61  ;;  %10663 = vmatpush3.bf16.msra.mxu1 %v11386_v51 }
 0x486   : > { %v10049_v58 = vcombine.low %v6234_v16, %v6237_v35  ;;  %10664 = vmatprep.subr.bf16.mxu1 %v11387_v44 }
 0x488   : > { %6767 = vmatprep.mubr.bf16.mxu1 %v10049_v58  ;;  %v5997_v33 = vpop.permute.xlu1 %5996 }
 0x489   : > { %v6213_v62 = vsel %vm4538_vm8, %v5949_v14, %v5997_v33  ;;  %10665 = vmatpush3.bf16.msra.mxu1 %v11388_v31  ;;  %v14583_v14 = vld [vmem:[%s15608_s11] ss:$0 sm:$0xff] }
 0x48a   : > { %v10048_v3 = vcombine.low %v6210_v52, %v6213_v62  ;;  %10666 = vmatprep.subr.bf16.mxu1 %v11389_v59  ;;  %v14589_v62 = vld [vmem:[%s15609_s12] ss:$0 sm:$0xff] }
 0x48c   : > { %6768 = vmatmul.mubr.bf16.gmra.mrb[180].mxu1 %v10048_v3 }
 0x48d   : > { %10667 = vmatpush3.bf16.msra.mxu1 %v11390_v23 }
 0x48e   : > { %10668 = vmatprep.subr.bf16.mxu1 %v11391_v30 }
 0x491   : > { %10669 = vmatpush3.bf16.msra.mxu1 %v11392_v32 }
 0x4b8   : > { %v14511_v43 = vpop.f32.mrb[72].mxu0 }
 0x4b9   : > { %v14513_v8 = vpop.f32.mrb[73].mxu0 }
 0x4ba   : > { %v14515_v57 = vpop.f32.mrb[74].mxu0 }
 0x4bb   : > { %v14517_v26 = vpop.f32.mrb[75].mxu0 }
 0x4ca   : > { %v14519_v27 = vpop.f32.mrb[76].mxu0 }
 0x4cb   : > { %v14521_v42 = vpop.f32.mrb[77].mxu0 }
 0x4cc   : > { %v14523_v9 = vpop.f32.mrb[78].mxu0 }
 0x4cd   : > { %v14525_v53 = vpop.f32.mrb[79].mxu0 }
 0x513   : > { %v10586_v49 = vpop.f32.mrb[152].mxu1 }
 0x514   : > { %v10587_v34 = vpop.f32.mrb[153].mxu1 }
 0x515   : > { %v10588_v20 = vadd.f32 %v10587_v34, %v10586_v49  ;;  %v10589_v13 = vpop.f32.mrb[154].mxu1 }
 0x516   : > { %v10590_v37 = vpop.f32.mrb[155].mxu1 }
 0x517   : > { %v10591_v55 = vadd.f32 %v10590_v37, %v10589_v13 }
 0x52a   : > { %v10592_v24 = vpop.f32.mrb[156].mxu1 }
 0x52b   : > { %v10593_v28 = vpop.f32.mrb[157].mxu1 }
 0x52c   : > { %v10594_v38 = vadd.f32 %v10593_v28, %v10592_v24  ;;  %v10595_v5 = vpop.f32.mrb[158].mxu1 }
 0x52d   : > { %v10596_v19 = vpop.f32.mrb[159].mxu1 }
 0x52e   : > { %v14534_v21 = vadd.f32 %v10596_v19, %v10595_v5 }
 0x533   : > { %v10598_v11 = vpop.f32.mrb[160].mxu1 }
 0x534   : > { %v10599_v12 = vpop.f32.mrb[161].mxu1 }
 0x535   : > { %v14551_v63 = vadd.f32 %v10599_v12, %v10598_v11  ;;  %v10601_v18 = vpop.f32.mrb[162].mxu1 }
 0x536   : > { %v10602_v4 = vpop.f32.mrb[163].mxu1 }
 0x537   : > { %v14556_v29 = vadd.f32 %v10602_v4, %v10601_v18 }
 0x53f   : > { %v10604_v15 = vpop.f32.mrb[164].mxu1 }
 0x540   : > { %v10605_v22 = vpop.f32.mrb[165].mxu1 }
 0x541   : > { %v14576_v6 = vadd.f32 %v10605_v22, %v10604_v15  ;;  %v10607_v45 = vpop.f32.mrb[166].mxu1 }
 0x542   : > { %v10608_v25 = vpop.f32.mrb[167].mxu1 }
 0x543   : > { %v14578_v61 = vadd.f32 %v10608_v25, %v10607_v45 }
 0x547   : > { %v10626_v16 = vpop.f32.mrb[168].mxu1 }
 0x548   : > { %v10627_v56 = vpop.f32.mrb[169].mxu1 }
 0x549   : > { %v10628_v35 = vadd.f32 %v10627_v56, %v10626_v16  ;;  %v10629_v2 = vpop.f32.mrb[170].mxu1 }
 0x54a   : > { %v10630_v17 = vpop.f32.mrb[171].mxu1 }
 0x54b   : > { %v6746_v58 = vadd.f32 %v10628_v35, %v10588_v20  ;;  %v10631_v36 = vadd.f32 %v10630_v17, %v10629_v2  ;;  %v11394_v17 = vld [vmem:[%s15601_s4 + $0x70] sm:$0xff]  }
 0x54c   : > { %10670 = vmatprep.subr.bf16.mxu1 %v11394_v17 }
 0x54d   : > { %v6811_v33 = vadd.f32 %v14513_v8, %v6746_v58  ;;  %v6749_v52 = vadd.f32 %v10631_v36, %v10591_v55 }
 0x54f   : > { %v6848_v3 = vmul.f32 %v14583_v14, %v6811_v33  ;;  %v6814_v47 = vadd.f32 %v14517_v26, %v6749_v52  ;;  %v10632_v41 = vpop.f32.mrb[172].mxu1 }
 0x550   : > { %v10633_v48 = vpop.f32.mrb[173].mxu1 }
 0x551   : > { %v6863_v40 = vadd.f32 %v14589_v62, %v6848_v3  ;;  %v6849_v60 = vmul.f32 %v14583_v14, %v6814_v47  ;;  %v10634_v49 = vadd.f32 %v10633_v48, %v10632_v41  ;;  %v10635_v34 = vpop.f32.mrb[174].mxu1 }
 0x552   : > { %v10636_v20 = vpop.f32.mrb[175].mxu1 }
 0x553   : > { %v6871_v8 = vmax.f32 %v6863_v40, 0.0  ;;  %v6864_v13 = vadd.f32 %v14589_v62, %v6849_v60  ;;  %v6754_v37 = vadd.f32 %v10634_v49, %v10594_v38  ;;  %v10637_v55 = vadd.f32 %v10636_v20, %v10635_v34  ;;  %v11396_v20 = vld [vmem:[%s15601_s4 + $0x30] sm:$0xff]  }
 0x554   : > { %10671 = vmatpush3.bf16.msra.mxu1 %v11396_v20 }
 0x555   : > { %v6879_v24 = vpack.c.bf16 %v6871_v8, %v6871_v8  ;;  %v6872_v28 = vmax.f32 %v6864_v13, 0.0  ;;  %v6819_v5 = vadd.f32 %v14511_v43, %v6754_v37  ;;  %v6757_v26 = vadd.f32 %v10637_v55, %v14534_v21  ;;  %v11397_v8 = vld [vmem:[%s15601_s4 + $0x78] sm:$0xff]  }
 0x556   : > { %10672 = vmatprep.subr.bf16.mxu1 %v11397_v8 }
 0x557   : > { %v6888_v19 = vshrl.u32 %v6879_v24, 16  ;;  %v6880_v0 = vpack.c.bf16 %v6872_v28, %v6872_v28  ;;  %v6850_v50 = vmul.f32 %v14583_v14, %v6819_v5  ;;  %v10638_v46 = vpop.f32.mrb[176].mxu1  ;;  %v6822_v7 = vadd.f32 %v14515_v57, %v6757_v26 }
 0x558   : > { %v10639_v11 = vpop.f32.mrb[177].mxu1  ;;  %v6891_v12 = vshll.u32 %v6879_v24, 16 }
 0x559   : > { %v6890_v10 = vrot.slane %v6888_v19, 7  ;;  %v6895_v18 = vshrl.u32 %v6880_v0, 16  ;;  %v6865_v38 = vadd.f32 %v14589_v62, %v6850_v50  ;;  %v10641_v4 = vpop.f32.mrb[178].mxu1  ;;  %v6898_v51 = vshll.u32 %v6880_v0, 16 }
 0x55a   : > { %v6851_v44 = vmul.f32 %v14583_v14, %v6822_v7  ;;  %v10640_v43 = vadd.f32 %v10639_v11, %v10638_v46  ;;  %v10642_v31 = vpop.f32.mrb[179].mxu1 }
 0x55b   : > { %v6893_v21 = vor.u32 %v6891_v12, %v6890_v10  ;;  %v6897_v59 = vrot.slane %v6895_v18, 7  ;;  %v6873_v23 = vmax.f32 %v6865_v38, 0.0  ;;  %v10643_v30 = vadd.f32 %v10642_v31, %v10641_v4 }
 0x55c   : > { %v6866_v15 = vadd.f32 %v14589_v62, %v6851_v44  ;;  %v6762_v57 = vadd.f32 %v10640_v43, %v14551_v63 }
 0x55d   : > { %v6951_v22 = vsel %vm12221_vm7, 0, %v6893_v21  ;;  %v6900_v32 = vor.u32 %v6898_v51, %v6897_v59  ;;  %v6881_v45 = vpack.c.bf16 %v6873_v23, %v6873_v23  ;;  %v6765_v25 = vadd.f32 %v10643_v30, %v14556_v29 }
 0x55e   : > { %v6959_v56 = vsel %vm14035_vm14, %v6951_v22, 0  ;;  %v6874_v35 = vmax.f32 %v6866_v15, 0.0  ;;  %v6827_v2 = vadd.f32 %v14521_v42, %v6762_v57  ;;  %v11398_v22 = vld [vmem:[%s15601_s4 + $0x38] sm:$0xff]  }
 0x55f   : > { %v10093_v58 = vcombine.low %v6959_v56, %v6959_v56  ;;  %v10094_v36 = vcombine.high %v6959_v56, %v6959_v56  ;;  %v6952_v63 = vsel %vm12221_vm7, 0, %v6900_v32  ;;  %v6902_v33 = vshrl.u32 %v6881_v45, 16  ;;  %v10644_v52 = vpop.f32.mrb[180].mxu1  ;;  %10673 = vmatpush3.bf16.msra.mxu1 %v11398_v22 }
 0x560   : > { %v6960_v29 = vsel %vm14035_vm14, %v6952_v63, 0  ;;  %v6905_v3 = vshll.u32 %v6881_v45, 16  ;;  %v6882_v47 = vpack.c.bf16 %v6874_v35, %v6874_v35  ;;  %v6852_v41 = vmul.f32 %v14583_v14, %v6827_v2  ;;  %v10645_v48 = vpop.f32.mrb[181].mxu1 }
 0x561   : > { %7025 = vst.msk [vmem:[#allocation4 + $0x8] sm:$0xf] %vm5590_vm10, %v10093_v58  ;;  %v10095_v42 = vcombine.low %v6960_v29, %v6960_v29  ;;  %v10096_v40 = vcombine.high %v6960_v29, %v6960_v29  ;;  %v6904_v60 = vrot.slane %v6902_v33, 7  ;;  %v6830_v49 = vadd.f32 %v14525_v53, %v6765_v25  ;;  %v10647_v34 = vpop.f32.mrb[182].mxu1 }
 0x562   : > { %7026 = vst.msk [vmem:[#allocation4 + $0xc] sm:$0x1] %vm5592_vm11, %v10094_v36  ;;  %v6909_v13 = vshrl.u32 %v6882_v47, 16  ;;  %v6867_v37 = vadd.f32 %v14589_v62, %v6852_v41  ;;  %v10646_v55 = vadd.f32 %v10645_v48, %v10644_v52  ;;  %v10648_v24 = vpop.f32.mrb[183].mxu1  ;;  %v6912_v19 = vshll.u32 %v6882_v47, 16  ;;  %v11400_v41 = vld [vmem:[%s15601_s4 + $0xc0] sm:$0xff]  }
 0x563   : > { %7027 = vst.msk [vmem:[#allocation4 + $0x10] sm:$0xf] %vm5590_vm10, %v10095_v42  ;;  %v6907_v28 = vor.u32 %v6905_v3, %v6904_v60  ;;  %v6853_v53 = vmul.f32 %v14583_v14, %v6830_v49  ;;  %v10649_v5 = vadd.f32 %v10648_v24, %v10647_v34  ;;  %10698 = vmatprep.subr.bf16.mxu0 %v11400_v41  ;;  %v11406_v41 = vld [vmem:[%s15601_s4 + $0xd0] sm:$0xff]  }
 0x564   : > { %7028 = vst.msk [vmem:[#allocation4 + $0x14] sm:$0x1] %vm5592_vm11, %v10096_v40  ;;  %v6911_v26 = vrot.slane %v6909_v13, 7  ;;  %v6875_v0 = vmax.f32 %v6867_v37, 0.0  ;;  %v6770_v50 = vadd.f32 %v10646_v55, %v14576_v6  ;;  %v11402_v13 = vld [vmem:[%s15601_s4 + $0x80] sm:$0xff]  }
 0x565   : > { %v6953_v46 = vsel %vm12221_vm7, 0, %v6907_v28  ;;  %v6868_v7 = vadd.f32 %v14589_v62, %v6853_v53  ;;  %v6773_v11 = vadd.f32 %v10649_v5, %v14578_v61  ;;  %10699 = vmatpush3.bf16.msra.mxu0 %v11402_v13 }
 0x566   : > { %v6961_v10 = vsel %vm14035_vm14, %v6953_v46, 0  ;;  %v6914_v12 = vor.u32 %v6912_v19, %v6911_v26  ;;  %v6883_v18 = vpack.c.bf16 %v6875_v0, %v6875_v0  ;;  %v6835_v38 = vadd.f32 %v14519_v27, %v6770_v50 }
 0x567   : > { %v10097_v4 = vcombine.low %v6961_v10, %v6961_v10  ;;  %v10098_v51 = vcombine.high %v6961_v10, %v6961_v10  ;;  %v6876_v44 = vmax.f32 %v6868_v7, 0.0  ;;  %v6838_v6 = vadd.f32 %v14523_v9, %v6773_v11 }
 0x568   : > { %v6954_v43 = vsel %vm12221_vm7, 0, %v6914_v12  ;;  %v6916_v31 = vshrl.u32 %v6883_v18, 16  ;;  %v6919_v21 = vshll.u32 %v6883_v18, 16  ;;  %v6854_v59 = vmul.f32 %v14583_v14, %v6835_v38  ;;  %v7068_v61 = vld [vmem:[#allocation4 + $0x8] sm:$0xf] }
 0x569   : > { %7029 = vst.msk [vmem:[#allocation4 + $0x18] sm:$0xf] %vm5590_vm10, %v10097_v4  ;;  %v6962_v27 = vsel %vm14035_vm14, %v6954_v43, 0  ;;  %v6884_v23 = vpack.c.bf16 %v6876_v44, %v6876_v44  ;;  %v6855_v30 = vmul.f32 %v14583_v14, %v6838_v6  ;;  %v10125_v15 = vcombine.low %v7068_v61, %v7068_v61  ;;  %v14648_v9 = vld [vmem:[#allocation4 + $0x8] sm:$0xf]  ;;  %v14715_v6 = vld [vmem:[%s15601_s4 + $0x100] sm:$0xff]  }
 0x56a   : > { %7030 = vst.msk [vmem:[#allocation4 + $0x1c] sm:$0x1] %vm5592_vm11, %v10098_v51  ;;  %v14650_v57 = vld [vmem:[#allocation4 + $0xc] sm:$0x1]  ;;  %v10099_v32 = vcombine.low %v6962_v27, %v6962_v27  ;;  %v10100_v45 = vcombine.high %v6962_v27, %v6962_v27  ;;  %v6918_v25 = vrot.slane %v6916_v31, 7  ;;  %v6869_v56 = vadd.f32 %v14589_v62, %v6854_v59  ;;  %10952 = vmatprep.subr.bf16.mxu1 %v14715_v6 }
 0x56b   : > { %v14656_v35 = vld [vmem:[#allocation4 + $0x10] sm:$0xf]  ;;  %v6923_v17 = vshrl.u32 %v6884_v23, 16  ;;  %v6926_v14 = vshll.u32 %v6884_v23, 16  ;;  %v6870_v58 = vadd.f32 %v14589_v62, %v6855_v30  ;;  %7285 = vrot.lane.b32.xlu0 %v10125_v15, %s15812_s26  ;;  %v14664_v63 = vld [vmem:[#allocation4 + $0x14] sm:$0x1]  ;;  %v10110_v3 = vcombine.low %v14648_v9, %v14650_v57 }
 0x56c   : > { %v14658_v2 = vld [vmem:[#allocation4 + $0x10] sm:$0xf]  ;;  %v10126_v36 = vcombine.low %v14656_v35, %v14656_v35  ;;  %7031 = vst.msk [vmem:[#allocation4 + $0x20] sm:$0xf] %vm5590_vm10, %v10099_v32  ;;  %v6921_v52 = vor.u32 %v6919_v21, %v6918_v25  ;;  %v6877_v29 = vmax.f32 %v6869_v56, 0.0  ;;  %v11404_v23 = vld [vmem:[%s15601_s4 + $0xc8] sm:$0xff]  }
 0x56d   : > { %v14666_v33 = vld [vmem:[#allocation4 + $0x10] sm:$0xf]  ;;  %7032 = vst.msk [vmem:[#allocation4 + $0x24] sm:$0x1] %vm5592_vm11, %v10100_v45  ;;  %v14672_v62 = vld [vmem:[#allocation4 + $0x14] sm:$0x1]  ;;  %v10111_v40 = vcombine.low %v14658_v2, %v14664_v63  ;;  %10700 = vmatprep.subr.bf16.mxu0 %v11404_v23 }
 0x56e   : > { %v14674_v47 = vld [vmem:[#allocation4 + $0xc] sm:$0x1]  ;;  %v6925_v48 = vrot.slane %v6923_v17, 7  ;;  %v6878_v42 = vmax.f32 %v6870_v58, 0.0  ;;  %7287 = vrot.lane.b32.xlu1 %v10126_v36, %s15812_s26  ;;  %v6955_v49 = vsel %vm12221_vm7, 0, %v6921_v52  ;;  %v6885_v34 = vpack.c.bf16 %v6877_v29, %v6877_v29  ;;  %v11405_v45 = vld [vmem:[%s15601_s4 + $0x88] sm:$0xff]  }
 0x56f   : > { %v14683_v60 = vcombine.low %v7068_v61, %v14674_v47  ;;  %v7167_v20 = vshll.u32 %v10110_v3, 16  ;;  %v14689_v8 = vcombine.low %v14666_v33, %v14672_v62  ;;  %v6963_v37 = vsel %vm14035_vm14, %v6955_v49, 0  ;;  %10701 = vmatpush3.bf16.msra.mxu0 %v11405_v45 }
 0x570   : > { %v6928_v55 = vor.u32 %v6926_v14, %v6925_v48  ;;  %v6886_v24 = vpack.c.bf16 %v6878_v42, %v6878_v42  ;;  %v7165_v28 = vshrl.u32 %v10110_v3, 16  ;;  %v10101_v53 = vcombine.low %v6963_v37, %v6963_v37  ;;  %v14696_v0 = vld [vmem:[#allocation4 + $0x18] sm:$0xf]  ;;  %10702 = vmatprep.subr.bf16.mxu0 %v11406_v41 }
 0x571   : > { %v10102_v5 = vcombine.high %v6963_v37, %v6963_v37  ;;  %v6930_v26 = vshrl.u32 %v6885_v34, 16  ;;  %v6933_v19 = vshll.u32 %v6885_v34, 16  ;;  %v14698_v50 = vld [vmem:[#allocation4 + $0x18] sm:$0xf]  ;;  %v7169_v10 = vrot.slane %v7167_v20, 1 }
 0x572   : > { %v6956_v46 = vsel %vm12221_vm7, 0, %v6928_v55  ;;  %v6937_v7 = vshrl.u32 %v6886_v24, 16  ;;  %v6940_v11 = vshll.u32 %v6886_v24, 16  ;;  %v14702_v12 = vld [vmem:[#allocation4 + $0x1c] sm:$0x1]  ;;  %v10127_v4 = vcombine.low %v14696_v0, %v14696_v0 }
 0x573   : > { %7033 = vst.msk [vmem:[#allocation4 + $0x28] sm:$0xf] %vm5590_vm10, %v10101_v53  ;;  %v6964_v18 = vsel %vm14035_vm14, %v6956_v46, 0  ;;  %v6932_v38 = vrot.slane %v6930_v26, 7  ;;  %v7174_v51 = vshll.u32 %v10111_v40, 16  ;;  %v7170_v59 = vor.u32 %v7169_v10, %v7165_v28 }
 0x574   : > { %7034 = vst.msk [vmem:[#allocation4 + $0x2c] sm:$0x1] %vm5592_vm11, %v10102_v5  ;;  %v14710_v44 = vld [vmem:[#allocation4 + $0x18] sm:$0xf]  ;;  %v10103_v43 = vcombine.low %v6964_v18, %v6964_v18  ;;  %v10104_v31 = vcombine.high %v6964_v18, %v6964_v18  ;;  %v6939_v21 = vrot.slane %v6937_v7, 7  ;;  %7289 = vrot.lane.b32.xlu0 %v10127_v4, %s15812_s26  ;;  %v7172_v15 = vshrl.u32 %v10111_v40, 16 }
 0x575   : > { %v14717_v61 = vld [vmem:[#allocation4 + $0x20] sm:$0xf]  ;;  %v14719_v27 = vld [vmem:[#allocation4 + $0x1c] sm:$0x1]  ;;  %v6935_v30 = vor.u32 %v6933_v19, %v6932_v38  ;;  %v7176_v22 = vrot.slane %v7174_v51, 1  ;;  %v10112_v32 = vcombine.low %v14698_v50, %v14702_v12  ;;  %7215 = vrot.lane.b32.xlu1 %v7170_v59, %s15812_s26  ;;  %v7472_v17 = vshll.u32 %v14689_v8, 16 }
 0x576   : > { %7035 = vst.msk [vmem:[#allocation4 + $0x30] sm:$0xf] %vm5590_vm10, %v10103_v43  ;;  %v6942_v25 = vor.u32 %v6940_v11, %v6939_v21  ;;  %v10128_v56 = vcombine.low %v14717_v61, %v14717_v61  ;;  %v10150_v14 = vcombine.low %v14710_v44, %v14719_v27  ;;  %v7470_v29 = vshrl.u32 %v14689_v8, 16  ;;  %v14742_v3 = vld [vmem:[#allocation4 + $0x20] sm:$0xf]  ;;  %v11407_v5 = vld [vmem:[%s15601_s4 + $0x90] sm:$0xff]  }
 0x577   : > { %7036 = vst.msk [vmem:[#allocation4 + $0x34] sm:$0x1] %vm5592_vm11, %v10104_v31  ;;  %v6957_v58 = vsel %vm12221_vm7, 0, %v6935_v30  ;;  %v7177_v36 = vor.u32 %v7176_v22, %v7172_v15  ;;  %v7181_v52 = vshll.u32 %v10112_v32, 16  ;;  %v7179_v40 = vshrl.u32 %v10112_v32, 16  ;;  %10703 = vmatpush3.bf16.msra.mxu0 %v11407_v5  ;;  %v11410_v32 = vld [vmem:[%s15601_s4 + $0xd8] sm:$0xff]  }
 0x578   : > { %v6965_v48 = vsel %vm14035_vm14, %v6957_v58, 0  ;;  %v6958_v42 = vsel %vm12221_vm7, 0, %v6942_v25  ;;  %v7474_v49 = vrot.slane %v7472_v17, 1  ;;  %v14751_v34 = vld [vmem:[#allocation4 + $0x24] sm:$0x1]  ;;  %v7479_v54 = vshll.u32 %v10150_v14, 16  ;;  %10704 = vmatprep.subr.bf16.mxu0 %v11410_v32 }
 0x579   : > { %v10105_v20 = vcombine.low %v6965_v48, %v6965_v48  ;;  %v10106_v13 = vcombine.high %v6965_v48, %v6965_v48  ;;  %v6966_v8 = vsel %vm14035_vm14, %v6958_v42, 0  ;;  %7217 = vrot.lane.b32.xlu0 %v7177_v36, %s15812_s26  ;;  %v7183_v37 = vrot.slane %v7181_v52, 1  ;;  %v14756_v55 = vld [vmem:[#allocation4 + $0x14] sm:$0x1]  ;;  %7291 = vrot.lane.b32.xlu1 %v10128_v56, %s15812_s26  ;;  %v7103_v38 = vld [vmem:[#allocation4 + $0x24] sm:$0x1] }
 0x57a   : > { %v10107_v24 = vcombine.low %v6966_v8, %v6966_v8  ;;  %v10108_v28 = vcombine.high %v6966_v8, %v6966_v8  ;;  %v14759_v53 = vld [vmem:[#allocation4 + $0x28] sm:$0xf]  ;;  %v7475_v26 = vor.u32 %v7474_v49, %v7470_v29  ;;  %v10113_v19 = vcombine.low %v14742_v3, %v14751_v34  ;;  %v7111_v43 = vld [vmem:[#allocation4 + $0x20] sm:$0xe]  ;;  %v14784_v59 = vld [vmem:[#allocation4 + $0x1c] sm:$0x1] }
 0x57b   : > { %7037 = vst.msk [vmem:[#allocation4 + $0x38] sm:$0xf] %vm5590_vm10, %v10105_v20  ;;  %v7184_v16 = vor.u32 %v7183_v37, %v7179_v40  ;;  %v14768_v46 = vld [vmem:[#allocation4 + $0x2c] sm:$0x1]  ;;  %v7481_v7 = vrot.slane %v7479_v54, 1  ;;  %v14776_v18 = vcombine.low %v14656_v35, %v14756_v55  ;;  %v7477_v31 = vshrl.u32 %v10150_v14, 16 }
 0x57c   : > { %7038 = vst.msk [vmem:[#allocation4 + $0x3c] sm:$0x1] %vm5592_vm11, %v10106_v13  ;;  %7040 = vst.msk [vmem:[#allocation4 + $0x44] sm:$0x1] %vm5592_vm11, %v10108_v28  ;;  %v7072_v11 = vld [vmem:[#allocation4 + $0x28] sm:$0xf]  ;;  %v10114_v10 = vcombine.low %v14759_v53, %v14768_v46  ;;  %v10159_v17 = vcombine.low %v7111_v43, %v7103_v38  ;;  %v14799_v29 = vcombine.low %v14696_v0, %v14784_v59 }
 0x57d   : > { %7039 = vst.msk [vmem:[#allocation4 + $0x40] sm:$0xf] %vm5590_vm10, %v10107_v24  ;;  %7525 = vrot.lane.b32.xlu0 %v7475_v26, %s15812_s26  ;;  %v7188_v4 = vshll.u32 %v10113_v19, 16  ;;  %v14779_v51 = vld [vmem:[#allocation4 + $0x30] sm:$0xf]  ;;  %7219 = vrot.lane.b32.xlu1 %v7184_v16, %s15812_s26  ;;  %v10129_v23 = vcombine.low %v7072_v11, %v7072_v11  ;;  %v7482_v45 = vor.u32 %v7481_v7, %v7477_v31  ;;  %v7186_v14 = vshrl.u32 %v10113_v19, 16 }
 0x57e   : > { %v14782_v21 = vld [vmem:[#allocation4 + $0x34] sm:$0x1]  ;;  %v7104_v15 = vld [vmem:[#allocation4 + $0x2c] sm:$0x1]  ;;  %v7112_v22 = vld [vmem:[#allocation4 + $0x28] sm:$0xe] }
 0x57f   : > { %v7190_v30 = vrot.slane %v7188_v4, 1  ;;  %v10115_v35 = vcombine.low %v14779_v51, %v14782_v21  ;;  %v7073_v25 = vld [vmem:[#allocation4 + $0x30] sm:$0xf]  ;;  %v7195_v56 = vshll.u32 %v10114_v10, 16  ;;  %v10160_v52 = vcombine.low %v7112_v22, %v7104_v15  ;;  %v14801_v40 = vld [vmem:[#allocation4 + $0x20] sm:$0xf] }
 0x580   : > { %v10130_v41 = vcombine.low %v7073_v25, %v7073_v25  ;;  %v14803_v49 = vld [vmem:[#allocation4 + $0x24] sm:$0x1]  ;;  %v14807_v37 = vrot.slane %v10159_v17, 1  ;;  %v11412_v0 = vld [vmem:[%s15601_s4 + $0x98] sm:$0xff]   ;;  %v14815_v28 = vld [vmem:[#allocation4 + $0x2c] sm:$0x1]  ;;  %v10151_v4 = vcombine.low %v14801_v40, %v7103_v38 }
 0x581   : > { %7293 = vrot.lane.b32.xlu0 %v10129_v23, %s15812_s26  ;;  %7527 = vrot.lane.b32.xlu1 %v7482_v45, %s15812_s26  ;;  %v7191_v48 = vor.u32 %v7190_v30, %v7186_v14  ;;  %v7202_v42 = vshll.u32 %v10115_v35, 16  ;;  %v7197_v20 = vrot.slane %v7195_v56, 1  ;;  %v14809_v24 = vrot.slane %v10160_v52, 1  ;;  %v14817_v54 = vld [vmem:[#allocation4 + $0x34] sm:$0x1]  ;;  %v11413_v31 = vld [vmem:[%s15601_s4 + $0xe0] sm:$0xff]  }
 0x582   : > { %v14793_v58 = vld [vmem:[#allocation4 + $0x38] sm:$0xf]  ;;  %v7193_v5 = vshrl.u32 %v10114_v10, 16  ;;  %v14824_v26 = vcombine.low %v14717_v61, %v14803_v49  ;;  %10705 = vmatpush3.bf16.msra.mxu0 %v11412_v0  ;;  %v14827_v43 = vld [vmem:[#allocation4 + $0x28] sm:$0xf]  ;;  %v14833_v22 = vcombine.low %v7072_v11, %v14815_v28  ;;  %v14836_v61 = vcombine.low %v7073_v25, %v14817_v54 }
 0x583   : > { %v14795_v36 = vld [vmem:[#allocation4 + $0x3c] sm:$0x1]  ;;  %v7074_v13 = vld [vmem:[#allocation4 + $0x38] sm:$0xf]  ;;  %v7204_v7 = vrot.slane %v7202_v42, 1  ;;  %v7200_v45 = vshrl.u32 %v10115_v35, 16  ;;  %10706 = vmatprep.subr.bf16.mxu0 %v11413_v31  ;;  %v10152_v11 = vcombine.low %v14827_v43, %v7104_v15 }
 0x584   : > { %v10116_v8 = vcombine.low %v14793_v58, %v14795_v36  ;;  %v10131_v19 = vcombine.low %v7074_v13, %v7074_v13  ;;  %v7198_v23 = vor.u32 %v7197_v20, %v7193_v5  ;;  %v7084_v30 = vld [vmem:[#allocation4 + $0x8] sm:$0xe]  ;;  %v14838_v32 = vld [vmem:[#allocation4 + $0x3c] sm:$0x1]  ;;  %v7075_v38 = vld [vmem:[#allocation4 + $0x40] sm:$0xf] }
 0x585   : > { %7221 = vrot.lane.b32.xlu0 %v7191_v48, %s15812_s26  ;;  %7295 = vrot.lane.b32.xlu1 %v10130_v41, %s15812_s26  ;;  %v14841_v56 = vld [vmem:[#allocation4 + $0x44] sm:$0x1]  ;;  %v11414_v17 = vld [vmem:[%s15601_s4 + $0xa0] sm:$0xff]   ;;  %v7205_v14 = vor.u32 %v7204_v7, %v7200_v45  ;;  %v10141_v25 = vcombine.low %v7084_v30, %v14674_v47  ;;  %v7486_v52 = vshll.u32 %v10151_v4, 16  ;;  %v14850_v41 = vcombine.low %v7074_v13, %v14838_v32  ;;  %v14858_v0 = vld [vmem:[#allocation4 + $0x30] sm:$0xf] }
 0x586   : > { %v7209_v10 = vshll.u32 %v10116_v8, 16  ;;  %10707 = vmatpush3.bf16.msra.mxu0 %v11414_v17  ;;  %v11417_v35 = vld [vmem:[%s15601_s4 + $0xe8] sm:$0xff]   ;;  %v10132_v42 = vcombine.low %v7075_v38, %v7075_v38  ;;  %15815 = vst [vmem:[#allocation28_spill] sm:$0xff] %v14858_v0  ;;  %v7105_v15 = vld [vmem:[#allocation4 + $0x34] sm:$0x1]  ;;  %v14861_v47 = vcombine.low %v7075_v38, %v14841_v56  ;;  %v11420_v13 = vld [vmem:[%s15601_s4 + $0xf0] sm:$0xff]  }
 0x587   : > { %15814 = vst [vmem:[#allocation33_spill] sm:$0xff] %v14850_v41  ;;  %v11419_v48 = vld [vmem:[%s15601_s4 + $0xa8] sm:$0xff]   ;;  %v7085_v5 = vld [vmem:[#allocation4 + $0x10] sm:$0xe]  ;;  %10708 = vmatprep.subr.bf16.mxu0 %v11417_v35  ;;  %v7493_v7 = vshll.u32 %v10152_v11, 16  ;;  %v10153_v30 = vcombine.low %v14858_v0, %v7105_v15  ;;  %v11421_v38 = vld [vmem:[%s15601_s4 + $0xb0] sm:$0xff]  }
 0x588   : > { %v7211_v20 = vrot.slane %v7209_v10, 1  ;;  %15816 = vst [vmem:[#allocation32_spill] sm:$0xff] %v14861_v47  ;;  %v7086_v31 = vld [vmem:[#allocation4 + $0x18] sm:$0xe]  ;;  %v7488_v10 = vrot.slane %v7486_v52, 1  ;;  %v10142_v17 = vcombine.low %v7085_v5, %v14756_v55 }
 0x589   : > { %7297 = vrot.lane.b32.xlu0 %v10131_v19, %s15812_s26  ;;  %7223 = vrot.lane.b32.xlu1 %v7198_v23, %s15812_s26  ;;  %v7207_v19 = vshrl.u32 %v10116_v8, 16  ;;  %v7405_v23 = vrot.slane %v10141_v25, 1  ;;  %v11423_v8 = vld [vmem:[%s15601_s4 + $0xf8] sm:$0xff]   ;;  %v10143_v25 = vcombine.low %v7086_v31, %v14784_v59  ;;  %v14878_v52 = vld [vmem:[#allocation4 + $0x38] sm:$0xf] }
 0x58a   : > { %10709 = vmatpush3.bf16.msra.mxu0 %v11419_v48  ;;  %v7109_v35 = vld [vmem:[#allocation4 + $0x10] sm:$0xe]  ;;  %15817 = vst [vmem:[#allocation23_spill] sm:$0xff] %v14878_v52  ;;  %v7106_v48 = vld [vmem:[#allocation4 + $0x3c] sm:$0x1]  ;;  %v7406_v59 = vrot.slane %v10142_v17, 1 }
 0x58b   : > { %v7212_v45 = vor.u32 %v7211_v20, %v7207_v19  ;;  %10710 = vmatprep.subr.bf16.mxu0 %v11420_v13  ;;  %v7495_v20 = vrot.slane %v7493_v7, 1  ;;  %v7087_v19 = vld [vmem:[#allocation4 + $0x20] sm:$0xe]  ;;  %v11424_v13 = vld [vmem:[%s15601_s4 + $0xb8] sm:$0xff]   ;;  %v10157_v5 = vcombine.low %v7109_v35, %v14672_v62  ;;  %v7114_v16 = vld [vmem:[#allocation4 + $0x38] sm:$0xe]  ;;  %v10154_v31 = vcombine.low %v14878_v52, %v7106_v48 }
 0x58c   : > { %v14886_v47 = vld [vmem:[#allocation4 + $0x40] sm:$0xf]  ;;  %v14888_v41 = vld [vmem:[#allocation4 + $0x44] sm:$0x1]  ;;  %v10144_v52 = vcombine.low %v7087_v19, %v14803_v49  ;;  %v14909_v49 = vld [vmem:[#allocation4 + $0x4c] sm:$0x1] }
 0x58d   : > { %7225 = vrot.lane.b32.xlu0 %v7205_v14, %s15812_s26  ;;  %7299 = vrot.lane.b32.xlu1 %v10132_v42, %s15812_s26  ;;  %v7484_v14 = vshrl.u32 %v10151_v4, 16  ;;  %v7110_v42 = vld [vmem:[#allocation4 + $0x18] sm:$0xe]  ;;  %v7500_v4 = vshll.u32 %v10153_v30, 16 }
 0x58e   : > { %10711 = vmatpush3.bf16.msra.mxu0 %v11421_v38  ;;  %v10158_v7 = vcombine.low %v7110_v42, %v14719_v27  ;;  %v7407_v38 = vrot.slane %v10143_v25, 1  ;;  %v14900_v27 = vld [vmem:[#allocation4 + $0x48] sm:$0xf] }
 0x58f   : > { %v7489_v55 = vor.u32 %v7488_v10, %v7484_v14  ;;  %10712 = vmatprep.subr.bf16.mxu0 %v11423_v8  ;;  %v7491_v10 = vshrl.u32 %v10152_v11, 16  ;;  %v10162_v14 = vcombine.low %v7114_v16, %v7106_v48  ;;  %v7502_v0 = vrot.slane %v7500_v4, 1  ;;  %v7088_v25 = vld [vmem:[#allocation4 + $0x28] sm:$0xe] }
 0x590   : > { %v14895_v62 = vrot.slane %v10158_v7, 1  ;;  %v10155_v8 = vcombine.low %v14886_v47, %v14888_v41  ;;  %v7507_v11 = vshll.u32 %v10154_v31, 16  ;;  %v7498_v16 = vshrl.u32 %v10153_v30, 16 }
 0x591   : > { %7413 = vrot.lane.b32.xlu0 %v7405_v23, %s15812_s26  ;;  %7227 = vrot.lane.b32.xlu1 %v7212_v45, %s15812_s26  ;;  %v7113_v23 = vld [vmem:[#allocation4 + $0x30] sm:$0xe]  ;;  %v14893_v45 = vrot.slane %v10157_v5, 1  ;;  %v7496_v35 = vor.u32 %v7495_v20, %v7491_v10  ;;  %v14906_v5 = vrot.slane %v10162_v14, 1  ;;  %v10145_v19 = vcombine.low %v7088_v25, %v14815_v28 }
 0x592   : > { %v10161_v17 = vcombine.low %v7113_v23, %v7105_v15  ;;  %10713 = vmatpush3.bf16.msra.mxu0 %v11424_v13  ;;  %v10156_v15 = vcombine.low %v14900_v27, %v14909_v49  ;;  %v7503_v20 = vor.u32 %v7502_v0, %v7498_v16  ;;  %v7514_v4 = vshll.u32 %v10155_v8, 16 }
 0x593   : > { %v10169_v42 = vcombine.low %v14893_v45, %v14895_v62  ;;  %v7408_v13 = vrot.slane %v10144_v52, 1  ;;  %v7509_v23 = vrot.slane %v7507_v11, 1  ;;  %v7505_v30 = vshrl.u32 %v10154_v31, 16  ;;  %v7091_v31 = vld [vmem:[#allocation4 + $0x40] sm:$0xe] }
 0x594   : > { %v7521_v7 = vshll.u32 %v10156_v15, 16  ;;  %v7409_v10 = vrot.slane %v10145_v19, 1  ;;  %v7512_v0 = vshrl.u32 %v10155_v8, 16  ;;  %v7519_v28 = vshrl.u32 %v10156_v15, 16  ;;  %v7059_v15 = vld [vmem:[#allocation4] sm:$0xe] }
 0x595   : > { %7529 = vrot.lane.b32.xlu0 %v7489_v55, %s15812_s26  ;;  %7415 = vrot.lane.b32.xlu1 %v7406_v59, %s15812_s26  ;;  %v14904_v55 = vrot.slane %v10161_v17, 1  ;;  %v7089_v59 = vld [vmem:[#allocation4 + $0x30] sm:$0xe]  ;;  %v7510_v17 = vor.u32 %v7509_v23, %v7505_v30  ;;  %v7347_v45 = vshrl.u32 %v14824_v26, 16 }
 0x596   : > { %v10146_v14 = vcombine.low %v7089_v59, %v14817_v54  ;;  %v7523_v52 = vrot.slane %v7521_v7, 1  ;;  %v10148_v54 = vcombine.low %v7091_v31, %v14841_v56 }
 0x597   : > { %v10179_v48 = vcombine.low %v14904_v55, %v14906_v5  ;;  %v7361_v55 = vshrl.u32 %v14836_v61, 16 }
 0x598   : > { %v7410_v16 = vrot.slane %v10146_v14, 1  ;;  %v7412_v8 = vrot.slane %v10148_v54, 1  ;;  %v7061_v14 = vld [vmem:[#allocation4 + $0x10] sm:$0xe] }
 0x599   : > { %7417 = vrot.lane.b32.xlu0 %v7407_v38, %s15812_s26  ;;  %7531 = vrot.lane.b32.xlu1 %v7496_v35, %s15812_s26  ;;  %v7516_v38 = vrot.slane %v7514_v4, 1  ;;  %v7090_v35 = vld [vmem:[#allocation4 + $0x38] sm:$0xe]  ;;  %v7214_v4 = vpop.permute.xlu0 %7213 }
 0x59a   : > { %v10147_v25 = vcombine.low %v7090_v35, %v14838_v32  ;;  %v7060_v32 = vld [vmem:[#allocation4 + $0x8] sm:$0xe]  ;;  %v7062_v35 = vld [vmem:[#allocation4 + $0x18] sm:$0xe] }
 0x59b   : > { %v7517_v11 = vor.u32 %v7516_v38, %v7512_v0  ;;  %v10118_v23 = vcombine.low %v7060_v32, %v14650_v57  ;;  %v10119_v0 = vcombine.low %v7061_v14, %v14664_v63  ;;  %v7575_v57 = vsel %vm4538_vm8, %v14527_v39, %v7214_v4  ;;  %v7063_v4 = vld [vmem:[#allocation4 + $0x20] sm:$0xe]  ;;  %v7064_v32 = vld [vmem:[#allocation4 + $0x28] sm:$0xe] }
 0x59c   : > { %v7411_v19 = vrot.slane %v10147_v25, 1 }
 0x59d   : > { %7533 = vrot.lane.b32.xlu0 %v7503_v20, %s15812_s26  ;;  %7419 = vrot.lane.b32.xlu1 %v7408_v13, %s15812_s26  ;;  %v7524_v20 = vor.u32 %v7523_v52, %v7519_v28  ;;  %v10117_v13 = vcombine.low %v7059_v15, %v14529_v1  ;;  %v7254_v7 = vrot.slane %v10118_v23, 1  ;;  %v10120_v52 = vcombine.low %v7062_v35, %v14702_v12 }
 0x59e   : > { %v7255_v31 = vrot.slane %v10119_v0, 1 }
 0x59f   : > { %v7253_v59 = vrot.slane %v10117_v13, 1 }
 0x5a1   : > { %7421 = vrot.lane.b32.xlu0 %v7409_v10, %s15812_s26  ;;  %7535 = vrot.lane.b32.xlu1 %v7510_v17, %s15812_s26 }
 0x5a5   : > { %7537 = vrot.lane.b32.xlu0 %v7517_v11, %s15812_s26  ;;  %7423 = vrot.lane.b32.xlu1 %v7410_v16, %s15812_s26  ;;  %v11409_v16 = vld [vmem:[%s15601_s4 + $0x108] sm:$0xff]  }
 0x5a9   : > { %7425 = vrot.lane.b32.xlu0 %v7411_v19, %s15812_s26  ;;  %7539 = vrot.lane.b32.xlu1 %v7524_v20, %s15812_s26  ;;  %v7256_v20 = vrot.slane %v10120_v52, 1 }
 0x5ad   : > { %7427 = vrot.lane.b32.xlu1 %v7412_v8, %s15812_s26 }
 0x5dd   : > { %v7286_v30 = vpop.permute.xlu0 %7285 }
 0x5de   : > { %v7599_v56 = vsel %vm4538_vm8, %v7253_v59, %v7286_v30  ;;  %v10121_v30 = vcombine.low %v7063_v4, %v14751_v34  ;;  %v7065_v34 = vld [vmem:[#allocation4 + $0x30] sm:$0xe] }
 0x5e0   : > { %v7288_v10 = vpop.permute.xlu1 %7287 }
 0x5e1   : > { %v7602_v38 = vsel %vm4538_vm8, %v7254_v7, %v7288_v10  ;;  %v10122_v10 = vcombine.low %v7064_v32, %v14768_v46 }
 0x5e2   : > { %v10166_v17 = vcombine.low %v7599_v56, %v7602_v38 }
 0x5e3   : > { %v7258_v14 = vrot.slane %v10122_v10, 1  ;;  %v7342_v10 = vshll.u32 %v14799_v29, 16 }
 0x5e4   : > { %8109 = vmatprep.mubr.bf16.mxu1 %v10166_v17  ;;  %v7257_v17 = vrot.slane %v10121_v30, 1 }
 0x5e6   : > { %v7290_v28 = vpop.permute.xlu0 %7289 }
 0x5e7   : > { %v7216_v1 = vpop.permute.xlu1 %7215  ;;  %v7605_v54 = vsel %vm4538_vm8, %v7255_v31, %v7290_v28  ;;  %v7066_v28 = vld [vmem:[#allocation4 + $0x38] sm:$0xe] }
 0x5e8   : > { %v7578_v11 = vsel %vm4538_vm8, %v14648_v9, %v7216_v1  ;;  %v11416_v9 = vld [vmem:[%s15601_s4 + $0x110] sm:$0xff]  }
 0x5e9   : > { %v10165_v25 = vcombine.low %v7575_v57, %v7578_v11 }
 0x5eb   : > { %v7218_v19 = vpop.permute.xlu0 %7217  ;;  %8110 = vmatmul.mubr.bf16.vlgmr.msra.gmra.mrb[184].mxu1 %v10165_v25  ;;  %v7292_v63 = vpop.permute.xlu1 %7291 }
 0x5ec   : > { %v7608_v12 = vsel %vm4538_vm8, %v7256_v20, %v7292_v63  ;;  %10953 = vmatpush3.bf16.msra.mxu1 %v14715_v6  ;;  %v7581_v13 = vsel %vm4538_vm8, %v14658_v2, %v7218_v19  ;;  %v11422_v6 = vld [vmem:[%s15601_s4 + $0x118] sm:$0xff]  }
 0x5ed   : > { %v10171_v39 = vcombine.low %v7605_v54, %v7608_v12  ;;  %10954 = vmatprep.subr.bf16.mxu1 %v11409_v16  ;;  %v7328_v54 = vshll.u32 %v14683_v60, 16  ;;  %v7335_v12 = vshll.u32 %v14776_v18, 16 }
 0x5ef   : > { %v7526_v8 = vpop.permute.xlu0 %7525  ;;  %8117 = vmatprep.mubr.bf16.mxu1 %v10171_v39  ;;  %v7220_v15 = vpop.permute.xlu1 %7219 }
 0x5f0   : > { %v7584_v23 = vsel %vm4538_vm8, %v14698_v50, %v7220_v15  ;;  %10955 = vmatpush3.bf16.msra.mxu1 %v11409_v16  ;;  %v7647_v2 = vsel %vm4538_vm8, %v14666_v33, %v7526_v8  ;;  %v10123_v33 = vcombine.low %v7065_v34, %v14782_v21  ;;  %v7330_v8 = vrot.slane %v7328_v54, 1 }
 0x5f1   : > { %v10170_v59 = vcombine.low %v7581_v13, %v7584_v23  ;;  %10956 = vmatprep.subr.bf16.mxu1 %v11416_v9  ;;  %v7337_v15 = vrot.slane %v7335_v12, 1  ;;  %v7326_v13 = vshrl.u32 %v14683_v60, 16  ;;  %v7333_v23 = vshrl.u32 %v14776_v18, 16 }
 0x5f2   : > { %v7259_v20 = vrot.slane %v10123_v33, 1  ;;  %v7344_v18 = vrot.slane %v7342_v10, 1  ;;  %v7354_v54 = vshrl.u32 %v14833_v22, 16 }
 0x5f3   : > { %v7294_v7 = vpop.permute.xlu0 %7293  ;;  %8118 = vmatmul.mubr.bf16.gmra.mrb[188].mxu1 %v10170_v59  ;;  %v7528_v56 = vpop.permute.xlu1 %7527  ;;  %v7338_v30 = vor.u32 %v7337_v15, %v7333_v23 }
 0x5f4   : > { %v7650_v50 = vsel %vm4538_vm8, %v14710_v44, %v7528_v56  ;;  %10957 = vmatpush3.bf16.msra.mxu1 %v11416_v9  ;;  %v7611_v46 = vsel %vm4538_vm8, %v7257_v17, %v7294_v7  ;;  %v10124_v44 = vcombine.low %v7066_v28, %v14795_v36  ;;  %v7349_v56 = vshll.u32 %v14824_v26, 16  ;;  %v7115_v17 = vld [vmem:[#allocation4 + $0x40] sm:$0xe] }
 0x5f5   : > { %v10168_v38 = vcombine.low %v7647_v2, %v7650_v50  ;;  %10958 = vmatprep.subr.bf16.mxu1 %v11422_v6  ;;  %v7340_v28 = vshrl.u32 %v14799_v29, 16 }
 0x5f6   : > { %v7260_v19 = vrot.slane %v10124_v44, 1  ;;  %v7363_v44 = vshll.u32 %v14836_v61, 16 }
 0x5f7   : > { %v7222_v35 = vpop.permute.xlu0 %7221  ;;  %8174 = vmatprep.mubr.bf16.mxu0 %v10168_v38  ;;  %v7296_v0 = vpop.permute.xlu1 %7295  ;;  %v7351_v38 = vrot.slane %v7349_v56, 1 }
 0x5f8   : > { %v7614_v52 = vsel %vm4538_vm8, %v7258_v14, %v7296_v0  ;;  %10959 = vmatpush3.bf16.msra.mxu1 %v11422_v6  ;;  %v7587_v25 = vsel %vm4538_vm8, %v14742_v3, %v7222_v35  ;;  %v7331_v6 = vor.u32 %v7330_v8, %v7326_v13  ;;  %v7116_v14 = vld [vmem:[#allocation4 + $0x48] sm:$0xe] }
 0x5f9   : > { %v10176_v1 = vcombine.low %v7611_v46, %v7614_v52  ;;  %v10164_v46 = vcombine.low %v7116_v14, %v14909_v49  ;;  %v7345_v52 = vor.u32 %v7344_v18, %v7340_v28  ;;  %v11437_v14 = vld [vmem:[%s15602_s5 + $0x20] ss:$8 sps:$4 sm:$0xff]  }
 0x5fa   : > { %v11443_v28 = vld [vmem:[%s15602_s5 + $0x40] ss:$8 sps:$4 sm:$0xff]  }
 0x5fb   : > { %v7298_v57 = vpop.permute.xlu0 %7297  ;;  %8125 = vmatprep.mubr.bf16.mxu1 %v10176_v1  ;;  %v7224_v11 = vpop.permute.xlu1 %7223  ;;  %v7352_v1 = vor.u32 %v7351_v38, %v7347_v45  ;;  %v11434_v38 = vld [vmem:[%s15602_s5 + $0x10] ss:$8 sps:$4 sm:$0xff]   ;;  %v11448_v45 = vld [vmem:[%s15602_s5 + $0x54] ss:$8 sps:$4 sm:$0xff]  }
 0x5fc   : > { %v7590_v16 = vsel %vm4538_vm8, %v14759_v53, %v7224_v11  ;;  %v7617_v36 = vsel %vm4538_vm8, %v7259_v20, %v7298_v57  ;;  %v7356_v57 = vshll.u32 %v14833_v22, 16  ;;  %v7572_v11 = vrot.slane %v10164_v46, 1  ;;  %v11449_v46 = vld [vmem:[%s15602_s5 + $0x60] ss:$8 sps:$4 sm:$0xff]  }
 0x5fd   : > { %v10175_v31 = vcombine.low %v7587_v25, %v7590_v16 }
 0x5fe   : > { %v7358_v25 = vrot.slane %v7356_v57, 1  ;;  %v11455_v57 = vld [vmem:[%s15602_s5 + $0x80] ss:$8 sps:$4 sm:$0xff]  }
 0x5ff   : > { %v7226_v63 = vpop.permute.xlu0 %7225  ;;  %8126 = vmatmul.mubr.bf16.gmra.mrb[192].mxu1 %v10175_v31  ;;  %v7300_v21 = vpop.permute.xlu1 %7299  ;;  %v7365_v31 = vrot.slane %v7363_v44, 1  ;;  %v11460_v44 = vld [vmem:[%s15602_s5 + $0x94] ss:$8 sps:$4 sm:$0xff]  }
 0x600   : > { %v7620_v39 = vsel %vm4538_vm8, %v7260_v19, %v7300_v21  ;;  %v7593_v4 = vsel %vm4538_vm8, %v14779_v51, %v7226_v63  ;;  %v15820_v19 = vld [vmem:[#allocation23_spill] sm:$0xff]  ;;  %v7359_v12 = vor.u32 %v7358_v25, %v7354_v54  ;;  %v11466_v25 = vld [vmem:[%s15602_s5 + $0xb4] ss:$8 sps:$4 sm:$0xff]  }
 0x601   : > { %v10181_v9 = vcombine.low %v7617_v36, %v7620_v39  ;;  %v7366_v21 = vor.u32 %v7365_v31, %v7361_v55  ;;  %v15821_v36 = vld [vmem:[#allocation33_spill] sm:$0xff] }
 0x602   : > { %v7370_v39 = vshll.u32 %v15821_v36, 16 }
 0x603   : > { %v7414_v3 = vpop.permute.xlu0 %7413  ;;  %8133 = vmatprep.mubr.bf16.mxu1 %v10181_v9  ;;  %v7228_v53 = vpop.permute.xlu1 %7227  ;;  %v15822_v9 = vld [vmem:[#allocation32_spill] sm:$0xff] }
 0x604   : > { %v7596_v32 = vsel %vm4538_vm8, %v14793_v58, %v7228_v53  ;;  %v7623_v50 = vsel %vm4538_vm8, %v7331_v6, %v7414_v3  ;;  %v7377_v8 = vshll.u32 %v15822_v9, 16  ;;  %v7368_v6 = vshrl.u32 %v15821_v36, 16  ;;  %v11475_v36 = vld [vmem:[%s15602_s5 + $0xe4] ss:$8 sps:$4 sm:$0xff]  }
 0x605   : > { %v10180_v59 = vcombine.low %v7593_v4, %v7596_v32  ;;  %v7372_v32 = vrot.slane %v7370_v39, 1  ;;  %v11473_v39 = vld [vmem:[%s15602_s5 + $0xe0] ss:$8 sps:$4 sm:$0xff]  }
 0x606   : > { %v7379_v61 = vrot.slane %v7377_v8, 1 }
 0x607   : > { %v7530_v7 = vpop.permute.xlu0 %7529  ;;  %8134 = vmatmul.mubr.bf16.gmra.mrb[196].mxu1 %v10180_v59  ;;  %v7416_v2 = vpop.permute.xlu1 %7415  ;;  %v7373_v56 = vor.u32 %v7372_v32, %v7368_v6 }
 0x608   : > { %v7626_v51 = vsel %vm4538_vm8, %v7338_v30, %v7416_v2  ;;  %10960 = vmatprep.mubr.msk.bf16.mxu1 %vm4538_vm8, %v10169_v42  ;;  %v7653_v0 = vsel %vm4538_vm8, %v14801_v40, %v7530_v7  ;;  %v10163_v42 = vcombine.low %v7115_v17, %v14888_v41  ;;  %v15818_v40 = vcombine.low %v14807_v37, %v14809_v24  ;;  %v15819_v24 = vld [vmem:[#allocation28_spill] sm:$0xff] }
 0x609   : > { %v10167_v60 = vcombine.low %v7623_v50, %v7626_v51  ;;  %v7375_v30 = vshrl.u32 %v15822_v9, 16  ;;  %v11439_v17 = vld [vmem:[%s15602_s5 + $0x24] ss:$8 sps:$4 sm:$0xff]  }
 0x60a   : > { %v7571_v49 = vrot.slane %v10163_v42, 1  ;;  %v11451_v42 = vld [vmem:[%s15602_s5 + $0x64] ss:$8 sps:$4 sm:$0xff]  }
 0x60b   : > { %v7418_v58 = vpop.permute.xlu0 %7417  ;;  %8175 = vmatmul.mubr.bf16.vlgmr.msra.gmra.mrb[80].mxu0 %v10167_v60  ;;  %v7532_v35 = vpop.permute.xlu1 %7531  ;;  %v7380_v2 = vor.u32 %v7379_v61, %v7375_v30 }
 0x60c   : > { %v7656_v34 = vsel %vm4538_vm8, %v14827_v43, %v7532_v35  ;;  %v7629_v26 = vsel %vm4538_vm8, %v7345_v52, %v7418_v58  ;;  %v11436_v58 = vld [vmem:[%s15602_s5 + $0x14] ss:$8 sps:$4 sm:$0xff]  }
 0x60d   : > { %v10173_v62 = vcombine.low %v7653_v0, %v7656_v34  ;;  %v11442_v35 = vld [vmem:[%s15602_s5 + $0x34] ss:$8 sps:$4 sm:$0xff]   ;;  %v11440_v0 = vld [vmem:[%s15602_s5 + $0x30] ss:$8 sps:$4 sm:$0xff]   ;;  %v11445_v34 = vld [vmem:[%s15602_s5 + $0x44] ss:$8 sps:$4 sm:$0xff]  }
 0x60e   : > { %v11454_v52 = vld [vmem:[%s15602_s5 + $0x74] ss:$8 sps:$4 sm:$0xff]  }
 0x60f   : > { %v7534_v33 = vpop.permute.xlu0 %7533  ;;  %8182 = vmatprep.mubr.bf16.mxu0 %v10173_v62  ;;  %10961 = vmatmul.mubr.msk.bf16.vlgmr.msra.gmra.mrb[200].mxu1 %vm4538_vm8, %v15818_v40  ;;  %v7420_v29 = vpop.permute.xlu1 %7419  ;;  %v11446_v62 = vld [vmem:[%s15602_s5 + $0x50] ss:$8 sps:$4 sm:$0xff]  }
 0x610   : > { %v7632_v43 = vsel %vm4538_vm8, %v7352_v1, %v7420_v29  ;;  %10964 = vmatprep.mubr.msk.bf16.mxu1 %vm4538_vm8, %v10179_v48  ;;  %v7659_v20 = vsel %vm4538_vm8, %v15819_v24, %v7534_v33  ;;  %v10184_v48 = vcombine.low %v7571_v49, %v7572_v11  ;;  %v11452_v1 = vld [vmem:[%s15602_s5 + $0x70] ss:$8 sps:$4 sm:$0xff]   ;;  %v11457_v33 = vld [vmem:[%s15602_s5 + $0x84] ss:$8 sps:$4 sm:$0xff]  }
 0x611   : > { %v10172_v41 = vcombine.low %v7629_v26, %v7632_v43  ;;  %v11458_v40 = vld [vmem:[%s15602_s5 + $0x90] ss:$8 sps:$4 sm:$0xff]   ;;  %v11463_v29 = vld [vmem:[%s15602_s5 + $0xa4] ss:$8 sps:$4 sm:$0xff]  }
 0x612   : > { %v11469_v24 = vld [vmem:[%s15602_s5 + $0xc4] ss:$8 sps:$4 sm:$0xff]  }
 0x613   : > { %v7422_v16 = vpop.permute.xlu0 %7421  ;;  %8183 = vmatmul.mubr.bf16.gmra.mrb[84].mxu0 %v10172_v41  ;;  %v7536_v37 = vpop.permute.xlu1 %7535  ;;  %v11461_v41 = vld [vmem:[%s15602_s5 + $0xa0] ss:$8 sps:$4 sm:$0xff]  }
 0x614   : > { %v7662_v63 = vsel %vm4538_vm8, %v15820_v19, %v7536_v37  ;;  %v7635_v53 = vsel %vm4538_vm8, %v7359_v12, %v7422_v16  ;;  %v11464_v37 = vld [vmem:[%s15602_s5 + $0xb0] ss:$8 sps:$4 sm:$0xff]  }
 0x615   : > { %v10178_v5 = vcombine.low %v7659_v20, %v7662_v63  ;;  %v11467_v63 = vld [vmem:[%s15602_s5 + $0xc0] ss:$8 sps:$4 sm:$0xff]  }
 0x617   : > { %8190 = vmatprep.mubr.bf16.mxu0 %v10178_v5  ;;  %10965 = vmatmul.mubr.msk.bf16.gmra.mrb[204].mxu1 %vm4538_vm8, %v10184_v48  ;;  %v7424_v3 = vpop.permute.xlu1 %7423  ;;  %v7538_v15 = vpop.permute.xlu0 %7537  ;;  %v11472_v5 = vld [vmem:[%s15602_s5 + $0xd4] ss:$8 sps:$4 sm:$0xff]  }
 0x618   : > { %v7638_v4 = vsel %vm4538_vm8, %v7366_v21, %v7424_v3  ;;  %v7665_v23 = vsel %vm4538_vm8, %v14886_v47, %v7538_v15  ;;  %v11431_v47 = vld [vmem:[%s15602_s5] ss:$8 sps:$4 sm:$0xff]   ;;  %v11470_v21 = vld [vmem:[%s15602_s5 + $0xd0] ss:$8 sps:$4 sm:$0xff]  }
 0x619   : > { %v10177_v22 = vcombine.low %v7635_v53, %v7638_v4 }
 0x61b   : > { %8191 = vmatmul.mubr.bf16.gmra.mrb[88].mxu0 %v10177_v22  ;;  %v7540_v13 = vpop.permute.xlu1 %7539  ;;  %v7426_v10 = vpop.permute.xlu0 %7425 }
 0x61c   : > { %v7668_v59 = vsel %vm4538_vm8, %v14900_v27, %v7540_v13  ;;  %v7641_v51 = vsel %vm4538_vm8, %v7373_v56, %v7426_v10  ;;  %v11433_v27 = vld [vmem:[%s15602_s5 + $0x4] ss:$8 sps:$4 sm:$0xff]  }
 0x61d   : > { %v10183_v7 = vcombine.low %v7665_v23, %v7668_v59  ;;  %9185 = vmatprep.subr.bf16.mxu0 %v11433_v27 }
 0x61e   : > { %9186 = vmatpush1.bf16.msra.mxu0 %v11431_v47 }
 0x61f   : > { %8198 = vmatprep.mubr.bf16.mxu0 %v10183_v7  ;;  %v7428_v50 = vpop.permute.xlu1 %7427  ;;  %9187 = vmatprep.subr.bf16.mxu0 %v11436_v58 }
 0x620   : > { %v7644_v60 = vsel %vm4538_vm8, %v7380_v2, %v7428_v50 }
 0x621   : > { %v10182_v18 = vcombine.low %v7641_v51, %v7644_v60 }
 0x622   : > { %9188 = vmatpush1.bf16.msra.mxu0 %v11434_v38  ;;  %v15128_v38 = vld [vmem:[%s15611_s14] ss:$0 sm:$0xff] }
 0x623   : > { %8199 = vmatmul.mubr.bf16.gmra.mrb[92].mxu0 %v10182_v18  ;;  %9189 = vmatprep.subr.bf16.mxu0 %v11439_v17  ;;  %v15123_v18 = vld [vmem:[%s15610_s13] ss:$0 sm:$0xff] }
 0x626   : > { %9190 = vmatpush1.bf16.msra.mxu0 %v11437_v14 }
 0x627   : > { %9191 = vmatprep.subr.bf16.mxu0 %v11442_v35 }
 0x62a   : > { %9192 = vmatpush1.bf16.msra.mxu0 %v11440_v0 }
 0x62b   : > { %9193 = vmatprep.subr.bf16.mxu0 %v11445_v34 }
 0x62e   : > { %9194 = vmatpush1.bf16.msra.mxu0 %v11443_v28 }
 0x62f   : > { %9195 = vmatprep.subr.bf16.mxu0 %v11448_v45 }
 0x632   : > { %9196 = vmatpush1.bf16.msra.mxu0 %v11446_v62 }
 0x633   : > { %9197 = vmatprep.subr.bf16.mxu0 %v11451_v42 }
 0x636   : > { %9198 = vmatpush1.bf16.msra.mxu0 %v11449_v46 }
 0x637   : > { %9199 = vmatprep.subr.bf16.mxu0 %v11454_v52  ;;  %v15823_v52 = vld [vmem:[#allocation27_spill] sm:$0xff] }
 0x63a   : > { %9200 = vmatpush1.bf16.msra.mxu0 %v11452_v1 }
 0x63b   : > { %9201 = vmatprep.subr.bf16.mxu0 %v11457_v33 }
 0x63e   : > { %9202 = vmatpush1.bf16.msra.mxu0 %v11455_v57 }
 0x63f   : > { %9203 = vmatprep.subr.bf16.mxu0 %v11460_v44 }
 0x642   : > { %9204 = vmatpush1.bf16.msra.mxu0 %v11458_v40 }
 0x643   : > { %9205 = vmatprep.subr.bf16.mxu0 %v11463_v29 }
 0x646   : > { %9206 = vmatpush1.bf16.msra.mxu0 %v11461_v41 }
 0x647   : > { %9207 = vmatprep.subr.bf16.mxu0 %v11466_v25 }
 0x64a   : > { %9208 = vmatpush1.bf16.msra.mxu0 %v11464_v37 }
 0x64b   : > { %9209 = vmatprep.subr.bf16.mxu0 %v11469_v24 }
 0x64e   : > { %9210 = vmatpush1.bf16.msra.mxu0 %v11467_v63 }
 0x64f   : > { %9211 = vmatprep.subr.bf16.mxu0 %v11472_v5 }
 0x652   : > { %9212 = vmatpush1.bf16.msra.mxu0 %v11470_v21 }
 0x653   : > { %9213 = vmatprep.subr.bf16.mxu0 %v11475_v36 }
 0x656   : > { %9214 = vmatpush1.bf16.msra.mxu0 %v11473_v39 }
 0x6be   : > { %v10674_v26 = vpop.f32.mrb[184].mxu1 }
 0x6bf   : > { %v10675_v43 = vpop.f32.mrb[185].mxu1 }
 0x6c0   : > { %v10676_v49 = vadd.f32 %v10675_v43, %v10674_v26  ;;  %v10677_v11 = vpop.f32.mrb[186].mxu1  ;;  %v15824_v26 = vld [vmem:[#allocation37_spill] sm:$0xff] }
 0x6c1   : > { %v10678_v16 = vpop.f32.mrb[187].mxu1 }
 0x6c2   : > { %v10679_v31 = vadd.f32 %v10678_v16, %v10677_v11 }
 0x6c6   : > { %v10680_v20 = vpop.f32.mrb[188].mxu1 }
 0x6c7   : > { %v10681_v19 = vpop.f32.mrb[189].mxu1 }
 0x6c8   : > { %v10682_v54 = vadd.f32 %v10681_v19, %v10680_v20  ;;  %v10683_v55 = vpop.f32.mrb[190].mxu1 }
 0x6c9   : > { %v10684_v48 = vpop.f32.mrb[191].mxu1 }
 0x6ca   : > { %v10685_v12 = vadd.f32 %v10684_v48, %v10683_v55 }
 0x6d2   : > { %v10686_v9 = vpop.f32.mrb[192].mxu1 }
 0x6d3   : > { %v10687_v8 = vpop.f32.mrb[193].mxu1 }
 0x6d4   : > { %v10688_v3 = vadd.f32 %v10687_v8, %v10686_v9  ;;  %v10689_v15 = vpop.f32.mrb[194].mxu1 }
 0x6d5   : > { %v10690_v53 = vpop.f32.mrb[195].mxu1 }
 0x6d6   : > { %v10691_v4 = vadd.f32 %v10690_v53, %v10689_v15  ;;  %v15826_v15 = vld [vmem:[#allocation34_spill] sm:$0xff] }
 0x6da   : > { %v10692_v22 = vpop.f32.mrb[196].mxu1 }
 0x6db   : > { %v10693_v32 = vpop.f32.mrb[197].mxu1 }
 0x6dc   : > { %v15116_v61 = vadd.f32 %v10693_v32, %v10692_v22  ;;  %v10695_v13 = vpop.f32.mrb[198].mxu1 }
 0x6dd   : > { %v10696_v23 = vpop.f32.mrb[199].mxu1 }
 0x6de   : > { %v15118_v59 = vadd.f32 %v10696_v23, %v10695_v13  ;;  %v10714_v6 = vpop.f32.mrb[80].mxu0 }
 0x6df   : > { %v10715_v30 = vpop.f32.mrb[81].mxu0 }
 0x6e0   : > { %v10716_v7 = vadd.f32 %v10715_v30, %v10714_v6  ;;  %v10717_v10 = vpop.f32.mrb[82].mxu0 }
 0x6e1   : > { %v10718_v56 = vpop.f32.mrb[83].mxu0 }
 0x6e2   : > { %v10719_v2 = vadd.f32 %v10718_v56, %v10717_v10  ;;  %v10962_v50 = vpop.f32.mrb[200].mxu1  ;;  %v8177_v51 = vadd.f32 %v10716_v7, %v10676_v49  ;;  %v11476_v56 = vld [vmem:[%s15602_s5 + $0xf0] ss:$8 sps:$4 sm:$0xff]  }
 0x6e3   : > { %v8241_v60 = vpop.f32.mrb[201].mxu1 }
 0x6e4   : > { %v8242_v47 = vadd.f32 %v8241_v60, %v8177_v51  ;;  %v10963_v27 = vpop.f32.mrb[202].mxu1  ;;  %v8180_v58 = vadd.f32 %v10719_v2, %v10679_v31 }
 0x6e5   : > { %v8244_v17 = vpop.f32.mrb[203].mxu1 }
 0x6e6   : > { %v8279_v14 = vmul.f32 %v15123_v18, %v8242_v47  ;;  %v8245_v35 = vadd.f32 %v8244_v17, %v8180_v58  ;;  %v10720_v0 = vpop.f32.mrb[84].mxu0  ;;  %v15827_v58 = vld [vmem:[#allocation18_spill] sm:$0xff] }
 0x6e7   : > { %v10721_v34 = vpop.f32.mrb[85].mxu0 }
 0x6e8   : > { %v8294_v28 = vadd.f32 %v15128_v38, %v8279_v14  ;;  %v8280_v45 = vmul.f32 %v15123_v18, %v8245_v35  ;;  %v10722_v62 = vadd.f32 %v10721_v34, %v10720_v0  ;;  %v10723_v42 = vpop.f32.mrb[86].mxu0 }
 0x6e9   : > { %v10724_v46 = vpop.f32.mrb[87].mxu0 }
 0x6ea   : > { %v8302_v1 = vadd.f32 %v8294_v28, %v15823_v52  ;;  %v8295_v33 = vadd.f32 %v15128_v38, %v8280_v45  ;;  %v8185_v57 = vadd.f32 %v10722_v62, %v10682_v54  ;;  %v10725_v44 = vadd.f32 %v10724_v46, %v10723_v42  ;;  %v10966_v40 = vpop.f32.mrb[204].mxu1  ;;  %v11481_v28 = vld [vmem:[%s15602_s5 + $0x104] ss:$8 sps:$4 sm:$0xff]   ;;  %v15828_v62 = vld [vmem:[#allocation22_spill] sm:$0xff] }
 0x6eb   : > { %v8257_v29 = vpop.f32.mrb[205].mxu1 }
 0x6ec   : > { %v8303_v43 = vadd.f32 %v8295_v33, %v15824_v26  ;;  %v8250_v41 = vadd.f32 %v10962_v50, %v8185_v57  ;;  %v8188_v49 = vadd.f32 %v10725_v44, %v10685_v12  ;;  %v10967_v11 = vpop.f32.mrb[206].mxu1  ;;  %v8310_v16 = vmax.f32 %v8302_v1, 0.0  ;;  %v15825_v12 = vld [vmem:[#allocation19_spill] sm:$0xff] }
 0x6ed   : > { %v8260_v25 = vpop.f32.mrb[207].mxu1 }
 0x6ee   : > { %v8311_v31 = vmax.f32 %v8303_v43, 0.0  ;;  %v8281_v37 = vmul.f32 %v15123_v18, %v8250_v41  ;;  %v8253_v24 = vadd.f32 %v10963_v27, %v8188_v49  ;;  %v10726_v20 = vpop.f32.mrb[88].mxu0 }
 0x6ef   : > { %v10727_v19 = vpop.f32.mrb[89].mxu0 }
 0x6f0   : > { %v8318_v63 = vmax.f32 %v8310_v16, %v8311_v31  ;;  %v8296_v55 = vadd.f32 %v15128_v38, %v8281_v37  ;;  %v8282_v54 = vmul.f32 %v15123_v18, %v8253_v24  ;;  %v10728_v5 = vadd.f32 %v10727_v19, %v10726_v20  ;;  %v10729_v48 = vpop.f32.mrb[90].mxu0  ;;  %v15830_v24 = vld [vmem:[#allocation30_spill] sm:$0xff] }
 0x6f1   : > { %v10730_v21 = vpop.f32.mrb[91].mxu0 }
 0x6f2   : > { %8322 = vst.msk [vmem:[#allocation7] sm:$0xff] %vm4538_vm8, %v8318_v63  ;;  %v8304_v36 = vadd.f32 %v8296_v55, %v15825_v12  ;;  %v8297_v39 = vadd.f32 %v15128_v38, %v8282_v54  ;;  %v8193_v9 = vadd.f32 %v10728_v5, %v10688_v3  ;;  %v10731_v8 = vadd.f32 %v10730_v21, %v10729_v48  ;;  %v11478_v3 = vld [vmem:[%s15602_s5 + $0xf4] ss:$8 sps:$4 sm:$0xff]  }
 0x6f3   : > { %9215 = vmatprep.subr.bf16.mxu0 %v11478_v3  ;;  %v11479_v3 = vld [vmem:[%s15602_s5 + $0x100] ss:$8 sps:$4 sm:$0xff]  }
 0x6f4   : > { %v8305_v53 = vadd.f32 %v8297_v39, %v15826_v15  ;;  %v8258_v22 = vadd.f32 %v8257_v29, %v8193_v9  ;;  %v8196_v32 = vadd.f32 %v10731_v8, %v10691_v4  ;;  %v8312_v13 = vmax.f32 %v8304_v36, 0.0  ;;  %9216 = vmatpush1.bf16.msra.mxu0 %v11476_v56 }
 0x6f5   : > { %9226 = vmatprep.subr.bf16.mxu0 %v11481_v28  ;;  %v11496_v28 = vld [vmem:[%s15602_s5 + $0x154] ss:$8 sps:$4 sm:$0xff]  }
 0x6f6   : > { %v8313_v23 = vmax.f32 %v8305_v53, 0.0  ;;  %v8283_v6 = vmul.f32 %v15123_v18, %v8258_v22  ;;  %v8261_v30 = vadd.f32 %v8260_v25, %v8196_v32  ;;  %v10732_v7 = vpop.f32.mrb[92].mxu0 }
 0x6f7   : > { %v10733_v10 = vpop.f32.mrb[93].mxu0 }
 0x6f8   : > { %v8319_v2 = vmax.f32 %v8312_v13, %v8313_v23  ;;  %v8298_v50 = vadd.f32 %v15128_v38, %v8283_v6  ;;  %v8284_v4 = vmul.f32 %v15123_v18, %v8261_v30  ;;  %v10734_v51 = vadd.f32 %v10733_v10, %v10732_v7  ;;  %v10735_v60 = vpop.f32.mrb[94].mxu0 }
 0x6f9   : > { %v10736_v47 = vpop.f32.mrb[95].mxu0  ;;  %v8326_v27 = vld [vmem:[#allocation7] ss:$2 sm:$0xf] }
 0x6fa   : > { %8323 = vst.msk [vmem:[#allocation7 + $0x8] sm:$0xff] %vm4538_vm8, %v8319_v2  ;;  %v8306_v17 = vadd.f32 %v8298_v50, %v15827_v58  ;;  %v8299_v14 = vadd.f32 %v15128_v38, %v8284_v4  ;;  %v8201_v35 = vadd.f32 %v10734_v51, %v15116_v61  ;;  %v10737_v0 = vadd.f32 %v10736_v47, %v10735_v60  ;;  %v8334_v34 = vld [vmem:[#allocation7 + $0x1] ss:$2 sm:$0xf]  ;;  %v11487_v47 = vld [vmem:[%s15602_s5 + $0x124] ss:$8 sps:$4 sm:$0xff]  }
 0x6fb   : > { %v8341_v45 = vmax.f32 %v8326_v27, %v8334_v34  ;;  %v11484_v2 = vld [vmem:[%s15602_s5 + $0x114] ss:$8 sps:$4 sm:$0xff]   ;;  %v11482_v51 = vld [vmem:[%s15602_s5 + $0x110] ss:$8 sps:$4 sm:$0xff]   ;;  %v11491_v34 = vld [vmem:[%s15602_s5 + $0x140] ss:$8 sps:$4 sm:$0xff]  }
 0x6fc   : > { %v8307_v42 = vadd.f32 %v8299_v14, %v15828_v62  ;;  %v8266_v46 = vadd.f32 %v10966_v40, %v8201_v35  ;;  %v8204_v52 = vadd.f32 %v10737_v0, %v15118_v59  ;;  %v8314_v57 = vmax.f32 %v8306_v17, 0.0  ;;  %v15829_v59 = vld [vmem:[#allocation24_spill] sm:$0xff]  ;;  %v11490_v14 = vld [vmem:[%s15602_s5 + $0x134] ss:$8 sps:$4 sm:$0xff]  }
 0x6fd   : > { %v8346_v1 = vrot.slane %v8341_v45, 1  ;;  %v8352_v33 = vrot.slane %v8341_v45, 3  ;;  %v8350_v6 = vrot.slane %v8341_v45, 2  ;;  %v11485_v17 = vld [vmem:[%s15602_s5 + $0x120] ss:$8 sps:$4 sm:$0xff]  }
 0x6fe   : > { %v8315_v44 = vmax.f32 %v8307_v42, 0.0  ;;  %v8285_v61 = vmul.f32 %v15123_v18, %v8266_v46  ;;  %v8269_v29 = vadd.f32 %v10967_v11, %v8204_v52  ;;  %v11488_v35 = vld [vmem:[%s15602_s5 + $0x130] ss:$8 sps:$4 sm:$0xff]   ;;  %v11493_v0 = vld [vmem:[%s15602_s5 + $0x144] ss:$8 sps:$4 sm:$0xff]  }
 0x6ff   : > { %v11029_v26 = vpack.i.bf16 %v8346_v1, %v8352_v33  ;;  %v11499_v62 = vld [vmem:[%s15602_s5 + $0x164] ss:$8 sps:$4 sm:$0xff]   ;;  %v11497_v42 = vld [vmem:[%s15602_s5 + $0x160] ss:$8 sps:$4 sm:$0xff]   ;;  %v11502_v46 = vld [vmem:[%s15602_s5 + $0x174] ss:$8 sps:$4 sm:$0xff]  }
 0x700   : > { %v8320_v43 = vmax.f32 %v8314_v57, %v8315_v44  ;;  %v8300_v41 = vadd.f32 %v15128_v38, %v8285_v61  ;;  %v8286_v49 = vmul.f32 %v15123_v18, %v8269_v29  ;;  %v11500_v52 = vld [vmem:[%s15602_s5 + $0x170] ss:$8 sps:$4 sm:$0xff]   ;;  %v11505_v1 = vld [vmem:[%s15602_s5 + $0x184] ss:$8 sps:$4 sm:$0xff]   ;;  %v11503_v33 = vld [vmem:[%s15602_s5 + $0x180] ss:$8 sps:$4 sm:$0xff]  }
 0x701   : > { %11030 = vrot.lane.b32.xlu0 %v11029_v26, %s15812_s26  ;;  %v8328_v25 = vld [vmem:[#allocation7 + $0x8] ss:$2 sm:$0xf]  ;;  %v8336_v40 = vld [vmem:[#allocation7 + $0x9] ss:$2 sm:$0xf] }
 0x702   : > { %8324 = vst.msk [vmem:[#allocation7 + $0x10] sm:$0xff] %vm4538_vm8, %v8320_v43  ;;  %v8308_v16 = vadd.f32 %v8300_v41, %v15829_v59  ;;  %v8301_v31 = vadd.f32 %v15128_v38, %v8286_v49  ;;  %v15168_v37 = vmax.f32 %v8328_v25, %v8336_v40  ;;  %v11508_v57 = vld [vmem:[%s15602_s5 + $0x194] ss:$8 sps:$4 sm:$0xff]   ;;  %v11506_v44 = vld [vmem:[%s15602_s5 + $0x190] ss:$8 sps:$4 sm:$0xff]  }
 0x703   : > { %v11511_v61 = vld [vmem:[%s15602_s5 + $0x1a4] ss:$8 sps:$4 sm:$0xff]   ;;  %v11509_v29 = vld [vmem:[%s15602_s5 + $0x1a0] ss:$8 sps:$4 sm:$0xff]   ;;  %v11514_v26 = vld [vmem:[%s15602_s5 + $0x1b4] ss:$8 sps:$4 sm:$0xff]  }
 0x704   : > { %v8309_v11 = vadd.f32 %v8301_v31, %v15830_v24  ;;  %v8357_v20 = vrot.slane %v15168_v37, 1  ;;  %v8363_v19 = vrot.slane %v15168_v37, 3  ;;  %v8316_v63 = vmax.f32 %v8308_v16, 0.0  ;;  %v11512_v43 = vld [vmem:[%s15602_s5 + $0x1b0] ss:$8 sps:$4 sm:$0xff]  }
 0x705   : > { %v8361_v60 = vrot.slane %v15168_v37, 2  ;;  %v11517_v41 = vld [vmem:[%s15602_s5 + $0x1c4] ss:$8 sps:$4 sm:$0xff]   ;;  %v11515_v49 = vld [vmem:[%s15602_s5 + $0x1c0] ss:$8 sps:$4 sm:$0xff]  }
 0x706   : > { %v8317_v18 = vmax.f32 %v8309_v11, 0.0  ;;  %v11034_v55 = vpack.i.bf16 %v8357_v20, %v8363_v19  ;;  %v11520_v25 = vld [vmem:[%s15602_s5 + $0x1d4] ss:$8 sps:$4 sm:$0xff]   ;;  %v11518_v40 = vld [vmem:[%s15602_s5 + $0x1d0] ss:$8 sps:$4 sm:$0xff]  }
 0x707   : > { %v11523_v59 = vld [vmem:[%s15602_s5 + $0x1e4] ss:$8 sps:$4 sm:$0xff]   ;;  %v11521_v31 = vld [vmem:[%s15602_s5 + $0x1e0] ss:$8 sps:$4 sm:$0xff]   ;;  %v11526_v24 = vld [vmem:[%s15602_s5 + $0x1f4] ss:$8 sps:$4 sm:$0xff]  }
 0x708   : > { %v8321_v54 = vmax.f32 %v8316_v63, %v8317_v18  ;;  %11035 = vrot.lane.b32.xlu1 %v11034_v55, %s15812_s26  ;;  %v11524_v19 = vld [vmem:[%s15602_s5 + $0x1f0] ss:$8 sps:$4 sm:$0xff]   ;;  %v11529_v63 = vld [vmem:[%s15602_s5 + $0x204] ss:$8 sps:$4 sm:$0xff]  }
 0x709   : > { %v8330_v5 = vld [vmem:[#allocation7 + $0x10] ss:$2 sm:$0xf]  ;;  %v8338_v48 = vld [vmem:[#allocation7 + $0x11] ss:$2 sm:$0xf] }
 0x70a   : > { %8325 = vst.msk [vmem:[#allocation7 + $0x18] sm:$0xff] %vm4538_vm8, %v8321_v54  ;;  %v15175_v21 = vmax.f32 %v8330_v5, %v8338_v48  ;;  %v11527_v5 = vld [vmem:[%s15602_s5 + $0x200] ss:$8 sps:$4 sm:$0xff]  }
 0x70c   : > { %v8368_v38 = vrot.slane %v15175_v21, 1  ;;  %v8374_v12 = vrot.slane %v15175_v21, 3  ;;  %v8372_v18 = vrot.slane %v15175_v21, 2 }
 0x70e   : > { %v11039_v36 = vpack.i.bf16 %v8368_v38, %v8374_v12  ;;  %v11532_v38 = vld [vmem:[%s15602_s5 + $0x214] ss:$8 sps:$4 sm:$0xff]  }
 0x710   : > { %11040 = vrot.lane.b32.xlu0 %v11039_v36, %s15812_s26  ;;  %v11623_v36 = vld [vmem:[%s15603_s6 + $0x40] sm:$0xff]  }
 0x711   : > { %v8332_v39 = vld [vmem:[#allocation7 + $0x18] ss:$2 sm:$0xf]  ;;  %v8340_v9 = vld [vmem:[#allocation7 + $0x19] ss:$2 sm:$0xf]  ;;  %10746 = vmatprep.subr.bf16.mxu1 %v11623_v36 }
 0x712   : > { %v15180_v8 = vmax.f32 %v8332_v39, %v8340_v9  ;;  %v11625_v39 = vld [vmem:[%s15603_s6 + $0x48] sm:$0xff]   ;;  %v11530_v9 = vld [vmem:[%s15602_s5 + $0x210] ss:$8 sps:$4 sm:$0xff]   ;;  %v11598_v36 = vld [vmem:[%s15602_s5 + $0x374] ss:$8 sps:$4 sm:$0xff]  }
 0x714   : > { %v8379_v15 = vrot.slane %v15180_v8, 1  ;;  %v8385_v53 = vrot.slane %v15180_v8, 3 }
 0x716   : > { %v11044_v22 = vpack.i.bf16 %v8379_v15, %v8385_v53  ;;  %v11535_v15 = vld [vmem:[%s15602_s5 + $0x224] ss:$8 sps:$4 sm:$0xff]  }
 0x717   : > { %v11626_v53 = vld [vmem:[%s15603_s6 + $0x8] sm:$0xff]  }
 0x718   : > { %11045 = vrot.lane.b32.xlu1 %v11044_v22, %s15812_s26  ;;  %v11627_v22 = vld [vmem:[%s15603_s6 + $0x50] sm:$0xff]   ;;  %s540_s26 = sand.u32 1, %s11731_s25  }
 0x719   : > { %s541_s0 = scalar_lea.vmem [#allocation8], %s540_s26  ;;  %s9524_s22 = scalar_lea.sflag [#allocation9], %s540_s26 }
 0x71a   : > { %s9536_s3 = sshll.u32 %s541_s0, 4  ;;  %s15557_s3 = int_to_ptr.vmem [resolvable:$true] %s9536_s3 }
 0x71b   : > { %s11677_s19 = scalar_lea.vmem %s15557_s3, 16  ;;  %p11684_p0 = scmp.lt.s32.totalorder %s15557_s3, %s11682_s30 }
 0x71c   : > { %p11678_p11 = scmp.ne.s32.totalorder %s15557_s3, %s11677_s19  ;;  %p11685_p1 = scmp.lt.s32.totalorder %s11683_s2, %s11677_s19 }
 0x71e   : > { %p11679_p12 = pnand %p11678_p11, %p11874_p5  ;;  %p11686_p2 = por %p11685_p1, %p11684_p0 }
 0x720   : > { %p11680_p13 = pneg %p11679_p12 }
 0x722   : > { %p11687_p3 = pnand %p11686_p2, %p11680_p13 }
 0x773   : > { %v11031_v32 = vpop.permute.xlu0 %11030 }
 0x774   : > { %v11033_v13 = vunpack.i.h.bf16 %v11031_v32  ;;  %v11032_v23 = vunpack.i.l.bf16 %v11031_v32  ;;  %v11533_v32 = vld [vmem:[%s15602_s5 + $0x220] ss:$8 sps:$4 sm:$0xff]  }
 0x776   : > { %v8389_v30 = vsel %vm4538_vm8, %v8341_v45, %v11033_v13  ;;  %v8390_v7 = vsel %vm4538_vm8, %v8350_v6, %v11032_v23  ;;  %v11494_v45 = vld [vmem:[%s15602_s5 + $0x150] ss:$8 sps:$4 sm:$0xff]   ;;  %v11538_v13 = vld [vmem:[%s15602_s5 + $0x234] ss:$8 sps:$4 sm:$0xff]  }
 0x777   : > { %v8397_v10 = vpack.c.bf16 %v8389_v30, %v8389_v30  ;;  %v8398_v56 = vpack.c.bf16 %v8390_v7, %v8390_v7  ;;  %v11628_v23 = vld [vmem:[%s15603_s6 + $0x10] sm:$0xff]   ;;  %v11629_v6 = vld [vmem:[%s15603_s6 + $0x58] sm:$0xff]   ;;  %v11541_v7 = vld [vmem:[%s15602_s5 + $0x244] ss:$8 sps:$4 sm:$0xff]  }
 0x778   : > { %v11536_v30 = vld [vmem:[%s15602_s5 + $0x230] ss:$8 sps:$4 sm:$0xff]  }
 0x779   : > { %9217 = vmatprep.mubr.bf16.mxu0 %v8398_v56  ;;  %v11631_v56 = vld [vmem:[%s15603_s6 + $0x60] sm:$0xff]  }
 0x77a   : > { %9218 = vmatmul.mubr.bf16.vlgmr.msra.gmra.mrb[96].mxu0 %v8397_v10  ;;  %v15193_v50 = vpop.permute.xlu1 %11035  ;;  %v11630_v10 = vld [vmem:[%s15603_s6 + $0x18] sm:$0xff]  }
 0x77b   : > { %9227 = vmatpush1.bf16.msra.mxu0 %v11479_v3  ;;  %v11037_v4 = vunpack.i.l.bf16 %v15193_v50  ;;  %v11038_v11 = vunpack.i.h.bf16 %v15193_v50  ;;  %v11539_v3 = vld [vmem:[%s15602_s5 + $0x240] ss:$8 sps:$4 sm:$0xff]  }
 0x77c   : > { %9228 = vmatprep.subr.bf16.mxu0 %v11484_v2  ;;  %v11544_v2 = vld [vmem:[%s15602_s5 + $0x254] ss:$8 sps:$4 sm:$0xff]   ;;  %v11632_v50 = vld [vmem:[%s15603_s6 + $0x20] sm:$0xff]  }
 0x77d   : > { %v8392_v27 = vsel %vm4538_vm8, %v8361_v60, %v11037_v4  ;;  %v8391_v55 = vsel %vm4538_vm8, %v15168_v37, %v11038_v11  ;;  %v11624_v37 = vld [vmem:[%s15603_s6] sm:$0xff]   ;;  %v11633_v4 = vld [vmem:[%s15603_s6 + $0x68] sm:$0xff]  }
 0x77e   : > { %v8400_v58 = vpack.c.bf16 %v8392_v27, %v8392_v27  ;;  %v8399_v48 = vpack.c.bf16 %v8391_v55, %v8391_v55  ;;  %10747 = vmatpush3.bf16.msra.mxu1 %v11624_v37  ;;  %v11547_v60 = vld [vmem:[%s15602_s5 + $0x264] ss:$8 sps:$4 sm:$0xff]   ;;  %v11545_v27 = vld [vmem:[%s15602_s5 + $0x260] ss:$8 sps:$4 sm:$0xff]   ;;  %v11596_v37 = vld [vmem:[%s15602_s5 + $0x370] ss:$8 sps:$4 sm:$0xff]  }
 0x77f   : > { %9229 = vmatpush1.bf16.msra.mxu0 %v11482_v51  ;;  %10748 = vmatprep.subr.bf16.mxu1 %v11625_v39  ;;  %v11542_v51 = vld [vmem:[%s15602_s5 + $0x250] ss:$8 sps:$4 sm:$0xff]   ;;  %v11589_v55 = vld [vmem:[%s15602_s5 + $0x344] ss:$8 sps:$4 sm:$0xff]  }
 0x780   : > { %9230 = vmatprep.subr.bf16.mxu0 %v11487_v47  ;;  %9258 = vmatprep.mubr.bf16.mxu0 %v8400_v58  ;;  %v11634_v47 = vld [vmem:[%s15603_s6 + $0x28] sm:$0xff]   ;;  %v11550_v58 = vld [vmem:[%s15602_s5 + $0x274] ss:$8 sps:$4 sm:$0xff]  }
 0x781   : > { %v11601_v39 = vld [vmem:[%s15602_s5 + $0x384] ss:$8 sps:$4 sm:$0xff]  }
 0x782   : > { %v15276_v16 = vpop.permute.xlu0 %11040  ;;  %10749 = vmatpush3.bf16.msra.mxu1 %v11626_v53  ;;  %v11602_v53 = vld [vmem:[%s15602_s5 + $0x390] ss:$8 sps:$4 sm:$0xff]  }
 0x783   : > { %9231 = vmatpush1.bf16.msra.mxu0 %v11485_v17  ;;  %v11042_v20 = vunpack.i.l.bf16 %v15276_v16  ;;  %10750 = vmatprep.subr.bf16.mxu1 %v11627_v22  ;;  %v11548_v17 = vld [vmem:[%s15602_s5 + $0x270] ss:$8 sps:$4 sm:$0xff]   ;;  %v11607_v22 = vld [vmem:[%s15602_s5 + $0x3a4] ss:$8 sps:$4 sm:$0xff]  }
 0x784   : > { %9232 = vmatprep.subr.bf16.mxu0 %v11490_v14  ;;  %v11553_v14 = vld [vmem:[%s15602_s5 + $0x284] ss:$8 sps:$4 sm:$0xff]  }
 0x785   : > { %v8394_v54 = vsel %vm4538_vm8, %v8372_v18, %v11042_v20  ;;  %v11583_v20 = vld [vmem:[%s15602_s5 + $0x324] ss:$8 sps:$4 sm:$0xff]   ;;  %v11584_v18 = vld [vmem:[%s15602_s5 + $0x330] ss:$8 sps:$4 sm:$0xff]  }
 0x786   : > { %v8402_v12 = vpack.c.bf16 %v8394_v54, %v8394_v54  ;;  %10751 = vmatpush3.bf16.msra.mxu1 %v11628_v23  ;;  %v11587_v54 = vld [vmem:[%s15602_s5 + $0x340] ss:$8 sps:$4 sm:$0xff]   ;;  %v11608_v23 = vld [vmem:[%s15602_s5 + $0x3b0] ss:$8 sps:$4 sm:$0xff]  }
 0x787   : > { %9233 = vmatpush1.bf16.msra.mxu0 %v11488_v35  ;;  %10752 = vmatprep.subr.bf16.mxu1 %v11629_v6  ;;  %v11551_v35 = vld [vmem:[%s15602_s5 + $0x280] ss:$8 sps:$4 sm:$0xff]   ;;  %v11613_v6 = vld [vmem:[%s15602_s5 + $0x3c4] ss:$8 sps:$4 sm:$0xff]  }
 0x788   : > { %9234 = vmatprep.subr.bf16.mxu0 %v11493_v0  ;;  %v11556_v0 = vld [vmem:[%s15602_s5 + $0x294] ss:$8 sps:$4 sm:$0xff]  }
 0x78a   : > { %10753 = vmatpush3.bf16.msra.mxu1 %v11630_v10  ;;  %v11614_v10 = vld [vmem:[%s15602_s5 + $0x3d0] ss:$8 sps:$4 sm:$0xff]  }
 0x78b   : > { %9235 = vmatpush1.bf16.msra.mxu0 %v11491_v34  ;;  %10754 = vmatprep.subr.bf16.mxu1 %v11631_v56  ;;  %v11554_v34 = vld [vmem:[%s15602_s5 + $0x290] ss:$8 sps:$4 sm:$0xff]   ;;  %v11619_v56 = vld [vmem:[%s15602_s5 + $0x3e4] ss:$8 sps:$4 sm:$0xff]  }
 0x78c   : > { %9236 = vmatprep.subr.bf16.mxu0 %v11496_v28  ;;  %v11559_v28 = vld [vmem:[%s15602_s5 + $0x2a4] ss:$8 sps:$4 sm:$0xff]  }
 0x78e   : > { %10755 = vmatpush3.bf16.msra.mxu1 %v11632_v50 }
 0x78f   : > { %9237 = vmatpush1.bf16.msra.mxu0 %v11494_v45  ;;  %10756 = vmatprep.subr.bf16.mxu1 %v11633_v4  ;;  %v11557_v45 = vld [vmem:[%s15602_s5 + $0x2a0] ss:$8 sps:$4 sm:$0xff]   ;;  %v11620_v4 = vld [vmem:[%s15602_s5 + $0x3f0] ss:$8 sps:$4 sm:$0xff]  }
 0x790   : > { %9238 = vmatprep.subr.bf16.mxu0 %v11499_v62  ;;  %v11562_v62 = vld [vmem:[%s15602_s5 + $0x2b4] ss:$8 sps:$4 sm:$0xff]  }
 0x792   : > { %10757 = vmatpush3.bf16.msra.mxu1 %v11634_v47  ;;  %v11635_v47 = vld [vmem:[%s15603_s6 + $0x70] sm:$0xff]  }
 0x793   : > { %9239 = vmatpush1.bf16.msra.mxu0 %v11497_v42  ;;  %v11560_v42 = vld [vmem:[%s15602_s5 + $0x2b0] ss:$8 sps:$4 sm:$0xff]   ;;  %10758 = vmatprep.subr.bf16.mxu1 %v11635_v47 }
 0x794   : > { %9240 = vmatprep.subr.bf16.mxu0 %v11502_v46  ;;  %v11565_v46 = vld [vmem:[%s15602_s5 + $0x2c4] ss:$8 sps:$4 sm:$0xff]  }
 0x797   : > { %9241 = vmatpush1.bf16.msra.mxu0 %v11500_v52  ;;  %v11563_v52 = vld [vmem:[%s15602_s5 + $0x2c0] ss:$8 sps:$4 sm:$0xff]  }
 0x798   : > { %9242 = vmatprep.subr.bf16.mxu0 %v11505_v1  ;;  %v11568_v1 = vld [vmem:[%s15602_s5 + $0x2d4] ss:$8 sps:$4 sm:$0xff]  }
 0x79b   : > { %9243 = vmatpush1.bf16.msra.mxu0 %v11503_v33  ;;  %v11566_v33 = vld [vmem:[%s15602_s5 + $0x2d0] ss:$8 sps:$4 sm:$0xff]  }
 0x79c   : > { %9244 = vmatprep.subr.bf16.mxu0 %v11508_v57  ;;  %v11571_v57 = vld [vmem:[%s15602_s5 + $0x2e4] ss:$8 sps:$4 sm:$0xff]  }
 0x79f   : > { %9245 = vmatpush1.bf16.msra.mxu0 %v11506_v44  ;;  %v15416_v44 = vpop.permute.xlu1 %11045 }
 0x7a0   : > { %9246 = vmatprep.subr.bf16.mxu0 %v11511_v61  ;;  %v11569_v61 = vld [vmem:[%s15602_s5 + $0x2e0] ss:$8 sps:$4 sm:$0xff]   ;;  %v11048_v50 = vunpack.i.h.bf16 %v15416_v44 }
 0x7a3   : > { %9247 = vmatpush1.bf16.msra.mxu0 %v11509_v29  ;;  %v11574_v29 = vld [vmem:[%s15602_s5 + $0x2f4] ss:$8 sps:$4 sm:$0xff]  }
 0x7a4   : > { %9248 = vmatprep.subr.bf16.mxu0 %v11514_v26  ;;  %v11043_v26 = vunpack.i.h.bf16 %v15276_v16  ;;  %v11575_v16 = vld [vmem:[%s15602_s5 + $0x300] ss:$8 sps:$4 sm:$0xff]  }
 0x7a7   : > { %9249 = vmatpush1.bf16.msra.mxu0 %v11512_v43  ;;  %v11047_v43 = vunpack.i.l.bf16 %v15416_v44 }
 0x7a8   : > { %9250 = vmatprep.subr.bf16.mxu0 %v11517_v41  ;;  %v11572_v41 = vld [vmem:[%s15602_s5 + $0x2f0] ss:$8 sps:$4 sm:$0xff]  }
 0x7ab   : > { %9251 = vmatpush1.bf16.msra.mxu0 %v11515_v49  ;;  %v11577_v49 = vld [vmem:[%s15602_s5 + $0x304] ss:$8 sps:$4 sm:$0xff]  }
 0x7ac   : > { %9252 = vmatprep.subr.bf16.mxu0 %v11520_v25  ;;  %v8383_v25 = vrot.slane %v15180_v8, 2 }
 0x7af   : > { %9253 = vmatpush1.bf16.msra.mxu0 %v11518_v40  ;;  %v8393_v40 = vsel %vm4538_vm8, %v15175_v21, %v11043_v26  ;;  %v11578_v21 = vld [vmem:[%s15602_s5 + $0x310] ss:$8 sps:$4 sm:$0xff]  }
 0x7b0   : > { %9254 = vmatprep.subr.bf16.mxu0 %v11523_v59  ;;  %v8396_v59 = vsel %vm4538_vm8, %v8383_v25, %v11047_v43  ;;  %v9385_v43 = vld [vmem:[%s15613_s16] sm:$0x1] }
 0x7b1   : > { %v8404_v11 = vpack.c.bf16 %v8396_v59, %v8396_v59 }
 0x7b3   : > { %9255 = vmatpush1.bf16.msra.mxu0 %v11521_v31  ;;  %v8401_v31 = vpack.c.bf16 %v8393_v40, %v8393_v40 }
 0x7b4   : > { %9256 = vmatprep.subr.bf16.mxu0 %v11526_v24  ;;  %v11580_v24 = vld [vmem:[%s15602_s5 + $0x314] ss:$8 sps:$4 sm:$0xff]  }
 0x7b7   : > { %9257 = vmatpush1.bf16.msra.mxu0 %v11524_v19  ;;  %v11581_v19 = vld [vmem:[%s15602_s5 + $0x320] ss:$8 sps:$4 sm:$0xff]  }
 0x7b8   : > { %9267 = vmatprep.subr.bf16.mxu0 %v11529_v63  ;;  %v11586_v63 = vld [vmem:[%s15602_s5 + $0x334] ss:$8 sps:$4 sm:$0xff]  }
 0x7ba   : > { %9259 = vmatmul.mubr.bf16.vlgmr.msra.gmra.mrb[96].mxu0 %v8399_v48  ;;  %v11590_v48 = vld [vmem:[%s15602_s5 + $0x350] ss:$8 sps:$4 sm:$0xff]  }
 0x7bb   : > { %9268 = vmatpush1.bf16.msra.mxu0 %v11527_v5  ;;  %9299 = vmatprep.mubr.bf16.mxu0 %v8402_v12  ;;  %v11592_v5 = vld [vmem:[%s15602_s5 + $0x354] ss:$8 sps:$4 sm:$0xff]   ;;  %v11593_v12 = vld [vmem:[%s15602_s5 + $0x360] ss:$8 sps:$4 sm:$0xff]  }
 0x7bc   : > { %9269 = vmatprep.subr.bf16.mxu0 %v11532_v38  ;;  %v11595_v38 = vld [vmem:[%s15602_s5 + $0x364] ss:$8 sps:$4 sm:$0xff]  }
 0x7bf   : > { %9270 = vmatpush1.bf16.msra.mxu0 %v11530_v9  ;;  %v11599_v9 = vld [vmem:[%s15602_s5 + $0x380] ss:$8 sps:$4 sm:$0xff]  }
 0x7c0   : > { %9271 = vmatprep.subr.bf16.mxu0 %v11535_v15  ;;  %v11604_v15 = vld [vmem:[%s15602_s5 + $0x394] ss:$8 sps:$4 sm:$0xff]  }
 0x7c3   : > { %9272 = vmatpush1.bf16.msra.mxu0 %v11533_v32  ;;  %v11605_v32 = vld [vmem:[%s15602_s5 + $0x3a0] ss:$8 sps:$4 sm:$0xff]  }
 0x7c4   : > { %9273 = vmatprep.subr.bf16.mxu0 %v11538_v13  ;;  %v11610_v13 = vld [vmem:[%s15602_s5 + $0x3b4] ss:$8 sps:$4 sm:$0xff]  }
 0x7c7   : > { %9274 = vmatpush1.bf16.msra.mxu0 %v11536_v30  ;;  %v11611_v30 = vld [vmem:[%s15602_s5 + $0x3c0] ss:$8 sps:$4 sm:$0xff]  }
 0x7c8   : > { %9275 = vmatprep.subr.bf16.mxu0 %v11541_v7  ;;  %v11616_v7 = vld [vmem:[%s15602_s5 + $0x3d4] ss:$8 sps:$4 sm:$0xff]  }
 0x7cb   : > { %9276 = vmatpush1.bf16.msra.mxu0 %v11539_v3  ;;  %v11617_v3 = vld [vmem:[%s15602_s5 + $0x3e0] ss:$8 sps:$4 sm:$0xff]  }
 0x7cc   : > { %9277 = vmatprep.subr.bf16.mxu0 %v11544_v2  ;;  %v11622_v2 = vld [vmem:[%s15602_s5 + $0x3f4] ss:$8 sps:$4 sm:$0xff]  }
 0x7cf   : > { %9278 = vmatpush1.bf16.msra.mxu0 %v11542_v51  ;;  %v8395_v51 = vsel %vm4538_vm8, %v15180_v8, %v11048_v50  ;;  %v11638_v8 = vld [vmem:[%s15603_s6 + $0x38] sm:$0xff]  }
 0x7d0   : > { %9279 = vmatprep.subr.bf16.mxu0 %v11547_v60  ;;  %v8403_v60 = vpack.c.bf16 %v8395_v51, %v8395_v51 }
 0x7d3   : > { %9280 = vmatpush1.bf16.msra.mxu0 %v11545_v27  ;;  %v11636_v27 = vld [vmem:[%s15603_s6 + $0x30] sm:$0xff]  }
 0x7d4   : > { %9281 = vmatprep.subr.bf16.mxu0 %v11550_v58  ;;  %v11637_v58 = vld [vmem:[%s15603_s6 + $0x78] sm:$0xff]   ;;  %10759 = vmatpush3.bf16.msra.mxu1 %v11636_v27 }
 0x7d5   : > { %10760 = vmatprep.subr.bf16.mxu1 %v11637_v58 }
 0x7d7   : > { %9282 = vmatpush1.bf16.msra.mxu0 %v11548_v17  ;;  %v9175_v17 = vlaneseq }
 0x7d8   : > { %9283 = vmatprep.subr.bf16.mxu0 %v11553_v14  ;;  %10761 = vmatpush3.bf16.msra.mxu1 %v11638_v8 }
 0x7d9   : > { %v9176_v14 = vshrl.u32 %v9175_v17, 7 }
 0x7db   : > { %9284 = vmatpush1.bf16.msra.mxu0 %v11551_v35  ;;  %v9177_v35 = vsub.s32 0, %v9176_v14 }
 0x7dc   : > { %9285 = vmatprep.subr.bf16.mxu0 %v11556_v0  ;;  %v8533_v0 = vld [vmem:[%s15612_s15] sm:$0x3] }
 0x7df   : > { %9286 = vmatpush1.bf16.msra.mxu0 %v11554_v34  ;;  %v9181_v34 = vsub.s32 1, %v9176_v14 }
 0x7e0   : > { %9287 = vmatprep.subr.bf16.mxu0 %v11559_v28  ;;  %v9178_v28 = vrot.slane %v8533_v0, %v9177_v35 }
 0x7e3   : > { %9288 = vmatpush1.bf16.msra.mxu0 %v11557_v45  ;;  %v9182_v45 = vrot.slane %v8533_v0, %v9181_v34 }
 0x7e4   : > { %9289 = vmatprep.subr.bf16.mxu0 %v11562_v62 }
 0x7e7   : > { %9290 = vmatpush1.bf16.msra.mxu0 %v11560_v42 }
 0x7e8   : > { %9291 = vmatprep.subr.bf16.mxu0 %v11565_v46 }
 0x7eb   : > { %9292 = vmatpush1.bf16.msra.mxu0 %v11563_v52 }
 0x7ec   : > { %9293 = vmatprep.subr.bf16.mxu0 %v11568_v1 }
 0x7ef   : > { %9294 = vmatpush1.bf16.msra.mxu0 %v11566_v33 }
 0x7f0   : > { %9295 = vmatprep.subr.bf16.mxu0 %v11571_v57 }
 0x7f3   : > { %9296 = vmatpush1.bf16.msra.mxu0 %v11569_v61 }
 0x7f4   : > { %9297 = vmatprep.subr.bf16.mxu0 %v11574_v29 }
 0x7f7   : > { %9298 = vmatpush1.bf16.msra.mxu0 %v11572_v41 }
 0x7f8   : > { %9308 = vmatprep.subr.bf16.mxu0 %v11577_v49 }
 0x7fa   : > { %9300 = vmatmul.mubr.bf16.vlgmr.msra.gmra.mrb[96].mxu0 %v8401_v31 }
 0x7fb   : > { %9309 = vmatpush1.bf16.msra.mxu0 %v11575_v16  ;;  %9340 = vmatprep.mubr.bf16.mxu0 %v8404_v11 }
 0x7fc   : > { %9310 = vmatprep.subr.bf16.mxu0 %v11580_v24 }
 0x7ff   : > { %9311 = vmatpush1.bf16.msra.mxu0 %v11578_v21 }
 0x800   : > { %9312 = vmatprep.subr.bf16.mxu0 %v11583_v20 }
 0x803   : > { %9313 = vmatpush1.bf16.msra.mxu0 %v11581_v19 }
 0x804   : > { %9314 = vmatprep.subr.bf16.mxu0 %v11586_v63 }
 0x807   : > { %9315 = vmatpush1.bf16.msra.mxu0 %v11584_v18 }
 0x808   : > { %9316 = vmatprep.subr.bf16.mxu0 %v11589_v55 }
 0x80b   : > { %9317 = vmatpush1.bf16.msra.mxu0 %v11587_v54 }
 0x80c   : > { %9318 = vmatprep.subr.bf16.mxu0 %v11592_v5 }
 0x80f   : > { %9319 = vmatpush1.bf16.msra.mxu0 %v11590_v48 }
 0x810   : > { %9320 = vmatprep.subr.bf16.mxu0 %v11595_v38 }
 0x813   : > { %9321 = vmatpush1.bf16.msra.mxu0 %v11593_v12 }
 0x814   : > { %9322 = vmatprep.subr.bf16.mxu0 %v11598_v36 }
 0x817   : > { %9323 = vmatpush1.bf16.msra.mxu0 %v11596_v37 }
 0x818   : > { %9324 = vmatprep.subr.bf16.mxu0 %v11601_v39 }
 0x81b   : > { %9325 = vmatpush1.bf16.msra.mxu0 %v11599_v9 }
 0x81c   : > { %9326 = vmatprep.subr.bf16.mxu0 %v11604_v15 }
 0x81f   : > { %9327 = vmatpush1.bf16.msra.mxu0 %v11602_v53 }
 0x820   : > { %9328 = vmatprep.subr.bf16.mxu0 %v11607_v22 }
 0x823   : > { %9329 = vmatpush1.bf16.msra.mxu0 %v11605_v32 }
 0x824   : > { %9330 = vmatprep.subr.bf16.mxu0 %v11610_v13 }
 0x827   : > { %9331 = vmatpush1.bf16.msra.mxu0 %v11608_v23 }
 0x828   : > { %9332 = vmatprep.subr.bf16.mxu0 %v11613_v6 }
 0x82b   : > { %9333 = vmatpush1.bf16.msra.mxu0 %v11611_v30 }
 0x82c   : > { %9334 = vmatprep.subr.bf16.mxu0 %v11616_v7 }
 0x82f   : > { %9335 = vmatpush1.bf16.msra.mxu0 %v11614_v10 }
 0x830   : > { %9336 = vmatprep.subr.bf16.mxu0 %v11619_v56 }
 0x833   : > { %9337 = vmatpush1.bf16.msra.mxu0 %v11617_v3 }
 0x834   : > { %9338 = vmatprep.subr.bf16.mxu0 %v11622_v2 }
 0x837   : > { %9339 = vmatpush1.bf16.msra.mxu0 %v11620_v4 }
 0x83a   : > { %9341 = vmatmul.mubr.bf16.vlgmr.msra.gmra.mrb[96].mxu0 %v8403_v60 }
 0x90d   : > { %v9342_v62 = vpop.f32.mrb[96].mxu0 }
 0x90e   : > { %v10972_v42 = vadd.f32 %v9342_v62, %v9178_v28  ;;  %v9344_v46 = vpop.f32.mrb[97].mxu0 }
 0x90f   : > { %v10973_v52 = vadd.f32 %v9344_v46, %v9182_v45  ;;  %v9346_v1 = vpop.f32.mrb[98].mxu0 }
 0x910   : > { %v9349_v33 = vmax.f32 %v10972_v42, 0.0  ;;  %v9347_v57 = vpop.f32.mrb[99].mxu0 }
 0x911   : > { %v9350_v44 = vmax.f32 %v10973_v52, 0.0 }
 0x912   : > { %v9351_v29 = vpack.c.bf16 %v9349_v33, %v9349_v33 }
 0x913   : > { %v9352_v61 = vpack.c.bf16 %v9350_v44, %v9350_v44 }
 0x915   : > { %9514 = vmatprep.mubr.bf16.mxu1 %v9352_v61 }
 0x916   : > { %9515 = vmatmul.mubr.bf16.vlgmr.msra.gmra.mrb[208].mxu1 %v9351_v29 }
 0x9e9   : > { %v10762_v26 = vpop.f32.mrb[208].mxu1 }
 0x9ea   : > { %v10763_v41 = vpop.f32.mrb[209].mxu1 }
 0x9eb   : > { %v10764_v49 = vadd.f32 %v10763_v41, %v10762_v26  ;;  %v10765_v25 = vpop.f32.mrb[210].mxu1 }
 0x9ec   : > { %v10766_v40 = vpop.f32.mrb[211].mxu1 }
 0x9ed   : > { %v9517_v59 = vadd.f32 %v10764_v49, %v9385_v43 }
 0x9ef   : > { %9522 = vst [vmem:[%s541_s0] sm:$0x1] %v9517_v59 }
 0x9f0   : > { %11690 = shalt.err (!%p11687_p3)
}
 0x9f1   : > { %s11691_s26 = scalar_lea.hbm %s15555_s21, 16  ;;  %s11695_s7 = scalar_lea.hbm %s15614_s17, 32 }
 0x9f2   : > { %p11692_p4 = scmp.ne.s32.totalorder %s15555_s21, %s11691_s26  ;;  %p11696_p9 = scmp.lt.u32.totalorder %s15555_s21, %s15614_s17 }
 0x9f3   : > { %p11697_p10 = scmp.lt.u32.totalorder %s11695_s7, %s11691_s26  ;;  %p11699_p12 = scmp.lt.u32.totalorder %s11691_s26, %s15555_s21 }
 0x9f4   : > { %p11693_p7 = pnand %p11692_p4, %p11874_p5 }
 0x9f5   : > { %p11698_p11 = por %p11697_p10, %p11696_p9 }
 0x9f6   : > { %p11694_p8 = pneg %p11693_p7 }
 0x9f7   : > { %p11700_p13 = por %p11699_p12, %p11698_p11 }
 0x9f9   : > { %p11701_p0 = pnand %p11700_p13, %p11694_p8 }
 0x9fb   : > { %11704 = shalt.err (!%p11701_p0)
}
 0x9fc   : > { %10986 = dma.vmem_to_hbm [thread:$0]  (%p11874_p5), %s15557_s3, 16, %s15555_s21, %s9524_s22  }
 0x9fd PF: > { %p10992_p1 = scmp.ge.s32.totalorder %s11739_s27, 2  ;;  %s9548_s19 = sand.u32 1, %s11727_s24  }
 0x9fe   : > { %s9549_s30 = scalar_lea.sflag [#allocation9], %s9548_s19 }
 0x9ff   : > { %p10989_p2 = pnand %p10992_p1, %p11878_p6 }
 0xa01   : > { %11722 = dma.done.wait (!%p10989_p2), %s9549_s30, 16  }
 0xa02   : > { %11724 = vsyncadd (!%p10989_p2), %s9549_s30, 4294967280  ;;  %s15831_s27 = sld [smem:[#allocation12_spill]]  ;;  %s15832_s2 = sld [smem:[#allocation11_spill]] }
 0xa03   : > { %s15833_s26 = sld [smem:[#allocation13_spill]]  ;;  %s15834_s24 = smov %s11731_s25 }
 0xa08   : > { %p27_p3 = scmp.ge.s32.totalorder %s15831_s27, 4   ;;  %s15835_s25 = smov %s15832_s2 }
 0xa0a   :  { %29 = sbr.rel (!%p27_p3) target bundleno = 9 (0x9), region = 214 }
 0xa11   :  { %9553 = vsyncpa [#allocation9], 1 }
 0xa12   :  { %9555 = vsyncpa [#allocation9 + $0x1], 1 }

</bundles_post_ra>
